<compile_context>
chip_gen: v7x
topology: tpu7x:2x2x1
jax: 0.10.0
libtpu: 0.0.40
codegen_flags: <defaults>
</compile_context>

<pallas_src>
import math
import numpy as np
import jax
import jax.numpy as jnp
from jax.experimental import pallas as pl
from jax.experimental.pallas import tpu as pltpu


def _round_up(x, m):
    return ((x + m - 1) // m) * m


# ----------------------------- Pallas kernel --------------------------------

def _mlp_render_kernel(feat_ref, view_ref,
                       w_feat_ref, w_view_ref,
                       w_sinf_ref, w_cosf_ref, w_sinv_ref, w_cosv_ref,
                       b0_ref, w1_ref, b1_ref, w2t_ref,
                       o_ref):
    feat = feat_ref[...]                       # [TN, C]  f32
    view = view_ref[...]                       # [TN, 3]  f32

    # Static PE orders, derived from the (static) weight-block shapes.
    feape = w_sinf_ref.shape[0] // feat.shape[-1]
    viewpe = w_sinv_ref.shape[0] // view.shape[-1]

    # Fused positional encoding, frequency-major column order (k*C + c).
    # Lane-concat of scaled copies avoids any reshape; sin/cos go to the EUP.
    pts_f = jnp.concatenate([feat * (2.0 ** k) for k in range(feape)], axis=-1)
    pts_v = jnp.concatenate([view * (2.0 ** k) for k in range(viewpe)], axis=-1)
    sin_f = jnp.sin(pts_f)
    cos_f = jnp.cos(pts_f)
    sin_v = jnp.sin(pts_v)
    cos_v = jnp.cos(pts_v)

    def mm(a, w_ref):
        # Matmul operands in the weights' dtype (bf16 by default), f32 accumulate.
        return jnp.dot(a.astype(w_ref.dtype), w_ref[...],
                       preferred_element_type=jnp.float32)

    # Layer 0:  h @ W0  ==  sum of partial matmuls over W0 row-blocks.
    x = (mm(feat, w_feat_ref) + mm(view, w_view_ref)
         + mm(sin_f, w_sinf_ref) + mm(cos_f, w_cosf_ref)
         + mm(sin_v, w_sinv_ref) + mm(cos_v, w_cosv_ref)
         + b0_ref[...])
    x = jnp.maximum(x, 0.0)

    # Layer 1.
    x = mm(x, w1_ref) + b1_ref[...]
    x = jnp.maximum(x, 0.0)

    # Layer 2 (no bias), computed transposed so the stored block is a
    # lane-dense [3, TN]:  out[o, n] = sum_h W2[h, o] * x[n, h].
    o = jax.lax.dot_general(w2t_ref[...], x.astype(w2t_ref.dtype),
                            dimension_numbers=(((1,), (1,)), ((), ())),
                            preferred_element_type=jnp.float32)
    o_ref[...] = jax.nn.sigmoid(o).astype(o_ref.dtype)


# ----------------------------- wrapper ---------------------------------------

def mlp_render_fea_pallas(viewdirs, features, params, *, viewpe=6, feape=2,
                          tile_n=1024, compute_dtype=jnp.bfloat16):
    """Forward pass. viewdirs: [N,3], features: [N,C] -> rgb [N,3] (f32)."""
    # TODO(synk): the fused-PE kernel assumes viewpe>0 and feape>0 (module defaults).
    assert viewpe > 0 and feape > 0, "fused kernel requires viewpe>0 and feape>0"
    w0, b0, w1, b1, w2 = params
    N, C = features.shape
    hidden = w0.shape[1]
    in_mlpC = w0.shape[0]

    # ---- tiling / padding ---------------------------------------------------
    # Lane-dense [3, tile] output block needs tile % 128 == 0.
    tile = min(int(tile_n), _round_up(N, 128))
    tile = _round_up(tile, 128)
    n_pad = _round_up(N, tile)
    if n_pad != N:
        features = jnp.pad(features, ((0, n_pad - N), (0, 0)))
        viewdirs = jnp.pad(viewdirs, ((0, n_pad - N), (0, 0)))
    grid = (n_pad // tile,)

    # ---- split & reorder W0 rows to the kernel's PE column order -------------
    # Original h layout: [features(C), viewdirs(3), PE_f sin|cos (c-major,k-minor),
    #                     PE_v sin|cos (c-major,k-minor)].
    # Kernel PE column order is frequency-major: column k*C + c.
    cdt = compute_dtype
    idx_f = np.array([c * feape + k for k in range(feape) for c in range(C)])
    idx_v = np.array([c * viewpe + k for k in range(viewpe) for c in range(3)])
    base_f = C + 3
    base_v = C + 3 + 2 * feape * C

    w_feat = w0[0:C].astype(cdt)                              # [C, hidden]
    w_view = w0[C:C + 3].astype(cdt)                          # [3, hidden]
    w_sinf = w0[base_f + idx_f].astype(cdt)                   # [feape*C, hidden]
    w_cosf = w0[base_f + feape * C + idx_f].astype(cdt)       # [feape*C, hidden]
    w_sinv = w0[base_v + idx_v].astype(cdt)                   # [viewpe*3, hidden]
    w_cosv = w0[base_v + viewpe * 3 + idx_v].astype(cdt)      # [viewpe*3, hidden]
    w1c = w1.astype(cdt)                                      # [hidden, hidden]
    w2t = w2.T.astype(cdt)                                    # [3, hidden]
    b0f = b0.astype(jnp.float32)                              # [1, hidden]
    b1f = b1.astype(jnp.float32)                              # [1, hidden]

    resident = lambda shape: pl.BlockSpec(shape, lambda i: (0, 0))
    in_specs = [
        pl.BlockSpec((tile, C), lambda i: (i, 0)),            # features tile
        pl.BlockSpec((tile, 3), lambda i: (i, 0)),            # viewdirs tile
        resident((C, hidden)),
        resident((3, hidden)),
        resident((feape * C, hidden)),
        resident((feape * C, hidden)),
        resident((viewpe * 3, hidden)),
        resident((viewpe * 3, hidden)),
        resident((1, hidden)),
        resident((hidden, hidden)),
        resident((1, hidden)),
        resident((3, hidden)),
    ]
    out_specs = pl.BlockSpec((3, tile), lambda i: (0, i))     # lane-dense output

    weights = (w_feat, w_view, w_sinf, w_cosf, w_sinv, w_cosv, b0f, w1c, b1f, w2t)
    flops = 2 * n_pad * (in_mlpC * hidden + hidden * hidden + hidden * 3)
    transcendentals = n_pad * (2 * (feape * C + viewpe * 3) + 3)
    bytes_accessed = (n_pad * ((C + 3) * 4 + 3 * 4)
                      + sum(int(np.prod(a.shape)) * a.dtype.itemsize for a in weights))

    out = pl.pallas_call(
        _mlp_render_kernel,
        out_shape=jax.ShapeDtypeStruct((3, n_pad), jnp.float32),
        grid_spec=pltpu.PrefetchScalarGridSpec(
            num_scalar_prefetch=0,
            grid=grid,
            in_specs=in_specs,
            out_specs=out_specs,
        ),
        compiler_params=pltpu.CompilerParams(
            dimension_semantics=("parallel",)),
        cost_estimate=pl.CostEstimate(flops=flops,
                                      transcendentals=transcendentals,
                                      bytes_accessed=bytes_accessed),
    )(features, viewdirs, *weights)

    return out[:, :N].T                                       # [N, 3]


# ----------------------------- parameter init --------------------------------

def init_params(key, in_mlpC, hidden_dim, num_layers=3):
    """Deterministic init mimicking torch.nn.Linear default U(-1/sqrt(fan_in), +)."""
    ks = jax.random.split(key, 2 * num_layers)
    dims = []
    for l in range(num_layers):
        in_dim = in_mlpC if l == 0 else hidden_dim
        out_dim = 3 if l == num_layers - 1 else hidden_dim
        dims.append((in_dim, out_dim))
    (i0, o0), (i1, o1), (i2, o2) = dims

    def lin(kw, kb, i, o, bias):
        bound = 1.0 / math.sqrt(i)
        w = jax.random.uniform(kw, (i, o), jnp.float32, -bound, bound)
        b = (jax.random.uniform(kb, (1, o), jnp.float32, -bound, bound)
             if bias else None)
        return w, b

    w0, b0 = lin(ks[0], ks[1], i0, o0, True)
    w1, b1 = lin(ks[2], ks[3], i1, o1, True)
    w2, _ = lin(ks[4], ks[5], i2, o2, False)
    return (w0, b0, w1, b1, w2)


# ----------------------------- reference (pure JAX) ---------------------------

def positional_encoding(positions, freqs):
    freq_bands = (2.0 ** jnp.arange(freqs)).astype(jnp.float32)
    pts = positions[..., None] * freq_bands
    pts = pts.reshape(positions.shape[:-1] + (freqs * positions.shape[-1],))
    return jnp.concatenate([jnp.sin(pts), jnp.cos(pts)], axis=-1)


def build_mlp_input(viewdirs, features, viewpe, feape):
    indata = [features, viewdirs]
    if feape > 0:
        indata.append(positional_encoding(features, feape))
    if viewpe > 0:
        indata.append(positional_encoding(viewdirs, viewpe))
    return jnp.concatenate(indata, axis=-1)


def reference_forward(viewdirs, features, params, viewpe=6, feape=2):
    w0, b0, w1, b1, w2 = params
    h = build_mlp_input(viewdirs, features, viewpe, feape)
    h = jnp.maximum(h @ w0 + b0, 0.0)
    h = jnp.maximum(h @ w1 + b1, 0.0)
    h = h @ w2
    return jax.nn.sigmoid(h)


# ----------------------------- main -------------------------------------------

if __name__ == "__main__":
    N = 256
    inChanel = 4
    viewpe, feape = 6, 2
    hidden_dim = 64
    in_mlpC = 3 + inChanel + 2 * viewpe * 3 + 2 * feape * inChanel   # = 59

    key = jax.random.PRNGKey(0)
    k_v, k_f, k_p = jax.random.split(key, 3)
    viewdirs = jax.random.normal(k_v, (N, 3), jnp.float32)
    viewdirs = viewdirs / jnp.linalg.norm(viewdirs, axis=-1, keepdims=True)
    features = jax.random.normal(k_f, (N, inChanel), jnp.float32)

    params = init_params(k_p, in_mlpC, hidden_dim)
    ref = reference_forward(viewdirs, features, params, viewpe, feape)

    # Structural check: f32 matmul path, small tile so the grid has >= 2 steps.
    rgb_f32 = mlp_render_fea_pallas(viewdirs, features, params,
                                    viewpe=viewpe, feape=feape,
                                    tile_n=128, compute_dtype=jnp.float32)
    rgb_f32 = jax.block_until_ready(rgb_f32)
    assert rgb_f32.shape == (N, 3)
    assert jnp.allclose(rgb_f32, ref, atol=1e-4, rtol=1e-4), "f32 path mismatch"

    # Default bf16-matmul path (f32 accumulation) — looser tolerance.
    rgb_bf16 = mlp_render_fea_pallas(viewdirs, features, params,
                                     viewpe=viewpe, feape=feape, tile_n=128)
    rgb_bf16 = jax.block_until_ready(rgb_bf16)
    assert rgb_bf16.shape == (N, 3)
    assert jnp.allclose(rgb_bf16, ref, atol=2e-2, rtol=2e-2), "bf16 path mismatch"

    print("KERNEL_OK")
</pallas_src>

<mosaic_0001>
module attributes {stable_mosaic.version = 11 : i64} {
  func.func @_mlp_render_kernel(%arg0: i32, %arg1: memref<128x4xf32, #tpu.memory_space<vmem>>, %arg2: memref<128x3xf32, #tpu.memory_space<vmem>>, %arg3: memref<4x64xf32, #tpu.memory_space<vmem>>, %arg4: memref<3x64xf32, #tpu.memory_space<vmem>>, %arg5: memref<8x64xf32, #tpu.memory_space<vmem>>, %arg6: memref<8x64xf32, #tpu.memory_space<vmem>>, %arg7: memref<18x64xf32, #tpu.memory_space<vmem>>, %arg8: memref<18x64xf32, #tpu.memory_space<vmem>>, %arg9: memref<1x64xf32, #tpu.memory_space<vmem>>, %arg10: memref<64x64xf32, #tpu.memory_space<vmem>>, %arg11: memref<1x64xf32, #tpu.memory_space<vmem>>, %arg12: memref<3x64xf32, #tpu.memory_space<vmem>>, %arg13: memref<3x128xf32, #tpu.memory_space<vmem>>) attributes {dimension_semantics = [#tpu.dimension_semantics<parallel>], iteration_bounds = array<i64: 2>, scalar_prefetch = 0 : i64, scratch_operands = 0 : i64, tpu.core_type = #tpu.core_type<tc>, window_params = [{transform_indices = @transform_0, window_bounds = array<i64: 128, 4>}, {transform_indices = @transform_1, window_bounds = array<i64: 128, 3>}, {pipeline_mode = #tpu.pipeline_mode<synchronous>, transform_indices = @transform_2, window_bounds = array<i64: 4, 64>}, {pipeline_mode = #tpu.pipeline_mode<synchronous>, transform_indices = @transform_3, window_bounds = array<i64: 3, 64>}, {pipeline_mode = #tpu.pipeline_mode<synchronous>, transform_indices = @transform_4, window_bounds = array<i64: 8, 64>}, {pipeline_mode = #tpu.pipeline_mode<synchronous>, transform_indices = @transform_5, window_bounds = array<i64: 8, 64>}, {pipeline_mode = #tpu.pipeline_mode<synchronous>, transform_indices = @transform_6, window_bounds = array<i64: 18, 64>}, {pipeline_mode = #tpu.pipeline_mode<synchronous>, transform_indices = @transform_7, window_bounds = array<i64: 18, 64>}, {pipeline_mode = #tpu.pipeline_mode<synchronous>, transform_indices = @transform_8, window_bounds = array<i64: 1, 64>}, {pipeline_mode = #tpu.pipeline_mode<synchronous>, transform_indices = @transform_9, window_bounds = array<i64: 64, 64>}, {pipeline_mode = #tpu.pipeline_mode<synchronous>, transform_indices = @transform_10, window_bounds = array<i64: 1, 64>}, {pipeline_mode = #tpu.pipeline_mode<synchronous>, transform_indices = @transform_11, window_bounds = array<i64: 3, 64>}, {transform_indices = @transform_12, window_bounds = array<i64: 3, 128>}]} {
    %c0 = arith.constant 0 : index
    %c0_0 = arith.constant 0 : index
    %0 = vector.load %arg1[%c0, %c0_0] : memref<128x4xf32, #tpu.memory_space<vmem>>, vector<128x4xf32>
    %c0_1 = arith.constant 0 : index
    %c0_2 = arith.constant 0 : index
    %1 = vector.load %arg2[%c0_1, %c0_2] : memref<128x3xf32, #tpu.memory_space<vmem>>, vector<128x3xf32>
    %cst = arith.constant 1.000000e+00 : f32
    %2 = vector.broadcast %cst : f32 to vector<128x4xf32>
    %3 = arith.mulf %0, %2 : vector<128x4xf32>
    %cst_3 = arith.constant 2.000000e+00 : f32
    %4 = vector.broadcast %cst_3 : f32 to vector<128x4xf32>
    %5 = arith.mulf %0, %4 : vector<128x4xf32>
    %6 = tpu.concatenate %3, %5 in 1 : vector<128x4xf32>, vector<128x4xf32> -> vector<128x8xf32>
    %cst_4 = arith.constant 1.000000e+00 : f32
    %7 = vector.broadcast %cst_4 : f32 to vector<128x3xf32>
    %8 = arith.mulf %1, %7 : vector<128x3xf32>
    %cst_5 = arith.constant 2.000000e+00 : f32
    %9 = vector.broadcast %cst_5 : f32 to vector<128x3xf32>
    %10 = arith.mulf %1, %9 : vector<128x3xf32>
    %cst_6 = arith.constant 4.000000e+00 : f32
    %11 = vector.broadcast %cst_6 : f32 to vector<128x3xf32>
    %12 = arith.mulf %1, %11 : vector<128x3xf32>
    %cst_7 = arith.constant 8.000000e+00 : f32
    %13 = vector.broadcast %cst_7 : f32 to vector<128x3xf32>
    %14 = arith.mulf %1, %13 : vector<128x3xf32>
    %cst_8 = arith.constant 1.600000e+01 : f32
    %15 = vector.broadcast %cst_8 : f32 to vector<128x3xf32>
    %16 = arith.mulf %1, %15 : vector<128x3xf32>
    %cst_9 = arith.constant 3.200000e+01 : f32
    %17 = vector.broadcast %cst_9 : f32 to vector<128x3xf32>
    %18 = arith.mulf %1, %17 : vector<128x3xf32>
    %19 = tpu.concatenate %8, %10, %12, %14, %16, %18 in 1 : vector<128x3xf32>, vector<128x3xf32>, vector<128x3xf32>, vector<128x3xf32>, vector<128x3xf32>, vector<128x3xf32> -> vector<128x18xf32>
    %20 = math.sin %6 : vector<128x8xf32>
    %21 = math.cos %6 : vector<128x8xf32>
    %22 = math.sin %19 : vector<128x18xf32>
    %23 = math.cos %19 : vector<128x18xf32>
    %c0_10 = arith.constant 0 : index
    %c0_11 = arith.constant 0 : index
    %24 = vector.load %arg3[%c0_10, %c0_11] : memref<4x64xf32, #tpu.memory_space<vmem>>, vector<4x64xf32>
    %cst_12 = arith.constant dense<0.000000e+00> : vector<128x64xf32>
    %25 = tpu.matmul %0, %24, %cst_12 {dimension_numbers = #tpu.dot_dimension_numbers<[1], [0], [0], [1], [0, 0, 1, 1], [], []>} : vector<128x4xf32>, vector<4x64xf32>, vector<128x64xf32> -> vector<128x64xf32>
    %c0_13 = arith.constant 0 : index
    %c0_14 = arith.constant 0 : index
    %26 = vector.load %arg4[%c0_13, %c0_14] : memref<3x64xf32, #tpu.memory_space<vmem>>, vector<3x64xf32>
    %cst_15 = arith.constant dense<0.000000e+00> : vector<128x64xf32>
    %27 = tpu.matmul %1, %26, %cst_15 {dimension_numbers = #tpu.dot_dimension_numbers<[1], [0], [0], [1], [0, 0, 1, 1], [], []>} : vector<128x3xf32>, vector<3x64xf32>, vector<128x64xf32> -> vector<128x64xf32>
    %28 = arith.addf %25, %27 : vector<128x64xf32>
    %c0_16 = arith.constant 0 : index
    %c0_17 = arith.constant 0 : index
    %29 = vector.load %arg5[%c0_16, %c0_17] : memref<8x64xf32, #tpu.memory_space<vmem>>, vector<8x64xf32>
    %cst_18 = arith.constant dense<0.000000e+00> : vector<128x64xf32>
    %30 = tpu.matmul %20, %29, %cst_18 {dimension_numbers = #tpu.dot_dimension_numbers<[1], [0], [0], [1], [0, 0, 1, 1], [], []>} : vector<128x8xf32>, vector<8x64xf32>, vector<128x64xf32> -> vector<128x64xf32>
    %31 = arith.addf %28, %30 : vector<128x64xf32>
    %c0_19 = arith.constant 0 : index
    %c0_20 = arith.constant 0 : index
    %32 = vector.load %arg6[%c0_19, %c0_20] : memref<8x64xf32, #tpu.memory_space<vmem>>, vector<8x64xf32>
    %cst_21 = arith.constant dense<0.000000e+00> : vector<128x64xf32>
    %33 = tpu.matmul %21, %32, %cst_21 {dimension_numbers = #tpu.dot_dimension_numbers<[1], [0], [0], [1], [0, 0, 1, 1], [], []>} : vector<128x8xf32>, vector<8x64xf32>, vector<128x64xf32> -> vector<128x64xf32>
    %34 = arith.addf %31, %33 : vector<128x64xf32>
    %c0_22 = arith.constant 0 : index
    %c0_23 = arith.constant 0 : index
    %35 = vector.load %arg7[%c0_22, %c0_23] : memref<18x64xf32, #tpu.memory_space<vmem>>, vector<18x64xf32>
    %cst_24 = arith.constant dense<0.000000e+00> : vector<128x64xf32>
    %36 = tpu.matmul %22, %35, %cst_24 {dimension_numbers = #tpu.dot_dimension_numbers<[1], [0], [0], [1], [0, 0, 1, 1], [], []>} : vector<128x18xf32>, vector<18x64xf32>, vector<128x64xf32> -> vector<128x64xf32>
    %37 = arith.addf %34, %36 : vector<128x64xf32>
    %c0_25 = arith.constant 0 : index
    %c0_26 = arith.constant 0 : index
    %38 = vector.load %arg8[%c0_25, %c0_26] : memref<18x64xf32, #tpu.memory_space<vmem>>, vector<18x64xf32>
    %cst_27 = arith.constant dense<0.000000e+00> : vector<128x64xf32>
    %39 = tpu.matmul %23, %38, %cst_27 {dimension_numbers = #tpu.dot_dimension_numbers<[1], [0], [0], [1], [0, 0, 1, 1], [], []>} : vector<128x18xf32>, vector<18x64xf32>, vector<128x64xf32> -> vector<128x64xf32>
    %40 = arith.addf %37, %39 : vector<128x64xf32>
    %c0_28 = arith.constant 0 : index
    %c0_29 = arith.constant 0 : index
    %41 = vector.load %arg9[%c0_28, %c0_29] : memref<1x64xf32, #tpu.memory_space<vmem>>, vector<1x64xf32>
    %42 = vector.broadcast %41 : vector<1x64xf32> to vector<128x64xf32>
    %43 = arith.addf %40, %42 : vector<128x64xf32>
    %cst_30 = arith.constant 0.000000e+00 : f32
    %44 = vector.broadcast %cst_30 : f32 to vector<128x64xf32>
    %45 = arith.maximumf %43, %44 : vector<128x64xf32>
    %c0_31 = arith.constant 0 : index
    %c0_32 = arith.constant 0 : index
    %46 = vector.load %arg10[%c0_31, %c0_32] : memref<64x64xf32, #tpu.memory_space<vmem>>, vector<64x64xf32>
    %cst_33 = arith.constant dense<0.000000e+00> : vector<128x64xf32>
    %47 = tpu.matmul %45, %46, %cst_33 {dimension_numbers = #tpu.dot_dimension_numbers<[1], [0], [0], [1], [0, 0, 1, 1], [], []>} : vector<128x64xf32>, vector<64x64xf32>, vector<128x64xf32> -> vector<128x64xf32>
    %c0_34 = arith.constant 0 : index
    %c0_35 = arith.constant 0 : index
    %48 = vector.load %arg11[%c0_34, %c0_35] : memref<1x64xf32, #tpu.memory_space<vmem>>, vector<1x64xf32>
    %49 = vector.broadcast %48 : vector<1x64xf32> to vector<128x64xf32>
    %50 = arith.addf %47, %49 : vector<128x64xf32>
    %cst_36 = arith.constant 0.000000e+00 : f32
    %51 = vector.broadcast %cst_36 : f32 to vector<128x64xf32>
    %52 = arith.maximumf %50, %51 : vector<128x64xf32>
    %c0_37 = arith.constant 0 : index
    %c0_38 = arith.constant 0 : index
    %53 = vector.load %arg12[%c0_37, %c0_38] : memref<3x64xf32, #tpu.memory_space<vmem>>, vector<3x64xf32>
    %cst_39 = arith.constant dense<0.000000e+00> : vector<3x128xf32>
    %54 = tpu.matmul %53, %52, %cst_39 {dimension_numbers = #tpu.dot_dimension_numbers<[1], [1], [0], [0], [0, 0, 1, 0], [], []>} : vector<3x64xf32>, vector<128x64xf32>, vector<3x128xf32> -> vector<3x128xf32>
    %55 = arith.negf %54 : vector<3x128xf32>
    %56 = math.exp %55 : vector<3x128xf32>
    %cst_40 = arith.constant 1.000000e+00 : f32
    %57 = vector.broadcast %cst_40 : f32 to vector<3x128xf32>
    %58 = arith.addf %57, %56 : vector<3x128xf32>
    %59 = arith.divf %57, %58 : vector<3x128xf32>
    %c0_41 = arith.constant 0 : index
    %c0_42 = arith.constant 0 : index
    %60 = vector.load %arg13[%c0_41, %c0_42] : memref<3x128xf32, #tpu.memory_space<vmem>>, vector<3x128xf32>
    tpu.vector_store %arg13[%c0_41, %c0_42], %59 {strides = array<i32>} : memref<3x128xf32, #tpu.memory_space<vmem>>, vector<3x128xf32>,
    return
  }
  func.func @transform_0(%arg0: i32) -> (i32, i32) {
    %c0_i32 = arith.constant 0 : i32
    %c0_i32_0 = arith.constant 0 : i32
    return %arg0, %c0_i32 : i32, i32
  }
  func.func @transform_1(%arg0: i32) -> (i32, i32) {
    %c0_i32 = arith.constant 0 : i32
    %c0_i32_0 = arith.constant 0 : i32
    return %arg0, %c0_i32 : i32, i32
  }
  func.func @transform_2(%arg0: i32) -> (i32, i32) {
    %c0_i32 = arith.constant 0 : i32
    %c0_i32_0 = arith.constant 0 : i32
    %c0_i32_1 = arith.constant 0 : i32
    return %c0_i32, %c0_i32_0 : i32, i32
  }
  func.func @transform_3(%arg0: i32) -> (i32, i32) {
    %c0_i32 = arith.constant 0 : i32
    %c0_i32_0 = arith.constant 0 : i32
    %c0_i32_1 = arith.constant 0 : i32
    return %c0_i32, %c0_i32_0 : i32, i32
  }
  func.func @transform_4(%arg0: i32) -> (i32, i32) {
    %c0_i32 = arith.constant 0 : i32
    %c0_i32_0 = arith.constant 0 : i32
    %c0_i32_1 = arith.constant 0 : i32
    return %c0_i32, %c0_i32_0 : i32, i32
  }
  func.func @transform_5(%arg0: i32) -> (i32, i32) {
    %c0_i32 = arith.constant 0 : i32
    %c0_i32_0 = arith.constant 0 : i32
    %c0_i32_1 = arith.constant 0 : i32
    return %c0_i32, %c0_i32_0 : i32, i32
  }
  func.func @transform_6(%arg0: i32) -> (i32, i32) {
    %c0_i32 = arith.constant 0 : i32
    %c0_i32_0 = arith.constant 0 : i32
    %c0_i32_1 = arith.constant 0 : i32
    return %c0_i32, %c0_i32_0 : i32, i32
  }
  func.func @transform_7(%arg0: i32) -> (i32, i32) {
    %c0_i32 = arith.constant 0 : i32
    %c0_i32_0 = arith.constant 0 : i32
    %c0_i32_1 = arith.constant 0 : i32
    return %c0_i32, %c0_i32_0 : i32, i32
  }
  func.func @transform_8(%arg0: i32) -> (i32, i32) {
    %c0_i32 = arith.constant 0 : i32
    %c0_i32_0 = arith.constant 0 : i32
    %c0_i32_1 = arith.constant 0 : i32
    return %c0_i32, %c0_i32_0 : i32, i32
  }
  func.func @transform_9(%arg0: i32) -> (i32, i32) {
    %c0_i32 = arith.constant 0 : i32
    %c0_i32_0 = arith.constant 0 : i32
    %c0_i32_1 = arith.constant 0 : i32
    return %c0_i32, %c0_i32_0 : i32, i32
  }
  func.func @transform_10(%arg0: i32) -> (i32, i32) {
    %c0_i32 = arith.constant 0 : i32
    %c0_i32_0 = arith.constant 0 : i32
    %c0_i32_1 = arith.constant 0 : i32
    return %c0_i32, %c0_i32_0 : i32, i32
  }
  func.func @transform_11(%arg0: i32) -> (i32, i32) {
    %c0_i32 = arith.constant 0 : i32
    %c0_i32_0 = arith.constant 0 : i32
    %c0_i32_1 = arith.constant 0 : i32
    return %c0_i32, %c0_i32_0 : i32, i32
  }
  func.func @transform_12(%arg0: i32) -> (i32, i32) {
    %c0_i32 = arith.constant 0 : i32
    %c0_i32_0 = arith.constant 0 : i32
    return %c0_i32, %arg0 : i32, i32
  }
}

</mosaic_0001>

<bundles_post_ra>
// kernel: tpu_custom_call.1
= control target key start
LH: loop header
LB: loop body
LE: loop exit
PB: predicated region body
PF: predicated region fallthrough
CT: control target
= control target key end

     0   :  { %s15200_s0 = inlined_call_operand.vmem [shape: f32[256,4], index: 0, kind: input, shape index: {}]   ;;  %s15201_s1 = inlined_call_operand.vmem [shape: f32[256,3], index: 1, kind: input, shape index: {}]   ;;  %s15202_s2 = inlined_call_operand.vmem [shape: f32[4,64], index: 2, kind: input, shape index: {}]   ;;  %s15203_s3 = inlined_call_operand.vmem [shape: f32[3,64], index: 3, kind: input, shape index: {}]   ;;  %s15204_s4 = inlined_call_operand.vmem [shape: f32[8,64], index: 4, kind: input, shape index: {}]   ;;  %s15205_s5 = inlined_call_operand.vmem [shape: f32[8,64], index: 5, kind: input, shape index: {}]   ;;  %s15206_s6 = inlined_call_operand.vmem [shape: f32[18,64], index: 6, kind: input, shape index: {}]   ;;  %s15207_s7 = inlined_call_operand.vmem [shape: f32[18,64], index: 7, kind: input, shape index: {}]   ;;  %s15208_s8 = inlined_call_operand.vmem [shape: f32[1,64], index: 8, kind: input, shape index: {}]   ;;  %s15209_s9 = inlined_call_operand.vmem [shape: f32[64,64], index: 9, kind: input, shape index: {}]   ;;  %s15210_s10 = inlined_call_operand.vmem [shape: f32[1,64], index: 10, kind: input, shape index: {}]   ;;  %s15211_s11 = inlined_call_operand.vmem [shape: f32[3,64], index: 11, kind: input, shape index: {}]   ;;  %s15212_s12 = inlined_call_operand.hbm [shape: f32[3,256], index: 12, kind: output, shape index: {}]  }
   0x1   :  { %15478 = sst [smem:[#allocation69_spill]] %s15200_s0 }
   0x2   :  { %15479 = sst [smem:[#allocation70_spill]] %s15201_s1 }
   0x3   :  { %17 = vsyncpa [#allocation3], 0 }
   0x4   :  { %19 = vsyncpa [#allocation3 + $0x1], 0  ;;  %s10846_s21 = smov 0   ;;  %s10848_s22 = smov 0  }
   0x5   :  { %s10850_s23 = smov 0   ;;  %s10852_s24 = smov 0  }
   0x6 LB: > { %s10867_s25 = sadd.s32 4294967295, %s10763_s24   ;;  %s9401_s26 = sadd.s32 4294967294, %s10763_s24   ;;  %s10763_s24 = sphi %s10852_s24, %s15966_s24   ;;  %s10759_s23 = sphi %s10850_s23, %s15965_s23   ;;  %s10755_s22 = sphi %s10848_s22, %s15964_s22   ;;  %s10751_s21 = sphi %s10846_s21, %s15963_s21  }
   0x7   : > { %s10871_s27 = sadd.s32 1, %s10763_s24   ;;  %s294_s28 = sadd.s32 1, %s10759_s23 }
   0x8   : > { %s291_s29 = ssub.s32 %s10763_s24, %s10871_s27  ;;  %p304_p0 = scmp.ne.s32.totalorder %s10759_s23, %s10755_s22 }
   0x9   : > { %p292_p1 = scmp.eq.s32.totalorder %s291_s29, 0  ;;  %p305_p2 = scmp.eq.s32.totalorder %s10867_s25, 1 }
   0xa   : > { %p310_p3 = scmp.ne.s32.totalorder %s10755_s22, %s10751_s21  ;;  %p311_p4 = scmp.eq.s32.totalorder %s9401_s26, 1 }
   0xb   : > { %s10882_s30 = scalar_select %p292_p1, %s10759_s23, %s294_s28  }
   0xc   : > { %p10884_p5 = por %p305_p2, %p304_p0  ;;  %p10888_p6 = por %p311_p4, %p310_p3 }
   0xd   : > { %p9404_p7 = scmp.ge.s32.totalorder %s10763_s24, 1  ;;  %p377_p8 = scmp.lt.s32.totalorder %s10763_s24, 3 }
   0xf   : > { %p378_p9 = pnand %p9404_p7, %p377_p8 }
  0x11   : > { %381 = sbr.rel (%p378_p9) target bundleno = 1807 (0x70f), region = 68 }
  0x18   : > { %s9406_s15 = sshll.u32 %s10867_s25, 4  ;;  %s15482_s0 = sld [smem:[#allocation69_spill]]  ;;  %vm15312_vm0 = vcmask 31744  }
  0x19   : > { %p425_p10 = scmp.lt.s32.totalorder %s9406_s15, 31  ;;  %s10765_s20 = smov 4  }
  0x1a   : > { %s15483_s1 = sld [smem:[#allocation70_spill]]  ;;  %s10768_s17 = smov 9  }
  0x1b   : > { %s15968_s15 = smov (!%p425_p10, %s9406_s15), 31  ;;  %s10769_s18 = smov 12  }
  0x1c   : > { %s9407_s16 = sshll.u32 %s15968_s15, 3  ;;  %s10766_s15 = smov 3  }
  0x1d   : > { %s421_s28 = sand.u32 1, %s10755_s22  }
  0x1e   : > { %s10903_s19 = scalar_lea.vmem %s15482_s0, %s9407_s16  ;;  %s9317_s26 = scalar_lea.sflag [#allocation3], %s421_s28 }
  0x1f   : > { %v10906_v0 = vld [vmem:[%s10903_s19 + $0x10] sm:$0xff]  ;;  %v10909_v1 = vld [vmem:[%s10903_s19] sm:$0xff]  ;;  %v10912_v2 = vld [vmem:[%s10903_s19 + $0x18] sm:$0xff] }
  0x20   : > { %v470_v3 = vmul.f32 2.0, %v10906_v0  ;;  %v468_v4 = vmul.f32 2.0, %v10909_v1  ;;  %v10917_v5 = vld [vmem:[%s10903_s19 + $0x8] sm:$0xff]  ;;  %v471_v6 = vmul.f32 2.0, %v10912_v2  ;;  %v10927_v9 = vld [vmem:[%s10903_s19 + $0x20] sm:$0xff]  ;;  %v10934_v12 = vld [vmem:[%s10903_s19 + $0x38] sm:$0xff]  ;;  %s10959_s29 = scalar_lea.vmem %s15483_s1, %s9407_s16 }
  0x21   : > { %v469_v7 = vmul.f32 2.0, %v10917_v5  ;;  %v10924_v8 = vld [vmem:[%s10903_s19 + $0x28] sm:$0xff]  ;;  %v472_v11 = vmul.f32 2.0, %v10927_v9  ;;  %v442_v13 = vld [vmem:[%s10903_s19 + $0x30] sm:$0xff]  ;;  %v475_v14 = vmul.f32 2.0, %v10934_v12  ;;  %v444_v17 = vld [vmem:[%s10903_s19 + $0x40] sm:$0xff] }
  0x22   : > { %504 = vrot.lane.b32.xlu1 %v470_v3, %s10765_s20  ;;  %500 = vrot.lane.b32.xlu0 %v468_v4, %s10765_s20  ;;  %v473_v10 = vmul.f32 2.0, %v10924_v8  ;;  %v474_v15 = vmul.f32 2.0, %v442_v13  ;;  %v445_v16 = vld [vmem:[%s10903_s19 + $0x48] sm:$0xff]  ;;  %v476_v19 = vmul.f32 2.0, %v444_v17  ;;  %v447_v20 = vld [vmem:[%s10903_s19 + $0x58] sm:$0xff]  ;;  %s10767_s16 = smov 6  }
  0x23   : > { %v477_v18 = vmul.f32 2.0, %v445_v16  ;;  %v446_v21 = vld [vmem:[%s10903_s19 + $0x50] sm:$0xff]  ;;  %v479_v22 = vmul.f32 2.0, %v447_v20  ;;  %v449_v24 = vld [vmem:[%s10903_s19 + $0x68] sm:$0xff]  ;;  %v448_v25 = vld [vmem:[%s10903_s19 + $0x60] sm:$0xff] }
  0x24   : > { %v478_v23 = vmul.f32 2.0, %v446_v21  ;;  %v481_v26 = vmul.f32 2.0, %v449_v24  ;;  %v480_v27 = vmul.f32 2.0, %v448_v25  ;;  %v451_v28 = vld [vmem:[%s10903_s19 + $0x78] sm:$0xff]  ;;  %v450_v29 = vld [vmem:[%s10903_s19 + $0x70] sm:$0xff]  ;;  %v453_v32 = vld [vmem:[%s10959_s29 + $0x8] sm:$0xff] }
  0x25   : > { %v483_v30 = vmul.f32 2.0, %v451_v28  ;;  %v482_v31 = vmul.f32 2.0, %v450_v29  ;;  %v452_v33 = vld [vmem:[%s10959_s29] sm:$0xff]  ;;  %v566_v34 = vmul.f32 2.0, %v453_v32  ;;  %v582_v36 = vmul.f32 4.0, %v453_v32  ;;  %v454_v40 = vld [vmem:[%s10959_s29 + $0x10] sm:$0xff] }
  0x26   : > { %506 = vrot.lane.b32.xlu1 %v471_v6, %s10765_s20  ;;  %502 = vrot.lane.b32.xlu0 %v469_v7, %s10765_s20  ;;  %v565_v35 = vmul.f32 2.0, %v452_v33  ;;  %v581_v37 = vmul.f32 4.0, %v452_v33  ;;  %v598_v38 = vmul.f32 8.0, %v453_v32  ;;  %v597_v39 = vmul.f32 8.0, %v452_v33  ;;  %v455_v45 = vld [vmem:[%s10959_s29 + $0x18] sm:$0xff]  ;;  %v456_v52 = vld [vmem:[%s10959_s29 + $0x20] sm:$0xff] }
  0x27   : > { %v567_v41 = vmul.f32 2.0, %v454_v40  ;;  %v613_v42 = vmul.f32 16.0, %v452_v33  ;;  %v629_v43 = vmul.f32 32.0, %v452_v33  ;;  %v614_v44 = vmul.f32 16.0, %v453_v32  ;;  %v457_v57 = vld [vmem:[%s10959_s29 + $0x28] sm:$0xff]  ;;  %v458_v3 = vld [vmem:[%s10959_s29 + $0x30] sm:$0xff] }
  0x28   : > { %v583_v46 = vmul.f32 4.0, %v454_v40  ;;  %v568_v47 = vmul.f32 2.0, %v455_v45  ;;  %v584_v48 = vmul.f32 4.0, %v455_v45  ;;  %v630_v49 = vmul.f32 32.0, %v453_v32  ;;  %v461_v24 = vld [vmem:[%s10959_s29 + $0x48] sm:$0xff] }
  0x29   : > { %v600_v50 = vmul.f32 8.0, %v455_v45  ;;  %v599_v51 = vmul.f32 8.0, %v454_v40  ;;  %v569_v53 = vmul.f32 2.0, %v456_v52  ;;  %v615_v54 = vmul.f32 16.0, %v454_v40 }
  0x2a   : > { %510 = vrot.lane.b32.xlu1 %v473_v10, %s10765_s20  ;;  %508 = vrot.lane.b32.xlu0 %v472_v11, %s10765_s20  ;;  %v631_v55 = vmul.f32 32.0, %v454_v40  ;;  %v616_v56 = vmul.f32 16.0, %v455_v45  ;;  %v585_v58 = vmul.f32 4.0, %v456_v52  ;;  %v570_v59 = vmul.f32 2.0, %v457_v57  ;;  %v459_v11 = vld [vmem:[%s10959_s29 + $0x38] sm:$0xff] }
  0x2b   : > { %v586_v60 = vmul.f32 4.0, %v457_v57  ;;  %v632_v61 = vmul.f32 32.0, %v455_v45  ;;  %v602_v62 = vmul.f32 8.0, %v457_v57  ;;  %v601_v63 = vmul.f32 8.0, %v456_v52 }
  0x2c   : > { %v571_v4 = vmul.f32 2.0, %v458_v3  ;;  %v617_v6 = vmul.f32 16.0, %v456_v52  ;;  %v633_v7 = vmul.f32 32.0, %v456_v52  ;;  %v618_v10 = vmul.f32 16.0, %v457_v57 }
  0x2d   : > { %v587_v13 = vmul.f32 4.0, %v458_v3  ;;  %v634_v16 = vmul.f32 32.0, %v457_v57  ;;  %v604_v17 = vmul.f32 8.0, %v459_v11  ;;  %v619_v21 = vmul.f32 16.0, %v458_v3 }
  0x2e   : > { %514 = vrot.lane.b32.xlu1 %v475_v14, %s10765_s20  ;;  %512 = vrot.lane.b32.xlu0 %v474_v15, %s10765_s20  ;;  %v572_v14 = vmul.f32 2.0, %v459_v11  ;;  %v588_v15 = vmul.f32 4.0, %v459_v11  ;;  %v636_v28 = vmul.f32 32.0, %v459_v11  ;;  %v606_v33 = vmul.f32 8.0, %v461_v24 }
  0x32   : > { %518 = vrot.lane.b32.xlu1 %v477_v18, %s10765_s20  ;;  %516 = vrot.lane.b32.xlu0 %v476_v19, %s10765_s20  ;;  %v603_v18 = vmul.f32 8.0, %v458_v3  ;;  %v11008_v19 = vld [vmem:[%s10959_s29 + $0x40] sm:$0xff] }
  0x33   : > { %v573_v20 = vmul.f32 2.0, %v11008_v19  ;;  %v589_v25 = vmul.f32 4.0, %v11008_v19 }
  0x36   : > { %522 = vrot.lane.b32.xlu1 %v479_v22, %s10765_s20  ;;  %520 = vrot.lane.b32.xlu0 %v478_v23, %s10765_s20  ;;  %v635_v22 = vmul.f32 32.0, %v458_v3  ;;  %v620_v23 = vmul.f32 16.0, %v459_v11  ;;  %v15222_v11 = vmov 2102212464  }
  0x3a   : > { %526 = vrot.lane.b32.xlu1 %v481_v26, %s10765_s20  ;;  %524 = vrot.lane.b32.xlu0 %v480_v27, %s10765_s20  ;;  %v574_v26 = vmul.f32 2.0, %v461_v24  ;;  %v590_v27 = vmul.f32 4.0, %v461_v24 }
  0x3e   : > { %530 = vrot.lane.b32.xlu1 %v483_v30, %s10765_s20  ;;  %528 = vrot.lane.b32.xlu0 %v482_v31, %s10765_s20  ;;  %s10770_s20 = smov 15  }
  0x42   : > { %663 = vrot.lane.b32.xlu1 %v566_v34, %s10766_s15  ;;  %661 = vrot.lane.b32.xlu0 %v565_v35, %s10766_s15 }
  0x46   : > { %727 = vrot.lane.b32.xlu1 %v582_v36, %s10767_s16  ;;  %725 = vrot.lane.b32.xlu0 %v581_v37, %s10767_s16  ;;  %v605_v37 = vmul.f32 8.0, %v11008_v19 }
  0x4a   : > { %791 = vrot.lane.b32.xlu1 %v598_v38, %s10768_s17  ;;  %789 = vrot.lane.b32.xlu0 %v597_v39, %s10768_s17  ;;  %v462_v38 = vld [vmem:[%s10959_s29 + $0x50] sm:$0xff] }
  0x4b   : > { %v575_v45 = vmul.f32 2.0, %v462_v38 }
  0x4e   : > { %665 = vrot.lane.b32.xlu1 %v567_v41, %s10766_s15  ;;  %853 = vrot.lane.b32.xlu0 %v613_v42, %s10769_s18 }
  0x52   : > { %917 = vrot.lane.b32.xlu1 %v629_v43, %s10770_s20  ;;  %855 = vrot.lane.b32.xlu0 %v614_v44, %s10769_s18 }
  0x56   : > { %729 = vrot.lane.b32.xlu1 %v583_v46, %s10767_s16  ;;  %667 = vrot.lane.b32.xlu0 %v568_v47, %s10766_s15  ;;  %v621_v46 = vmul.f32 16.0, %v11008_v19 }
  0x5a   : > { %731 = vrot.lane.b32.xlu1 %v584_v48, %s10767_s16  ;;  %919 = vrot.lane.b32.xlu0 %v630_v49, %s10770_s20 }
  0x5e   : > { %795 = vrot.lane.b32.xlu1 %v600_v50, %s10768_s17  ;;  %793 = vrot.lane.b32.xlu0 %v599_v51, %s10768_s17 }
  0x62   : > { %669 = vrot.lane.b32.xlu1 %v569_v53, %s10766_s15  ;;  %857 = vrot.lane.b32.xlu0 %v615_v54, %s10769_s18 }
  0x66   : > { %921 = vrot.lane.b32.xlu1 %v631_v55, %s10770_s20  ;;  %859 = vrot.lane.b32.xlu0 %v616_v56, %s10769_s18 }
  0x6a   : > { %733 = vrot.lane.b32.xlu1 %v585_v58, %s10767_s16  ;;  %671 = vrot.lane.b32.xlu0 %v570_v59, %s10766_s15 }
  0x6e   : > { %735 = vrot.lane.b32.xlu1 %v586_v60, %s10767_s16  ;;  %923 = vrot.lane.b32.xlu0 %v632_v61, %s10770_s20  ;;  %v15227_v61 = vmov 683565275  }
  0x72   : > { %799 = vrot.lane.b32.xlu1 %v602_v62, %s10768_s17  ;;  %797 = vrot.lane.b32.xlu0 %v601_v63, %s10768_s17 }
  0x76   : > { %673 = vrot.lane.b32.xlu1 %v571_v4, %s10766_s15  ;;  %861 = vrot.lane.b32.xlu0 %v617_v6, %s10769_s18  ;;  %v15224_v4 = vmov 2475754826  }
  0x7a   : > { %925 = vrot.lane.b32.xlu1 %v633_v7, %s10770_s20  ;;  %863 = vrot.lane.b32.xlu0 %v618_v10, %s10769_s18  ;;  %v15216_v7 = vmov 2131351028  }
  0x7e   : > { %737 = vrot.lane.b32.xlu1 %v587_v13, %s10767_s16  ;;  %675 = vrot.lane.b32.xlu0 %v572_v14, %s10766_s15  ;;  %v15220_v14 = vmov 920167782  }
  0x82   : > { %739 = vrot.lane.b32.xlu1 %v588_v15, %s10767_s16  ;;  %927 = vrot.lane.b32.xlu0 %v634_v16, %s10770_s20 }
  0x86   : > { %803 = vrot.lane.b32.xlu1 %v604_v17, %s10768_s17  ;;  %801 = vrot.lane.b32.xlu0 %v603_v18, %s10768_s17 }
  0x8a   : > { %677 = vrot.lane.b32.xlu1 %v573_v20, %s10766_s15  ;;  %865 = vrot.lane.b32.xlu0 %v619_v21, %s10769_s18 }
  0x8e   : > { %929 = vrot.lane.b32.xlu1 %v635_v22, %s10770_s20  ;;  %867 = vrot.lane.b32.xlu0 %v620_v23, %s10769_s18  ;;  %v15218_v22 = vmov 1326507024  }
  0x92   : > { %741 = vrot.lane.b32.xlu1 %v589_v25, %s10767_s16  ;;  %679 = vrot.lane.b32.xlu0 %v574_v26, %s10766_s15 }
  0x94   : > { %v505_v29 = vpop.permute.xlu1 %504  ;;  %v501_v30 = vpop.permute.xlu0 %500 }
  0x95   : > { %v11023_v31 = vsel %vm15312_vm0, %v10906_v0, %v505_v29  ;;  %v11027_v32 = vsel %vm15312_vm0, %v10909_v1, %v501_v30 }
  0x96   : > { %15484 = vst [vmem:[#allocation5_spill] sm:$0xff] %v11023_v31  ;;  %15485 = vst [vmem:[#allocation6_spill] sm:$0xff] %v11027_v32  ;;  %v1258_v34 = vand.u32 2147483647, %v11023_v31  ;;  %v1261_v35 = vand.u32 2139095040, %v11023_v31  ;;  %743 = vrot.lane.b32.xlu1 %v590_v27, %s10767_s16  ;;  %931 = vrot.lane.b32.xlu0 %v636_v28, %s10770_s20  ;;  %v1053_v0 = vand.u32 2139095040, %v11027_v32 }
  0x97   : > { %v1050_v36 = vand.u32 2147483647, %v11027_v32 }
  0x98   : > { %v1262_v39 = vshrl.u32 %v1261_v35, 23  ;;  %v507_v40 = vpop.permute.xlu1 %506  ;;  %v1265_v1 = vand.u32 8388607, %v1258_v34  ;;  %v1054_v41 = vshrl.u32 %v1053_v0, 23 }
  0x99   : > { %v1057_v42 = vand.u32 8388607, %v1050_v36  ;;  %v11043_v43 = vsel %vm15312_vm0, %v10912_v2, %v507_v40 }
  0x9a   : > { %15486 = vst [vmem:[#allocation7_spill] sm:$0xff] %v11043_v43  ;;  %v9418_v44 = vadd.s32 4294967169, %v1262_v39  ;;  %807 = vrot.lane.b32.xlu1 %v606_v33, %s10768_s17  ;;  %805 = vrot.lane.b32.xlu0 %v605_v37, %s10768_s17  ;;  %v9410_v47 = vadd.s32 4294967169, %v1054_v41  ;;  %v1365_v48 = vand.u32 2139095040, %v11043_v43  ;;  %v1266_v50 = vor.u32 8388608, %v1265_v1 }
  0x9b   : > { %v1058_v51 = vor.u32 8388608, %v1057_v42 }
  0x9c   : > { %v1268_v49 = vadd.s32 1, %v9418_v44  ;;  %v1060_v52 = vadd.s32 1, %v9410_v47  ;;  %v1366_v53 = vshrl.u32 %v1365_v48, 23  ;;  %v11051_v57 = vshll.u32 %v1266_v50, 8 }
  0x9d   : > { %v11053_v58 = vshll.u32 %v1058_v51, 8 }
  0x9e   : > { %vm1269_vm1 = vcmp.gt.s32.totalorder %v1268_v49, 0  ;;  %681 = vrot.lane.b32.xlu1 %v575_v45, %s10766_s15  ;;  %869 = vrot.lane.b32.xlu0 %v621_v46, %s10769_s18  ;;  %vm1061_vm2 = vcmp.gt.s32.totalorder %v1060_v52, 0  ;;  %v9422_v59 = vadd.s32 4294967169, %v1366_v53 }
  0x9f   : > { %v1270_v2 = vsel %vm1269_vm1, %v1268_v49, 0  ;;  %v1062_v56 = vsel %vm1061_vm2, %v1060_v52, 0 }
  0xa0   : > { %v1271_v54 = vshrl.u32 %v1270_v2, 5  ;;  %v1272_v55 = vand.u32 31, %v1270_v2  ;;  %v11056_v63 = vshrl.u32 %v1062_v56, 5  ;;  %v1064_v3 = vand.u32 31, %v1062_v56 }
  0xa2   : > { %v1273_v60 = vsub.s32 32, %v1272_v55  ;;  %v1275_v62 = vshll.u32 %v15227_v61, %v1272_v55  ;;  %v1278_v6 = vshll.u32 %v15224_v4, %v1272_v55  ;;  %v1281_v10 = vshll.u32 %v15216_v7, %v1272_v55 }
  0xa3   : > { %v1284_v13 = vshll.u32 %v15222_v11, %v1272_v55  ;;  %v1287_v15 = vshll.u32 %v15220_v14, %v1272_v55  ;;  %vm1290_vm3 = vcmp.lt.s32.totalorder %v1271_v54, 1  ;;  %vm1291_vm4 = vcmp.lt.s32.totalorder %v1271_v54, 2 }
  0xa4   : > { %v1276_v16 = vshrl.u32 %v15224_v4, %v1273_v60  ;;  %v1279_v17 = vshrl.u32 %v15216_v7, %v1273_v60  ;;  %v1282_v18 = vshrl.u32 %v15222_v11, %v1273_v60  ;;  %v1274_v20 = vshrl.u32 %v15227_v61, %v1273_v60 }
  0xa5   : > { %v1285_v21 = vshrl.u32 %v15220_v14, %v1273_v60  ;;  %v1288_v23 = vshrl.u32 %v15218_v22, %v1273_v60  ;;  %v1065_v27 = vsub.s32 32, %v1064_v3  ;;  %vm1292_vm5 = vcmp.lt.s32.totalorder %v1271_v54, 3 }
  0xa6   : > { %v1277_v24 = vor.u32 %v1276_v16, %v1275_v62  ;;  %v1280_v25 = vor.u32 %v1279_v17, %v1278_v6  ;;  %v1283_v26 = vor.u32 %v1282_v18, %v1281_v10  ;;  %vm1293_vm6 = vcmp.lt.s32.totalorder %v1271_v54, 4 }
  0xa7   : > { %v1286_v28 = vor.u32 %v1285_v21, %v1284_v13  ;;  %v1289_v29 = vor.u32 %v1288_v23, %v1287_v15  ;;  %v1067_v40 = vshll.u32 %v15227_v61, %v1064_v3  ;;  %v1068_v42 = vshrl.u32 %v15224_v4, %v1065_v27 }
  0xa8   : > { %v1294_v30 = vsel %vm1290_vm3, %v1274_v20, %v1277_v24  ;;  %v1295_v33 = vsel %vm1293_vm6, %v1283_v26, 2102212464  ;;  %v1298_v35 = vsel %vm1290_vm3, %v1277_v24, %v1280_v25  ;;  %v1302_v37 = vsel %vm1290_vm3, %v1280_v25, %v1283_v26 }
  0xa9   : > { %v1296_v0 = vsel %vm1292_vm5, %v1280_v25, %v1295_v33  ;;  %v1299_v38 = vsel %vm1293_vm6, %v1286_v28, 920167782  ;;  %v1303_v39 = vsel %vm1293_vm6, %v1289_v29, 1326507024  ;;  %v1070_v44 = vshll.u32 %v15224_v4, %v1064_v3 }
  0xaa   : > { %v1300_v1 = vsel %vm1292_vm5, %v1283_v26, %v1299_v38  ;;  %v1304_v41 = vsel %vm1292_vm5, %v1286_v28, %v1303_v39  ;;  %v1297_v45 = vsel %vm1291_vm4, %v1294_v30, %v1296_v0  ;;  %v1071_v48 = vshrl.u32 %v15216_v7, %v1065_v27  ;;  %v503_v0 = vpop.permute.xlu0 %502 }
  0xab   : > { %v1301_v46 = vsel %vm1291_vm4, %v1298_v35, %v1300_v1  ;;  %v1305_v47 = vsel %vm1291_vm4, %v1302_v37, %v1304_v41  ;;  %v1069_v53 = vor.u32 %v1068_v42, %v1067_v40  ;;  %v1073_v55 = vshll.u32 %v15216_v7, %v1064_v3 }
  0xac   : > { %v11079_v49 = vmul.u32.u64.low %v11051_v57, %v1305_v47  ;;  %v11080_v50 = vmul.u32.u64.high %v11051_v57, %v1305_v47, %v11079_v49  ;;  %v11083_v51 = vmul.u32.u64.low %v11051_v57, %v1301_v46  ;;  %v11084_v52 = vmul.u32.u64.high %v11051_v57, %v1301_v46, %v11083_v51 }
  0xad   : > { %v1072_v2 = vor.u32 %v1071_v48, %v1070_v44  ;;  %v1074_v56 = vshrl.u32 %v15222_v11, %v1065_v27  ;;  %v1076_v54 = vshll.u32 %v15222_v11, %v1064_v3  ;;  %v1077_v60 = vshrl.u32 %v15220_v14, %v1065_v27 }
  0xae   : > { %v1080_v62 = vshrl.u32 %v15218_v22, %v1065_v27  ;;  %v1372_v6 = vadd.s32 1, %v9422_v59  ;;  %v1313_v10 = vmul.u32 %v11051_v57, %v1297_v45  ;;  %v1066_v13 = vshrl.u32 %v15227_v61, %v1065_v27 }
  0xaf   : > { %v1075_v15 = vor.u32 %v1074_v56, %v1073_v55  ;;  %v1079_v16 = vshll.u32 %v15220_v14, %v1064_v3  ;;  %vm1315_vm7 = vc.u32 %v11080_v50, %v11083_v51  ;;  %v1316_v17 = vadd.s32 1, %v11084_v52 }
  0xb0   : > { %v1078_v18 = vor.u32 %v1077_v60, %v1076_v54  ;;  %vm1082_vm8 = vcmp.lt.s32.totalorder %v11056_v63, 1  ;;  %vm1083_vm9 = vcmp.lt.s32.totalorder %v11056_v63, 2  ;;  %vm1085_vm10 = vcmp.lt.s32.totalorder %v11056_v63, 4 }
  0xb1   : > { %v1081_v20 = vor.u32 %v1080_v62, %v1079_v16  ;;  %v1090_v59 = vsel %vm1082_vm8, %v1069_v53, %v1072_v2  ;;  %v1317_v57 = vsel %vm1315_vm7, %v1316_v17, %v11084_v52  ;;  %vm1084_vm11 = vcmp.lt.s32.totalorder %v11056_v63, 3 }
  0xb2   : > { %v1091_v21 = vsel %vm1085_vm10, %v1078_v18, 920167782  ;;  %v1094_v3 = vsel %vm1082_vm8, %v1072_v2, %v1075_v15  ;;  %v1318_v23 = vadd.s32 %v1317_v57, %v1313_v10  ;;  %v1087_v24 = vsel %vm1085_vm10, %v1075_v15, 2102212464 }
  0xb3   : > { %v1092_v25 = vsel %vm1084_vm11, %v1075_v15, %v1091_v21  ;;  %v1095_v26 = vsel %vm1085_vm10, %v1081_v20, 1326507024  ;;  %v1086_v27 = vsel %vm1082_vm8, %v1066_v13, %v1069_v53  ;;  %vm1373_vm12 = vcmp.gt.s32.totalorder %v1372_v6, 0 }
  0xb4   : > { %v1093_v28 = vsel %vm1083_vm9, %v1090_v59, %v1092_v25  ;;  %v1096_v29 = vsel %vm1084_vm11, %v1078_v18, %v1095_v26  ;;  %v1319_v30 = vadd.s32 536870912, %v1318_v23  ;;  %v1088_v38 = vsel %vm1084_vm11, %v1072_v2, %v1087_v24 }
  0xb5   : > { %v1097_v33 = vsel %vm1083_vm9, %v1094_v3, %v1096_v29  ;;  %v11108_v35 = vmul.u32.u64.low %v11053_v58, %v1093_v28  ;;  %v11109_v37 = vmul.u32.u64.high %v11053_v58, %v1093_v28, %v11108_v35  ;;  %v1374_v1 = vsel %vm1373_vm12, %v1372_v6, 0 }
  0xb6   : > { %v11113_v39 = vmul.u32.u64.low %v11053_v58, %v1097_v33  ;;  %v11114_v40 = vmul.u32.u64.high %v11053_v58, %v1097_v33, %v11113_v39  ;;  %v1362_v41 = vand.u32 2147483647, %v11043_v43  ;;  %v1376_v42 = vand.u32 31, %v1374_v1 }
  0xb7   : > { %v11119_v44 = vsel %vm15312_vm0, %v10917_v5, %v503_v0  ;;  %v11121_v45 = vshrl.u32 %v1319_v30, 30  ;;  %v1089_v46 = vsel %vm1083_vm9, %v1086_v27, %v1088_v38  ;;  %v1108_v47 = vadd.s32 1, %v11109_v37 }
  0xb8   : > { %15487 = vst [vmem:[#allocation8_spill] sm:$0xff] %v11119_v44  ;;  %v1377_v48 = vsub.s32 32, %v1376_v42  ;;  %vm1107_vm13 = vc.u32 %v11114_v40, %v11108_v35  ;;  %v1369_v52 = vand.u32 8388607, %v1362_v41  ;;  %v1157_v53 = vand.u32 2139095040, %v11119_v44 }
  0xb9   : > { %v1109_v49 = vsel %vm1107_vm13, %v1108_v47, %v11109_v37  ;;  %v1105_v5 = vmul.u32 %v11053_v58, %v1089_v46  ;;  %v1375_v2 = vshrl.u32 %v1374_v1, 5  ;;  %v1321_v56 = vshll.u32 %v11121_v45, 30 }
  0xba   : > { %v1380_v55 = vshrl.u32 %v15224_v4, %v1377_v48  ;;  %v1383_v63 = vshrl.u32 %v15216_v7, %v1377_v48  ;;  %v1379_v54 = vshll.u32 %v15227_v61, %v1376_v42  ;;  %v1382_v60 = vshll.u32 %v15224_v4, %v1376_v42 }
  0xbb   : > { %v1386_v62 = vshrl.u32 %v15222_v11, %v1377_v48  ;;  %v1110_v6 = vadd.s32 %v1109_v49, %v1105_v5  ;;  %v1385_v10 = vshll.u32 %v15216_v7, %v1376_v42  ;;  %v1388_v13 = vshll.u32 %v15222_v11, %v1376_v42 }
  0xbc   : > { %v1389_v58 = vshrl.u32 %v15220_v14, %v1377_v48  ;;  %v1381_v15 = vor.u32 %v1380_v55, %v1379_v54  ;;  %v1384_v16 = vor.u32 %v1383_v63, %v1382_v60  ;;  %v1391_v17 = vshll.u32 %v15220_v14, %v1376_v42 }
  0xbd   : > { %v1392_v18 = vshrl.u32 %v15218_v22, %v1377_v48  ;;  %v1370_v20 = vor.u32 8388608, %v1369_v52  ;;  %v1387_v59 = vor.u32 %v1386_v62, %v1385_v10  ;;  %v11144_v21 = vsub.s32 %v1318_v23, %v1321_v56 }
  0xbe   : > { %v1390_v57 = vor.u32 %v1389_v58, %v1388_v13  ;;  %v1111_v24 = vadd.s32 536870912, %v1110_v6  ;;  %vm1394_vm14 = vcmp.lt.s32.totalorder %v1375_v2, 1  ;;  %vm1397_vm15 = vcmp.lt.s32.totalorder %v1375_v2, 4 }
  0xbf   : > { %v1393_v3 = vor.u32 %v1392_v18, %v1391_v17  ;;  %v1158_v25 = vshrl.u32 %v1157_v53, 23  ;;  %vm1396_vm1 = vcmp.lt.s32.totalorder %v1375_v2, 3  ;;  %v1402_v26 = vsel %vm1394_vm14, %v1381_v15, %v1384_v16 }
  0xc0   : > { %v1403_v27 = vsel %vm1397_vm15, %v1390_v57, 920167782  ;;  %v1410_v29 = vshll.u32 %v1370_v20, 8  ;;  %v1324_v30 = vsub.s32 0, %v11144_v21  ;;  %vm1395_vm2 = vcmp.lt.s32.totalorder %v1375_v2, 2 }
  0xc1   : > { %v1404_v28 = vsel %vm1396_vm1, %v1387_v59, %v1403_v27  ;;  %v1406_v33 = vsel %vm1394_vm14, %v1384_v16, %v1387_v59  ;;  %v1407_v37 = vsel %vm1397_vm15, %v1393_v3, 1326507024  ;;  %v11150_v23 = vshrl.u32 %v1111_v24, 30  ;;  %v511_v3 = vpop.permute.xlu1 %510 }
  0xc2   : > { %v1405_v0 = vsel %vm1395_vm2, %v1402_v26, %v1404_v28  ;;  %v1408_v38 = vsel %vm1396_vm1, %v1390_v57, %v1407_v37  ;;  %v9414_v39 = vadd.s32 4294967169, %v1158_v25  ;;  %v1399_v1 = vsel %vm1397_vm15, %v1387_v59, 2102212464 }
  0xc3   : > { %v1409_v42 = vsel %vm1395_vm2, %v1406_v33, %v1408_v38  ;;  %v1378_v46 = vshrl.u32 %v15227_v61, %v1377_v48  ;;  %v9419_v52 = vmin.u32 %v1324_v30, %v11144_v21  ;;  %v1113_v55 = vshll.u32 %v11150_v23, 30 }
  0xc4   : > { %v11156_v47 = vmul.u32.u64.low %v1410_v29, %v1409_v42  ;;  %v11157_v49 = vmul.u32.u64.high %v1410_v29, %v1409_v42, %v11156_v47  ;;  %v11160_v53 = vmul.u32.u64.low %v1410_v29, %v1405_v0  ;;  %v11161_v5 = vmul.u32.u64.high %v1410_v29, %v1405_v0, %v11160_v53 }
  0xc5   : > { %v1398_v63 = vsel %vm1394_vm14, %v1378_v46, %v1381_v15  ;;  %v1400_v56 = vsel %vm1396_vm1, %v1384_v16, %v1399_v1  ;;  %v1164_v54 = vadd.s32 1, %v9414_v39  ;;  %v1326_v48 = vclz %v9419_v52 }
  0xc6   : > { %vm1419_vm3 = vc.u32 %v11157_v49, %v11160_v53  ;;  %v1401_v60 = vsel %vm1395_vm2, %v1398_v63, %v1400_v56  ;;  %v1420_v62 = vadd.s32 1, %v11161_v5  ;;  %v11171_v13 = vsub.s32 %v1110_v6, %v1113_v55 }
  0xc7   : > { %vm1165_vm4 = vcmp.gt.s32.totalorder %v1164_v54, 0  ;;  %v1417_v18 = vmul.u32 %v1410_v29, %v1401_v60  ;;  %v1154_v15 = vand.u32 2147483647, %v11119_v44  ;;  %v9420_v16 = vadd.s32 4294967294, %v1326_v48 }
  0xc8   : > { %v1166_v10 = vsel %vm1165_vm4, %v1164_v54, 0  ;;  %v1421_v17 = vsel %vm1419_vm3, %v1420_v62, %v11161_v5  ;;  %v1116_v59 = vsub.s32 0, %v11171_v13  ;;  %v11183_v26 = vsel %vm15312_vm0, %v10924_v8, %v511_v3 }
  0xc9   : > { %v1168_v58 = vand.u32 31, %v1166_v10  ;;  %v1422_v57 = vadd.s32 %v1421_v17, %v1417_v18  ;;  %v1161_v2 = vand.u32 8388607, %v1154_v15  ;;  %vm9421_vm5 = vcmp.lt.s32.totalorder %v9420_v16, 0  ;;  %15488 = vst [vmem:[#allocation9_spill] sm:$0xff] %v11183_v26 }
  0xca   : > { %v9411_v27 = vmin.u32 %v1116_v59, %v11171_v13  ;;  %v1167_v33 = vshrl.u32 %v1166_v10, 5  ;;  %v1573_v8 = vand.u32 2139095040, %v11183_v26  ;;  %v11197_v63 = vsel %vm9421_vm5, 0, %v9420_v16 }
  0xcb   : > { %v1169_v20 = vsub.s32 32, %v1168_v58  ;;  %v1423_v28 = vadd.s32 536870912, %v1422_v57  ;;  %v1171_v29 = vshll.u32 %v15227_v61, %v1168_v58  ;;  %v1174_v30 = vshll.u32 %v15224_v4, %v1168_v58 }
  0xcc   : > { %v1177_v37 = vshll.u32 %v15216_v7, %v1168_v58  ;;  %v1180_v0 = vshll.u32 %v15222_v11, %v1168_v58  ;;  %v1162_v39 = vor.u32 8388608, %v1161_v2  ;;  %v1183_v52 = vshll.u32 %v15220_v14, %v1168_v58 }
  0xcd   : > { %v1172_v24 = vshrl.u32 %v15224_v4, %v1169_v20  ;;  %v1175_v6 = vshrl.u32 %v15216_v7, %v1169_v20  ;;  %v1178_v25 = vshrl.u32 %v15222_v11, %v1169_v20  ;;  %v1181_v38 = vshrl.u32 %v15220_v14, %v1169_v20 }
  0xce   : > { %v1184_v5 = vshrl.u32 %v15218_v22, %v1169_v20  ;;  %v11194_v55 = vshrl.u32 %v1423_v28, 30  ;;  %v1118_v56 = vclz %v9411_v27  ;;  %vm1186_vm6 = vcmp.lt.s32.totalorder %v1167_v33, 1 }
  0xcf   : > { %v1173_v1 = vor.u32 %v1172_v24, %v1171_v29  ;;  %v1176_v42 = vor.u32 %v1175_v6, %v1174_v30  ;;  %v1179_v46 = vor.u32 %v1178_v25, %v1177_v37  ;;  %v1182_v47 = vor.u32 %v1181_v38, %v1180_v0 }
  0xd0   : > { %v1185_v54 = vor.u32 %v1184_v5, %v1183_v52  ;;  %vm1189_vm7 = vcmp.lt.s32.totalorder %v1167_v33, 4  ;;  %v1202_v60 = vshll.u32 %v1162_v39, 8  ;;  %v1574_v62 = vshrl.u32 %v1573_v8, 23 }
  0xd1   : > { %v1194_v48 = vsel %vm1186_vm6, %v1173_v1, %v1176_v42  ;;  %vm1188_vm8 = vcmp.lt.s32.totalorder %v1167_v33, 3  ;;  %v1195_v10 = vsel %vm1189_vm7, %v1182_v47, 920167782  ;;  %v1198_v17 = vsel %vm1186_vm6, %v1176_v42, %v1179_v46 }
  0xd2   : > { %v1199_v58 = vsel %vm1189_vm7, %v1185_v54, 1326507024  ;;  %v1425_v18 = vshll.u32 %v11194_v55, 30  ;;  %vm1187_vm9 = vcmp.lt.s32.totalorder %v1167_v33, 2  ;;  %v1191_v59 = vsel %vm1189_vm7, %v1179_v46, 2102212464 }
  0xd3   : > { %v1196_v16 = vsel %vm1188_vm8, %v1179_v46, %v1195_v10  ;;  %v9412_v3 = vadd.s32 4294967294, %v1118_v56  ;;  %v1170_v2 = vshrl.u32 %v15227_v61, %v1169_v20  ;;  %v1200_v6 = vsel %vm1188_vm8, %v1182_v47, %v1199_v58 }
  0xd4   : > { %v1197_v24 = vsel %vm1187_vm9, %v1194_v48, %v1196_v16  ;;  %v1334_v25 = vsub.s32 4294967266, %v11197_v63  ;;  %v1201_v27 = vsel %vm1187_vm9, %v1198_v17, %v1200_v6  ;;  %v9430_v28 = vadd.s32 4294967169, %v1574_v62  ;;  %v509_v6 = vpop.permute.xlu0 %508 }
  0xd5   : > { %v1190_v29 = vsel %vm1186_vm6, %v1170_v2, %v1173_v1  ;;  %v1192_v30 = vsel %vm1188_vm8, %v1176_v42, %v1191_v59  ;;  %v11210_v37 = vmul.u32.u64.low %v1202_v60, %v1201_v27  ;;  %v11211_v0 = vmul.u32.u64.high %v1202_v60, %v1201_v27, %v11210_v37 }
  0xd6   : > { %v11213_v38 = vsub.s32 %v1422_v57, %v1425_v18  ;;  %v11215_v39 = vmul.u32.u64.low %v1202_v60, %v1197_v24  ;;  %v11216_v20 = vmul.u32.u64.high %v1202_v60, %v1197_v24, %v11215_v39  ;;  %v1580_v8 = vadd.s32 1, %v9430_v28 }
  0xd7   : > { %vm9413_vm10 = vcmp.lt.s32.totalorder %v9412_v3, 0  ;;  %v1330_v46 = vsub.s32 32, %v11197_v63  ;;  %v1193_v47 = vsel %vm1187_vm9, %v1190_v29, %v1192_v30  ;;  %v1314_v1 = vadd.s32 %v11083_v51, %v11080_v50 }
  0xd8   : > { %vm1581_vm11 = vcmp.gt.s32.totalorder %v1580_v8, 0  ;;  %v1335_v42 = vadd.s32 127, %v1334_v25  ;;  %vm1211_vm12 = vc.u32 %v11211_v0, %v11215_v39  ;;  %v11225_v52 = vsel %vm9413_vm10, 0, %v9412_v3 }
  0xd9   : > { %v1582_v57 = vsel %vm1581_vm11, %v1580_v8, 0  ;;  %v1428_v5 = vsub.s32 0, %v11213_v38  ;;  %v1212_v56 = vadd.s32 1, %v11216_v20  ;;  %v15226_v54 = vand.u32 2147483647, %v11183_v26 }
  0xda   : > { %v1209_v48 = vmul.u32 %v1202_v60, %v1193_v47  ;;  %v1584_v33 = vand.u32 31, %v1582_v57  ;;  %v1331_v62 = vshll.u32 %v11144_v21, %v11197_v63  ;;  %v1332_v10 = vshrl.u32 %v1314_v1, %v1330_v46 }
  0xdb   : > { %v1213_v50 = vsel %vm1211_vm12, %v1212_v56, %v11216_v20  ;;  %v1336_v51 = vshll.u32 %v1335_v42, 23  ;;  %v1126_v17 = vsub.s32 4294967266, %v11225_v52  ;;  %v9423_v59 = vmin.u32 %v1428_v5, %v11213_v38 }
  0xdc   : > { %v1214_v58 = vadd.s32 %v1213_v50, %v1209_v48  ;;  %v1585_v18 = vsub.s32 32, %v1584_v33  ;;  %v1577_v16 = vand.u32 8388607, %v15226_v54  ;;  %v11237_v3 = vshrl.u32 %v1582_v57, 5 }
  0xdd   : > { %v1587_v60 = vshll.u32 %v15227_v61, %v1584_v33  ;;  %v1590_v63 = vshll.u32 %v15224_v4, %v1584_v33  ;;  %v1593_v25 = vshll.u32 %v15216_v7, %v1584_v33  ;;  %v1596_v28 = vshll.u32 %v15222_v11, %v1584_v33 }
  0xde   : > { %v1215_v2 = vadd.s32 536870912, %v1214_v58  ;;  %v1588_v21 = vshrl.u32 %v15224_v4, %v1585_v18  ;;  %v1591_v24 = vshrl.u32 %v15216_v7, %v1585_v18  ;;  %v1594_v27 = vshrl.u32 %v15222_v11, %v1585_v18 }
  0xdf   : > { %v1597_v29 = vshrl.u32 %v15220_v14, %v1585_v18  ;;  %v1600_v8 = vshrl.u32 %v15218_v22, %v1585_v18  ;;  %v1599_v1 = vshll.u32 %v15220_v14, %v1584_v33  ;;  %v11253_v42 = vsel %vm15312_vm0, %v10927_v9, %v509_v6 }
  0xe0   : > { %v11247_v30 = vshrl.u32 %v1215_v2, 30  ;;  %v1589_v37 = vor.u32 %v1588_v21, %v1587_v60  ;;  %v1592_v20 = vor.u32 %v1591_v24, %v1590_v63  ;;  %v1595_v46 = vor.u32 %v1594_v27, %v1593_v25  ;;  %15489 = vst [vmem:[#allocation10_spill] sm:$0xff] %v11253_v42 }
  0xe1   : > { %v1598_v47 = vor.u32 %v1597_v29, %v1596_v28  ;;  %v1333_v57 = vor.u32 %v1332_v10, %v1331_v62  ;;  %v1337_v5 = vor.u32 4788187, %v1336_v51  ;;  %v1127_v56 = vadd.s32 127, %v1126_v17 }
  0xe2   : > { %v1217_v48 = vshll.u32 %v11247_v30, 30  ;;  %v1578_v50 = vor.u32 8388608, %v1577_v16  ;;  %v1601_v2 = vor.u32 %v1600_v8, %v1599_v1  ;;  %vm1602_vm13 = vcmp.lt.s32.totalorder %v11237_v3, 1 }
  0xe3   : > { %vm1605_vm14 = vcmp.lt.s32.totalorder %v11237_v3, 4  ;;  %v1430_v60 = vclz %v9423_v59  ;;  %vm1604_vm15 = vcmp.lt.s32.totalorder %v11237_v3, 3  ;;  %v1610_v33 = vsel %vm1602_vm13, %v1589_v37, %v1592_v20 }
  0xe4   : > { %v1611_v9 = vsel %vm1605_vm14, %v1598_v47, 920167782  ;;  %v1106_v62 = vadd.s32 %v11108_v35, %v11114_v40  ;;  %v1469_v51 = vand.u32 2139095040, %v11253_v42  ;;  %v1340_v17 = vcvt.s32.f32 %v1333_v57 }
  0xe5   : > { %v1612_v10 = vsel %vm1604_vm15, %v1595_v46, %v1611_v9  ;;  %v1122_v16 = vsub.s32 32, %v11225_v52  ;;  %v11269_v59 = vsub.s32 %v1214_v58, %v1217_v48  ;;  %vm1603_vm1 = vcmp.lt.s32.totalorder %v11237_v3, 2  ;;  %v515_v58 = vpop.permute.xlu1 %514 }
  0xe6   : > { %v1613_v21 = vsel %vm1603_vm1, %v1610_v33, %v1612_v10  ;;  %v1614_v63 = vsel %vm1602_vm13, %v1592_v20, %v1595_v46  ;;  %v1615_v35 = vsel %vm1605_vm14, %v1601_v2, 1326507024  ;;  %v1618_v40 = vshll.u32 %v1578_v50, 8 }
  0xe7   : > { %v1338_v24 = vand.u32 2147483647, %v1337_v5  ;;  %v1128_v6 = vshll.u32 %v1127_v56, 23  ;;  %v9424_v25 = vadd.s32 4294967294, %v1430_v60  ;;  %v1616_v27 = vsel %vm1604_vm15, %v1598_v47, %v1615_v35 }
  0xe8   : > { %v1617_v28 = vsel %vm1603_vm1, %v1614_v63, %v1616_v27  ;;  %v11282_v29 = vmul.u32.u64.low %v1618_v40, %v1613_v21  ;;  %v11283_v8 = vmul.u32.u64.high %v1618_v40, %v1613_v21, %v11282_v29  ;;  %v1470_v1 = vshrl.u32 %v1469_v51, 23 }
  0xe9   : > { %v1220_v57 = vsub.s32 0, %v11269_v59  ;;  %v1607_v48 = vsel %vm1605_vm14, %v1595_v46, 2102212464  ;;  %v11289_v5 = vmul.u32.u64.low %v1618_v40, %v1617_v28  ;;  %v11290_v56 = vmul.u32.u64.high %v1618_v40, %v1617_v28, %v11289_v5 }
  0xea   : > { %v1124_v50 = vshrl.u32 %v1106_v62, %v1122_v16  ;;  %v1586_v47 = vshrl.u32 %v15227_v61, %v1585_v18  ;;  %v9426_v2 = vadd.s32 4294967169, %v1470_v1  ;;  %v11295_v60 = vsel %vm15312_vm0, %v10934_v12, %v515_v58 }
  0xeb   : > { %15490 = vst [vmem:[#allocation11_spill] sm:$0xff] %v11295_v60  ;;  %v1341_v33 = vmul.f32 %v1340_v17, %v1338_v24  ;;  %v1123_v9 = vshll.u32 %v11171_v13, %v11225_v52  ;;  %vm9425_vm2 = vcmp.lt.s32.totalorder %v9424_v25, 0  ;;  %v637_v10 = vmul.f32 32.0, %v11008_v19 }
  0xec   : > { %v1129_v51 = vor.u32 4788187, %v1128_v6  ;;  %v1606_v46 = vsel %vm1602_vm13, %v1586_v47, %v1589_v37  ;;  %v1608_v62 = vsel %vm1604_vm15, %v1592_v20, %v1607_v48  ;;  %v1476_v18 = vadd.s32 1, %v9426_v2 }
  0xed   : > { %v1344_v16 = vsub.s32 4, %v11121_v45  ;;  %v9415_v12 = vmin.u32 %v1220_v57, %v11269_v59  ;;  %v1628_v17 = vadd.s32 1, %v11283_v8  ;;  %933 = vrot.lane.b32.xlu1 %v637_v10, %s10770_s20  ;;  %v1125_v13 = vor.u32 %v1124_v50, %v1123_v9 }
  0xee   : > { %v11308_v52 = vsel %vm9425_vm2, 0, %v9424_v25  ;;  %vm1627_vm3 = vc.u32 %v11290_v56, %v11282_v29  ;;  %vm1477_vm4 = vcmp.gt.s32.totalorder %v1476_v18, 0  ;;  %v1342_v19 = vxor.u32 2147483648, %v1341_v33 }
  0xef   : > { %v1609_v37 = vsel %vm1603_vm1, %v1606_v46, %v1608_v62  ;;  %v15214_v20 = vand.u32 2147483647, %v11253_v42  ;;  %v1781_v21 = vand.u32 2139095040, %v11295_v60  ;;  %v1130_v63 = vand.u32 2147483647, %v1129_v51 }
  0xf0   : > { %v1478_v35 = vsel %vm1477_vm4, %v1476_v18, 0  ;;  %vm1260_vm5 = vcmp.lt.s32.totalorder %v11023_v31, 0  ;;  %v1438_v24 = vsub.s32 4294967266, %v11308_v52  ;;  %v1222_v6 = vclz %v9415_v12 }
  0xf1   : > { %v1629_v25 = vsel %vm1627_vm3, %v1628_v17, %v11283_v8  ;;  %v11320_v27 = vsel %vm1260_vm5, %v1344_v16, %v11121_v45  ;;  %v1132_v58 = vcvt.s32.f32 %v1125_v13  ;;  %v1625_v28 = vmul.u32 %v1618_v40, %v1609_v37 }
  0xf2   : > { %v1480_v3 = vand.u32 31, %v1478_v35  ;;  %v1343_v1 = vsel %vm1260_vm5, %v1342_v19, %v1341_v33  ;;  %v1418_v57 = vadd.s32 %v11160_v53, %v11157_v49  ;;  %v1473_v48 = vand.u32 8388607, %v15214_v20 }
  0xf3   : > { %v1782_v5 = vshrl.u32 %v1781_v21, 23  ;;  %v11326_v50 = vmul.f32 %v1132_v58, %v1130_v63  ;;  %v1434_v47 = vsub.s32 32, %v11308_v52  ;;  %v11329_v2 = vadd.s32 %v1629_v25, %v1625_v28 }
  0xf4   : > { %v1481_v8 = vsub.s32 32, %v1480_v3  ;;  %v1435_v45 = vshll.u32 %v11213_v38, %v11308_v52  ;;  %v1439_v40 = vadd.s32 127, %v1438_v24  ;;  %v9416_v9 = vadd.s32 4294967294, %v1222_v6 }
  0xf5   : > { %v1483_v33 = vshll.u32 %v15227_v61, %v1480_v3  ;;  %v1486_v53 = vshll.u32 %v15224_v4, %v1480_v3  ;;  %v1474_v46 = vor.u32 8388608, %v1473_v48  ;;  %v1479_v62 = vshrl.u32 %v1478_v35, 5 }
  0xf6   : > { %v1484_v49 = vshrl.u32 %v15224_v4, %v1481_v8  ;;  %v1487_v10 = vshrl.u32 %v15216_v7, %v1481_v8  ;;  %v1490_v51 = vshrl.u32 %v15222_v11, %v1481_v8  ;;  %v1489_v18 = vshll.u32 %v15216_v7, %v1480_v3 }
  0xf7   : > { %v9438_v16 = vadd.s32 4294967169, %v1782_v5  ;;  %v1436_v12 = vshrl.u32 %v1418_v57, %v1434_v47  ;;  %v1631_v38 = vadd.s32 536870912, %v11329_v2  ;;  %vm11342_vm6 = vcmp.le.f32.partialorder %v1258_v34, 0.7853982 }
  0xf8   : > { %v1485_v17 = vor.u32 %v1484_v49, %v1483_v33  ;;  %v1488_v13 = vor.u32 %v1487_v10, %v1486_v53  ;;  %v1440_v19 = vshll.u32 %v1439_v40, 23  ;;  %v1491_v37 = vor.u32 %v1490_v51, %v1489_v18 }
  0xf9   : > { %v1492_v21 = vshll.u32 %v15222_v11, %v1480_v3  ;;  %v1493_v63 = vshrl.u32 %v15220_v14, %v1481_v8  ;;  %vm9417_vm7 = vcmp.lt.s32.totalorder %v9416_v9, 0  ;;  %v1495_v35 = vshll.u32 %v15220_v14, %v1480_v3 }
  0xfa   : > { %v1496_v24 = vshrl.u32 %v15218_v22, %v1481_v8  ;;  %v15213_v6 = vand.u32 2147483647, %v11295_v60  ;;  %vm1498_vm8 = vcmp.lt.s32.totalorder %v1479_v62, 1  ;;  %v1514_v58 = vshll.u32 %v1474_v46, 8 }
  0xfb   : > { %v1494_v25 = vor.u32 %v1493_v63, %v1492_v21  ;;  %v1788_v34 = vadd.s32 1, %v9438_v16  ;;  %v11351_v28 = vshrl.u32 %v1631_v38, 30  ;;  %vm1501_vm9 = vcmp.lt.s32.totalorder %v1479_v62, 4 }
  0xfc   : > { %v1497_v57 = vor.u32 %v1496_v24, %v1495_v35  ;;  %v1506_v48 = vsel %vm1498_vm8, %v1485_v17, %v1488_v13  ;;  %v11354_v5 = vsel %vm9417_vm7, 0, %v9416_v9  ;;  %vm1500_vm10 = vcmp.lt.s32.totalorder %v1479_v62, 3 }
  0xfd   : > { %v1507_v47 = vsel %vm1501_vm9, %v1494_v25, 920167782  ;;  %v1510_v3 = vsel %vm1498_vm8, %v1488_v13, %v1491_v37  ;;  %vm1499_vm11 = vcmp.lt.s32.totalorder %v1479_v62, 2  ;;  %v1503_v40 = vsel %vm1501_vm9, %v1491_v37, 2102212464 }
  0xfe   : > { %v1508_v33 = vsel %vm1500_vm10, %v1491_v37, %v1507_v47  ;;  %v1511_v49 = vsel %vm1501_vm9, %v1497_v57, 1326507024  ;;  %v1482_v53 = vshrl.u32 %v15227_v61, %v1481_v8  ;;  %vm1789_vm12 = vcmp.gt.s32.totalorder %v1788_v34, 0 }
  0xff   : > { %v1509_v10 = vsel %vm1499_vm11, %v1506_v48, %v1508_v33  ;;  %v1512_v51 = vsel %vm1500_vm10, %v1494_v25, %v1511_v49  ;;  %v1633_v46 = vshll.u32 %v11351_v28, 30  ;;  %v1504_v21 = vsel %vm1500_vm10, %v1488_v13, %v1503_v40 }
 0x100   : > { %v1513_v18 = vsel %vm1499_vm11, %v1510_v3, %v1512_v51  ;;  %v11361_v9 = vmul.u32.u64.low %v1514_v58, %v1509_v10  ;;  %v11362_v16 = vmul.u32.u64.high %v1514_v58, %v1509_v10, %v11361_v9  ;;  %v1502_v38 = vsel %vm1498_vm8, %v1482_v53, %v1485_v17 }
 0x101   : > { %v11366_v63 = vmul.u32.u64.low %v1514_v58, %v1513_v18  ;;  %v11367_v37 = vmul.u32.u64.high %v1514_v58, %v1513_v18, %v11366_v63  ;;  %v11372_v8 = vsel %vm11342_vm6, %v11023_v31, %v1343_v1  ;;  %v11377_v35 = vsel %vm11342_vm6, 0, %v11320_v27  ;;  %v513_v1 = vpop.permute.xlu0 %512 }
 0x102   : > { %15493 = vst [vmem:[#allocation12_spill] sm:$0xff] %v11377_v35  ;;  %v1437_v24 = vor.u32 %v1436_v12, %v1435_v45  ;;  %v1790_v25 = vsel %vm1789_vm12, %v1788_v34, 0  ;;  %vm1052_vm13 = vcmp.lt.s32.totalorder %v11027_v32, 0  ;;  %v1136_v17 = vsub.s32 4, %v11150_v23 }
 0x103   : > { %v1441_v13 = vor.u32 4788187, %v1440_v19  ;;  %v1230_v57 = vsub.s32 4294967266, %v11354_v5  ;;  %v1785_v48 = vand.u32 8388607, %v15213_v6  ;;  %v11385_v47 = vsub.s32 %v11329_v2, %v1633_v46  ;;  %v10642_v2 = vld [vmem:[%s10903_s19 + $0x30] sm:$0xff] }
 0x104   : > { %v1505_v27 = vsel %vm1499_vm11, %v1502_v38, %v1504_v21  ;;  %v1524_v45 = vadd.s32 1, %v11362_v16  ;;  %v1792_v12 = vand.u32 31, %v1790_v25  ;;  %10510 = vcosq.f32 %v11372_v8 }
 0x105   : > { %v1134_v52 = vxor.u32 2147483648, %v11326_v50  ;;  %v1448_v19 = vsub.s32 4, %v11194_v55  ;;  %vm1523_vm14 = vc.u32 %v11367_v37, %v11361_v9  ;;  %v1444_v34 = vcvt.s32.f32 %v1437_v24 }
 0x106   : > { %v1525_v3 = vsel %vm1523_vm14, %v1524_v45, %v11362_v16  ;;  %v1793_v40 = vsub.s32 32, %v1792_v12  ;;  %v11397_v62 = vsel %vm15312_vm0, %v10642_v2, %v513_v1  ;;  %v1442_v33 = vand.u32 2147483647, %v1441_v13 }
 0x107   : > { %15494 = vst [vmem:[#allocation13_spill] sm:$0xff] %v11397_v62  ;;  %v1231_v49 = vadd.s32 127, %v1230_v57  ;;  %v1521_v53 = vmul.u32 %v1514_v58, %v1505_v27  ;;  %v1786_v10 = vor.u32 8388608, %v1785_v48  ;;  %v1636_v51 = vsub.s32 0, %v11385_v47 }
 0x108   : > { %v1796_v46 = vshrl.u32 %v15224_v4, %v1793_v40  ;;  %v1799_v18 = vshrl.u32 %v15216_v7, %v1793_v40  ;;  %v1802_v38 = vshrl.u32 %v15222_v11, %v1793_v40  ;;  %v1795_v16 = vshll.u32 %v15227_v61, %v1792_v12 }
 0x109   : > { %v11403_v21 = vadd.s32 %v1525_v3, %v1521_v53  ;;  %v1798_v63 = vshll.u32 %v15224_v4, %v1792_v12  ;;  %v1677_v24 = vand.u32 2139095040, %v11397_v62  ;;  %v1791_v13 = vshrl.u32 %v1790_v25, 5 }
 0x10a   : > { %v1801_v58 = vshll.u32 %v15216_v7, %v1792_v12  ;;  %v1804_v57 = vshll.u32 %v15222_v11, %v1792_v12  ;;  %v1805_v48 = vshrl.u32 %v15220_v14, %v1793_v40  ;;  %v1797_v1 = vor.u32 %v1796_v46, %v1795_v16 }
 0x10b   : > { %v1800_v27 = vor.u32 %v1799_v18, %v1798_v63  ;;  %v1807_v45 = vshll.u32 %v15220_v14, %v1792_v12  ;;  %v1808_v3 = vshrl.u32 %v15218_v22, %v1793_v40  ;;  %v1135_v2 = vsel %vm1052_vm13, %v1134_v52, %v11326_v50 }
 0x10c   : > { %v1210_v53 = vadd.s32 %v11215_v39, %v11211_v0  ;;  %v1803_v25 = vor.u32 %v1802_v38, %v1801_v58  ;;  %v1806_v6 = vor.u32 %v1805_v48, %v1804_v57  ;;  %vm11420_vm15 = vcmp.le.f32.partialorder %v1050_v36, 0.7853982 }
 0x10d   : > { %v15495_v20 = vmov 0  ;;  %vm1364_vm1 = vcmp.lt.s32.totalorder %v11043_v43, 0  ;;  %v11425_v12 = vmul.f32 %v1444_v34, %v1442_v33  ;;  %v1226_v46 = vsub.s32 32, %v11354_v5 }
 0x10e   : > { %v15496_v20 = vsel %vm11420_vm15, 4294967295, %v15495_v20  ;;  %v1527_v18 = vadd.s32 536870912, %v11403_v21  ;;  %v1809_v50 = vor.u32 %v1808_v3, %v1807_v45  ;;  %v1227_v0 = vshll.u32 %v11269_v59, %v11354_v5  ;;  %v11432_v36 = vpop.eup %10510 }
 0x10f   : > { %15497 = vst [vmem:[#allocation14_spill] sm:$0xff] %v15496_v20  ;;  %v9431_v39 = vmin.u32 %v1636_v51, %v11385_v47  ;;  %vm1810_vm2 = vcmp.lt.s32.totalorder %v1791_v13, 1  ;;  %v1826_v52 = vshll.u32 %v1786_v10, 8  ;;  %15498 = vst [vmem:[#allocation15_spill] sm:$0xff] %v11432_v36  ;;  %v1232_v38 = vshll.u32 %v1231_v49, 23 }
 0x110   : > { %vm1813_vm3 = vcmp.lt.s32.totalorder %v1791_v13, 4  ;;  %v1818_v16 = vsel %vm1810_vm2, %v1797_v1, %v1800_v27  ;;  %v1678_v34 = vshrl.u32 %v1677_v24, 23  ;;  %vm1812_vm4 = vcmp.lt.s32.totalorder %v1791_v13, 3 }
 0x111   : > { %v1819_v33 = vsel %vm1813_vm3, %v1806_v6, 920167782  ;;  %v1822_v63 = vsel %vm1810_vm2, %v1800_v27, %v1803_v25  ;;  %v1823_v58 = vsel %vm1813_vm3, %v1809_v50, 1326507024  ;;  %v11436_v57 = vshrl.u32 %v1527_v18, 30 }
 0x112   : > { %vm1811_vm5 = vcmp.lt.s32.totalorder %v1791_v13, 2  ;;  %v1815_v59 = vsel %vm1813_vm3, %v1803_v25, 2102212464  ;;  %v1820_v5 = vsel %vm1812_vm4, %v1803_v25, %v1819_v33  ;;  %vm11441_vm6 = vcmp.le.f32.partialorder %v1362_v41, 0.7853982 }
 0x113   : > { %v1638_v49 = vclz %v9431_v39  ;;  %v1794_v51 = vshrl.u32 %v15227_v61, %v1793_v40  ;;  %v1821_v24 = vsel %vm1811_vm5, %v1818_v16, %v1820_v5  ;;  %v1824_v48 = vsel %vm1812_vm4, %v1806_v6, %v1823_v58 }
 0x114   : > { %vm1156_vm7 = vcmp.lt.s32.totalorder %v11119_v44, 0  ;;  %v1228_v45 = vshrl.u32 %v1210_v53, %v1226_v46  ;;  %v1233_v3 = vor.u32 4788187, %v1232_v38  ;;  %v1825_v25 = vsel %vm1811_vm5, %v1822_v63, %v1824_v48  ;;  %v11471_v46 = vld [vmem:[%s10959_s29 + $0x48] sm:$0xff] }
 0x115   : > { %v9434_v18 = vadd.s32 4294967169, %v1678_v34  ;;  %v1814_v41 = vsel %vm1810_vm2, %v1794_v51, %v1797_v1  ;;  %v1816_v50 = vsel %vm1812_vm4, %v1800_v27, %v1815_v59  ;;  %v1529_v40 = vshll.u32 %v11436_v57, 30 }
 0x116   : > { %v11452_v33 = vmul.u32.u64.low %v1826_v52, %v1825_v25  ;;  %v11453_v39 = vmul.u32.u64.high %v1826_v52, %v1825_v25, %v11452_v33  ;;  %v11456_v16 = vmul.u32.u64.low %v1826_v52, %v1821_v24  ;;  %v11457_v5 = vmul.u32.u64.high %v1826_v52, %v1821_v24, %v11456_v16 }
 0x117   : > { %v1684_v6 = vadd.s32 1, %v9434_v18  ;;  %v11463_v53 = vsel %vm11420_vm15, %v11027_v32, %v1135_v2  ;;  %v1449_v1 = vsel %vm1364_vm1, %v1448_v19, %v11194_v55  ;;  %v9432_v27 = vadd.s32 4294967294, %v1638_v49 }
 0x118   : > { %v622_v38 = vmul.f32 16.0, %v11471_v46  ;;  %v1229_v34 = vor.u32 %v1228_v45, %v1227_v0  ;;  %v1240_v63 = vsub.s32 4, %v11247_v30  ;;  %v1817_v58 = vsel %vm1811_vm5, %v1814_v41, %v1816_v50  ;;  %v519_v50 = vpop.permute.xlu1 %518 }
 0x119   : > { %vm1685_vm8 = vcmp.gt.s32.totalorder %v1684_v6, 0  ;;  %v1446_v2 = vxor.u32 2147483648, %v11425_v12  ;;  %vm1835_vm9 = vc.u32 %v11453_v39, %v11456_v16  ;;  %v15215_v59 = vand.u32 2147483647, %v11397_v62 }
 0x11a   : > { %v1686_v51 = vsel %vm1685_vm8, %v1684_v6, 0  ;;  %871 = vrot.lane.b32.xlu0 %v622_v38, %s10769_s18  ;;  %vm11483_vm10 = vcmp.le.f32.partialorder %v1154_v15, 0.7853982  ;;  %v1234_v19 = vand.u32 2147483647, %v1233_v3  ;;  %v11488_v13 = vsub.s32 %v11403_v21, %v1529_v40 }
 0x11b   : > { %v1836_v0 = vadd.s32 1, %v11457_v5  ;;  %v1688_v49 = vand.u32 31, %v1686_v51  ;;  %10512 = vsinq.f32 %v11372_v8  ;;  %v11497_v24 = vsel %vm1052_vm13, %v1136_v17, %v11150_v23 }
 0x11c   : > { %15503 = vst [vmem:[#allocation16_spill] sm:$0xff] %v11497_v24  ;;  %vm9433_vm11 = vcmp.lt.s32.totalorder %v9432_v27, 0  ;;  %v1833_v15 = vmul.u32 %v1826_v52, %v1817_v58  ;;  %10514 = vcosq.f32 %v11463_v53  ;;  %v11502_v21 = vsel %vm11441_vm6, 0, %v1449_v1  ;;  %v10644_v58 = vld [vmem:[%s10903_s19 + $0x48] sm:$0xff] }
 0x11d   : > { %15504 = vst [vmem:[#allocation17_spill] sm:$0xff] %v11502_v21  ;;  %v1236_v48 = vcvt.s32.f32 %v1229_v34  ;;  %v1837_v8 = vsel %vm1835_vm9, %v1836_v0, %v11457_v5  ;;  %v1241_v45 = vsel %vm1156_vm7, %v1240_v63, %v11247_v30  ;;  %v1681_v17 = vand.u32 8388607, %v15215_v59 }
 0x11e   : > { %v1838_v23 = vadd.s32 %v1837_v8, %v1833_v15  ;;  %v1689_v52 = vsub.s32 32, %v1688_v49  ;;  %v1447_v3 = vsel %vm1364_vm1, %v1446_v2, %v11425_v12  ;;  %v11518_v18 = vsel %vm9433_vm11, 0, %v9432_v27 }
 0x11f   : > { %v11516_v25 = vmul.f32 %v1236_v48, %v1234_v19  ;;  %v1532_v41 = vsub.s32 0, %v11488_v13  ;;  %v1691_v30 = vshll.u32 %v15227_v61, %v1688_v49  ;;  %v1694_v6 = vshll.u32 %v15224_v4, %v1688_v49 }
 0x120   : > { %v1839_v33 = vadd.s32 536870912, %v1838_v23  ;;  %v1692_v40 = vshrl.u32 %v15224_v4, %v1689_v52  ;;  %v1695_v5 = vshrl.u32 %v15216_v7, %v1689_v52  ;;  %v1697_v1 = vshll.u32 %v15216_v7, %v1688_v49 }
 0x121   : > { %v1698_v12 = vshrl.u32 %v15222_v11, %v1689_v52  ;;  %v1701_v38 = vshrl.u32 %v15220_v14, %v1689_v52  ;;  %v1682_v27 = vor.u32 8388608, %v1681_v17  ;;  %v1687_v34 = vshrl.u32 %v1686_v51, 5 }
 0x122   : > { %v1700_v63 = vshll.u32 %v15222_v11, %v1688_v49  ;;  %v11531_v2 = vsel %vm15312_vm0, %v10644_v58, %v519_v50  ;;  %v11533_v19 = vshrl.u32 %v1839_v33, 30  ;;  %v1693_v0 = vor.u32 %v1692_v40, %v1691_v30 }
 0x123   : > { %15505 = vst [vmem:[#allocation18_spill] sm:$0xff] %v11531_v2  ;;  %v1696_v15 = vor.u32 %v1695_v5, %v1694_v6  ;;  %v1699_v48 = vor.u32 %v1698_v12, %v1697_v1  ;;  %v11537_v8 = vsel %vm11483_vm10, 0, %v1241_v45  ;;  %v1703_v7 = vshll.u32 %v15220_v14, %v1688_v49 }
 0x124   : > { %15506 = vst [vmem:[#allocation19_spill] sm:$0xff] %v11537_v8  ;;  %v1702_v59 = vor.u32 %v1701_v38, %v1700_v63  ;;  %v1704_v51 = vshrl.u32 %v15218_v22, %v1689_v52  ;;  %v1450_v17 = vsel %vm11441_vm6, %v11043_v43, %v1447_v3  ;;  %v1238_v50 = vxor.u32 2147483648, %v11516_v25 }
 0x125   : > { %v1646_v33 = vsub.s32 4294967266, %v11518_v18  ;;  %v1989_v30 = vand.u32 2139095040, %v11531_v2  ;;  %v11547_v40 = vpop.eup %10512  ;;  %v9427_v45 = vmin.u32 %v1532_v41, %v11488_v13  ;;  %vm1706_vm12 = vcmp.lt.s32.totalorder %v1687_v34, 1 }
 0x126   : > { %15507 = vst [vmem:[#allocation20_spill] sm:$0xff] %v11547_v40  ;;  %v1705_v5 = vor.u32 %v1704_v51, %v1703_v7  ;;  %vm1709_vm13 = vcmp.lt.s32.totalorder %v1687_v34, 4  ;;  %v11550_v49 = vpop.eup %10514  ;;  %vm1572_vm14 = vcmp.lt.s32.totalorder %v11183_v26, 0  ;;  %v1841_v10 = vshll.u32 %v11533_v19, 30 }
 0x127   : > { %15508 = vst [vmem:[#allocation21_spill] sm:$0xff] %v11550_v49  ;;  %v1711_v3 = vsel %vm1709_vm13, %v1699_v48, 2102212464  ;;  %v1714_v6 = vsel %vm1706_vm12, %v1693_v0, %v1696_v15  ;;  %v1722_v1 = vshll.u32 %v1682_v27, 8  ;;  %v1690_v12 = vshrl.u32 %v15227_v61, %v1689_v52 }
 0x128   : > { %vm1708_vm1 = vcmp.lt.s32.totalorder %v1687_v34, 3  ;;  %v1715_v38 = vsel %vm1709_vm13, %v1702_v59, 920167782  ;;  %v1718_v63 = vsel %vm1706_vm12, %v1696_v15, %v1699_v48  ;;  %vm1707_vm2 = vcmp.lt.s32.totalorder %v1687_v34, 2 }
 0x129   : > { %v1716_v7 = vsel %vm1708_vm1, %v1699_v48, %v1715_v38  ;;  %v1719_v41 = vsel %vm1709_vm13, %v1705_v5, 1326507024  ;;  %v1990_v58 = vshrl.u32 %v1989_v30, 23  ;;  %v1710_v51 = vsel %vm1706_vm12, %v1690_v12, %v1693_v0 }
 0x12a   : > { %v1712_v22 = vsel %vm1708_vm1, %v1696_v15, %v1711_v3  ;;  %v1717_v14 = vsel %vm1707_vm2, %v1714_v6, %v1716_v7  ;;  %v1720_v11 = vsel %vm1708_vm1, %v1702_v59, %v1719_v41  ;;  %v11559_v4 = vsub.s32 %v1838_v23, %v1841_v10  ;;  %v517_v10 = vpop.permute.xlu0 %516  ;;  %v11606_v7 = vld [vmem:[%s10959_s29 + $0x58] sm:$0xff] }
 0x12b   : > { %v1721_v27 = vsel %vm1707_vm2, %v1718_v63, %v1720_v11  ;;  %v11562_v54 = vmul.u32.u64.low %v1722_v1, %v1717_v14  ;;  %v11563_v52 = vmul.u32.u64.high %v1722_v1, %v1717_v14, %v11562_v54  ;;  %v15509_v61 = vand.u32 2147483647, %v11183_v26 }
 0x12c   : > { %v1656_v0 = vsub.s32 4, %v11351_v28  ;;  %v1534_v15 = vclz %v9427_v45  ;;  %v11573_v30 = vmul.u32.u64.low %v1722_v1, %v1721_v27  ;;  %v11574_v5 = vmul.u32.u64.high %v1722_v1, %v1721_v27, %v11573_v30 }
 0x12d   : > { %vm11568_vm3 = vcmp.le.f32.partialorder %v15509_v61, 0.7853982  ;;  %10516 = vsinq.f32 %v11463_v53  ;;  %v11578_v11 = vand.u32 3, %v11537_v8  ;;  %v1713_v14 = vsel %vm1707_vm2, %v1710_v51, %v1712_v22 }
 0x12e   : > { %v9446_v59 = vadd.s32 4294967169, %v1990_v58  ;;  %10518 = vcosq.f32 %v1450_v17  ;;  %v1239_v61 = vsel %vm1156_vm7, %v1238_v50, %v11516_v25  ;;  %v1642_v23 = vsub.s32 32, %v11518_v18  ;;  %v10645_v50 = vld [vmem:[%s10903_s19 + $0x40] sm:$0xff]  ;;  %v11610_v58 = vld [vmem:[%s10959_s29 + $0x50] sm:$0xff] }
 0x12f   : > { %15512 = vst [vmem:[#allocation22_spill] sm:$0xff] %v11578_v11  ;;  %v1647_v45 = vadd.s32 127, %v1646_v33  ;;  %v1626_v3 = vadd.s32 %v11282_v29, %v11290_v56  ;;  %v1844_v53 = vsub.s32 0, %v11559_v4  ;;  %v1732_v34 = vadd.s32 1, %v11563_v52 }
 0x130   : > { %v1996_v22 = vadd.s32 1, %v9446_v59  ;;  %v1657_v6 = vsel %vm1572_vm14, %v1656_v0, %v11351_v28  ;;  %v9428_v12 = vadd.s32 4294967294, %v1534_v15  ;;  %v1729_v25 = vmul.u32 %v1722_v1, %v1713_v14 }
 0x131   : > { %vm1731_vm4 = vc.u32 %v11574_v5, %v11562_v54  ;;  %v11597_v29 = vsel %vm11483_vm10, %v11119_v44, %v1239_v61  ;;  %v11602_v33 = vsel %vm15312_vm0, %v10645_v50, %v517_v10  ;;  %v1644_v38 = vshrl.u32 %v1626_v3, %v1642_v23 }
 0x132   : > { %v1733_v56 = vsel %vm1731_vm4, %v1732_v34, %v11563_v52  ;;  %vm1997_vm5 = vcmp.gt.s32.totalorder %v1996_v22, 0  ;;  %15513 = vst [vmem:[#allocation23_spill] sm:$0xff] %v11602_v33  ;;  %v1648_v28 = vshll.u32 %v1647_v45, 23  ;;  %v15229_v1 = vand.u32 2147483647, %v11531_v2 }
 0x133   : > { %v1734_v63 = vadd.s32 %v1733_v56, %v1729_v25  ;;  %10520 = vsinq.f32 %v1450_v17  ;;  %v9439_v41 = vmin.u32 %v1844_v53, %v11559_v4  ;;  %v1998_v55 = vsel %vm1997_vm5, %v1996_v22, 0 }
 0x134   : > { %v591_v51 = vmul.f32 4.0, %v11610_v58  ;;  %v1643_v27 = vshll.u32 %v11385_v47, %v11518_v18  ;;  %vm9429_vm6 = vcmp.lt.s32.totalorder %v9428_v12, 0  ;;  %v1885_v0 = vand.u32 2139095040, %v11602_v33 }
 0x135   : > { %v1735_v52 = vadd.s32 536870912, %v1734_v63  ;;  %10522 = vcosq.f32 %v11597_v29  ;;  %v11619_v15 = vsel %vm11568_vm3, 0, %v1657_v6  ;;  %v2000_v17 = vand.u32 31, %v1998_v55 }
 0x136   : > { %15514 = vst [vmem:[#allocation24_spill] sm:$0xff] %v11619_v15  ;;  %745 = vrot.lane.b32.xlu1 %v591_v51, %s10767_s16  ;;  %v576_v30 = vmul.f32 2.0, %v11606_v7  ;;  %v1645_v14 = vor.u32 %v1644_v38, %v1643_v27  ;;  %v1649_v59 = vor.u32 4788187, %v1648_v28  ;;  %v1993_v47 = vand.u32 8388607, %v15229_v1 }
 0x137   : > { %v11623_v61 = vshrl.u32 %v1735_v52, 30  ;;  %v11627_v18 = vpop.eup %10516  ;;  %v1522_v23 = vadd.s32 %v11361_v9, %v11367_v37  ;;  %v11631_v45 = vsel %vm9429_vm6, 0, %v9428_v12  ;;  %v1846_v10 = vclz %v9439_v41 }
 0x138   : > { %15515 = vst [vmem:[#allocation25_spill] sm:$0xff] %v11627_v18  ;;  %v2001_v3 = vsub.s32 32, %v2000_v17  ;;  %683 = vrot.lane.b32.xlu0 %v576_v30, %s10766_s15  ;;  %v11634_v53 = vpop.eup %10518  ;;  %v15517_v22 = vmov 683565275   ;;  %v15518_v25 = vmov 2475754826   ;;  %v1652_v27 = vcvt.s32.f32 %v1645_v14 }
 0x139   : > { %15516 = vst [vmem:[#allocation26_spill] sm:$0xff] %v11634_v53  ;;  %v1737_v34 = vshll.u32 %v11623_v61, 30  ;;  %v2003_v6 = vshll.u32 %v15517_v22, %v2000_v17  ;;  %v2006_v56 = vshll.u32 %v15518_v25, %v2000_v17  ;;  %v1886_v50 = vshrl.u32 %v1885_v0, 23 }
 0x13a   : > { %v2004_v38 = vshrl.u32 %v15518_v25, %v2001_v3  ;;  %v15519_v28 = vmov 2131351028   ;;  %v15520_v37 = vmov 2102212464   ;;  %v1650_v41 = vand.u32 2147483647, %v1649_v59 }
 0x13b   : > { %v2007_v51 = vshrl.u32 %v15519_v28, %v2001_v3  ;;  %v2009_v9 = vshll.u32 %v15519_v28, %v2000_v17  ;;  %v2010_v12 = vshrl.u32 %v15520_v37, %v2001_v3  ;;  %v1994_v52 = vor.u32 8388608, %v1993_v47 }
 0x13c   : > { %v1999_v30 = vshrl.u32 %v1998_v55, 5  ;;  %v1538_v1 = vsub.s32 32, %v11631_v45  ;;  %v2005_v15 = vor.u32 %v2004_v38, %v2003_v6  ;;  %v1542_v21 = vsub.s32 4294967266, %v11631_v45 }
 0x13d   : > { %v2008_v43 = vor.u32 %v2007_v51, %v2006_v56  ;;  %v2011_v53 = vor.u32 %v2010_v12, %v2009_v9  ;;  %v11645_v0 = vsub.s32 %v1734_v63, %v1737_v34  ;;  %v2012_v31 = vshll.u32 %v15520_v37, %v2000_v17  ;;  %v11649_v35 = vpop.eup %10520 }
 0x13e   : > { %v15521_v36 = vmov 920167782   ;;  %15522 = vst [vmem:[#allocation27_spill] sm:$0xff] %v11649_v35  ;;  %v9440_v44 = vadd.s32 4294967294, %v1846_v10  ;;  %v15523_v59 = vmov 1326507024   ;;  %v2002_v63 = vshrl.u32 %v15517_v22, %v2001_v3 }
 0x13f   : > { %v2013_v40 = vshrl.u32 %v15521_v36, %v2001_v3  ;;  %v2015_v14 = vshll.u32 %v15521_v36, %v2000_v17  ;;  %v2016_v55 = vshrl.u32 %v15523_v59, %v2001_v3  ;;  %v9442_v47 = vadd.s32 4294967169, %v1886_v50  ;;  %v11653_v56 = vpop.eup %10522 }
 0x140   : > { %vm2018_vm7 = vcmp.lt.s32.totalorder %v1999_v30, 1  ;;  %vm2021_vm8 = vcmp.lt.s32.totalorder %v1999_v30, 4  ;;  %v2034_v6 = vshll.u32 %v1994_v52, 8  ;;  %15524 = vst [vmem:[#allocation28_spill] sm:$0xff] %v11653_v56  ;;  %vm1468_vm9 = vcmp.lt.s32.totalorder %v11253_v42, 0 }
 0x141   : > { %v2014_v11 = vor.u32 %v2013_v40, %v2012_v31  ;;  %v2017_v34 = vor.u32 %v2016_v55, %v2015_v14  ;;  %v2023_v38 = vsel %vm2021_vm8, %v2011_v53, 2102212464  ;;  %v2026_v51 = vsel %vm2018_vm7, %v2005_v15, %v2008_v43 }
 0x142   : > { %v1740_v10 = vsub.s32 0, %v11645_v0  ;;  %vm2020_vm10 = vcmp.lt.s32.totalorder %v1999_v30, 3  ;;  %v2030_v50 = vsel %vm2018_vm7, %v2008_v43, %v2011_v53  ;;  %vm2019_vm11 = vcmp.lt.s32.totalorder %v1999_v30, 2 }
 0x143   : > { %v2027_v17 = vsel %vm2021_vm8, %v2014_v11, 920167782  ;;  %v2031_v40 = vsel %vm2021_vm8, %v2017_v34, 1326507024  ;;  %v1892_v9 = vadd.s32 1, %v9442_v47  ;;  %v2022_v12 = vsel %vm2018_vm7, %v2002_v63, %v2005_v15 }
 0x144   : > { %v2028_v31 = vsel %vm2020_vm10, %v2011_v53, %v2027_v17  ;;  %v2024_v52 = vsel %vm2020_vm10, %v2008_v43, %v2023_v38  ;;  %v2032_v14 = vsel %vm2020_vm10, %v2014_v11, %v2031_v40  ;;  %v11662_v55 = vmul.f32 %v1652_v27, %v1650_v41 }
 0x145   : > { %v2029_v3 = vsel %vm2019_vm11, %v2026_v51, %v2028_v31  ;;  %v2033_v35 = vsel %vm2019_vm11, %v2030_v50, %v2032_v14  ;;  %vm9441_vm12 = vcmp.lt.s32.totalorder %v9440_v44, 0  ;;  %v9435_v49 = vmin.u32 %v1740_v10, %v11645_v0 }
 0x146   : > { %v11665_v56 = vmul.u32.u64.low %v2034_v6, %v2029_v3  ;;  %v11666_v8 = vmul.u32.u64.high %v2034_v6, %v2029_v3, %v11665_v56  ;;  %v11670_v53 = vmul.u32.u64.low %v2034_v6, %v2033_v35  ;;  %v11671_v34 = vmul.u32.u64.high %v2034_v6, %v2033_v35, %v11670_v53 }
 0x147   : > { %v1540_v47 = vshrl.u32 %v1522_v23, %v1538_v1  ;;  %v1552_v43 = vsub.s32 4, %v11436_v57  ;;  %v2025_v15 = vsel %vm2019_vm11, %v2022_v12, %v2024_v52  ;;  %vm1893_vm13 = vcmp.gt.s32.totalorder %v1892_v9, 0 }
 0x148   : > { %10524 = vsinq.f32 %v11597_v29  ;;  %v1543_v11 = vadd.s32 127, %v1542_v21  ;;  %v15246_v41 = vand.u32 2147483647, %v11602_v33  ;;  %v1894_v27 = vsel %vm1893_vm13, %v1892_v9, 0 }
 0x149   : > { %v1539_v63 = vshll.u32 %v11488_v13, %v11631_v45  ;;  %v11679_v38 = vsel %vm9441_vm12, 0, %v9440_v44  ;;  %v2044_v35 = vadd.s32 1, %v11666_v8  ;;  %v1896_v51 = vand.u32 31, %v1894_v27 }
 0x14a   : > { %v1742_v23 = vclz %v9435_v49  ;;  %v2041_v30 = vmul.u32 %v2034_v6, %v2025_v15  ;;  %vm2043_vm1 = vc.u32 %v11671_v34, %v11665_v56  ;;  %v11690_v21 = vsel %vm1468_vm9, %v1552_v43, %v11436_v57 }
 0x14b   : > { %v11685_v29 = vor.u32 %v1540_v47, %v1539_v63  ;;  %v2045_v44 = vsel %vm2043_vm1, %v2044_v35, %v11666_v8  ;;  %v1897_v13 = vsub.s32 32, %v1896_v51  ;;  %v1544_v45 = vshll.u32 %v1543_v11, 23 }
 0x14c   : > { %v1854_v10 = vsub.s32 4294967266, %v11679_v38  ;;  %v2046_v17 = vadd.s32 %v2045_v44, %v2041_v30  ;;  %v1889_v49 = vand.u32 8388607, %v15246_v41  ;;  %v1899_v6 = vshll.u32 %v15517_v22, %v1896_v51 }
 0x14d   : > { %v1900_v50 = vshrl.u32 %v15518_v25, %v1897_v13  ;;  %v1903_v31 = vshrl.u32 %v15519_v28, %v1897_v13  ;;  %v1906_v40 = vshrl.u32 %v15520_v37, %v1897_v13  ;;  %v9436_v57 = vadd.s32 4294967294, %v1742_v23 }
 0x14e   : > { %v2047_v9 = vadd.s32 536870912, %v2046_v17  ;;  %v1895_v12 = vshrl.u32 %v1894_v27, 5  ;;  %v1902_v8 = vshll.u32 %v15518_v25, %v1896_v51  ;;  %v1905_v3 = vshll.u32 %v15519_v28, %v1896_v51 }
 0x14f   : > { %v1901_v52 = vor.u32 %v1900_v50, %v1899_v6  ;;  %v1908_v14 = vshll.u32 %v15520_v37, %v1896_v51  ;;  %v1909_v53 = vshrl.u32 %v15521_v36, %v1897_v13  ;;  %v1911_v15 = vshll.u32 %v15521_v36, %v1896_v51 }
 0x150   : > { %v11704_v47 = vshrl.u32 %v2047_v9, 30  ;;  %v1904_v43 = vor.u32 %v1903_v31, %v1902_v8  ;;  %v1912_v11 = vshrl.u32 %v15523_v59, %v1897_v13  ;;  %v1545_v63 = vor.u32 4788187, %v1544_v45 }
 0x151   : > { %v1834_v27 = vadd.s32 %v11456_v16, %v11453_v39  ;;  %v1907_v35 = vor.u32 %v1906_v40, %v1905_v3  ;;  %v1910_v23 = vor.u32 %v1909_v53, %v1908_v14  ;;  %v1548_v44 = vcvt.s32.f32 %v11685_v29  ;;  %v523_v16 = vpop.permute.xlu1 %522 }
 0x152   : > { %v11710_v30 = vpop.eup %10524  ;;  %v1850_v6 = vsub.s32 32, %v11679_v38  ;;  %v2049_v50 = vshll.u32 %v11704_v47, 30  ;;  %v1913_v9 = vor.u32 %v1912_v11, %v1911_v15  ;;  %v1855_v31 = vadd.s32 127, %v1854_v10 }
 0x153   : > { %15525 = vst [vmem:[#allocation29_spill] sm:$0xff] %v11710_v30  ;;  %vm9437_vm2 = vcmp.lt.s32.totalorder %v9436_v57, 0  ;;  %v1890_v51 = vor.u32 8388608, %v1889_v49  ;;  %vm1914_vm4 = vcmp.lt.s32.totalorder %v1895_v12, 1  ;;  %vm1916_vm5 = vcmp.lt.s32.totalorder %v1895_v12, 3  ;;  %v521_v49 = vpop.permute.xlu0 %520 }
 0x154   : > { %v11715_v8 = vsub.s32 %v2046_v17, %v2049_v50  ;;  %vm1917_vm6 = vcmp.lt.s32.totalorder %v1895_v12, 4  ;;  %v1922_v39 = vsel %vm1914_vm4, %v1901_v52, %v1904_v43  ;;  %v1926_v29 = vsel %vm1914_vm4, %v1904_v43, %v1907_v35  ;;  %v10647_v50 = vld [vmem:[%s10903_s19 + $0x58] sm:$0xff] }
 0x155   : > { %v1919_v45 = vsel %vm1917_vm6, %v1907_v35, 2102212464  ;;  %v1923_v40 = vsel %vm1917_vm6, %v1910_v23, 920167782  ;;  %v1927_v3 = vsel %vm1917_vm6, %v1913_v9, 1326507024  ;;  %v1898_v10 = vshrl.u32 %v15517_v22, %v1897_v13 }
 0x156   : > { %v2052_v14 = vsub.s32 0, %v11715_v8  ;;  %vm1915_vm7 = vcmp.lt.s32.totalorder %v1895_v12, 2  ;;  %v1924_v17 = vsel %vm1916_vm5, %v1907_v35, %v1923_v40  ;;  %v1928_v15 = vsel %vm1916_vm5, %v1910_v23, %v1927_v3 }
 0x157   : > { %v1925_v53 = vsel %vm1915_vm7, %v1922_v39, %v1924_v17  ;;  %v1930_v11 = vshll.u32 %v1890_v51, 8  ;;  %v11726_v41 = vsel %vm15312_vm0, %v10647_v50, %v523_v16  ;;  %v1745_v9 = vsel %vm9437_vm2, 0, %v9436_v57  ;;  %v10648_v39 = vld [vmem:[%s10903_s19 + $0x50] sm:$0xff] }
 0x158   : > { %15526 = vst [vmem:[#allocation30_spill] sm:$0xff] %v11726_v41  ;;  %v1918_v1 = vsel %vm1914_vm4, %v1898_v10, %v1901_v52  ;;  %v1920_v30 = vsel %vm1916_vm5, %v1904_v43, %v1919_v45  ;;  %v1929_v13 = vsel %vm1915_vm7, %v1926_v29, %v1928_v15  ;;  %v9447_v35 = vmin.u32 %v2052_v14, %v11715_v8 }
 0x159   : > { %v11733_v40 = vmul.u32.u64.low %v1930_v11, %v1929_v13  ;;  %v11734_v32 = vmul.u32.u64.high %v1930_v11, %v1929_v13, %v11733_v40  ;;  %v11738_v23 = vsel %vm15312_vm0, %v10648_v39, %v521_v49  ;;  %v1546_v51 = vand.u32 2147483647, %v1545_v63 }
 0x15a   : > { %15527 = vst [vmem:[#allocation31_spill] sm:$0xff] %v11738_v23  ;;  %v11740_v16 = vmul.u32.u64.low %v1930_v11, %v1925_v53  ;;  %v11741_v3 = vmul.u32.u64.high %v1930_v11, %v1925_v53, %v11740_v16  ;;  %v2197_v57 = vand.u32 2139095040, %v11726_v41  ;;  %v1856_v52 = vshll.u32 %v1855_v31, 23 }
 0x15b   : > { %v1746_v43 = vsub.s32 32, %v1745_v9  ;;  %v1750_v45 = vsub.s32 4294967266, %v1745_v9  ;;  %v1921_v29 = vsel %vm1915_vm7, %v1918_v1, %v1920_v30  ;;  %v2093_v10 = vand.u32 2139095040, %v11738_v23 }
 0x15c   : > { %v2198_v14 = vshrl.u32 %v2197_v57, 23  ;;  %v592_v17 = vmul.f32 4.0, %v11606_v7  ;;  %v638_v49 = vmul.f32 32.0, %v11471_v46  ;;  %v15528_v63 = vxor.u32 2147483648, %v11662_v55 }
 0x15d   : > { %v15529_v15 = vand.u32 2147483647, %v11253_v42  ;;  %vm1780_vm10 = vcmp.lt.s32.totalorder %v11295_v60, 0  ;;  %v1852_v1 = vshrl.u32 %v1834_v27, %v1850_v6  ;;  %v2054_v12 = vclz %v9447_v35 }
 0x15e   : > { %v1655_v53 = vsel %vm1572_vm14, %v15528_v63, %v11662_v55  ;;  %vm1939_vm11 = vc.u32 %v11734_v32, %v11740_v16  ;;  %v1549_v46 = vmul.f32 %v1548_v44, %v1546_v51  ;;  %v1730_v30 = vadd.s32 %v11562_v54, %v11574_v5  ;;  %747 = vrot.lane.b32.xlu1 %v592_v17, %s10767_s16 }
 0x15f   : > { %vm11756_vm8 = vcmp.le.f32.partialorder %v15529_v15, 0.7853982  ;;  %v1940_v50 = vadd.s32 1, %v11741_v3  ;;  %v9454_v55 = vadd.s32 4294967169, %v2198_v14  ;;  %935 = vrot.lane.b32.xlu0 %v638_v49, %s10770_s20  ;;  %v1851_v13 = vshll.u32 %v11559_v4, %v11679_v38 }
 0x160   : > { %v1857_v40 = vor.u32 4788187, %v1856_v52  ;;  %v1751_v27 = vadd.s32 127, %v1750_v45  ;;  %v1937_v6 = vmul.u32 %v1930_v11, %v1921_v29  ;;  %v1748_v35 = vshrl.u32 %v1730_v30, %v1746_v43 }
 0x161   : > { %v1941_v39 = vsel %vm1939_vm11, %v1940_v50, %v11741_v3  ;;  %v15250_v44 = vand.u32 2147483647, %v11726_v41  ;;  %v2094_v51 = vshrl.u32 %v2093_v10, 23  ;;  %v1853_v54 = vor.u32 %v1852_v1, %v1851_v13 }
 0x162   : > { %v9448_v5 = vadd.s32 4294967294, %v2054_v12  ;;  %v1942_v57 = vadd.s32 %v1941_v39, %v1937_v6  ;;  %v2204_v14 = vadd.s32 1, %v9454_v55  ;;  %v11775_v17 = vsel %vm11568_vm3, %v11183_v26, %v1655_v53 }
 0x163   : > { %v1550_v49 = vxor.u32 2147483648, %v1549_v46  ;;  %v1864_v4 = vsub.s32 4, %v11533_v19  ;;  %v1747_v38 = vshll.u32 %v11645_v0, %v1745_v9  ;;  %v1858_v11 = vand.u32 2147483647, %v1857_v40 }
 0x164   : > { %v1752_v52 = vshll.u32 %v1751_v27, 23  ;;  %v1943_v3 = vadd.s32 536870912, %v1942_v57  ;;  %vm2205_vm14 = vcmp.gt.s32.totalorder %v2204_v14, 0  ;;  %v2201_v45 = vand.u32 8388607, %v15250_v44 }
 0x165   : > { %v11779_v43 = vor.u32 %v1748_v35, %v1747_v38  ;;  %v2206_v29 = vsel %vm2205_vm14, %v2204_v14, 0  ;;  %v9450_v10 = vadd.s32 4294967169, %v2094_v51  ;;  %v1860_v63 = vcvt.s32.f32 %v1853_v54 }
 0x166   : > { %vm9449_vm12 = vcmp.lt.s32.totalorder %v9448_v5, 0  ;;  %v11783_v48 = vshrl.u32 %v1943_v3, 30  ;;  %v2208_v53 = vand.u32 31, %v2206_v29  ;;  %10526 = vcosq.f32 %v11775_v17 }
 0x167   : > { %v11788_v0 = vsel %vm1468_vm9, %v1550_v49, %v1549_v46  ;;  %v11793_v9 = vsel %vm11756_vm8, 0, %v11690_v21  ;;  %v11798_v15 = vsel %vm1780_vm10, %v1864_v4, %v11533_v19  ;;  %v11800_v1 = vmul.f32 %v1860_v63, %v1858_v11 }
 0x168   : > { %15532 = vst [vmem:[#allocation32_spill] sm:$0xff] %v11793_v9  ;;  %v1753_v12 = vor.u32 4788187, %v1752_v52  ;;  %v1945_v30 = vshll.u32 %v11783_v48, 30  ;;  %v2209_v50 = vsub.s32 32, %v2208_v53  ;;  %v1756_v55 = vcvt.s32.f32 %v11779_v43 }
 0x169   : > { %v11804_v46 = vsel %vm9449_vm12, 0, %v9448_v5  ;;  %v2202_v13 = vor.u32 8388608, %v2201_v45  ;;  %v2100_v40 = vadd.s32 1, %v9450_v10  ;;  %v2207_v21 = vshrl.u32 %v2206_v29, 5 }
 0x16a   : > { %v11806_v27 = vsub.s32 %v1942_v57, %v1945_v30  ;;  %v2211_v6 = vshll.u32 %v15517_v22, %v2208_v53  ;;  %v2212_v19 = vshrl.u32 %v15518_v25, %v2209_v50  ;;  %v2214_v35 = vshll.u32 %v15518_v25, %v2208_v53 }
 0x16b   : > { %v2215_v39 = vshrl.u32 %v15519_v28, %v2209_v50  ;;  %v2217_v51 = vshll.u32 %v15519_v28, %v2208_v53  ;;  %v2218_v54 = vshrl.u32 %v15520_v37, %v2209_v50  ;;  %v2220_v49 = vshll.u32 %v15520_v37, %v2208_v53 }
 0x16c   : > { %v1948_v5 = vsub.s32 0, %v11806_v27  ;;  %v2213_v14 = vor.u32 %v2212_v19, %v2211_v6  ;;  %v2221_v57 = vshrl.u32 %v15521_v36, %v2209_v50  ;;  %v2223_v11 = vshll.u32 %v15521_v36, %v2208_v53 }
 0x16d   : > { %v2216_v4 = vor.u32 %v2215_v39, %v2214_v35  ;;  %v2219_v38 = vor.u32 %v2218_v54, %v2217_v51  ;;  %v2224_v52 = vshrl.u32 %v15523_v59, %v2209_v50  ;;  %v1754_v3 = vand.u32 2147483647, %v1753_v12 }
 0x16e   : > { %v9443_v43 = vmin.u32 %v1948_v5, %v11806_v27  ;;  %v2222_v45 = vor.u32 %v2221_v57, %v2220_v49  ;;  %vm2101_vm3 = vcmp.gt.s32.totalorder %v2100_v40, 0  ;;  %vm2229_vm9 = vcmp.lt.s32.totalorder %v2207_v21, 4 }
 0x16f   : > { %v2225_v29 = vor.u32 %v2224_v52, %v2223_v11  ;;  %v2242_v10 = vshll.u32 %v2202_v13, 8  ;;  %v2062_v30 = vsub.s32 4294967266, %v11804_v46  ;;  %v2210_v6 = vshrl.u32 %v15517_v22, %v2209_v50  ;;  %v527_v11 = vpop.permute.xlu1 %526 }
 0x170   : > { %vm2226_vm13 = vcmp.lt.s32.totalorder %v2207_v21, 1  ;;  %v2231_v19 = vsel %vm2229_vm9, %v2219_v38, 2102212464  ;;  %v11824_v53 = vpop.eup %10526  ;;  %vm2228_vm1 = vcmp.lt.s32.totalorder %v2207_v21, 3  ;;  %v2235_v35 = vsel %vm2229_vm9, %v2222_v45, 920167782 }
 0x171   : > { %15533 = vst [vmem:[#allocation33_spill] sm:$0xff] %v11824_v53  ;;  %v2234_v12 = vsel %vm2226_vm13, %v2213_v14, %v2216_v4  ;;  %v2102_v39 = vsel %vm2101_vm3, %v2100_v40, 0  ;;  %v1950_v51 = vclz %v9443_v43  ;;  %vm2227_vm2 = vcmp.lt.s32.totalorder %v2207_v21, 2 }
 0x172   : > { %v2230_v54 = vsel %vm2226_vm13, %v2210_v6, %v2213_v14  ;;  %v2236_v13 = vsel %vm2228_vm1, %v2219_v38, %v2235_v35  ;;  %v2232_v5 = vsel %vm2228_vm1, %v2216_v4, %v2231_v19  ;;  %v2238_v57 = vsel %vm2226_vm13, %v2216_v4, %v2219_v38 }
 0x173   : > { %v2237_v49 = vsel %vm2227_vm2, %v2234_v12, %v2236_v13  ;;  %v2239_v50 = vsel %vm2229_vm9, %v2225_v29, 1326507024  ;;  %v15534_v26 = vand.u32 2147483647, %v11738_v23  ;;  %v2063_v14 = vadd.s32 127, %v2062_v30 }
 0x174   : > { %v2240_v52 = vsel %vm2228_vm1, %v2222_v45, %v2239_v50  ;;  %v11829_v44 = vmul.u32.u64.low %v2242_v10, %v2237_v49  ;;  %v11830_v63 = vmul.u32.u64.high %v2242_v10, %v2237_v49, %v11829_v44  ;;  %v2104_v19 = vand.u32 31, %v2102_v39  ;;  %v10649_v45 = vld [vmem:[%s10903_s19 + $0x68] sm:$0xff] }
 0x175   : > { %v2097_v40 = vand.u32 8388607, %v15534_v26  ;;  %v2241_v6 = vsel %vm2227_vm2, %v2238_v57, %v2240_v52  ;;  %v11837_v35 = vmul.f32 %v1756_v55, %v1754_v3  ;;  %v2042_v4 = vadd.s32 %v11665_v56, %v11671_v34 }
 0x176   : > { %v2233_v38 = vsel %vm2227_vm2, %v2230_v54, %v2232_v5  ;;  %v11844_v29 = vsel %vm15312_vm0, %v10649_v45, %v527_v11  ;;  %v9444_v12 = vadd.s32 4294967294, %v1950_v51  ;;  %v2105_v49 = vsub.s32 32, %v2104_v19 }
 0x177   : > { %15535 = vst [vmem:[#allocation34_spill] sm:$0xff] %v11844_v29  ;;  %v11846_v13 = vmul.u32.u64.low %v2242_v10, %v2241_v6  ;;  %v11847_v26 = vmul.u32.u64.high %v2242_v10, %v2241_v6, %v11846_v13  ;;  %v2058_v30 = vsub.s32 32, %v11804_v46  ;;  %v2059_v55 = vshll.u32 %v11715_v8, %v11804_v46 }
 0x178   : > { %v2252_v3 = vadd.s32 1, %v11830_v63  ;;  %v2098_v57 = vor.u32 8388608, %v2097_v40  ;;  %v2064_v56 = vshll.u32 %v2063_v14, 23  ;;  %v2249_v34 = vmul.u32 %v2242_v10, %v2233_v38 }
 0x179   : > { %v2108_v21 = vshrl.u32 %v15518_v25, %v2105_v49  ;;  %v2111_v54 = vshrl.u32 %v15519_v28, %v2105_v49  ;;  %v2107_v51 = vshll.u32 %v15517_v22, %v2104_v19  ;;  %v2110_v5 = vshll.u32 %v15518_v25, %v2104_v19 }
 0x17a   : > { %v2113_v50 = vshll.u32 %v15519_v28, %v2104_v19  ;;  %v2114_v11 = vshrl.u32 %v15520_v37, %v2105_v49  ;;  %vm9445_vm4 = vcmp.lt.s32.totalorder %v9444_v12, 0  ;;  %vm2251_vm5 = vc.u32 %v11847_v26, %v11829_v44 }
 0x17b   : > { %v2103_v8 = vshrl.u32 %v2102_v39, 5  ;;  %v2116_v46 = vshll.u32 %v15520_v37, %v2104_v19  ;;  %v15536_v10 = vand.u32 2147483647, %v11295_v60  ;;  %v2253_v40 = vsel %vm2251_vm5, %v2252_v3, %v11830_v63 }
 0x17c   : > { %v2109_v14 = vor.u32 %v2108_v21, %v2107_v51  ;;  %v2112_v6 = vor.u32 %v2111_v54, %v2110_v5  ;;  %v2115_v38 = vor.u32 %v2114_v11, %v2113_v50  ;;  %v11869_v45 = vadd.s32 %v2253_v40, %v2249_v34 }
 0x17d   : > { %vm11864_vm6 = vcmp.le.f32.partialorder %v15536_v10, 0.7853982  ;;  %v2117_v13 = vshrl.u32 %v15521_v36, %v2105_v49  ;;  %v2119_v43 = vshll.u32 %v15521_v36, %v2104_v19  ;;  %v2120_v39 = vshrl.u32 %v15523_v59, %v2105_v49 }
 0x17e   : > { %v2060_v53 = vshrl.u32 %v2042_v4, %v2058_v30  ;;  %v2065_v9 = vor.u32 4788187, %v2064_v56  ;;  %v2138_v18 = vshll.u32 %v2098_v57, 8  ;;  %v2405_v10 = vand.u32 2139095040, %v11844_v29 }
 0x17f   : > { %v2255_v20 = vadd.s32 536870912, %v11869_v45  ;;  %v2118_v24 = vor.u32 %v2117_v13, %v2116_v46  ;;  %v2121_v63 = vor.u32 %v2120_v39, %v2119_v43  ;;  %vm2122_vm7 = vcmp.lt.s32.totalorder %v2103_v8, 1 }
 0x180   : > { %v11877_v3 = vsel %vm9445_vm4, 0, %v9444_v12  ;;  %v2106_v34 = vshrl.u32 %v15517_v22, %v2105_v49  ;;  %vm2125_vm11 = vcmp.lt.s32.totalorder %v2103_v8, 4  ;;  %v2130_v21 = vsel %vm2122_vm7, %v2109_v14, %v2112_v6 }
 0x181   : > { %vm2124_vm14 = vcmp.lt.s32.totalorder %v2103_v8, 3  ;;  %v2127_v19 = vsel %vm2125_vm11, %v2115_v38, 2102212464  ;;  %v2131_v54 = vsel %vm2125_vm11, %v2118_v24, 920167782  ;;  %v2134_v4 = vsel %vm2122_vm7, %v2112_v6, %v2115_v38 }
 0x182   : > { %vm1676_vm12 = vcmp.lt.s32.totalorder %v11397_v62, 0  ;;  %vm2123_vm3 = vcmp.lt.s32.totalorder %v2103_v8, 2  ;;  %v2132_v30 = vsel %vm2124_vm14, %v2115_v38, %v2131_v54  ;;  %v2135_v57 = vsel %vm2125_vm11, %v2121_v63, 1326507024 }
 0x183   : > { %v2406_v56 = vshrl.u32 %v2405_v10, 23  ;;  %v11881_v51 = vshrl.u32 %v2255_v20, 30  ;;  %v2126_v43 = vsel %vm2122_vm7, %v2106_v34, %v2109_v14  ;;  %v2133_v12 = vsel %vm2123_vm3, %v2130_v21, %v2132_v30  ;;  %v525_v30 = vpop.permute.xlu0 %524 }
 0x184   : > { %v2136_v5 = vsel %vm2124_vm14, %v2118_v24, %v2135_v57  ;;  %v2128_v50 = vsel %vm2124_vm14, %v2112_v6, %v2127_v19  ;;  %v11885_v11 = vmul.u32.u64.low %v2138_v18, %v2133_v12  ;;  %v11886_v46 = vmul.u32.u64.high %v2138_v18, %v2133_v12, %v11885_v11 }
 0x185   : > { %v2137_v49 = vsel %vm2123_vm3, %v2134_v4, %v2136_v5  ;;  %10528 = vsinq.f32 %v11775_v17  ;;  %v1554_v40 = vsel %vm11756_vm8, %v11253_v42, %v11788_v0  ;;  %v11897_v20 = vsel %vm11864_vm6, 0, %v11798_v15 }
 0x186   : > { %15539 = vst [vmem:[#allocation35_spill] sm:$0xff] %v11897_v20  ;;  %v1958_v24 = vsub.s32 4294967266, %v11877_v3  ;;  %v15540_v14 = vxor.u32 2147483648, %v11800_v1  ;;  %v2061_v38 = vor.u32 %v2060_v53, %v2059_v55  ;;  %v15541_v31 = vand.u32 2147483647, %v11397_v62 }
 0x187   : > { %v11905_v17 = vmul.u32.u64.low %v2138_v18, %v2137_v49  ;;  %v11906_v13 = vmul.u32.u64.high %v2138_v18, %v2137_v49, %v11905_v17  ;;  %v1758_v15 = vxor.u32 2147483648, %v11837_v35  ;;  %v2066_v39 = vand.u32 2147483647, %v2065_v9 }
 0x188   : > { %v1863_v6 = vsel %vm1780_vm10, %v15540_v14, %v11800_v1  ;;  %vm11910_vm8 = vcmp.le.f32.partialorder %v15541_v31, 0.7853982  ;;  %v2129_v10 = vsel %vm2123_vm3, %v2126_v43, %v2128_v50  ;;  %v9462_v63 = vadd.s32 4294967169, %v2406_v56 }
 0x189   : > { %v2257_v34 = vshll.u32 %v11881_v51, 30  ;;  %v2148_v1 = vadd.s32 1, %v11886_v46  ;;  %v608_v53 = vmul.f32 8.0, %v11606_v7  ;;  %v607_v55 = vmul.f32 8.0, %v11610_v58 }
 0x18a   : > { %10530 = vcosq.f32 %v1554_v40  ;;  %v1954_v21 = vsub.s32 32, %v11877_v3  ;;  %v1959_v19 = vadd.s32 127, %v1958_v24  ;;  %v2412_v54 = vadd.s32 1, %v9462_v63 }
 0x18b   : > { %v11924_v9 = vsel %vm11864_vm6, %v11295_v60, %v1863_v6  ;;  %v2068_v8 = vcvt.s32.f32 %v2061_v38  ;;  %v2145_v4 = vmul.u32 %v2138_v18, %v2129_v10  ;;  %vm2147_vm10 = vc.u32 %v11906_v13, %v11885_v11  ;;  %811 = vrot.lane.b32.xlu1 %v608_v53, %s10768_s17  ;;  %809 = vrot.lane.b32.xlu0 %v607_v55, %s10768_s17 }
 0x18c   : > { %v1759_v7 = vsel %vm1676_vm12, %v1758_v15, %v11837_v35  ;;  %v1938_v58 = vadd.s32 %v11740_v16, %v11734_v32  ;;  %v2149_v52 = vsel %vm2147_vm10, %v2148_v1, %v11886_v46  ;;  %vm2413_vm9 = vcmp.gt.s32.totalorder %v2412_v54, 0  ;;  %v10650_v16 = vld [vmem:[%s10903_s19 + $0x60] sm:$0xff] }
 0x18d   : > { %v2069_v18 = vmul.f32 %v2068_v8, %v2066_v39  ;;  %v11937_v57 = vsub.s32 %v11869_v45, %v2257_v34  ;;  %v2150_v56 = vadd.s32 %v2149_v52, %v2145_v4  ;;  %v2414_v43 = vsel %vm2413_vm9, %v2412_v54, 0 }
 0x18e   : > { %v1956_v12 = vshrl.u32 %v1938_v58, %v1954_v21  ;;  %v1960_v5 = vshll.u32 %v1959_v19, 23  ;;  %v15257_v50 = vand.u32 2147483647, %v11844_v29  ;;  %v2416_v49 = vand.u32 31, %v2414_v43 }
 0x18f   : > { %10532 = vsinq.f32 %v1554_v40  ;;  %vm1988_vm13 = vcmp.lt.s32.totalorder %v11531_v2, 0  ;;  %v2151_v32 = vadd.s32 536870912, %v2150_v56  ;;  %v11944_v46 = vsel %vm15312_vm0, %v10650_v16, %v525_v30  ;;  %v11946_v24 = vpop.eup %10528 }
 0x190   : > { %15544 = vst [vmem:[#allocation36_spill] sm:$0xff] %v11944_v46  ;;  %15545 = vst [vmem:[#allocation37_spill] sm:$0xff] %v11946_v24  ;;  %10534 = vcosq.f32 %v11924_v9  ;;  %v1955_v14 = vshll.u32 %v11806_v27, %v11877_v3  ;;  %v2417_v6 = vsub.s32 32, %v2416_v49  ;;  %v11955_v40 = vsel %vm11910_vm8, %v11397_v62, %v1759_v7 }
 0x191   : > { %v2070_v38 = vxor.u32 2147483648, %v2069_v18  ;;  %v2260_v17 = vsub.s32 0, %v11937_v57  ;;  %v11958_v31 = vshrl.u32 %v2151_v32, 30  ;;  %v1961_v39 = vor.u32 4788187, %v1960_v5 }
 0x192   : > { %v1957_v15 = vor.u32 %v1956_v12, %v1955_v14  ;;  %v2409_v10 = vand.u32 8388607, %v15257_v50  ;;  %v2301_v63 = vand.u32 2139095040, %v11944_v46  ;;  %v2419_v3 = vshll.u32 %v15517_v22, %v2416_v49 }
 0x193   : > { %v2153_v27 = vshll.u32 %v11958_v31, 30  ;;  %v2420_v34 = vshrl.u32 %v15518_v25, %v2417_v6  ;;  %v2423_v1 = vshrl.u32 %v15519_v28, %v2417_v6  ;;  %v2422_v55 = vshll.u32 %v15518_v25, %v2416_v49 }
 0x194   : > { %v11967_v53 = vpop.eup %10530  ;;  %v2425_v21 = vshll.u32 %v15519_v28, %v2416_v49  ;;  %v2426_v19 = vshrl.u32 %v15520_v37, %v2417_v6  ;;  %v2429_v54 = vshrl.u32 %v15521_v36, %v2417_v6  ;;  %v9455_v8 = vmin.u32 %v2260_v17, %v11937_v57 }
 0x195   : > { %v11974_v4 = vsub.s32 %v2150_v56, %v2153_v27  ;;  %v2415_v7 = vshrl.u32 %v2414_v43, 5  ;;  %v2428_v58 = vshll.u32 %v15520_v37, %v2416_v49  ;;  %v2410_v52 = vor.u32 8388608, %v2409_v10 }
 0x196   : > { %v2421_v30 = vor.u32 %v2420_v34, %v2419_v3  ;;  %v2424_v12 = vor.u32 %v2423_v1, %v2422_v55  ;;  %v2427_v5 = vor.u32 %v2426_v19, %v2425_v21  ;;  %v2431_v14 = vshll.u32 %v15521_v36, %v2416_v49 }
 0x197   : > { %v2156_v32 = vsub.s32 0, %v11974_v4  ;;  %v2430_v16 = vor.u32 %v2429_v54, %v2428_v58  ;;  %v2432_v50 = vshrl.u32 %v15523_v59, %v2417_v6  ;;  %v2071_v45 = vsel %vm1988_vm13, %v2070_v38, %v2069_v18 }
 0x198   : > { %v1962_v17 = vand.u32 2147483647, %v1961_v39  ;;  %v1964_v56 = vcvt.s32.f32 %v1957_v15  ;;  %v2302_v27 = vshrl.u32 %v2301_v63, 23  ;;  %v15546_v10 = vand.u32 2147483647, %v11531_v2 }
 0x199   : > { %v11982_v43 = vpop.eup %10532  ;;  %v2262_v34 = vclz %v9455_v8  ;;  %v9451_v1 = vmin.u32 %v2156_v32, %v11974_v4  ;;  %v2433_v49 = vor.u32 %v2432_v50, %v2431_v14  ;;  %vm2434_vm2 = vcmp.lt.s32.totalorder %v2415_v7, 1 }
 0x19a   : > { %vm11986_vm1 = vcmp.le.f32.partialorder %v15546_v10, 0.7853982  ;;  %v11991_v55 = vpop.eup %10534  ;;  %v2418_v18 = vshrl.u32 %v15517_v22, %v2417_v6  ;;  %vm2437_vm4 = vcmp.lt.s32.totalorder %v2415_v7, 4  ;;  %v2442_v38 = vsel %vm2434_vm2, %v2421_v30, %v2424_v12 }
 0x19b   : > { %15549 = vst [vmem:[#allocation38_spill] sm:$0xff] %v11991_v55  ;;  %v2450_v15 = vshll.u32 %v2410_v52, 8  ;;  %vm2436_vm5 = vcmp.lt.s32.totalorder %v2415_v7, 3  ;;  %v2439_v39 = vsel %vm2437_vm4, %v2427_v5, 2102212464  ;;  %v2446_v21 = vsel %vm2434_vm2, %v2424_v12, %v2427_v5 }
 0x19c   : > { %v2443_v63 = vsel %vm2437_vm4, %v2430_v16, 920167782  ;;  %vm2435_vm6 = vcmp.lt.s32.totalorder %v2415_v7, 2  ;;  %v2447_v54 = vsel %vm2437_vm4, %v2433_v49, 1326507024  ;;  %v9458_v58 = vadd.s32 4294967169, %v2302_v27 }
 0x19d   : > { %v2444_v19 = vsel %vm2436_vm5, %v2427_v5, %v2443_v63  ;;  %v2158_v8 = vclz %v9451_v1  ;;  %v2438_v10 = vsel %vm2434_vm2, %v2418_v18, %v2421_v30  ;;  %v2448_v32 = vsel %vm2436_vm5, %v2430_v16, %v2447_v54 }
 0x19e   : > { %v2445_v50 = vsel %vm2435_vm6, %v2442_v38, %v2444_v19  ;;  %v2440_v14 = vsel %vm2436_vm5, %v2424_v12, %v2439_v39  ;;  %v2449_v35 = vsel %vm2435_vm6, %v2446_v21, %v2448_v32  ;;  %v1965_v52 = vmul.f32 %v1964_v56, %v1962_v17  ;;  %v531_v38 = vpop.permute.xlu1 %530 }
 0x19f   : > { %v11996_v6 = vmul.u32.u64.low %v2450_v15, %v2445_v50  ;;  %v11997_v60 = vmul.u32.u64.high %v2450_v15, %v2445_v50, %v11996_v6  ;;  %v9456_v55 = vadd.s32 4294967294, %v2262_v34  ;;  %10536 = vsinq.f32 %v11924_v9 }
 0x1a0   : > { %v12000_v20 = vmul.u32.u64.low %v2450_v15, %v2449_v35  ;;  %v12001_v24 = vmul.u32.u64.high %v2450_v15, %v2449_v35, %v12000_v20  ;;  %v15550_v30 = vsub.s32 4, %v11623_v61  ;;  %vm1884_vm7 = vcmp.lt.s32.totalorder %v11602_v33, 0 }
 0x1a1   : > { %v2308_v12 = vadd.s32 1, %v9458_v58  ;;  %10538 = vcosq.f32 %v11955_v40  ;;  %v15551_v16 = vsub.s32 4, %v11704_v47  ;;  %v1968_v20 = vsub.s32 4, %v11783_v48 }
 0x1a2   : > { %v1761_v5 = vsel %vm1676_vm12, %v15550_v30, %v11623_v61  ;;  %v2441_v9 = vsel %vm2435_vm6, %v2438_v10, %v2440_v14  ;;  %v2074_v17 = vsel %vm11986_vm1, %v11531_v2, %v2071_v45  ;;  %v9452_v61 = vadd.s32 4294967294, %v2158_v8 }
 0x1a3   : > { %v2073_v35 = vsel %vm1988_vm13, %v15551_v16, %v11704_v47  ;;  %v2460_v56 = vadd.s32 1, %v11997_v60  ;;  %vm2309_vm11 = vcmp.gt.s32.totalorder %v2308_v12, 0  ;;  %v12024_v27 = vsel %vm11910_vm8, 0, %v1761_v5 }
 0x1a4   : > { %15552 = vst [vmem:[#allocation39_spill] sm:$0xff] %v12024_v27  ;;  %10540 = vsinq.f32 %v11955_v40  ;;  %v1966_v34 = vxor.u32 2147483648, %v1965_v52  ;;  %vm9457_vm14 = vcmp.lt.s32.totalorder %v9456_v55, 0  ;;  %v15553_v47 = vand.u32 2147483647, %v11602_v33 }
 0x1a5   : > { %v2457_v1 = vmul.u32 %v2450_v15, %v2441_v9  ;;  %vm2459_vm3 = vc.u32 %v12001_v24, %v11996_v6  ;;  %v15263_v45 = vand.u32 2147483647, %v11944_v46  ;;  %v2310_v49 = vsel %vm2309_vm11, %v2308_v12, 0 }
 0x1a6   : > { %vm12029_vm12 = vcmp.le.f32.partialorder %v15553_v47, 0.7853982  ;;  %v12038_v0 = vsel %vm11986_vm1, 0, %v2073_v35  ;;  %10542 = vcosq.f32 %v2074_v17  ;;  %v12043_v40 = vsel %vm1884_vm7, %v1968_v20, %v11783_v48 }
 0x1a7   : > { %15556 = vst [vmem:[#allocation40_spill] sm:$0xff] %v12038_v0  ;;  %v2461_v18 = vsel %vm2459_vm3, %v2460_v56, %v11997_v60  ;;  %v12046_v15 = vsel %vm9457_vm14, 0, %v9456_v55  ;;  %vm9453_vm8 = vcmp.lt.s32.totalorder %v9452_v61, 0  ;;  %v2312_v63 = vand.u32 31, %v2310_v49  ;;  %v10651_v55 = vld [vmem:[%s10903_s19 + $0x78] sm:$0xff] }
 0x1a8   : > { %v2462_v39 = vadd.s32 %v2461_v18, %v2457_v1  ;;  %10544 = vsinq.f32 %v2074_v17  ;;  %v1967_v3 = vsel %vm1884_vm7, %v1966_v34, %v1965_v52  ;;  %v12052_v21 = vadd.s32 %v11829_v44, %v11847_v26 }
 0x1a9   : > { %v2305_v60 = vand.u32 8388607, %v15263_v45  ;;  %v2313_v54 = vsub.s32 32, %v2312_v63  ;;  %v12059_v58 = vsel %vm15312_vm0, %v10651_v55, %v531_v38  ;;  %v2270_v8 = vsub.s32 4294967266, %v12046_v15  ;;  %v12067_v26 = vpop.eup %10536 }
 0x1aa   : > { %v2463_v48 = vadd.s32 536870912, %v2462_v39  ;;  %15557 = vst [vmem:[#allocation41_spill] sm:$0xff] %v12059_v58  ;;  %v12062_v10 = vsel %vm9453_vm8, 0, %v9452_v61  ;;  %v12064_v50 = vshrl.u32 %v2310_v49, 5  ;;  %v2315_v44 = vshll.u32 %v15517_v22, %v2312_v63  ;;  %15558 = vst [vmem:[#allocation42_spill] sm:$0xff] %v12067_v26 }
 0x1ab   : > { %v2316_v32 = vshrl.u32 %v15518_v25, %v2313_v54  ;;  %v2318_v14 = vshll.u32 %v15518_v25, %v2312_v63  ;;  %v2319_v52 = vshrl.u32 %v15519_v28, %v2313_v54  ;;  %v2321_v30 = vshll.u32 %v15519_v28, %v2312_v63  ;;  %v12073_v5 = vpop.eup %10538 }
 0x1ac   : > { %15559 = vst [vmem:[#allocation43_spill] sm:$0xff] %v12073_v5  ;;  %v2322_v12 = vshrl.u32 %v15520_v37, %v2313_v54  ;;  %v2324_v16 = vshll.u32 %v15520_v37, %v2312_v63  ;;  %v2325_v35 = vshrl.u32 %v15521_v36, %v2313_v54  ;;  %v2328_v20 = vshrl.u32 %v15523_v59, %v2313_v54 }
 0x1ad   : > { %v12079_v9 = vshrl.u32 %v2463_v48, 30  ;;  %v2317_v17 = vor.u32 %v2316_v32, %v2315_v44  ;;  %v2320_v61 = vor.u32 %v2319_v52, %v2318_v14  ;;  %v2327_v56 = vshll.u32 %v15521_v36, %v2312_v63 }
 0x1ae   : > { %v12082_v34 = vpop.eup %10540  ;;  %v12087_v47 = vsel %vm12029_vm12, %v11602_v33, %v1967_v3  ;;  %v2306_v1 = vor.u32 8388608, %v2305_v60  ;;  %v2323_v49 = vor.u32 %v2322_v12, %v2321_v30  ;;  %v2326_v18 = vor.u32 %v2325_v35, %v2324_v16 }
 0x1af   : > { %15560 = vst [vmem:[#allocation44_spill] sm:$0xff] %v12082_v34  ;;  %v2266_v38 = vsub.s32 32, %v12046_v15  ;;  %v2271_v55 = vadd.s32 127, %v2270_v8  ;;  %v2146_v48 = vadd.s32 %v11885_v11, %v11906_v13  ;;  %v2329_v44 = vor.u32 %v2328_v20, %v2327_v56  ;;  %v529_v56 = vpop.permute.xlu0 %528 }
 0x1b0   : > { %v12092_v32 = vpop.eup %10542  ;;  %v2166_v63 = vsub.s32 4294967266, %v12062_v10  ;;  %vm2330_vm10 = vcmp.lt.s32.totalorder %v12064_v50, 1  ;;  %vm2333_vm9 = vcmp.lt.s32.totalorder %v12064_v50, 4  ;;  %v2613_v3 = vand.u32 2139095040, %v12059_v58 }
 0x1b1   : > { %15561 = vst [vmem:[#allocation45_spill] sm:$0xff] %v12092_v32  ;;  %v2465_v60 = vshll.u32 %v12079_v9, 30  ;;  %v2314_v14 = vshrl.u32 %v15517_v22, %v2313_v54  ;;  %v2335_v52 = vsel %vm2333_vm9, %v2323_v49, 2102212464  ;;  %v2338_v8 = vsel %vm2330_vm10, %v2317_v17, %v2320_v61 }
 0x1b2   : > { %v12100_v30 = vpop.eup %10544  ;;  %vm2332_vm13 = vcmp.lt.s32.totalorder %v12064_v50, 3  ;;  %v2339_v11 = vsel %vm2333_vm9, %v2326_v18, 920167782  ;;  %v2342_v13 = vsel %vm2330_vm10, %v2320_v61, %v2323_v49  ;;  %v2346_v12 = vshll.u32 %v2306_v1, 8 }
 0x1b3   : > { %15562 = vst [vmem:[#allocation46_spill] sm:$0xff] %v12100_v30  ;;  %vm2331_vm1 = vcmp.lt.s32.totalorder %v12064_v50, 2  ;;  %v2334_v16 = vsel %vm2330_vm10, %v2314_v14, %v2317_v17  ;;  %v2340_v35 = vsel %vm2332_vm13, %v2323_v49, %v2339_v11  ;;  %v2343_v20 = vsel %vm2333_vm9, %v2329_v44, 1326507024  ;;  %v12116_v49 = vld [vmem:[%s10959_s29 + $0x60] sm:$0xff] }
 0x1b4   : > { %vm2196_vm2 = vcmp.lt.s32.totalorder %v11726_v41, 0  ;;  %v2336_v54 = vsel %vm2332_vm13, %v2320_v61, %v2335_v52  ;;  %v2341_v45 = vsel %vm2331_vm1, %v2338_v8, %v2340_v35  ;;  %v2344_v19 = vsel %vm2332_vm13, %v2326_v18, %v2343_v20  ;;  %v10652_v18 = vld [vmem:[%s10903_s19 + $0x70] sm:$0xff] }
 0x1b5   : > { %v2614_v2 = vshrl.u32 %v2613_v3, 23  ;;  %v12107_v32 = vsub.s32 %v2462_v39, %v2465_v60  ;;  %v2345_v1 = vsel %vm2331_vm1, %v2342_v13, %v2344_v19  ;;  %vm2092_vm4 = vcmp.lt.s32.totalorder %v11738_v23, 0  ;;  %v12132_v13 = vld [vmem:[%s10959_s29 + $0x50] sm:$0xff] }
 0x1b6   : > { %v12111_v30 = vmul.u32.u64.low %v2346_v12, %v2341_v45  ;;  %v12112_v17 = vmul.u32.u64.high %v2346_v12, %v2341_v45, %v12111_v30  ;;  %v12119_v61 = vmul.u32.u64.low %v2346_v12, %v2345_v1  ;;  %v12120_v44 = vmul.u32.u64.high %v2346_v12, %v2345_v1, %v12119_v61 }
 0x1b7   : > { %v9470_v14 = vadd.s32 4294967169, %v2614_v2  ;;  %v12124_v39 = vsel %vm15312_vm0, %v10652_v18, %v529_v56  ;;  %v2268_v3 = vshrl.u32 %v12052_v21, %v2266_v38  ;;  %v2272_v60 = vshll.u32 %v2271_v55, 23 }
 0x1b8   : > { %15563 = vst [vmem:[#allocation47_spill] sm:$0xff] %v12124_v39  ;;  %v2162_v19 = vsub.s32 32, %v12062_v10  ;;  %v2337_v45 = vsel %vm2331_vm1, %v2334_v16, %v2336_v54  ;;  %v2167_v52 = vadd.s32 127, %v2166_v63  ;;  %v577_v11 = vmul.f32 2.0, %v12116_v49 }
 0x1b9   : > { %v2620_v8 = vadd.s32 1, %v9470_v14  ;;  %v623_v2 = vmul.f32 16.0, %v12132_v13  ;;  %v2267_v35 = vshll.u32 %v11937_v57, %v12046_v15  ;;  %v2468_v20 = vsub.s32 0, %v12107_v32 }
 0x1ba   : > { %v2356_v21 = vadd.s32 1, %v12112_v17  ;;  %v15268_v38 = vand.u32 2147483647, %v12059_v58  ;;  %v2176_v50 = vsub.s32 4, %v11958_v31  ;;  %v2353_v55 = vmul.u32 %v2346_v12, %v2337_v45  ;;  %685 = vrot.lane.b32.xlu1 %v577_v11, %s10766_s15 }
 0x1bb   : > { %vm2355_vm5 = vc.u32 %v12120_v44, %v12111_v30  ;;  %vm2621_vm6 = vcmp.gt.s32.totalorder %v2620_v8, 0  ;;  %873 = vrot.lane.b32.xlu0 %v623_v2, %s10769_s18  ;;  %v2269_v63 = vor.u32 %v2268_v3, %v2267_v35  ;;  %v2273_v16 = vor.u32 4788187, %v2272_v60 }
 0x1bc   : > { %v2164_v57 = vshrl.u32 %v2146_v48, %v2162_v19  ;;  %v2357_v15 = vsel %vm2355_vm5, %v2356_v21, %v12112_v17  ;;  %v2168_v56 = vshll.u32 %v2167_v52, 23  ;;  %v2622_v1 = vsel %vm2621_vm6, %v2620_v8, 0  ;;  %v12166_v8 = vld [vmem:[%s10959_s29] sm:$0xff] }
 0x1bd   : > { %v2358_v54 = vadd.s32 %v2357_v15, %v2353_v55  ;;  %v2509_v61 = vand.u32 2139095040, %v12124_v39  ;;  %v15564_v12 = vsub.s32 4, %v11881_v51  ;;  %v9463_v18 = vmin.u32 %v2468_v20, %v12107_v32 }
 0x1be   : > { %v2617_v48 = vand.u32 8388607, %v15268_v38  ;;  %v2624_v3 = vand.u32 31, %v2622_v1  ;;  %10546 = vcosq.f32 %v12087_v47  ;;  %v2163_v17 = vshll.u32 %v11974_v4, %v12062_v10 }
 0x1bf   : > { %v12152_v14 = vsel %vm2196_vm2, %v15564_v12, %v11881_v51  ;;  %v2359_v60 = vadd.s32 536870912, %v2358_v54  ;;  %vm965_vm7 = vcmask 23552   ;;  %v2274_v19 = vand.u32 2147483647, %v2273_v16 }
 0x1c0   : > { %v2276_v45 = vcvt.s32.f32 %v2269_v63  ;;  %v12163_v51 = vsel %vm2092_vm4, %v2176_v50, %v11958_v31  ;;  %v2625_v52 = vsub.s32 32, %v2624_v3  ;;  %9955 = vmatprep.mubr.msk.f32.mxu1 %vm965_vm7, %v12166_v8  ;;  %v2165_v11 = vor.u32 %v2164_v57, %v2163_v17 }
 0x1c1   : > { %v2169_v2 = vor.u32 4788187, %v2168_v56  ;;  %v12170_v35 = vshrl.u32 %v2359_v60, 30  ;;  %v2510_v4 = vshrl.u32 %v2509_v61, 23  ;;  %v2470_v10 = vclz %v9463_v18 }
 0x1c2   : > { %v2618_v20 = vor.u32 8388608, %v2617_v48  ;;  %v2627_v21 = vshll.u32 %v15517_v22, %v2624_v3  ;;  %v2628_v55 = vshrl.u32 %v15518_v25, %v2625_v52  ;;  %v2630_v50 = vshll.u32 %v15518_v25, %v2624_v3 }
 0x1c3   : > { %v2361_v31 = vshll.u32 %v12170_v35, 30  ;;  %v2631_v63 = vshrl.u32 %v15519_v28, %v2625_v52  ;;  %v2634_v16 = vshrl.u32 %v15520_v37, %v2625_v52  ;;  %v2623_v15 = vshrl.u32 %v2622_v1, 5 }
 0x1c4   : > { %v2633_v57 = vshll.u32 %v15519_v28, %v2624_v3  ;;  %v2636_v56 = vshll.u32 %v15520_v37, %v2624_v3  ;;  %v2637_v61 = vshrl.u32 %v15521_v36, %v2625_v52  ;;  %v2629_v12 = vor.u32 %v2628_v55, %v2627_v21 }
 0x1c5   : > { %v2632_v18 = vor.u32 %v2631_v63, %v2630_v50  ;;  %v2639_v48 = vshll.u32 %v15521_v36, %v2624_v3  ;;  %v9466_v17 = vadd.s32 4294967169, %v2510_v4  ;;  %v12182_v60 = vsub.s32 %v2358_v54, %v2361_v31 }
 0x1c6   : > { %v2635_v38 = vor.u32 %v2634_v16, %v2633_v57  ;;  %v2638_v0 = vor.u32 %v2637_v61, %v2636_v56  ;;  %v2640_v33 = vshrl.u32 %v15523_v59, %v2625_v52  ;;  %v2277_v26 = vmul.f32 %v2276_v45, %v2274_v19  ;;  %v12210_v61 = vpop.permute.xlu0 %661 }
 0x1c7   : > { %v2170_v62 = vand.u32 2147483647, %v2169_v2  ;;  %v2172_v1 = vcvt.s32.f32 %v2165_v11  ;;  %v9464_v5 = vadd.s32 4294967294, %v2470_v10  ;;  %v15565_v34 = vand.u32 2147483647, %v11726_v41 }
 0x1c8   : > { %v2641_v21 = vor.u32 %v2640_v33, %v2639_v48  ;;  %vm2642_vm14 = vcmp.lt.s32.totalorder %v2623_v15, 1  ;;  %vm2645_vm3 = vcmp.lt.s32.totalorder %v2623_v15, 4  ;;  %v2658_v3 = vshll.u32 %v2618_v20, 8  ;;  %v12191_v54 = vpop.eup %10546 }
 0x1c9   : > { %vm12187_vm11 = vcmp.le.f32.partialorder %v15565_v34, 0.7853982  ;;  %15568 = vst [vmem:[#allocation48_spill] sm:$0xff] %v12191_v54  ;;  %vm2644_vm8 = vcmp.lt.s32.totalorder %v2623_v15, 3  ;;  %v2650_v4 = vsel %vm2642_vm14, %v2629_v12, %v2632_v18  ;;  %v2651_v19 = vsel %vm2645_vm3, %v2638_v0, 920167782 }
 0x1ca   : > { %v2516_v45 = vadd.s32 1, %v9466_v17  ;;  %v2364_v11 = vsub.s32 0, %v12182_v60  ;;  %vm2643_vm10 = vcmp.lt.s32.totalorder %v2623_v15, 2  ;;  %v2647_v34 = vsel %vm2645_vm3, %v2635_v38, 2102212464 }
 0x1cb   : > { %v2652_v2 = vsel %vm2644_vm8, %v2635_v38, %v2651_v19  ;;  %v2626_v33 = vshrl.u32 %v15517_v22, %v2625_v52  ;;  %v2654_v20 = vsel %vm2642_vm14, %v2632_v18, %v2635_v38  ;;  %v15278_v55 = vand.u32 2147483647, %v12124_v39 }
 0x1cc   : > { %v2653_v10 = vsel %vm2643_vm10, %v2650_v4, %v2652_v2  ;;  %vm9465_vm9 = vcmp.lt.s32.totalorder %v9464_v5, 0  ;;  %v2655_v31 = vsel %vm2645_vm3, %v2641_v21, 1326507024  ;;  %v2278_v16 = vxor.u32 2147483648, %v2277_v26  ;;  %v12214_v21 = vpop.permute.xlu1 %663 }
 0x1cd   : > { %v12203_v50 = vmul.u32.u64.low %v2658_v3, %v2653_v10  ;;  %v12204_v63 = vmul.u32.u64.high %v2658_v3, %v2653_v10, %v12203_v50  ;;  %v2646_v57 = vsel %vm2642_vm14, %v2626_v33, %v2629_v12  ;;  %v2648_v56 = vsel %vm2644_vm8, %v2632_v18, %v2647_v34 }
 0x1ce   : > { %v2656_v52 = vsel %vm2644_vm8, %v2638_v0, %v2655_v31  ;;  %v2173_v48 = vmul.f32 %v2172_v1, %v2170_v62  ;;  %v9459_v38 = vmin.u32 %v2364_v11, %v12182_v60  ;;  %vm2517_vm13 = vcmp.gt.s32.totalorder %v2516_v45, 0 }
 0x1cf   : > { %v2657_v17 = vsel %vm2643_vm10, %v2654_v20, %v2656_v52  ;;  %v12216_v4 = vsel %vm9465_vm9, 0, %v9464_v5  ;;  %v2518_v12 = vsel %vm2517_vm13, %v2516_v45, 0  ;;  %v2649_v18 = vsel %vm2643_vm10, %v2646_v57, %v2648_v56  ;;  %v12252_v20 = vpop.permute.xlu0 %725 }
 0x1d0   : > { %v12218_v19 = vmul.u32.u64.low %v2658_v3, %v2657_v17  ;;  %v12219_v2 = vmul.u32.u64.high %v2658_v3, %v2657_v17, %v12218_v19  ;;  %v2668_v0 = vadd.s32 1, %v12204_v63  ;;  %v2513_v62 = vand.u32 8388607, %v15278_v55 }
 0x1d1   : > { %v2520_v1 = vand.u32 31, %v2518_v12  ;;  %v12228_v11 = vsel %vm12029_vm12, 0, %v12043_v40  ;;  %10548 = vsinq.f32 %v12087_v47  ;;  %v12234_v5 = vsel %vm12187_vm11, 0, %v12152_v14 }
 0x1d2   : > { %15569 = vst [vmem:[#allocation49_spill] sm:$0xff] %v12228_v11  ;;  %15570 = vst [vmem:[#allocation50_spill] sm:$0xff] %v12234_v5  ;;  %v15571_v15 = vand.u32 2147483647, %v11738_v23  ;;  %v2279_v34 = vsel %vm2196_vm2, %v2278_v16, %v2277_v26  ;;  %v2366_v40 = vclz %v9459_v38  ;;  %v2174_v33 = vxor.u32 2147483648, %v2173_v48 }
 0x1d3   : > { %v2521_v47 = vsub.s32 32, %v2520_v1  ;;  %v2478_v14 = vsub.s32 4294967266, %v12216_v4  ;;  %v2665_v10 = vmul.u32 %v2658_v3, %v2649_v18  ;;  %vm2667_vm12 = vc.u32 %v12219_v2, %v12203_v50 }
 0x1d4   : > { %vm12238_vm1 = vcmp.le.f32.partialorder %v15571_v15, 0.7853982  ;;  %v2669_v31 = vsel %vm2667_vm12, %v2668_v0, %v12204_v63  ;;  %v2514_v57 = vor.u32 8388608, %v2513_v62  ;;  %v2523_v52 = vshll.u32 %v15517_v22, %v2520_v1 }
 0x1d5   : > { %v12247_v7 = vsel %vm12238_vm1, 0, %v12163_v51  ;;  %v2524_v26 = vshrl.u32 %v15518_v25, %v2521_v47  ;;  %v2527_v16 = vshrl.u32 %v15519_v28, %v2521_v47  ;;  %v12257_v51 = vpop.permute.xlu1 %727  ;;  %v2670_v56 = vadd.s32 %v2669_v31, %v2665_v10 }
 0x1d6   : > { %15574 = vst [vmem:[#allocation51_spill] sm:$0xff] %v12247_v7  ;;  %v2526_v38 = vshll.u32 %v15518_v25, %v2520_v1  ;;  %v2530_v3 = vshrl.u32 %v15520_v37, %v2521_v47  ;;  %v9460_v17 = vadd.s32 4294967294, %v2366_v40  ;;  %v2529_v19 = vshll.u32 %v15519_v28, %v2520_v1 }
 0x1d7   : > { %v2532_v18 = vshll.u32 %v15520_v37, %v2520_v1  ;;  %v2533_v63 = vshrl.u32 %v15521_v36, %v2521_v47  ;;  %v2671_v0 = vadd.s32 536870912, %v2670_v56  ;;  %v2519_v62 = vshrl.u32 %v2518_v12, 5 }
 0x1d8   : > { %v2525_v15 = vor.u32 %v2524_v26, %v2523_v52  ;;  %v2528_v55 = vor.u32 %v2527_v16, %v2526_v38  ;;  %v2531_v5 = vor.u32 %v2530_v3, %v2529_v19  ;;  %v2535_v10 = vshll.u32 %v15521_v36, %v2520_v1  ;;  %v12279_v26 = vpop.permute.xlu0 %789 }
 0x1d9   : > { %v2534_v7 = vor.u32 %v2533_v63, %v2532_v18  ;;  %v2536_v31 = vshrl.u32 %v15523_v59, %v2521_v47  ;;  %v12270_v40 = vsel %vm12187_vm11, %v11726_v41, %v2279_v34  ;;  %v12274_v54 = vadd.s32 %v11996_v6, %v12001_v24  ;;  %v12289_v34 = vpop.permute.xlu1 %791 }
 0x1da   : > { %v12277_v12 = vshrl.u32 %v2671_v0, 30  ;;  %v12283_v1 = vsel %vm2092_vm4, %v2174_v33, %v2173_v48  ;;  %v12285_v16 = vadd.s32 127, %v2478_v14  ;;  %v12287_v27 = vshll.u32 %v2514_v57, 8 }
 0x1db   : > { %v2537_v52 = vor.u32 %v2536_v31, %v2535_v10  ;;  %v12291_v38 = vpop.eup %10548  ;;  %vm9461_vm2 = vcmp.lt.s32.totalorder %v9460_v17, 0  ;;  %vm2538_vm5 = vcmp.lt.s32.totalorder %v2519_v62, 1  ;;  %vm2541_vm6 = vcmp.lt.s32.totalorder %v2519_v62, 4 }
 0x1dc   : > { %15575 = vst [vmem:[#allocation52_spill] sm:$0xff] %v12291_v38  ;;  %v2673_v24 = vshll.u32 %v12277_v12, 30  ;;  %v2546_v6 = vsel %vm2538_vm5, %v2525_v15, %v2528_v55  ;;  %v2547_v3 = vsel %vm2541_vm6, %v2534_v7, 920167782  ;;  %v2550_v19 = vsel %vm2538_vm5, %v2528_v55, %v2531_v5 }
 0x1dd   : > { %v2551_v18 = vsel %vm2541_vm6, %v2537_v52, 1326507024  ;;  %v2522_v33 = vshrl.u32 %v15517_v22, %v2521_v47  ;;  %vm2540_vm4 = vcmp.lt.s32.totalorder %v2519_v62, 3  ;;  %v2543_v14 = vsel %vm2541_vm6, %v2531_v5, 2102212464  ;;  %v12307_v38 = vpop.permute.xlu1 %665 }
 0x1de   : > { %v12294_v48 = vsub.s32 %v2670_v56, %v2673_v24  ;;  %v12297_v57 = vsel %vm9461_vm2, 0, %v9460_v17  ;;  %vm2539_vm11 = vcmp.lt.s32.totalorder %v2519_v62, 2  ;;  %v2548_v63 = vsel %vm2540_vm4, %v2531_v5, %v2547_v3  ;;  %v854_v56 = vpop.permute.xlu0 %853 }
 0x1df   : > { %v2552_v0 = vsel %vm2540_vm4, %v2534_v7, %v2551_v18  ;;  %v2542_v31 = vsel %vm2538_vm5, %v2522_v33, %v2525_v15  ;;  %v2549_v11 = vsel %vm2539_vm11, %v2546_v6, %v2548_v63  ;;  %v2544_v24 = vsel %vm2540_vm4, %v2528_v55, %v2543_v14  ;;  %v12317_v6 = vld [vmem:[%s10959_s29 + $0x68] sm:$0xff] }
 0x1e0   : > { %v2676_v10 = vsub.s32 0, %v12294_v48  ;;  %v2553_v52 = vsel %vm2539_vm11, %v2550_v19, %v2552_v0  ;;  %v639_v17 = vmul.f32 32.0, %v12132_v13  ;;  %v2374_v5 = vsub.s32 4294967266, %v12297_v57  ;;  %v10655_v19 = vld [vmem:[%s10959_s29 + $0x58] sm:$0xff] }
 0x1e1   : > { %v12303_v47 = vmul.u32.u64.low %v12287_v27, %v2553_v52  ;;  %v12304_v41 = vmul.u32.u64.high %v12287_v27, %v2553_v52, %v12303_v47  ;;  %v12312_v15 = vmul.u32.u64.low %v12287_v27, %v2549_v11  ;;  %v12313_v3 = vmul.u32.u64.high %v12287_v27, %v2549_v11, %v12312_v15 }
 0x1e2   : > { %v9471_v7 = vmin.u32 %v2676_v10, %v12294_v48  ;;  %vm2404_vm14 = vcmp.lt.s32.totalorder %v11844_v29, 0  ;;  %v2474_v55 = vsub.s32 32, %v12216_v4  ;;  %v2354_v13 = vadd.s32 %v12111_v30, %v12120_v44  ;;  %937 = vrot.lane.b32.xlu1 %v639_v17, %s10770_s20  ;;  %v918_v17 = vpop.permute.xlu1 %917 }
 0x1e3   : > { %v624_v18 = vmul.f32 16.0, %v10655_v19  ;;  %v593_v33 = vmul.f32 4.0, %v12116_v49  ;;  %v2475_v11 = vshll.u32 %v12107_v32, %v12216_v4  ;;  %v2480_v14 = vshll.u32 %v12285_v16, 23 }
 0x1e4   : > { %v2545_v63 = vsel %vm2539_vm11, %v2542_v31, %v2544_v24  ;;  %vm15314_vm3 = vcmask 48128   ;;  %v2370_v0 = vsub.s32 32, %v12297_v57  ;;  %vm2563_vm8 = vc.u32 %v12304_v41, %v12312_v15  ;;  %v12345_v31 = vpop.permute.xlu0 %855 }
 0x1e5   : > { %875 = vrot.lane.b32.xlu0 %v624_v18, %s10769_s18  ;;  %v578_v30 = vmul.f32 2.0, %v12317_v6  ;;  %vm15313_vm10 = vcmask 72704   ;;  %v15576_v44 = vand.u32 2147483647, %v11844_v29  ;;  %v2375_v32 = vadd.s32 127, %v2374_v5 }
 0x1e6   : > { %v2678_v4 = vclz %v9471_v7  ;;  %v2564_v62 = vadd.s32 1, %v12313_v3  ;;  %v966_v16 = vsel %vm965_vm7, %v12166_v8, %v12210_v61  ;;  %v2561_v52 = vmul.u32 %v12287_v27, %v2545_v63  ;;  %749 = vrot.lane.b32.xlu1 %v593_v33, %s10767_s16 }
 0x1e7   : > { %vm12337_vm9 = vcmp.le.f32.partialorder %v15576_v44, 0.7853982  ;;  %v983_v24 = vsel %vm15314_vm3, %v966_v16, %v12252_v20  ;;  %v594_v47 = vmul.f32 4.0, %v12317_v6  ;;  %vm1016_vm13 = vcmask 97280  }
 0x1e8   : > { %v2476_v5 = vshrl.u32 %v12274_v54, %v2474_v55  ;;  %v2481_v7 = vor.u32 4788187, %v2480_v14  ;;  %v2565_v8 = vsel %vm2563_vm8, %v2564_v62, %v12313_v3  ;;  %v1000_v61 = vsel %vm15313_vm10, %v983_v24, %v12279_v26  ;;  %v12379_v44 = vpop.permute.xlu0 %667  ;;  %v10656_v24 = vld [vmem:[%s10959_s29 + $0x8] sm:$0xff] }
 0x1e9   : > { %v2566_v27 = vadd.s32 %v2565_v8, %v2561_v52  ;;  %687 = vrot.lane.b32.xlu0 %v578_v30, %s10766_s15  ;;  %v640_v20 = vmul.f32 32.0, %v10655_v19  ;;  %v1017_v18 = vsel %vm1016_vm13, %v1000_v61, %v854_v56  ;;  %vm1033_vm12 = vcmask 121856   ;;  %v12377_v30 = vld [vmem:[%s10959_s29 + $0x70] sm:$0xff] }
 0x1ea   : > { %v2372_v33 = vshrl.u32 %v2354_v13, %v2370_v0  ;;  %v2376_v63 = vshll.u32 %v2375_v32, 23  ;;  %v9472_v54 = vadd.s32 4294967294, %v2678_v4  ;;  %v12362_v55 = vsel %vm1033_vm12, %v1017_v18, %v918_v17  ;;  %751 = vrot.lane.b32.xlu1 %v594_v47, %s10767_s16 }
 0x1eb   : > { %15579 = vst [vmem:[#allocation53_spill] sm:$0xff] %v12362_v55  ;;  %10550 = vcosq.f32 %v12270_v40  ;;  %v2567_v3 = vadd.s32 536870912, %v2566_v27  ;;  %v610_v26 = vmul.f32 8.0, %v12317_v6  ;;  %v4365_v14 = vand.u32 2139095040, %v12362_v55 }
 0x1ec   : > { %10552 = vsinq.f32 %v12270_v40  ;;  %v2477_v19 = vor.u32 %v2476_v5, %v2475_v11  ;;  %v15580_v56 = vsub.s32 4, %v12079_v9  ;;  %v2371_v0 = vshll.u32 %v12182_v60, %v12297_v57 }
 0x1ed   : > { %v2178_v32 = vsel %vm12238_vm1, %v11738_v23, %v12283_v1  ;;  %v12385_v40 = vshrl.u32 %v2567_v3, 30  ;;  %939 = vrot.lane.b32.xlu0 %v640_v20, %s10770_s20  ;;  %v609_v11 = vmul.f32 8.0, %v12116_v49  ;;  %v2482_v4 = vand.u32 2147483647, %v2481_v7  ;;  %v920_v3 = vpop.permute.xlu0 %919 }
 0x1ee   : > { %v2489_v13 = vsel %vm2404_vm14, %v15580_v56, %v12079_v9  ;;  %v4366_v9 = vshrl.u32 %v4365_v14, 23  ;;  %v2373_v62 = vor.u32 %v2372_v33, %v2371_v0  ;;  %v2377_v60 = vor.u32 4788187, %v2376_v63  ;;  %815 = vrot.lane.b32.xlu1 %v610_v26, %s10768_s17 }
 0x1ef   : > { %vm9473_vm2 = vcmp.lt.s32.totalorder %v9472_v54, 0  ;;  %v12391_v57 = vsel %vm12337_vm9, 0, %v2489_v13  ;;  %v2569_v16 = vshll.u32 %v12385_v40, 30  ;;  %v579_v1 = vmul.f32 2.0, %v12377_v30 }
 0x1f0   : > { %15581 = vst [vmem:[#allocation54_spill] sm:$0xff] %v12391_v57  ;;  %v9538_v45 = vadd.s32 4294967169, %v4366_v9  ;;  %10554 = vcosq.f32 %v2178_v32  ;;  %v2484_v52 = vcvt.s32.f32 %v2477_v19  ;;  %v967_v47 = vsel %vm965_vm7, %v10656_v24, %v12214_v21 }
 0x1f1   : > { %v15286_v17 = vand.u32 2147483647, %v12362_v55  ;;  %v12400_v5 = vsel %vm9473_vm2, 0, %v9472_v54  ;;  %v12402_v7 = vsub.s32 %v2566_v27, %v2569_v16  ;;  %813 = vrot.lane.b32.xlu0 %v609_v11, %s10768_s17  ;;  %v625_v61 = vmul.f32 16.0, %v12116_v49  ;;  %v8070_v11 = vld [vmem:[%s15204_s4] sm:$0xff] }
 0x1f2   : > { %v4372_v8 = vadd.s32 1, %v9538_v45  ;;  %v2485_v20 = vmul.f32 %v2484_v52, %v2482_v4  ;;  %v2378_v18 = vand.u32 2147483647, %v2377_v60  ;;  %v2380_v33 = vcvt.s32.f32 %v2373_v62  ;;  %689 = vrot.lane.b32.xlu1 %v579_v1, %s10766_s15  ;;  %10005 = vmatprep.subr.mxu0 %v8070_v11 }
 0x1f3   : > { %v984_v63 = vsel %vm15314_vm3, %v967_v47, %v12257_v51  ;;  %v2572_v21 = vsub.s32 0, %v12402_v7  ;;  %v641_v27 = vmul.f32 32.0, %v12116_v49  ;;  %vm2300_vm5 = vcmp.lt.s32.totalorder %v11944_v46, 0  ;;  %10006 = vmatpush3.msra.mxu0 %v8070_v11 }
 0x1f4   : > { %v1001_v54 = vsel %vm15313_vm10, %v984_v63, %v12289_v34  ;;  %vm4373_vm1 = vcmp.gt.s32.totalorder %v4372_v8, 0  ;;  %v2686_v26 = vsub.s32 4294967266, %v12400_v5  ;;  %v4369_v14 = vand.u32 8388607, %v15286_v17  ;;  %v730_v17 = vpop.permute.xlu1 %729 }
 0x1f5   : > { %v4374_v19 = vsel %vm4373_vm1, %v4372_v8, 0  ;;  %v1018_v51 = vsel %vm1016_vm13, %v1001_v54, %v12345_v31  ;;  %v12419_v56 = vpop.eup %10550  ;;  %v9467_v34 = vmin.u32 %v2572_v21, %v12402_v7  ;;  %877 = vrot.lane.b32.xlu0 %v625_v61, %s10769_s18  ;;  %v626_v49 = vmul.f32 16.0, %v12317_v6 }
 0x1f6   : > { %15582 = vst [vmem:[#allocation55_spill] sm:$0xff] %v12419_v56  ;;  %v4376_v13 = vand.u32 31, %v4374_v19  ;;  %v12425_v0 = vsel %vm1033_vm12, %v1018_v51, %v920_v3  ;;  %v12430_v9 = vpop.eup %10552  ;;  %10556 = vsinq.f32 %v2178_v32  ;;  %v2486_v31 = vxor.u32 2147483648, %v2485_v20  ;;  %941 = vrot.lane.b32.xlu1 %v641_v27, %s10770_s20 }
 0x1f7   : > { %15583 = vst [vmem:[#allocation56_spill] sm:$0xff] %v12425_v0  ;;  %15584 = vst [vmem:[#allocation57_spill] sm:$0xff] %v12430_v9  ;;  %v2384_v4 = vsub.s32 4, %v12170_v35  ;;  %v2666_v62 = vadd.s32 %v12203_v50, %v12219_v2  ;;  %v12435_v60 = vmul.f32 %v2380_v33, %v2378_v18  ;;  %v2574_v16 = vclz %v9467_v34 }
 0x1f8   : > { %v4377_v45 = vsub.s32 32, %v4376_v13  ;;  %v595_v1 = vmul.f32 4.0, %v12377_v30  ;;  %v2682_v52 = vsub.s32 32, %v12400_v5  ;;  %v2687_v24 = vadd.s32 127, %v2686_v26 }
 0x1f9   : > { %v4370_v32 = vor.u32 8388608, %v4369_v14  ;;  %v4469_v47 = vand.u32 2139095040, %v12425_v0  ;;  %v4379_v8 = vshll.u32 %v15517_v22, %v4376_v13  ;;  %v4382_v2 = vshll.u32 %v15518_v25, %v4376_v13  ;;  %879 = vrot.lane.b32.xlu0 %v626_v49, %s10769_s18 }
 0x1fa   : > { %v4380_v50 = vshrl.u32 %v15518_v25, %v4377_v45  ;;  %v4385_v61 = vshll.u32 %v15519_v28, %v4376_v13  ;;  %v12446_v18 = vpop.eup %10554  ;;  %v4383_v33 = vshrl.u32 %v15519_v28, %v4377_v45  ;;  %v4386_v63 = vshrl.u32 %v15520_v37, %v4377_v45  ;;  %753 = vrot.lane.b32.xlu1 %v595_v1, %s10767_s16 }
 0x1fb   : > { %15585 = vst [vmem:[#allocation58_spill] sm:$0xff] %v12446_v18  ;;  %v4388_v3 = vshll.u32 %v15520_v37, %v4376_v13  ;;  %v4389_v21 = vshrl.u32 %v15521_v36, %v4377_v45  ;;  %v9468_v54 = vadd.s32 4294967294, %v2574_v16  ;;  %v4375_v27 = vshrl.u32 %v4374_v19, 5 }
 0x1fc   : > { %v4391_v26 = vshll.u32 %v15521_v36, %v4376_v13  ;;  %v4392_v14 = vshrl.u32 %v15523_v59, %v4377_v45  ;;  %v4381_v51 = vor.u32 %v4380_v50, %v4379_v8  ;;  %v4384_v34 = vor.u32 %v4383_v33, %v4382_v2 }
 0x1fd   : > { %v4387_v49 = vor.u32 %v4386_v63, %v4385_v61  ;;  %v4390_v11 = vor.u32 %v4389_v21, %v4388_v3  ;;  %v12457_v57 = vsel %vm2404_vm14, %v2486_v31, %v2485_v20  ;;  %v12463_v19 = vsel %vm2300_vm5, %v2384_v4, %v12170_v35  ;;  %v12484_v21 = vld [vmem:[%s10959_s29 + $0x78] sm:$0xff] }
 0x1fe   : > { %v2683_v13 = vshll.u32 %v12294_v48, %v12400_v5  ;;  %v2684_v16 = vshrl.u32 %v2666_v62, %v2682_v52  ;;  %v2688_v1 = vshll.u32 %v2687_v24, 23  ;;  %v4393_v8 = vor.u32 %v4392_v14, %v4391_v26  ;;  %v12474_v24 = vpop.permute.xlu1 %731 }
 0x1ff   : > { %v4470_v50 = vshrl.u32 %v4469_v47, 23  ;;  %vm9469_vm6 = vcmp.lt.s32.totalorder %v9468_v54, 0  ;;  %vm4394_vm4 = vcmp.lt.s32.totalorder %v4375_v27, 1  ;;  %vm4397_vm11 = vcmp.lt.s32.totalorder %v4375_v27, 4 }
 0x200   : > { %v4410_v2 = vshll.u32 %v4370_v32, 8  ;;  %v12467_v20 = vpop.eup %10556  ;;  %vm4396_vm14 = vcmp.lt.s32.totalorder %v4375_v27, 3  ;;  %v4399_v31 = vsel %vm4397_vm11, %v4387_v49, 2102212464  ;;  %v4402_v61 = vsel %vm4394_vm4, %v4381_v51, %v4384_v34 }
 0x201   : > { %15586 = vst [vmem:[#allocation59_spill] sm:$0xff] %v12467_v20  ;;  %v4403_v35 = vsel %vm4397_vm11, %v4390_v11, 920167782  ;;  %v4378_v4 = vshrl.u32 %v15517_v22, %v4377_v45  ;;  %vm4395_vm8 = vcmp.lt.s32.totalorder %v4375_v27, 2  ;;  %v4406_v5 = vsel %vm4394_vm4, %v4384_v34, %v4387_v49 }
 0x202   : > { %v4404_v48 = vsel %vm4396_vm14, %v4387_v49, %v4403_v35  ;;  %v4407_v52 = vsel %vm4397_vm11, %v4393_v8, 1326507024  ;;  %v15289_v32 = vand.u32 2147483647, %v12425_v0  ;;  %v9542_v47 = vadd.s32 4294967169, %v4470_v50 }
 0x203   : > { %v4405_v62 = vsel %vm4395_vm8, %v4402_v61, %v4404_v48  ;;  %v12478_v33 = vsel %vm9469_vm6, 0, %v9468_v54  ;;  %v4398_v63 = vsel %vm4394_vm4, %v4378_v4, %v4381_v51  ;;  %v4400_v45 = vsel %vm4396_vm14, %v4384_v34, %v4399_v31  ;;  %v10657_v4 = vld [vmem:[%s10959_s29 + $0x10] sm:$0xff] }
 0x204   : > { %v4408_v3 = vsel %vm4396_vm14, %v4390_v11, %v4407_v52  ;;  %v12487_v14 = vmul.u32.u64.low %v4410_v2, %v4405_v62  ;;  %v12488_v49 = vmul.u32.u64.high %v4410_v2, %v4405_v62, %v12487_v14  ;;  %v4476_v8 = vadd.s32 1, %v9542_v47  ;;  %v12513_v62 = vpop.permute.xlu1 %795 }
 0x205   : > { %v4409_v26 = vsel %vm4395_vm8, %v4406_v5, %v4408_v3  ;;  %v12491_v50 = vor.u32 %v2684_v16, %v2683_v13  ;;  %v12493_v54 = vor.u32 4788187, %v2688_v1  ;;  %v2582_v34 = vsub.s32 4294967266, %v12478_v33 }
 0x206   : > { %v12495_v61 = vmul.u32.u64.low %v4410_v2, %v4409_v26  ;;  %v12496_v51 = vmul.u32.u64.high %v4410_v2, %v4409_v26, %v12495_v61  ;;  %v4401_v11 = vsel %vm4395_vm8, %v4398_v63, %v4400_v45  ;;  %vm4477_vm2 = vcmp.gt.s32.totalorder %v4476_v8, 0 }
 0x207   : > { %v580_v31 = vmul.f32 2.0, %v12484_v21  ;;  %v12503_v35 = vadd.s32 %v12312_v15, %v12304_v41  ;;  %v4473_v13 = vand.u32 8388607, %v15289_v32  ;;  %v4478_v16 = vsel %vm4477_vm2, %v4476_v8, 0 }
 0x208   : > { %v596_v1 = vmul.f32 4.0, %v12484_v21  ;;  %v968_v48 = vsel %vm965_vm7, %v10657_v4, %v12307_v38  ;;  %v4420_v27 = vadd.s32 1, %v12488_v49  ;;  %v4480_v5 = vand.u32 31, %v4478_v16 }
 0x209   : > { %691 = vrot.lane.b32.xlu0 %v580_v31, %s10766_s15  ;;  %v642_v41 = vmul.f32 32.0, %v12317_v6  ;;  %v4417_v52 = vmul.u32 %v4410_v2, %v4401_v11  ;;  %vm4419_vm1 = vc.u32 %v12496_v51, %v12487_v14  ;;  %v985_v47 = vsel %vm15314_vm3, %v968_v48, %v730_v17  ;;  %s9405_s15 = sshll.u32 %s421_s28, 2 }
 0x20a   : > { %755 = vrot.lane.b32.xlu1 %v596_v1, %s10767_s16  ;;  %v12522_v63 = vadd.s32 127, %v2582_v34  ;;  %v4421_v45 = vsel %vm4419_vm1, %v4420_v27, %v12488_v49  ;;  %v4481_v3 = vsub.s32 32, %v4480_v5  ;;  %v4474_v8 = vor.u32 8388608, %v4473_v13  ;;  %v794_v1 = vpop.permute.xlu0 %793  ;;  %s9803_s16 = sshll.u32 %s10867_s25, 6  ;;  %s10780_s25 = smov [#allocation2]  }
 0x20b   : > { %v4422_v26 = vadd.s32 %v4421_v45, %v4417_v52  ;;  %v4479_v6 = vshrl.u32 %v4478_v16, 5  ;;  %v4483_v61 = vshll.u32 %v15517_v22, %v4480_v5  ;;  %v4486_v11 = vshll.u32 %v15518_v25, %v4480_v5  ;;  %v12536_v45 = vpop.permute.xlu1 %669 }
 0x20c   : > { %v4484_v2 = vshrl.u32 %v15518_v25, %v4481_v3  ;;  %v4487_v17 = vshrl.u32 %v15519_v28, %v4481_v3  ;;  %v4489_v31 = vshll.u32 %v15519_v28, %v4480_v5  ;;  %v4490_v49 = vshrl.u32 %v15520_v37, %v4481_v3 }
 0x20d   : > { %943 = vrot.lane.b32.xlu0 %v642_v41, %s10770_s20  ;;  %v4423_v34 = vadd.s32 536870912, %v4422_v26  ;;  %v4492_v4 = vshll.u32 %v15520_v37, %v4480_v5  ;;  %v4493_v13 = vshrl.u32 %v15521_v36, %v4481_v3  ;;  %v2578_v16 = vsub.s32 32, %v12478_v33 }
 0x20e   : > { %v4485_v48 = vor.u32 %v4484_v2, %v4483_v61  ;;  %v4488_v27 = vor.u32 %v4487_v17, %v4486_v11  ;;  %v4495_v52 = vshll.u32 %v15521_v36, %v4480_v5  ;;  %v4491_v56 = vor.u32 %v4490_v49, %v4489_v31  ;;  %v858_v31 = vpop.permute.xlu0 %857 }
 0x20f   : > { %v12538_v32 = vshrl.u32 %v4423_v34, 30  ;;  %v4494_v15 = vor.u32 %v4493_v13, %v4492_v4  ;;  %v4496_v41 = vshrl.u32 %v15523_v59, %v4481_v3  ;;  %v2584_v38 = vshll.u32 %v12522_v63, 23  ;;  %v922_v4 = vpop.permute.xlu1 %921 }
 0x210   : > { %v4482_v9 = vshrl.u32 %v15517_v22, %v4481_v3  ;;  %v12543_v23 = vshll.u32 %v4474_v8, 8  ;;  %v1002_v18 = vsel %vm15313_vm10, %v985_v47, %v794_v1  ;;  %vm4498_vm6 = vcmp.lt.s32.totalorder %v4479_v6, 1 }
 0x211   : > { %v4425_v61 = vshll.u32 %v12538_v32, 30  ;;  %v4497_v2 = vor.u32 %v4496_v41, %v4495_v52  ;;  %vm4501_vm4 = vcmp.lt.s32.totalorder %v4479_v6, 4  ;;  %vm4500_vm11 = vcmp.lt.s32.totalorder %v4479_v6, 3 }
 0x212   : > { %v4503_v5 = vsel %vm4501_vm4, %v4491_v56, 2102212464  ;;  %v4506_v11 = vsel %vm4498_vm6, %v4485_v48, %v4488_v27  ;;  %v4507_v17 = vsel %vm4501_vm4, %v4494_v15, 920167782  ;;  %vm4499_vm14 = vcmp.lt.s32.totalorder %v4479_v6, 2 }
 0x213   : > { %v12547_v34 = vsub.s32 %v4422_v26, %v4425_v61  ;;  %v4508_v63 = vsel %vm4500_vm11, %v4491_v56, %v4507_v17  ;;  %v4510_v3 = vsel %vm4498_vm6, %v4488_v27, %v4491_v56  ;;  %v4502_v8 = vsel %vm4498_vm6, %v4482_v9, %v4485_v48 }
 0x214   : > { %v4504_v49 = vsel %vm4500_vm11, %v4488_v27, %v4503_v5  ;;  %v4509_v47 = vsel %vm4499_vm14, %v4506_v11, %v4508_v63  ;;  %v4511_v1 = vsel %vm4501_vm4, %v4497_v2, 1326507024  ;;  %v15587_v13 = vand.u32 2147483647, %v11944_v46 }
 0x215   : > { %v4428_v26 = vsub.s32 0, %v12547_v34  ;;  %v4512_v41 = vsel %vm4500_vm11, %v4494_v15, %v4511_v1  ;;  %v12561_v61 = vmul.u32.u64.low %v12543_v23, %v4509_v47  ;;  %v12562_v56 = vmul.u32.u64.high %v12543_v23, %v4509_v47, %v12561_v61 }
 0x216   : > { %vm12554_vm8 = vcmp.le.f32.partialorder %v15587_v13, 0.7853982  ;;  %v4513_v9 = vsel %vm4499_vm14, %v4510_v3, %v4512_v41  ;;  %v1019_v48 = vsel %vm1016_vm13, %v1002_v18, %v858_v31  ;;  %v612_v27 = vmul.f32 8.0, %v12484_v21 }
 0x217   : > { %v611_v2 = vmul.f32 8.0, %v12377_v30  ;;  %vm2612_vm2 = vcmp.lt.s32.totalorder %v12059_v58, 0  ;;  %v2580_v5 = vshrl.u32 %v12503_v35, %v2578_v16  ;;  %v12576_v17 = vsel %vm1033_vm12, %v1019_v48, %v922_v4  ;;  %v12585_v16 = vpop.permute.xlu0 %859 }
 0x218   : > { %v12572_v11 = vmul.u32.u64.low %v12543_v23, %v4513_v9  ;;  %v12573_v15 = vmul.u32.u64.high %v12543_v23, %v4513_v9, %v12572_v11  ;;  %15590 = vst [vmem:[#allocation60_spill] sm:$0xff] %v12576_v17  ;;  %v2579_v63 = vshll.u32 %v12402_v7, %v12478_v33  ;;  %v9539_v18 = vmin.u32 %v4428_v26, %v12547_v34  ;;  %819 = vrot.lane.b32.xlu1 %v612_v27, %s10768_s17 }
 0x219   : > { %v4505_v31 = vsel %vm4499_vm14, %v4502_v8, %v4504_v49  ;;  %817 = vrot.lane.b32.xlu0 %v611_v2, %s10768_s17  ;;  %v4573_v35 = vand.u32 2139095040, %v12576_v17  ;;  %v2585_v3 = vor.u32 4788187, %v2584_v38  ;;  %v4524_v47 = vadd.s32 1, %v12562_v56  ;;  %s423_s17 = scalar_lea.vmem [#allocation2], %s9405_s15  ;;  %s10705_s15 = sshll.u32 %s10780_s25, 4  ;;  %s10706_s15 = int_to_ptr.vmem [resolvable:$false] %s10705_s15 }
 0x21a   : > { %v628_v1 = vmul.f32 16.0, %v12484_v21  ;;  %v627_v4 = vmul.f32 16.0, %v12377_v30  ;;  %v2490_v7 = vsel %vm12337_vm9, %v11844_v29, %v12457_v57  ;;  %v15591_v33 = vand.u32 2147483647, %v12059_v58  ;;  %s10707_s1 = scalar_lea.vmem %s10706_s15, 128 }
 0x21b   : > { %v15594_v8 = vand.u32 2147483647, %v12493_v54  ;;  %v15595_v38 = vcvt.s32.f32 %v12491_v50  ;;  %v2696_v13 = vsub.s32 4, %v12277_v12  ;;  %v4574_v26 = vshrl.u32 %v4573_v35, 23 }
 0x21c   : > { %vm12596_vm1 = vcmp.le.f32.partialorder %v15591_v33, 0.7853982  ;;  %v15596_v41 = vxor.u32 2147483648, %v12435_v60  ;;  %vm2508_vm9 = vcmp.lt.s32.totalorder %v12124_v39, 0  ;;  %v2581_v57 = vor.u32 %v2580_v5, %v2579_v63  ;;  %883 = vrot.lane.b32.xlu1 %v628_v1, %s10769_s18 }
 0x21d   : > { %v2693_v49 = vmul.f32 %v15595_v38, %v15594_v8  ;;  %v4521_v9 = vmul.u32 %v12543_v23, %v4505_v31  ;;  %vm4523_vm6 = vc.u32 %v12573_v15, %v12561_v61  ;;  %v4430_v54 = vclz %v9539_v18  ;;  %881 = vrot.lane.b32.xlu0 %v627_v4, %s10769_s18  ;;  %v12623_v18 = vpop.permute.xlu0 %671  ;;  %s9330_s18 = sshll.u32 %s423_s17, 4  ;;  %s15160_s18 = int_to_ptr.vmem [resolvable:$true] %s9330_s18 }
 0x21e   : > { %v2383_v10 = vsel %vm2300_vm5, %v15596_v41, %v12435_v60  ;;  %v4525_v50 = vsel %vm4523_vm6, %v4524_v47, %v12562_v56  ;;  %v9546_v48 = vadd.s32 4294967169, %v4574_v26  ;;  %v644_v27 = vmul.f32 32.0, %v12484_v21  ;;  %s10701_s0 = scalar_lea.vmem %s15160_s18, 64  ;;  %p10708_p0 = scmp.lt.s32.totalorder %s15160_s18, %s10706_s15 }
 0x21f   : > { %10558 = vcosq.f32 %v2490_v7  ;;  %v2586_v60 = vand.u32 2147483647, %v2585_v3  ;;  %v4526_v2 = vadd.s32 %v4525_v50, %v4521_v9  ;;  %v643_v5 = vmul.f32 32.0, %v12377_v30  ;;  %p10702_p11 = scmp.ne.s32.totalorder %s15160_s18, %s10701_s0  ;;  %p10709_p1 = scmp.lt.s32.totalorder %s10707_s1, %s10701_s0 }
 0x220   : > { %v2386_v23 = vsel %vm12554_vm8, %v11944_v46, %v2383_v10  ;;  %v2694_v11 = vxor.u32 2147483648, %v2693_v49  ;;  %v15294_v63 = vand.u32 2147483647, %v12576_v17  ;;  %v4580_v56 = vadd.s32 1, %v9546_v48  ;;  %947 = vrot.lane.b32.xlu1 %v644_v27, %s10770_s20 }
 0x221   : > { %10560 = vsinq.f32 %v2490_v7  ;;  %v12628_v21 = vsel %vm12554_vm8, 0, %v12463_v19  ;;  %v2588_v31 = vcvt.s32.f32 %v2581_v57  ;;  %v4527_v35 = vadd.s32 536870912, %v4526_v2  ;;  %945 = vrot.lane.b32.xlu0 %v643_v5, %s10770_s20  ;;  %v10658_v7 = vld [vmem:[%s10959_s29 + $0x18] sm:$0xff]  ;;  %v924_v10 = vpop.permute.xlu0 %923  ;;  %s15158_s20 = scalar_lea.hbm %s15212_s12, %s9803_s16  ;;  %p10703_p12 = pnand %p10702_p11, %p10884_p5 }
 0x222   : > { %15597 = vst [vmem:[#allocation61_spill] sm:$0xff] %v12628_v21  ;;  %v2697_v30 = vsel %vm2612_vm2, %v2696_v13, %v12277_v12  ;;  %v2592_v3 = vsub.s32 4, %v12385_v40  ;;  %v9540_v47 = vadd.s32 4294967294, %v4430_v54  ;;  %vm4581_vm5 = vcmp.gt.s32.totalorder %v4580_v56, 0  ;;  %p10710_p2 = por %p10709_p1, %p10708_p0 }
 0x223   : > { %10562 = vcosq.f32 %v2386_v23  ;;  %v2589_v1 = vmul.f32 %v2588_v31, %v2586_v60  ;;  %v12636_v4 = vshrl.u32 %v4527_v35, 30  ;;  %v4582_v19 = vsel %vm4581_vm5, %v4580_v56, 0  ;;  %p10704_p13 = pneg %p10703_p12 }
 0x224   : > { %v2695_v52 = vsel %vm2612_vm2, %v2694_v11, %v2693_v49  ;;  %v969_v12 = vsel %vm965_vm7, %v10658_v7, %v12379_v44  ;;  %v4577_v33 = vand.u32 8388607, %v15294_v63  ;;  %v4584_v8 = vand.u32 31, %v4582_v19 }
 0x225   : > { %10564 = vsinq.f32 %v2386_v23  ;;  %v12647_v38 = vsel %vm12596_vm1, 0, %v2697_v30  ;;  %v986_v13 = vsel %vm15314_vm3, %v969_v12, %v12474_v24  ;;  %v4529_v26 = vshll.u32 %v12636_v4, 30  ;;  %p10711_p3 = pnand %p10710_p2, %p10704_p13 }
 0x226   : > { %15598 = vst [vmem:[#allocation62_spill] sm:$0xff] %v12647_v38  ;;  %v12655_v49 = vsel %vm2508_vm9, %v2592_v3, %v12385_v40  ;;  %vm9541_vm4 = vcmp.lt.s32.totalorder %v9540_v47, 0  ;;  %v1003_v44 = vsel %vm15313_vm10, %v986_v13, %v12513_v62  ;;  %v4585_v41 = vsub.s32 32, %v4584_v8 }
 0x227   : > { %v12662_v57 = vsel %vm12596_vm1, %v12059_v58, %v2695_v52  ;;  %v2590_v9 = vxor.u32 2147483648, %v2589_v1  ;;  %v12664_v24 = vsub.s32 %v4526_v2, %v4529_v26  ;;  %v1020_v54 = vsel %vm1016_vm13, %v1003_v44, %v12585_v16 }
 0x228   : > { %v4578_v50 = vor.u32 8388608, %v4577_v33  ;;  %v4587_v40 = vshll.u32 %v15517_v22, %v4584_v8  ;;  %v4588_v48 = vshrl.u32 %v15518_v25, %v4585_v41  ;;  %v4591_v62 = vshrl.u32 %v15519_v28, %v4585_v41 }
 0x229   : > { %v12671_v27 = vpop.eup %10558  ;;  %v12673_v60 = vsel %vm9541_vm4, 0, %v9540_v47  ;;  %v4532_v6 = vsub.s32 0, %v12664_v24  ;;  %v4590_v5 = vshll.u32 %v15518_v25, %v4584_v8  ;;  %v12678_v2 = vsel %vm1033_vm12, %v1020_v54, %v924_v10 }
 0x22a   : > { %15599 = vst [vmem:[#allocation63_spill] sm:$0xff] %v12671_v27  ;;  %15600 = vst [vmem:[#allocation64_spill] sm:$0xff] %v12678_v2  ;;  %v4583_v23 = vshrl.u32 %v4582_v19, 5  ;;  %v4589_v16 = vor.u32 %v4588_v48, %v4587_v40  ;;  %v4593_v11 = vshll.u32 %v15519_v28, %v4584_v8  ;;  %v4594_v56 = vshrl.u32 %v15520_v37, %v4585_v41 }
 0x22b   : > { %v12682_v31 = vpop.eup %10560  ;;  %v9543_v35 = vmin.u32 %v4532_v6, %v12664_v24  ;;  %v4592_v30 = vor.u32 %v4591_v62, %v4590_v5  ;;  %v4596_v3 = vshll.u32 %v15520_v37, %v4584_v8  ;;  %v4597_v47 = vshrl.u32 %v15521_v36, %v4585_v41 }
 0x22c   : > { %15601 = vst [vmem:[#allocation65_spill] sm:$0xff] %v12682_v31  ;;  %v4438_v52 = vsub.s32 4294967266, %v12673_v60  ;;  %v4595_v7 = vor.u32 %v4594_v56, %v4593_v11  ;;  %v4599_v12 = vshll.u32 %v15521_v36, %v4584_v8  ;;  %v4600_v19 = vshrl.u32 %v15523_v59, %v4585_v41 }
 0x22d   : > { %v12690_v33 = vpop.eup %10562  ;;  %v2591_v13 = vsel %vm2508_vm9, %v2590_v9, %v2589_v1  ;;  %v4418_v26 = vadd.s32 %v12487_v14, %v12496_v51  ;;  %v4534_v44 = vclz %v9543_v35  ;;  %v4598_v10 = vor.u32 %v4597_v47, %v4596_v3 }
 0x22e   : > { %15602 = vst [vmem:[#allocation66_spill] sm:$0xff] %v12690_v33  ;;  %v15603_v54 = vand.u32 2147483647, %v12124_v39  ;;  %v4434_v8 = vsub.s32 32, %v12673_v60  ;;  %v4601_v48 = vor.u32 %v4600_v19, %v4599_v12  ;;  %vm4602_vm14 = vcmp.lt.s32.totalorder %v4583_v23, 1 }
 0x22f   : > { %v4677_v62 = vand.u32 2139095040, %v12678_v2  ;;  %v12704_v6 = vpop.eup %10564  ;;  %v9544_v1 = vadd.s32 4294967294, %v4534_v44  ;;  %vm4605_vm8 = vcmp.lt.s32.totalorder %v4583_v23, 4  ;;  %v4610_v14 = vsel %vm4602_vm14, %v4589_v16, %v4592_v30 }
 0x230   : > { %vm12698_vm11 = vcmp.le.f32.partialorder %v15603_v54, 0.7853982  ;;  %15606 = vst [vmem:[#allocation67_spill] sm:$0xff] %v12704_v6  ;;  %v4618_v51 = vshll.u32 %v4578_v50, 8  ;;  %v4439_v9 = vadd.s32 127, %v4438_v52  ;;  %vm4604_vm2 = vcmp.lt.s32.totalorder %v4583_v23, 3 }
 0x231   : > { %v4607_v5 = vsel %vm4605_vm8, %v4595_v7, 2102212464  ;;  %v4611_v11 = vsel %vm4605_vm8, %v4598_v10, 920167782  ;;  %v4586_v56 = vshrl.u32 %v15517_v22, %v4585_v41  ;;  %vm4603_vm1 = vcmp.lt.s32.totalorder %v4583_v23, 2 }
 0x232   : > { %v4612_v35 = vsel %vm4604_vm2, %v4595_v7, %v4611_v11  ;;  %v4614_v3 = vsel %vm4602_vm14, %v4592_v30, %v4595_v7  ;;  %v4436_v47 = vshrl.u32 %v4418_v26, %v4434_v8  ;;  %v4615_v19 = vsel %vm4605_vm8, %v4601_v48, 1326507024 }
 0x233   : > { %v4613_v12 = vsel %vm4603_vm1, %v4610_v14, %v4612_v35  ;;  %v4678_v54 = vshrl.u32 %v4677_v62, 23  ;;  %vm9545_vm9 = vcmp.lt.s32.totalorder %v9544_v1, 0  ;;  %v4606_v44 = vsel %vm4602_vm14, %v4586_v56, %v4589_v16  ;;  %v10659_v56 = vld [vmem:[%s10959_s29 + $0x20] sm:$0xff] }
 0x234   : > { %v4608_v63 = vsel %vm4604_vm2, %v4592_v30, %v4607_v5  ;;  %v4616_v50 = vsel %vm4604_vm2, %v4598_v10, %v4615_v19  ;;  %v4440_v52 = vshll.u32 %v4439_v9, 23  ;;  %10566 = vcosq.f32 %v12662_v57 }
 0x235   : > { %v4617_v58 = vsel %vm4603_vm1, %v4614_v3, %v4616_v50  ;;  %v12712_v38 = vmul.u32.u64.low %v4618_v51, %v4613_v12  ;;  %v12713_v29 = vmul.u32.u64.high %v4618_v51, %v4613_v12, %v12712_v38  ;;  %v4435_v41 = vshll.u32 %v12547_v34, %v12673_v60  ;;  %v15608_v34 = vld [vmem:[#allocation16_spill] sm:$0xff]  ;;  %v15611_v60 = vld [vmem:[#allocation25_spill] sm:$0xff] }
 0x236   : > { %v12719_v7 = vmul.u32.u64.low %v4618_v51, %v4617_v58  ;;  %v12720_v26 = vmul.u32.u64.high %v4618_v51, %v4617_v58, %v12719_v7  ;;  %v12722_v8 = vsel %vm9545_vm9, 0, %v9544_v1  ;;  %v4609_v16 = vsel %vm4603_vm1, %v4606_v44, %v4608_v63 }
 0x237   : > { %v15300_v30 = vand.u32 2147483647, %v12678_v2  ;;  %v9550_v10 = vadd.s32 4294967169, %v4678_v54  ;;  %10568 = vsinq.f32 %v12662_v57  ;;  %v12730_v48 = vsel %vm12698_vm11, %v12124_v39, %v2591_v13 }
 0x238   : > { %v12735_v58 = vsel %vm12698_vm11, 0, %v12655_v49  ;;  %v12740_v63 = vsel %vm11420_vm15, 0, %v15608_v34  ;;  %v12742_v23 = vor.u32 %v4436_v47, %v4435_v41  ;;  %v12744_v62 = vor.u32 4788187, %v4440_v52 }
 0x239   : > { %15607 = vst [vmem:[#allocation68_spill] sm:$0xff] %v12735_v58  ;;  %v4628_v57 = vadd.s32 1, %v12713_v29  ;;  %v4684_v1 = vadd.s32 1, %v9550_v10  ;;  %v4538_v13 = vsub.s32 32, %v12722_v8  ;;  %v4542_v14 = vsub.s32 4294967266, %v12722_v8 }
 0x23a   : > { %v4625_v40 = vmul.u32 %v4618_v51, %v4609_v16  ;;  %vm4627_vm6 = vc.u32 %v12720_v26, %v12712_v38  ;;  %v4681_v9 = vand.u32 8388607, %v15300_v30  ;;  %v1143_v5 = vadd.s32 3, %v12740_v63  ;;  %v12776_v16 = vpop.permute.xlu1 %733 }
 0x23b   : > { %v4629_v49 = vsel %vm4627_vm6, %v4628_v57, %v12713_v29  ;;  %vm4685_vm15 = vcmp.gt.s32.totalorder %v4684_v1, 0  ;;  %v4522_v11 = vadd.s32 %v12561_v61, %v12573_v15  ;;  %v12760_v35 = vsel %vm965_vm7, %v10659_v56, %v12536_v45 }
 0x23c   : > { %v4630_v51 = vadd.s32 %v4629_v49, %v4625_v40  ;;  %v4686_v3 = vsel %vm4685_vm15, %v4684_v1, 0  ;;  %10570 = vcosq.f32 %v12730_v48  ;;  %v12770_v44 = vadd.s32 127, %v4542_v14 }
 0x23d   : > { %v4688_v12 = vand.u32 31, %v4686_v3  ;;  %v12768_v61 = vshrl.u32 %v4522_v11, %v4538_v13  ;;  %v4682_v45 = vor.u32 8388608, %v4681_v9  ;;  %v1144_v52 = vand.u32 3, %v1143_v5 }
 0x23e   : > { %v4631_v15 = vadd.s32 536870912, %v4630_v51  ;;  %v12772_v41 = vpop.eup %10566  ;;  %v4687_v5 = vshrl.u32 %v4686_v3, 5  ;;  %vm4364_vm11 = vcmp.lt.s32.totalorder %v12362_v55, 0  ;;  %vm4468_vm6 = vcmp.lt.s32.totalorder %v12425_v0, 0 }
 0x23f   : > { %v4689_v50 = vsub.s32 32, %v4688_v12  ;;  %15610 = vst [vmem:[#allocation16_spill] sm:$0xff] %v12772_v41  ;;  %v4691_v10 = vshll.u32 %v15517_v22, %v4688_v12  ;;  %v4694_v34 = vshll.u32 %v15518_v25, %v4688_v12  ;;  %v4697_v14 = vshll.u32 %v15519_v28, %v4688_v12  ;;  %v15613_v41 = vld [vmem:[#allocation6_spill] sm:$0xff] }
 0x240   : > { %v12774_v7 = vshrl.u32 %v4631_v15, 30  ;;  %v4700_v11 = vshll.u32 %v15520_v37, %v4688_v12  ;;  %v4544_v15 = vshll.u32 %v12770_v44, 23  ;;  %v12793_v57 = vshll.u32 %v4682_v45, 8 }
 0x241   : > { %v4692_v1 = vshrl.u32 %v15518_v25, %v4689_v50  ;;  %v4695_v13 = vshrl.u32 %v15519_v28, %v4689_v50  ;;  %v4698_v40 = vshrl.u32 %v15520_v37, %v4689_v50  ;;  %v12785_v49 = vpop.eup %10568  ;;  %v4701_v56 = vshrl.u32 %v15521_v36, %v4689_v50 }
 0x242   : > { %15612 = vst [vmem:[#allocation14_spill] sm:$0xff] %v12785_v49  ;;  %v4633_v9 = vshll.u32 %v12774_v7, 30  ;;  %vm1142_vm5 = vweird.f32 %v15613_v41  ;;  %vm1146_vm4 = vcmp.eq.s32.totalorder %v1144_v52, 0  ;;  %v4703_v3 = vshll.u32 %v15521_v36, %v4688_v12 }
 0x243   : > { %v4693_v30 = vor.u32 %v4692_v1, %v4691_v10  ;;  %v4696_v54 = vor.u32 %v4695_v13, %v4694_v34  ;;  %v4699_v29 = vor.u32 %v4698_v40, %v4697_v14  ;;  %v4702_v47 = vor.u32 %v4701_v56, %v4700_v11  ;;  %v15615_v10 = vld [vmem:[#allocation21_spill] sm:$0xff]  ;;  %v12803_v1 = vpop.permute.xlu1 %735 }
 0x244   : > { %v12791_v19 = vsub.s32 %v4630_v51, %v4633_v9  ;;  %v4704_v49 = vshrl.u32 %v15523_v59, %v4689_v50  ;;  %vm1145_vm14 = vcmp.lt.s32.totalorder %v1144_v52, 2  ;;  %v15614_v44 = vxor.u32 2147483648, %v15611_v60 }
 0x245   : > { %vm4706_vm8 = vcmp.lt.s32.totalorder %v4687_v5, 1  ;;  %vm4709_vm2 = vcmp.lt.s32.totalorder %v4687_v5, 4  ;;  %vm1149_vm1 = vcmp.eq.s32.totalorder %v1144_v52, 2  ;;  %v4690_v13 = vshrl.u32 %v15517_v22, %v4689_v50 }
 0x246   : > { %v1148_v34 = vsel %vm1146_vm4, %v15615_v10, %v15614_v44  ;;  %v4636_v51 = vsub.s32 0, %v12791_v19  ;;  %v12805_v45 = vpop.eup %10570  ;;  %v4705_v14 = vor.u32 %v4704_v49, %v4703_v3  ;;  %v4711_v12 = vsel %vm4709_vm2, %v4699_v29, 2102212464 }
 0x247   : > { %15616 = vst [vmem:[#allocation25_spill] sm:$0xff] %v12805_v45  ;;  %v4714_v40 = vsel %vm4706_vm8, %v4693_v30, %v4696_v54  ;;  %vm4708_vm9 = vcmp.lt.s32.totalorder %v4687_v5, 3  ;;  %v4715_v11 = vsel %vm4709_vm2, %v4702_v47, 920167782  ;;  %v4718_v56 = vsel %vm4706_vm8, %v4696_v54, %v4699_v29 }
 0x248   : > { %v9547_v9 = vmin.u32 %v4636_v51, %v12791_v19  ;;  %vm4707_vm15 = vcmp.lt.s32.totalorder %v4687_v5, 2  ;;  %v4716_v44 = vsel %vm4708_vm9, %v4699_v29, %v4715_v11  ;;  %v4719_v39 = vsel %vm4709_vm2, %v4705_v14, 1326507024  ;;  %v12825_v11 = vpop.permute.xlu1 %799 }
 0x249   : > { %v1150_v58 = vxor.u32 2147483648, %v15615_v10  ;;  %v4710_v45 = vsel %vm4706_vm8, %v4690_v13, %v4693_v30  ;;  %v4712_v50 = vsel %vm4708_vm9, %v4696_v54, %v4711_v12  ;;  %v4717_v49 = vsel %vm4707_vm15, %v4714_v40, %v4716_v44 }
 0x24a   : > { %v4720_v3 = vsel %vm4708_vm9, %v4702_v47, %v4719_v39  ;;  %v12815_v31 = vmul.u32.u64.low %v12793_v57, %v4717_v49  ;;  %v12816_v51 = vmul.u32.u64.high %v12793_v57, %v4717_v49, %v12815_v31  ;;  %v4638_v33 = vclz %v9547_v9 }
 0x24b   : > { %v4721_v27 = vsel %vm4707_vm15, %v4718_v56, %v4720_v3  ;;  %v1151_v46 = vsel %vm1149_vm1, %v1150_v58, %v15611_v60  ;;  %v4713_v54 = vsel %vm4707_vm15, %v4710_v45, %v4712_v50  ;;  %v2807_v47 = vand.u32 3, %v12740_v63 }
 0x24c   : > { %v12822_v29 = vmul.u32.u64.low %v12793_v57, %v4721_v27  ;;  %v12823_v14 = vmul.u32.u64.high %v12793_v57, %v4721_v27, %v12822_v29  ;;  %v1152_v30 = vsel %vm1145_vm14, %v1148_v34, %v1151_v46  ;;  %vm8071_vm4 = vcmask 64512   ;;  %v15618_v46 = vld [vmem:[#allocation19_spill] sm:$0xff] }
 0x24d   : > { %v1153_v39 = vsel %vm1142_vm5, nan, %v1152_v30  ;;  %10572 = vsinq.f32 %v12730_v48  ;;  %v15617_v5 = vsub.s32 4, %v12538_v32  ;;  %v4552_v13 = vsub.s32 4, %v12636_v4  ;;  %v15629_v30 = vld [vmem:[#allocation29_spill] sm:$0xff] }
 0x24e   : > { %10007 = vmatprep.mubr.msk.f32.mxu0 %vm8071_vm4, %v1153_v39  ;;  %v1247_v52 = vadd.s32 3, %v15618_v46  ;;  %v15619_v34 = vand.u32 2147483647, %v12744_v62  ;;  %v15620_v63 = vcvt.s32.f32 %v12742_v23  ;;  %v15621_v48 = vshll.u32 %v12664_v24, %v12722_v8  ;;  %v798_v62 = vpop.permute.xlu0 %797  ;;  %v15631_v46 = vld [vmem:[#allocation22_spill] sm:$0xff] }
 0x24f   : > { %v12837_v27 = vsel %vm4364_vm11, %v15617_v5, %v12538_v32  ;;  %v987_v32 = vsel %vm15314_vm3, %v12760_v35, %v12776_v16  ;;  %v4732_v40 = vadd.s32 1, %v12816_v51  ;;  %v4545_v9 = vor.u32 4788187, %v4544_v15  ;;  %v12867_v16 = vpop.permute.xlu1 %673 }
 0x250   : > { %v12846_v45 = vmul.f32 %v15620_v63, %v15619_v34  ;;  %v4541_v12 = vor.u32 %v12768_v61, %v15621_v48  ;;  %v9548_v56 = vadd.s32 4294967294, %v4638_v33  ;;  %v4729_v44 = vmul.u32 %v12793_v57, %v4713_v54 }
 0x251   : > { %vm2809_vm14 = vcmp.eq.s32.totalorder %v2807_v47, 0  ;;  %vm4731_vm8 = vc.u32 %v12823_v14, %v12815_v31  ;;  %v15622_v23 = vxor.u32 2147483648, %v15611_v60  ;;  %vm2812_vm2 = vcmp.eq.s32.totalorder %v2807_v47, 2 }
 0x252   : > { %v1248_v8 = vand.u32 3, %v1247_v52  ;;  %v4553_v35 = vsel %vm4468_vm6, %v4552_v13, %v12636_v4  ;;  %v4733_v61 = vsel %vm4731_vm8, %v4732_v40, %v12816_v51  ;;  %vm2808_vm1 = vcmp.lt.s32.totalorder %v2807_v47, 2  ;;  %v15630_v47 = vld [vmem:[#allocation28_spill] sm:$0xff]  ;;  %v862_v34 = vpop.permute.xlu0 %861 }
 0x253   : > { %v2811_v24 = vsel %vm2809_vm14, %v15615_v10, %v15622_v23  ;;  %v2814_v33 = vsel %vm2812_vm2, %v1150_v58, %v15611_v60  ;;  %v15623_v57 = vand.u32 2147483647, %v12362_v55  ;;  %v4446_v10 = vxor.u32 2147483648, %v12846_v45 }
 0x254   : > { %v15626_v50 = vand.u32 2147483647, %v12425_v0  ;;  %v4734_v4 = vadd.s32 %v4733_v61, %v4729_v44  ;;  %v1004_v3 = vsel %vm15313_vm10, %v987_v32, %v798_v62  ;;  %v2815_v58 = vsel %vm2808_vm1, %v2811_v24, %v2814_v33 }
 0x255   : > { %vm12871_vm9 = vcmp.le.f32.partialorder %v15623_v57, 0.7853982  ;;  %v4546_v60 = vand.u32 2147483647, %v4545_v9  ;;  %v4548_v51 = vcvt.s32.f32 %v4541_v12  ;;  %v12885_v29 = vsel %vm1142_vm5, nan, %v2815_v58  ;;  %v15632_v12 = vld [vmem:[#allocation8_spill] sm:$0xff]  ;;  %v926_v9 = vpop.permute.xlu1 %925 }
 0x256   : > { %vm12878_vm15 = vcmp.le.f32.partialorder %v15626_v50, 0.7853982  ;;  %v1251_v54 = vxor.u32 2147483648, %v15629_v30  ;;  %vm9549_vm14 = vcmp.lt.s32.totalorder %v9548_v56, 0  ;;  %v4735_v39 = vadd.s32 536870912, %v4734_v4  ;;  %v15633_v57 = vld [vmem:[#allocation12_spill] sm:$0xff] }
 0x257   : > { %vm1250_vm8 = vcmp.eq.s32.totalorder %v1248_v8, 0  ;;  %v1254_v5 = vxor.u32 2147483648, %v15630_v47  ;;  %vm1249_vm2 = vcmp.lt.s32.totalorder %v1248_v8, 2  ;;  %vm1253_vm0 = vcmp.eq.s32.totalorder %v1248_v8, 2  ;;  %v12896_v48 = vpop.eup %10572 }
 0x258   : > { %v1252_v13 = vsel %vm1250_vm8, %v15630_v47, %v1251_v54  ;;  %vm2912_vm10 = vcmp.eq.s32.totalorder %v15631_v46, 0  ;;  %v12891_v52 = vshrl.u32 %v4735_v39, 30  ;;  %vm2915_vm5 = vcmp.eq.s32.totalorder %v15631_v46, 2  ;;  %v15635_v39 = vld [vmem:[#allocation15_spill] sm:$0xff] }
 0x259   : > { %v1255_v41 = vsel %vm1253_vm0, %v1254_v5, %v15629_v30  ;;  %v2914_v63 = vsel %vm2912_vm10, %v15630_v47, %v1251_v54  ;;  %vm1246_vm1 = vweird.f32 %v15632_v12  ;;  %vm2911_vm3 = vcmp.lt.s32.totalorder %v15631_v46, 2  ;;  %v15639_v12 = vld [vmem:[#allocation5_spill] sm:$0xff] }
 0x25a   : > { %v1256_v32 = vsel %vm1249_vm2, %v1252_v13, %v1255_v41  ;;  %v2917_v40 = vsel %vm2915_vm5, %v1254_v5, %v15629_v30  ;;  %v12902_v44 = vsel %vm9549_vm14, 0, %v9548_v56  ;;  %v4737_v62 = vshll.u32 %v12891_v52, 30  ;;  %v15634_v30 = vld [vmem:[#allocation20_spill] sm:$0xff] }
 0x25b   : > { %v1257_v23 = vsel %vm1246_vm1, nan, %v1256_v32  ;;  %v2918_v24 = vsel %vm2911_vm3, %v2914_v63, %v2917_v40  ;;  %v4549_v8 = vmul.f32 %v4548_v51, %v4546_v60  ;;  %v1021_v61 = vsel %vm1016_vm13, %v1004_v3, %v862_v34 }
 0x25c   : > { %v12906_v33 = vsel %vm1246_vm1, nan, %v2918_v24  ;;  %10008 = vmatmul.mubr.msk.f32.vlgmr.msra.gmra.mrb[0].mxu0 %vm8071_vm4, %v1257_v23  ;;  %v1351_v50 = vadd.s32 3, %v15633_v57  ;;  %v12910_v58 = vsub.s32 %v4734_v4, %v4737_v62  ;;  %v15316_v54 = vxor.u32 2147483648, %v15634_v30 }
 0x25d   : > { %v15315_v56 = vxor.u32 2147483648, %v15635_v39  ;;  %v12915_v47 = vsel %vm1033_vm12, %v1021_v61, %v926_v9  ;;  %v12920_v60 = vsel %vm12871_vm9, 0, %v12837_v27  ;;  %v12924_v3 = vsel %vm12878_vm15, 0, %v4553_v35 }
 0x25e   : > { %15636 = vst [vmem:[#allocation6_spill] sm:$0xff] %v12915_v47  ;;  %15637 = vst [vmem:[#allocation21_spill] sm:$0xff] %v12920_v60  ;;  %v4646_v51 = vsub.s32 4294967266, %v12902_v44  ;;  %v1352_v4 = vand.u32 3, %v1351_v50  ;;  %v4447_v5 = vsel %vm4364_vm11, %v4446_v10, %v12846_v45  ;;  %v4740_v13 = vsub.s32 0, %v12910_v58  ;;  %v10660_v50 = vld [vmem:[%s10959_s29 + $0x28] sm:$0xff] }
 0x25f   : > { %15638 = vst [vmem:[#allocation19_spill] sm:$0xff] %v12924_v3  ;;  %v15317_v46 = vand.u32 2147483647, %v12915_v47  ;;  %v4781_v34 = vand.u32 2139095040, %v12915_v47  ;;  %v4550_v41 = vxor.u32 2147483648, %v4549_v8  ;;  %v4642_v27 = vsub.s32 32, %v12902_v44 }
 0x260   : > { %vm1354_vm0 = vcmp.eq.s32.totalorder %v1352_v4, 0  ;;  %vm1357_vm3 = vcmp.eq.s32.totalorder %v1352_v4, 2  ;;  %v9551_v35 = vmin.u32 %v4740_v13, %v12910_v58  ;;  %vm1353_vm10 = vcmp.lt.s32.totalorder %v1352_v4, 2  ;;  %v15640_v13 = vld [vmem:[#allocation17_spill] sm:$0xff] }
 0x261   : > { %v1356_v63 = vsel %vm1354_vm0, %v15635_v39, %v15316_v54  ;;  %v1359_v45 = vsel %vm1357_vm3, %v15315_v56, %v15634_v30  ;;  %v4647_v10 = vadd.s32 127, %v4646_v51  ;;  %vm1350_vm11 = vweird.f32 %v15639_v12 }
 0x262   : > { %v1360_v32 = vsel %vm1353_vm10, %v1356_v63, %v1359_v45  ;;  %v4782_v40 = vshrl.u32 %v4781_v34, 23  ;;  %v4450_v9 = vsel %vm12871_vm9, %v12362_v55, %v4447_v5  ;;  %v4742_v62 = vclz %v9551_v35 }
 0x263   : > { %v1361_v23 = vsel %vm1350_vm11, nan, %v1360_v32  ;;  %v4785_v24 = vand.u32 8388607, %v15317_v46  ;;  %v4626_v61 = vadd.s32 %v12712_v38, %v12720_v26  ;;  %v971_v51 = vsel %vm965_vm7, %v10660_v50, %v12623_v18  ;;  %v13006_v18 = vpop.permute.xlu0 %863 }
 0x264   : > { %10010 = vmatprep.mubr.msk.f32.mxu0 %vm8071_vm4, %v1361_v23  ;;  %v9554_v4 = vadd.s32 4294967169, %v4782_v40  ;;  %v1455_v15 = vadd.s32 3, %v15640_v13  ;;  %v4551_v5 = vsel %vm4468_vm6, %v4550_v41, %v4549_v8  ;;  %v12959_v34 = vadd.s32 3, %v12924_v3  ;;  %v8281_v3 = vld [vmem:[%s15205_s5] sm:$0xff] }
 0x265   : > { %vm15641_vm9 = vcmask 48128   ;;  %v9552_v63 = vadd.s32 4294967294, %v4742_v62  ;;  %10574 = vcosq.f32 %v4450_v9  ;;  %v4644_v38 = vshrl.u32 %v4626_v61, %v4642_v27  ;;  %10031 = vmatprep.subr.mxu0 %v8281_v3 }
 0x266   : > { %v988_v35 = vsel %vm15641_vm9, %v971_v51, %v12803_v1  ;;  %v4648_v26 = vshll.u32 %v4647_v10, 23  ;;  %v4788_v45 = vadd.s32 1, %v9554_v4  ;;  %10576 = vsinq.f32 %v4450_v9  ;;  %v15643_v9 = vld [vmem:[#allocation27_spill] sm:$0xff]  ;;  %10032 = vmatpush3.msra.mxu0 %v8281_v3 }
 0x267   : > { %vm15642_vm14 = vcmask 72704   ;;  %v4786_v40 = vor.u32 8388608, %v4785_v24  ;;  %v12971_v8 = vsel %vm12878_vm15, %v12425_v0, %v4551_v5  ;;  %v4643_v1 = vshll.u32 %v12791_v19, %v12902_v44  ;;  %v15644_v24 = vld [vmem:[#allocation26_spill] sm:$0xff]  ;;  %v15645_v19 = vld [vmem:[#allocation32_spill] sm:$0xff] }
 0x268   : > { %v12966_v32 = vsel %vm15642_vm14, %v988_v35, %v12825_v11  ;;  %vm4789_vm6 = vcmp.gt.s32.totalorder %v4788_v45, 0  ;;  %v1456_v41 = vand.u32 3, %v1455_v15  ;;  %v12977_v27 = vadd.s32 %v12815_v31, %v12823_v14 }
 0x269   : > { %vm9553_vm8 = vcmp.lt.s32.totalorder %v9552_v63, 0  ;;  %v4790_v10 = vsel %vm4789_vm6, %v4788_v45, 0  ;;  %v15318_v11 = vxor.u32 2147483648, %v15643_v9  ;;  %v12980_v62 = vor.u32 %v4644_v38, %v4643_v1  ;;  %v15646_v1 = vld [vmem:[#allocation7_spill] sm:$0xff] }
 0x26a   : > { %v12982_v23 = vor.u32 4788187, %v4648_v26  ;;  %v4792_v49 = vand.u32 31, %v4790_v10  ;;  %v12985_v50 = vshll.u32 %v4786_v40, 8  ;;  %v1559_v44 = vadd.s32 3, %v15645_v19 }
 0x26b   : > { %v12990_v14 = vsel %vm9553_vm8, 0, %v9552_v63  ;;  %vm1457_vm15 = vcmp.lt.s32.totalorder %v1456_v41, 2  ;;  %vm1458_vm2 = vcmp.eq.s32.totalorder %v1456_v41, 0  ;;  %v4791_v15 = vshrl.u32 %v4790_v10, 5 }
 0x26c   : > { %v4793_v4 = vsub.s32 32, %v4792_v49  ;;  %v4795_v5 = vshll.u32 %v15517_v22, %v4792_v49  ;;  %v4798_v35 = vshll.u32 %v15518_v25, %v4792_v49  ;;  %v1460_v38 = vsel %vm1458_vm2, %v15644_v24, %v15318_v11 }
 0x26d   : > { %v4801_v40 = vshll.u32 %v15519_v28, %v4792_v49  ;;  %vm15353_vm5 = vweird.f32 %v15646_v1  ;;  %v4804_v10 = vshll.u32 %v15520_v37, %v4792_v49  ;;  %v4807_v54 = vshll.u32 %v15521_v36, %v4792_v49 }
 0x26e   : > { %v4796_v26 = vshrl.u32 %v15518_v25, %v4793_v4  ;;  %v4799_v45 = vshrl.u32 %v15519_v28, %v4793_v4  ;;  %v4802_v63 = vshrl.u32 %v15520_v37, %v4793_v4  ;;  %v4805_v56 = vshrl.u32 %v15521_v36, %v4793_v4 }
 0x26f   : > { %v4808_v46 = vshrl.u32 %v15523_v59, %v4793_v4  ;;  %v13008_v11 = vpop.eup %10574  ;;  %vm1461_vm1 = vcmp.eq.s32.totalorder %v1456_v41, 2  ;;  %vm4810_vm0 = vcmp.lt.s32.totalorder %v4791_v15, 1  ;;  %v15649_v49 = vxor.u32 2147483648, %v15644_v24 }
 0x270   : > { %15647 = vst [vmem:[#allocation29_spill] sm:$0xff] %v13008_v11  ;;  %v4797_v31 = vor.u32 %v4796_v26, %v4795_v5  ;;  %v4800_v51 = vor.u32 %v4799_v45, %v4798_v35  ;;  %v4803_v61 = vor.u32 %v4802_v63, %v4801_v40  ;;  %v13013_v55 = vpop.eup %10576  ;;  %v4806_v0 = vor.u32 %v4805_v56, %v4804_v10 }
 0x271   : > { %15648 = vst [vmem:[#allocation28_spill] sm:$0xff] %v13013_v55  ;;  %v4809_v60 = vor.u32 %v4808_v46, %v4807_v54  ;;  %v1463_v19 = vsel %vm1461_vm1, %v15649_v49, %v15643_v9  ;;  %v4794_v11 = vshrl.u32 %v15517_v22, %v4793_v4  ;;  %vm4813_vm3 = vcmp.lt.s32.totalorder %v4791_v15, 4  ;;  %v13024_v55 = vpop.permute.xlu0 %675 }
 0x272   : > { %v4818_v5 = vsel %vm4810_vm0, %v4797_v31, %v4800_v51  ;;  %v1560_v35 = vand.u32 3, %v1559_v44  ;;  %vm4812_vm10 = vcmp.lt.s32.totalorder %v4791_v15, 3  ;;  %v4815_v26 = vsel %vm4813_vm3, %v4803_v61, 2102212464 }
 0x273   : > { %v4819_v45 = vsel %vm4813_vm3, %v4806_v0, 920167782  ;;  %v4822_v40 = vsel %vm4810_vm0, %v4800_v51, %v4803_v61  ;;  %vm4811_vm9 = vcmp.lt.s32.totalorder %v4791_v15, 2  ;;  %v4823_v56 = vsel %vm4813_vm3, %v4809_v60, 1326507024 }
 0x274   : > { %v4820_v54 = vsel %vm4812_vm10, %v4803_v61, %v4819_v45  ;;  %v1464_v46 = vsel %vm1457_vm15, %v1460_v38, %v1463_v19  ;;  %v4814_v63 = vsel %vm4810_vm0, %v4794_v11, %v4797_v31  ;;  %v4816_v10 = vsel %vm4812_vm10, %v4800_v51, %v4815_v26 }
 0x275   : > { %v4821_v4 = vsel %vm4811_vm9, %v4818_v5, %v4820_v54  ;;  %v4824_v49 = vsel %vm4812_vm10, %v4806_v0, %v4823_v56  ;;  %v4750_v3 = vsub.s32 4294967266, %v12990_v14  ;;  %v4652_v60 = vcvt.s32.f32 %v12980_v62  ;;  %v928_v56 = vpop.permute.xlu0 %927 }
 0x276   : > { %v4825_v44 = vsel %vm4811_vm9, %v4822_v40, %v4824_v49  ;;  %v13029_v24 = vmul.u32.u64.low %v12985_v50, %v4821_v4  ;;  %v13030_v9 = vmul.u32.u64.high %v12985_v50, %v4821_v4, %v13029_v24  ;;  %v1465_v0 = vsel %vm15353_vm5, nan, %v1464_v46  ;;  %v15652_v40 = vld [vmem:[#allocation24_spill] sm:$0xff]  ;;  %v15654_v49 = vld [vmem:[#allocation33_spill] sm:$0xff] }
 0x277   : > { %v13035_v41 = vmul.u32.u64.low %v12985_v50, %v4825_v44  ;;  %v13036_v11 = vmul.u32.u64.high %v12985_v50, %v4825_v44, %v13035_v41  ;;  %v4650_v61 = vand.u32 2147483647, %v12982_v23  ;;  %v4817_v19 = vsel %vm4811_vm9, %v4814_v63, %v4816_v10  ;;  %10011 = vmatmul.mubr.msk.f32.gmra.mrb[2].mxu0 %vm8071_vm4, %v1465_v0  ;;  %v15653_v10 = vld [vmem:[#allocation37_spill] sm:$0xff]  ;;  %v15655_v0 = vld [vmem:[#allocation39_spill] sm:$0xff] }
 0x278   : > { %vm1562_vm14 = vcmp.eq.s32.totalorder %v1560_v35, 0  ;;  %vm1565_vm6 = vcmp.eq.s32.totalorder %v1560_v35, 2  ;;  %v4760_v51 = vsub.s32 4, %v12891_v52  ;;  %vm1561_vm8 = vcmp.lt.s32.totalorder %v1560_v35, 2 }
 0x279   : > { %v15650_v62 = vxor.u32 2147483648, %v11982_v43  ;;  %v15651_v38 = vxor.u32 2147483648, %v11967_v53  ;;  %v4751_v26 = vadd.s32 127, %v4750_v3  ;;  %v4836_v23 = vadd.s32 1, %v13030_v9 }
 0x27a   : > { %vm15350_vm15 = vweird.f32 %v11253_v42  ;;  %v4833_v45 = vmul.u32 %v12985_v50, %v4817_v19  ;;  %vm4835_vm2 = vc.u32 %v13036_v11, %v13029_v24  ;;  %v1663_v54 = vadd.s32 3, %v15652_v40 }
 0x27b   : > { %v1564_v31 = vsel %vm1562_vm14, %v11967_v53, %v15650_v62  ;;  %v1567_v5 = vsel %vm1565_vm6, %v15651_v38, %v11982_v43  ;;  %v13058_v46 = vmul.f32 %v4652_v60, %v4650_v61  ;;  %v4837_v63 = vsel %vm4835_vm2, %v4836_v23, %v13030_v9  ;;  %v15656_v61 = vld [vmem:[#allocation44_spill] sm:$0xff] }
 0x27c   : > { %v1568_v15 = vsel %vm1561_vm8, %v1564_v31, %v1567_v5  ;;  %v15332_v4 = vxor.u32 2147483648, %v15653_v10  ;;  %v15331_v3 = vxor.u32 2147483648, %v15654_v49  ;;  %vm4572_vm1 = vcmp.lt.s32.totalorder %v12576_v17, 0  ;;  %v15658_v5 = vld [vmem:[#allocation43_spill] sm:$0xff] }
 0x27d   : > { %v1569_v35 = vsel %vm15350_vm15, nan, %v1568_v15  ;;  %v4838_v50 = vadd.s32 %v4837_v63, %v4833_v45  ;;  %v1022_v44 = vsel %vm1016_vm13, %v12966_v32, %v13006_v18  ;;  %v1664_v41 = vand.u32 3, %v1663_v54  ;;  %v15659_v45 = vld [vmem:[#allocation9_spill] sm:$0xff] }
 0x27e   : > { %10013 = vmatprep.mubr.msk.f32.mxu0 %vm8071_vm4, %v1569_v35  ;;  %v1767_v19 = vadd.s32 3, %v15655_v0  ;;  %vm4676_vm0 = vcmp.lt.s32.totalorder %v12678_v2, 0  ;;  %v4746_v9 = vsub.s32 32, %v12990_v14  ;;  %v4752_v60 = vshll.u32 %v4751_v26, 23 }
 0x27f   : > { %v15329_v62 = vxor.u32 2147483648, %v15656_v61  ;;  %v13073_v31 = vsel %vm1033_vm12, %v1022_v44, %v928_v56  ;;  %v4839_v38 = vadd.s32 536870912, %v4838_v50  ;;  %vm1666_vm3 = vcmp.eq.s32.totalorder %v1664_v41, 0 }
 0x280   : > { %15657 = vst [vmem:[#allocation22_spill] sm:$0xff] %v13073_v31  ;;  %vm1669_vm10 = vcmp.eq.s32.totalorder %v1664_v41, 2  ;;  %v15330_v23 = vxor.u32 2147483648, %v15658_v5  ;;  %vm1665_vm9 = vcmp.lt.s32.totalorder %v1664_v41, 2  ;;  %v1668_v18 = vsel %vm1666_vm3, %v15654_v49, %v15332_v4 }
 0x281   : > { %v1671_v32 = vsel %vm1669_vm10, %v15331_v3, %v15653_v10  ;;  %v1768_v26 = vand.u32 3, %v1767_v19  ;;  %v13082_v15 = vshrl.u32 %v4839_v38, 30  ;;  %vm15335_vm14 = vweird.f32 %v15659_v45  ;;  %v15667_v3 = vld [vmem:[#allocation35_spill] sm:$0xff]  ;;  %v15679_v10 = vld [vmem:[#allocation48_spill] sm:$0xff] }
 0x282   : > { %v1672_v35 = vsel %vm1665_vm9, %v1668_v18, %v1671_v32  ;;  %v4885_v54 = vand.u32 2139095040, %v13073_v31  ;;  %v4748_v56 = vshrl.u32 %v12977_v27, %v4746_v9  ;;  %v15660_v27 = vand.u32 2147483647, %v12576_v17  ;;  %v15663_v18 = vld [vmem:[#allocation13_spill] sm:$0xff] }
 0x283   : > { %v1673_v63 = vsel %vm15335_vm14, nan, %v1672_v35  ;;  %vm1770_vm6 = vcmp.eq.s32.totalorder %v1768_v26, 0  ;;  %vm1773_vm8 = vcmp.eq.s32.totalorder %v1768_v26, 2  ;;  %v4841_v44 = vshll.u32 %v13082_v15, 30 }
 0x284   : > { %10014 = vmatmul.mubr.msk.f32.gmra.mrb[4].mxu0 %vm8071_vm4, %v1673_v63  ;;  %vm1769_vm2 = vcmp.lt.s32.totalorder %v1768_v26, 2  ;;  %v1772_v41 = vsel %vm1770_vm6, %v15658_v5, %v15329_v62  ;;  %v1775_v19 = vsel %vm1773_vm8, %v15330_v23, %v15656_v61  ;;  %vm13099_vm3 = vcmp.le.f32.partialorder %v15660_v27, 0.7853982 }
 0x285   : > { %v4753_v38 = vor.u32 4788187, %v4752_v60  ;;  %vm15334_vm10 = vweird.f32 %v15663_v18  ;;  %v1776_v32 = vsel %vm1769_vm2, %v1772_v41, %v1775_v19  ;;  %v4886_v35 = vshrl.u32 %v4885_v54, 23  ;;  %v15672_v19 = vld [vmem:[#allocation11_spill] sm:$0xff] }
 0x286   : > { %v15664_v26 = vand.u32 2147483647, %v12678_v2  ;;  %v13110_v62 = vsub.s32 %v4838_v50, %v4841_v44  ;;  %v1777_v23 = vsel %vm15334_vm10, nan, %v1776_v32  ;;  %v1871_v4 = vadd.s32 3, %v15667_v3  ;;  %v15669_v44 = vld [vmem:[#allocation42_spill] sm:$0xff] }
 0x287   : > { %v15668_v60 = vsub.s32 4, %v12774_v7  ;;  %v4747_v41 = vshll.u32 %v12910_v58, %v12990_v14  ;;  %10016 = vmatprep.mubr.msk.f32.mxu0 %vm8071_vm4, %v1777_v23  ;;  %v9558_v50 = vadd.s32 4294967169, %v4886_v35  ;;  %v4761_v32 = vsel %vm4676_vm0, %v4760_v51, %v12891_v52  ;;  %v15670_v3 = vld [vmem:[#allocation38_spill] sm:$0xff] }
 0x288   : > { %vm13106_vm9 = vcmp.le.f32.partialorder %v15664_v26, 0.7853982  ;;  %v4844_v26 = vsub.s32 0, %v13110_v62  ;;  %v1872_v27 = vand.u32 3, %v1871_v4  ;;  %v15338_v18 = vxor.u32 2147483648, %v15670_v3 }
 0x289   : > { %v4657_v54 = vsel %vm4572_vm1, %v15668_v60, %v12774_v7  ;;  %v4654_v7 = vxor.u32 2147483648, %v13058_v46  ;;  %v4749_v60 = vor.u32 %v4748_v56, %v4747_v41  ;;  %v4754_v58 = vand.u32 2147483647, %v4753_v38 }
 0x28a   : > { %v4892_v14 = vadd.s32 1, %v9558_v50  ;;  %v15671_v23 = vand.u32 2147483647, %v13073_v31  ;;  %vm15349_vm6 = vweird.f32 %v15672_v19  ;;  %vm1874_vm8 = vcmp.eq.s32.totalorder %v1872_v27, 0  ;;  %v15674_v50 = vld [vmem:[#allocation49_spill] sm:$0xff] }
 0x28b   : > { %vm1877_vm2 = vcmp.eq.s32.totalorder %v1872_v27, 2  ;;  %vm1873_vm14 = vcmp.lt.s32.totalorder %v1872_v27, 2  ;;  %v15673_v52 = vxor.u32 2147483648, %v15669_v44  ;;  %v9555_v56 = vmin.u32 %v4844_v26, %v13110_v62  ;;  %v10661_v26 = vld [vmem:[%s10959_s29 + $0x30] sm:$0xff] }
 0x28c   : > { %v4889_v35 = vand.u32 8388607, %v15671_v23  ;;  %vm4893_vm10 = vcmp.gt.s32.totalorder %v4892_v14, 0  ;;  %v1879_v4 = vsel %vm1877_vm2, %v15338_v18, %v15669_v44  ;;  %v1975_v23 = vadd.s32 3, %v15674_v50  ;;  %v15678_v44 = vld [vmem:[#allocation52_spill] sm:$0xff] }
 0x28d   : > { %v1876_v51 = vsel %vm1874_vm8, %v15670_v3, %v15673_v52  ;;  %v4894_v38 = vsel %vm4893_vm10, %v4892_v14, 0  ;;  %10578 = vcosq.f32 %v12971_v8  ;;  %v4756_v5 = vcvt.s32.f32 %v4749_v60 }
 0x28e   : > { %v1880_v41 = vsel %vm1873_vm14, %v1876_v51, %v1879_v4  ;;  %v4896_v61 = vand.u32 31, %v4894_v38  ;;  %10580 = vsinq.f32 %v12971_v8  ;;  %v13149_v52 = vand.u32 3, %v12959_v34  ;;  %v13170_v4 = vpop.permute.xlu1 %737 }
 0x28f   : > { %v1881_v27 = vsel %vm15349_vm6, nan, %v1880_v41  ;;  %v13153_v18 = vsel %vm13099_vm3, 0, %v4657_v54  ;;  %v13158_v14 = vsel %vm965_vm7, %v10661_v26, %v12867_v16  ;;  %v4655_v60 = vsel %vm4572_vm1, %v4654_v7, %v13058_v46 }
 0x290   : > { %15675 = vst [vmem:[#allocation8_spill] sm:$0xff] %v13149_v52  ;;  %15676 = vst [vmem:[#allocation12_spill] sm:$0xff] %v13153_v18  ;;  %10017 = vmatmul.mubr.msk.f32.gmra.mrb[6].mxu0 %vm8071_vm4, %v1881_v27  ;;  %v13164_v51 = vmul.f32 %v4756_v5, %v4754_v58  ;;  %v13168_v34 = vsel %vm13106_vm9, 0, %v4761_v32  ;;  %v4897_v8 = vsub.s32 32, %v4896_v61  ;;  %v4846_v54 = vclz %v9555_v56 }
 0x291   : > { %15677 = vst [vmem:[#allocation20_spill] sm:$0xff] %v13168_v34  ;;  %v4890_v41 = vor.u32 8388608, %v4889_v35  ;;  %v4895_v18 = vshrl.u32 %v4894_v38, 5  ;;  %v1976_v16 = vand.u32 3, %v1975_v23  ;;  %v4899_v26 = vshll.u32 %v15517_v22, %v4896_v61 }
 0x292   : > { %v4900_v27 = vshrl.u32 %v15518_v25, %v4897_v8  ;;  %v4902_v52 = vshll.u32 %v15518_v25, %v4896_v61  ;;  %v4903_v46 = vshrl.u32 %v15519_v28, %v4897_v8  ;;  %v4905_v5 = vshll.u32 %v15519_v28, %v4896_v61  ;;  %v13184_v42 = vpop.permute.xlu1 %739 }
 0x293   : > { %v4906_v32 = vshrl.u32 %v15520_v37, %v4897_v8  ;;  %v4908_v7 = vshll.u32 %v15520_v37, %v4896_v61  ;;  %v4911_v58 = vshll.u32 %v15521_v36, %v4896_v61  ;;  %v4909_v38 = vshrl.u32 %v15521_v36, %v4897_v8 }
 0x294   : > { %v4901_v56 = vor.u32 %v4900_v27, %v4899_v26  ;;  %v4904_v35 = vor.u32 %v4903_v46, %v4902_v52  ;;  %v4912_v23 = vshrl.u32 %v15523_v59, %v4897_v8  ;;  %v9556_v34 = vadd.s32 4294967294, %v4846_v54 }
 0x295   : > { %v4907_v19 = vor.u32 %v4906_v32, %v4905_v5  ;;  %v4930_v3 = vshll.u32 %v4890_v41, 8  ;;  %v15354_v50 = vxor.u32 2147483648, %v15678_v44  ;;  %v4910_v45 = vor.u32 %v4909_v38, %v4908_v7 }
 0x296   : > { %v4913_v49 = vor.u32 %v4912_v23, %v4911_v58  ;;  %vm1978_vm1 = vcmp.eq.s32.totalorder %v1976_v16, 0  ;;  %v4898_v61 = vshrl.u32 %v15517_v22, %v4897_v8  ;;  %vm4914_vm14 = vcmp.lt.s32.totalorder %v4895_v18, 1 }
 0x297   : > { %vm4917_vm10 = vcmp.lt.s32.totalorder %v4895_v18, 4  ;;  %vm1981_vm8 = vcmp.eq.s32.totalorder %v1976_v16, 2  ;;  %v13187_v52 = vpop.eup %10578  ;;  %vm4916_vm2 = vcmp.lt.s32.totalorder %v4895_v18, 3  ;;  %v4922_v26 = vsel %vm4914_vm14, %v4901_v56, %v4904_v35 }
 0x298   : > { %15680 = vst [vmem:[#allocation15_spill] sm:$0xff] %v13187_v52  ;;  %v4919_v54 = vsel %vm4917_vm10, %v4907_v19, 2102212464  ;;  %v4923_v41 = vsel %vm4917_vm10, %v4910_v45, 920167782  ;;  %v13189_v27 = vpop.eup %10580  ;;  %vm9557_vm6 = vcmp.lt.s32.totalorder %v9556_v34, 0  ;;  %v4926_v5 = vsel %vm4914_vm14, %v4904_v35, %v4907_v19 }
 0x299   : > { %15681 = vst [vmem:[#allocation5_spill] sm:$0xff] %v13189_v27  ;;  %vm4915_vm15 = vcmp.lt.s32.totalorder %v4895_v18, 2  ;;  %v4924_v46 = vsel %vm4916_vm2, %v4907_v19, %v4923_v41  ;;  %v4918_v32 = vsel %vm4914_vm14, %v4898_v61, %v4901_v56  ;;  %v4927_v58 = vsel %vm4917_vm10, %v4913_v49, 1326507024 }
 0x29a   : > { %v4925_v7 = vsel %vm4915_vm15, %v4922_v26, %v4924_v46  ;;  %v1980_v8 = vsel %vm1978_vm1, %v15679_v10, %v15354_v50  ;;  %v4920_v38 = vsel %vm4916_vm2, %v4904_v35, %v4919_v54  ;;  %v4928_v23 = vsel %vm4916_vm2, %v4910_v45, %v4927_v58  ;;  %v15683_v26 = vld [vmem:[#allocation23_spill] sm:$0xff]  ;;  %v13211_v35 = vpop.permute.xlu1 %803 }
 0x29b   : > { %v13196_v0 = vmul.u32.u64.low %v4930_v3, %v4925_v7  ;;  %v13197_v52 = vmul.u32.u64.high %v4930_v3, %v4925_v7, %v13196_v0  ;;  %v13200_v27 = vsel %vm9557_vm6, 0, %v9556_v34  ;;  %v4929_v41 = vsel %vm4915_vm15, %v4926_v5, %v4928_v23  ;;  %v15689_v23 = vld [vmem:[#allocation58_spill] sm:$0xff] }
 0x29c   : > { %vm1977_vm5 = vcmp.lt.s32.totalorder %v1976_v16, 2  ;;  %v15682_v19 = vxor.u32 2147483648, %v15679_v10  ;;  %v13207_v56 = vmul.u32.u64.low %v4930_v3, %v4929_v41  ;;  %v13208_v61 = vmul.u32.u64.high %v4930_v3, %v4929_v41, %v13207_v56  ;;  %v15684_v16 = vld [vmem:[#allocation40_spill] sm:$0xff]  ;;  %v15686_v41 = vld [vmem:[#allocation51_spill] sm:$0xff] }
 0x29d   : > { %vm1974_vm1 = vweird.f32 %v15683_v26  ;;  %v13216_v34 = vsel %vm13099_vm3, %v12576_v17, %v4655_v60  ;;  %v4921_v54 = vsel %vm4915_vm15, %v4918_v32, %v4920_v38  ;;  %v2079_v5 = vadd.s32 3, %v15684_v16  ;;  %v15688_v32 = vld [vmem:[#allocation45_spill] sm:$0xff]  ;;  %v802_v56 = vpop.permute.xlu0 %801  ;;  %v15775_v26 = vld [vmem:[#allocation51_spill] sm:$0xff] }
 0x29e   : > { %v1983_v49 = vsel %vm1981_vm8, %v15682_v19, %v15678_v44  ;;  %v4854_v7 = vsub.s32 4294967266, %v13200_v27  ;;  %v4940_v58 = vadd.s32 1, %v13197_v52  ;;  %v2183_v19 = vadd.s32 3, %v15686_v41  ;;  %v15699_v41 = vld [vmem:[#allocation36_spill] sm:$0xff] }
 0x29f   : > { %v1984_v45 = vsel %vm1977_vm5, %v1980_v8, %v1983_v49  ;;  %v15685_v8 = vld [vmem:[#allocation46_spill] sm:$0xff]  ;;  %vm15687_vm5 = vcmask 48128   ;;  %v2080_v60 = vand.u32 3, %v2079_v5  ;;  %v15358_v38 = vxor.u32 2147483648, %v15688_v32  ;;  %v13244_v5 = vpop.permute.xlu1 %677 }
 0x2a0   : > { %v1985_v46 = vsel %vm1974_vm1, nan, %v1984_v45  ;;  %v989_v18 = vsel %vm15687_vm5, %v13158_v14, %v13170_v4  ;;  %v4937_v49 = vmul.u32 %v4930_v3, %v4921_v54  ;;  %vm4939_vm15 = vc.u32 %v13208_v61, %v13196_v0 }
 0x2a1   : > { %10019 = vmatprep.mubr.msk.f32.mxu0 %vm8071_vm4, %v1985_v46  ;;  %v2184_v45 = vand.u32 3, %v2183_v19  ;;  %v15357_v46 = vxor.u32 2147483648, %v12467_v20  ;;  %v4834_v50 = vadd.s32 %v13029_v24, %v13036_v11  ;;  %v4941_v9 = vsel %vm4939_vm15, %v4940_v58, %v13197_v52  ;;  %v15691_v19 = vld [vmem:[#allocation18_spill] sm:$0xff] }
 0x2a2   : > { %vm2082_vm3 = vcmp.eq.s32.totalorder %v2080_v60, 0  ;;  %v15362_v17 = vxor.u32 2147483648, %v15689_v23  ;;  %v13239_v14 = vadd.s32 127, %v4854_v7  ;;  %v4942_v4 = vadd.s32 %v4941_v9, %v4937_v49 }
 0x2a3   : > { %v15690_v3 = vxor.u32 2147483648, %v15685_v8  ;;  %vm2085_vm6 = vcmp.eq.s32.totalorder %v2080_v60, 2  ;;  %vm15369_vm14 = vweird.f32 %v15691_v19  ;;  %vm2081_vm10 = vcmp.lt.s32.totalorder %v2080_v60, 2 }
 0x2a4   : > { %v2087_v24 = vsel %vm2085_vm6, %v15358_v38, %v15685_v8  ;;  %vm2186_vm8 = vcmp.eq.s32.totalorder %v2184_v45, 0  ;;  %v4943_v11 = vadd.s32 536870912, %v4942_v4  ;;  %vm2189_vm2 = vcmp.eq.s32.totalorder %v2184_v45, 2 }
 0x2a5   : > { %v2084_v54 = vsel %vm2082_vm3, %v15688_v32, %v15690_v3  ;;  %v2188_v7 = vsel %vm2186_vm8, %v15689_v23, %v15357_v46  ;;  %v4850_v58 = vsub.s32 32, %v13200_v27  ;;  %vm2185_vm5 = vcmp.lt.s32.totalorder %v2184_v45, 2  ;;  %v15692_v3 = vld [vmem:[#allocation31_spill] sm:$0xff]  ;;  %v15693_v46 = vld [vmem:[#allocation50_spill] sm:$0xff]  ;;  %v15694_v45 = vld [vmem:[#allocation57_spill] sm:$0xff] }
 0x2a6   : > { %v2088_v52 = vsel %vm2081_vm10, %v2084_v54, %v2087_v24  ;;  %v2191_v60 = vsel %vm2189_vm2, %v15362_v17, %v12467_v20  ;;  %v13259_v49 = vshrl.u32 %v4943_v11, 30  ;;  %vm15368_vm15 = vweird.f32 %v15692_v3  ;;  %v866_v24 = vpop.permute.xlu0 %865  ;;  %v930_v20 = vpop.permute.xlu1 %929 }
 0x2a7   : > { %v2089_v9 = vsel %vm15369_vm14, nan, %v2088_v52  ;;  %v2192_v54 = vsel %vm2185_vm5, %v2188_v7, %v2191_v60  ;;  %v2287_v38 = vadd.s32 3, %v15693_v46  ;;  %v4856_v32 = vshll.u32 %v13239_v14, 23  ;;  %v15696_v7 = vld [vmem:[#allocation55_spill] sm:$0xff] }
 0x2a8   : > { %10020 = vmatmul.mubr.msk.f32.gmra.mrb[8].mxu0 %vm8071_vm4, %v2089_v9  ;;  %v2193_v52 = vsel %vm15368_vm15, nan, %v2192_v54  ;;  %v2391_v23 = vadd.s32 3, %v12628_v21  ;;  %v4945_v11 = vshll.u32 %v13259_v49, 30  ;;  %vm15695_vm3 = vcmask 72704   ;;  %v15697_v54 = vld [vmem:[#allocation66_spill] sm:$0xff] }
 0x2a9   : > { %v1006_v17 = vsel %vm15695_vm3, %v989_v18, %v802_v56  ;;  %10022 = vmatprep.mubr.msk.f32.mxu0 %vm8071_vm4, %v2193_v52  ;;  %v2288_v9 = vand.u32 3, %v2287_v38  ;;  %v15372_v60 = vxor.u32 2147483648, %v15696_v7  ;;  %v15371_v3 = vxor.u32 2147483648, %v12704_v6  ;;  %v15698_v21 = vld [vmem:[#allocation30_spill] sm:$0xff] }
 0x2aa   : > { %v1023_v46 = vsel %vm1016_vm13, %v1006_v17, %v866_v24  ;;  %v2392_v14 = vand.u32 3, %v2391_v23  ;;  %v15370_v8 = vxor.u32 2147483648, %v15697_v54  ;;  %v13276_v19 = vsub.s32 %v4942_v4, %v4945_v11 }
 0x2ab   : > { %vm2286_vm6 = vweird.f32 %v15698_v21  ;;  %vm2290_vm10 = vcmp.eq.s32.totalorder %v2288_v9, 0  ;;  %vm2390_vm8 = vweird.f32 %v15699_v41  ;;  %vm2289_vm2 = vcmp.lt.s32.totalorder %v2288_v9, 2 }
 0x2ac   : > { %v15700_v18 = vxor.u32 2147483648, %v15694_v45  ;;  %vm2293_vm5 = vcmp.eq.s32.totalorder %v2288_v9, 2  ;;  %v13284_v17 = vsel %vm1033_vm12, %v1023_v46, %v930_v20  ;;  %v4948_v23 = vsub.s32 0, %v13276_v19 }
 0x2ad   : > { %v2295_v56 = vsel %vm2293_vm5, %v15372_v60, %v15694_v45  ;;  %vm2394_vm3 = vcmp.eq.s32.totalorder %v2392_v14, 0  ;;  %vm2397_vm15 = vcmp.eq.s32.totalorder %v2392_v14, 2  ;;  %vm2393_vm14 = vcmp.lt.s32.totalorder %v2392_v14, 2 }
 0x2ae   : > { %v2292_v38 = vsel %vm2290_vm10, %v15696_v7, %v15700_v18  ;;  %v2396_v24 = vsel %vm2394_vm3, %v15697_v54, %v15371_v3  ;;  %v2399_v52 = vsel %vm2397_vm15, %v15370_v8, %v12704_v6  ;;  %v9559_v20 = vmin.u32 %v4948_v23, %v13276_v19  ;;  %v15704_v8 = vld [vmem:[#allocation63_spill] sm:$0xff] }
 0x2af   : > { %v2296_v4 = vsel %vm2289_vm2, %v2292_v38, %v2295_v56  ;;  %v2400_v11 = vsel %vm2393_vm14, %v2396_v24, %v2399_v52  ;;  %v15377_v9 = vand.u32 2147483647, %v13284_v17  ;;  %10582 = vcosq.f32 %v13216_v34  ;;  %v15702_v24 = vld [vmem:[#allocation54_spill] sm:$0xff] }
 0x2b0   : > { %v2297_v46 = vsel %vm2286_vm6, nan, %v2296_v4  ;;  %v4852_v18 = vshrl.u32 %v4834_v50, %v4850_v58  ;;  %v2401_v14 = vsel %vm2390_vm8, nan, %v2400_v11  ;;  %v4989_v38 = vand.u32 2139095040, %v13284_v17 }
 0x2b1   : > { %10023 = vmatmul.mubr.msk.f32.gmra.mrb[10].mxu0 %vm8071_vm4, %v2297_v46  ;;  %10584 = vsinq.f32 %v13216_v34  ;;  %v15701_v23 = vxor.u32 2147483648, %v13164_v51  ;;  %v4950_v4 = vclz %v9559_v20  ;;  %v2495_v50 = vadd.s32 3, %v15702_v24  ;;  %v15703_v46 = vld [vmem:[#allocation65_spill] sm:$0xff] }
 0x2b2   : > { %10025 = vmatprep.mubr.msk.f32.mxu0 %vm8071_vm4, %v2401_v14  ;;  %v4851_v58 = vshll.u32 %v13110_v62, %v13200_v27  ;;  %v4990_v52 = vshrl.u32 %v4989_v38, 23  ;;  %v15375_v11 = vxor.u32 2147483648, %v15703_v46  ;;  %v15376_v3 = vxor.u32 2147483648, %v15704_v8  ;;  %v15705_v62 = vld [vmem:[#allocation68_spill] sm:$0xff] }
 0x2b3   : > { %v4759_v56 = vsel %vm4676_vm0, %v15701_v23, %v13164_v51  ;;  %v4857_v34 = vor.u32 4788187, %v4856_v32  ;;  %v9560_v60 = vadd.s32 4294967294, %v4950_v4  ;;  %v4993_v41 = vand.u32 8388607, %v15377_v9  ;;  %v15706_v4 = vld [vmem:[#allocation34_spill] sm:$0xff] }
 0x2b4   : > { %v2496_v54 = vand.u32 3, %v2495_v50  ;;  %v13322_v51 = vsel %vm13106_vm9, %v12678_v2, %v4759_v56  ;;  %v4853_v20 = vor.u32 %v4852_v18, %v4851_v58  ;;  %v9562_v14 = vadd.s32 4294967169, %v4990_v52  ;;  %v10662_v58 = vld [vmem:[%s10959_s29 + $0x38] sm:$0xff] }
 0x2b5   : > { %v2599_v27 = vadd.s32 3, %v15705_v62  ;;  %vm9561_vm0 = vcmp.lt.s32.totalorder %v9560_v60, 0  ;;  %v4858_v56 = vand.u32 2147483647, %v4857_v34  ;;  %v4994_v18 = vor.u32 8388608, %v4993_v41 }
 0x2b6   : > { %vm2497_vm14 = vcmp.lt.s32.totalorder %v2496_v54, 2  ;;  %vm2498_vm15 = vcmp.eq.s32.totalorder %v2496_v54, 0  ;;  %vm2501_vm10 = vcmp.eq.s32.totalorder %v2496_v54, 2  ;;  %v13325_v32 = vsel %vm9561_vm0, 0, %v9560_v60 }
 0x2b7   : > { %v4996_v38 = vadd.s32 1, %v9562_v14  ;;  %v2500_v23 = vsel %vm2498_vm15, %v15704_v8, %v15375_v11  ;;  %v2503_v63 = vsel %vm2501_vm10, %v15376_v3, %v15703_v46  ;;  %vm15399_vm9 = vweird.f32 %v15706_v4 }
 0x2b8   : > { %v2504_v50 = vsel %vm2497_vm14, %v2500_v23, %v2503_v63  ;;  %v973_v54 = vsel %vm965_vm7, %v10662_v58, %v13024_v55  ;;  %v4958_v60 = vsub.s32 4294967266, %v13325_v32  ;;  %v4860_v14 = vcvt.s32.f32 %v4853_v20  ;;  %v868_v58 = vpop.permute.xlu0 %867  ;;  %v15711_v55 = vld [vmem:[#allocation25_spill] sm:$0xff] }
 0x2b9   : > { %vm4997_vm2 = vcmp.gt.s32.totalorder %v4996_v38, 0  ;;  %v2505_v52 = vsel %vm15399_vm9, nan, %v2504_v50  ;;  %vm15707_vm5 = vcmask 48128   ;;  %v2600_v41 = vand.u32 3, %v2599_v27  ;;  %v13343_v34 = vpop.eup %10582 }
 0x2ba   : > { %v990_v11 = vsel %vm15707_vm5, %v973_v54, %v13184_v42  ;;  %v4998_v3 = vsel %vm4997_vm2, %v4996_v38, 0  ;;  %10026 = vmatmul.mubr.msk.f32.gmra.mrb[12].mxu0 %vm8071_vm4, %v2505_v52  ;;  %15708 = vst [vmem:[#allocation17_spill] sm:$0xff] %v13343_v34  ;;  %10586 = vcosq.f32 %v13322_v51  ;;  %vm15709_vm3 = vcmask 72704  }
 0x2bb   : > { %v1007_v23 = vsel %vm15709_vm3, %v990_v11, %v13211_v35  ;;  %v5000_v63 = vand.u32 31, %v4998_v3  ;;  %v13349_v50 = vpop.eup %10584  ;;  %v13351_v20 = vmul.f32 %v4860_v14, %v4858_v56  ;;  %v13355_v42 = vadd.s32 %v13196_v0, %v13208_v61 }
 0x2bc   : > { %15710 = vst [vmem:[#allocation7_spill] sm:$0xff] %v13349_v50  ;;  %v13357_v27 = vshll.u32 %v4994_v18, 8  ;;  %v13360_v54 = vadd.s32 127, %v4958_v60  ;;  %v4999_v52 = vshrl.u32 %v4998_v3, 5  ;;  %vm2601_vm0 = vcmp.lt.s32.totalorder %v2600_v41, 2  ;;  %v13376_v46 = vpop.permute.xlu0 %679 }
 0x2bd   : > { %v5001_v9 = vsub.s32 32, %v5000_v63  ;;  %v5003_v11 = vshll.u32 %v15517_v22, %v5000_v63  ;;  %v5006_v2 = vshll.u32 %v15518_v25, %v5000_v63  ;;  %vm2602_vm14 = vcmp.eq.s32.totalorder %v2600_v41, 0 }
 0x2be   : > { %v5009_v61 = vshll.u32 %v15519_v28, %v5000_v63  ;;  %v5012_v60 = vshll.u32 %v15520_v37, %v5000_v63  ;;  %v5015_v14 = vshll.u32 %v15521_v36, %v5000_v63  ;;  %v15712_v4 = vxor.u32 2147483648, %v12896_v48 }
 0x2bf   : > { %v5004_v56 = vshrl.u32 %v15518_v25, %v5001_v9  ;;  %v5007_v0 = vshrl.u32 %v15519_v28, %v5001_v9  ;;  %v5010_v18 = vshrl.u32 %v15520_v37, %v5001_v9  ;;  %v5013_v3 = vshrl.u32 %v15521_v36, %v5001_v9 }
 0x2c0   : > { %v5016_v35 = vshrl.u32 %v15523_v59, %v5001_v9  ;;  %v2604_v8 = vsel %vm2602_vm14, %v15711_v55, %v15712_v4  ;;  %vm5018_vm15 = vcmp.lt.s32.totalorder %v4999_v52, 1  ;;  %vm2605_vm10 = vcmp.eq.s32.totalorder %v2600_v41, 2 }
 0x2c1   : > { %v5005_v38 = vor.u32 %v5004_v56, %v5003_v11  ;;  %v5008_v34 = vor.u32 %v5007_v0, %v5006_v2  ;;  %v5011_v50 = vor.u32 %v5010_v18, %v5009_v61  ;;  %v5014_v62 = vor.u32 %v5013_v3, %v5012_v60 }
 0x2c2   : > { %v5017_v24 = vor.u32 %v5016_v35, %v5015_v14  ;;  %v5002_v6 = vshrl.u32 %v15517_v22, %v5001_v9  ;;  %vm5020_vm2 = vcmp.lt.s32.totalorder %v4999_v52, 3  ;;  %vm5021_vm5 = vcmp.lt.s32.totalorder %v4999_v52, 4 }
 0x2c3   : > { %v5026_v63 = vsel %vm5018_vm15, %v5005_v38, %v5008_v34  ;;  %v5023_v21 = vsel %vm5021_vm5, %v5011_v50, 2102212464  ;;  %v5027_v7 = vsel %vm5021_vm5, %v5014_v62, 920167782  ;;  %v5030_v11 = vsel %vm5018_vm15, %v5008_v34, %v5011_v50 }
 0x2c4   : > { %v15713_v2 = vxor.u32 2147483648, %v15711_v55  ;;  %v13382_v0 = vpop.eup %10586  ;;  %vm5019_vm3 = vcmp.lt.s32.totalorder %v4999_v52, 2  ;;  %v5022_v4 = vsel %vm5018_vm15, %v5002_v6, %v5005_v38  ;;  %v5028_v61 = vsel %vm5020_vm2, %v5011_v50, %v5027_v7 }
 0x2c5   : > { %15714 = vst [vmem:[#allocation24_spill] sm:$0xff] %v13382_v0  ;;  %v5031_v35 = vsel %vm5021_vm5, %v5017_v24, 1326507024  ;;  %v5024_v18 = vsel %vm5020_vm2, %v5008_v34, %v5023_v21  ;;  %v5029_v60 = vsel %vm5019_vm3, %v5026_v63, %v5028_v61  ;;  %v4954_v14 = vsub.s32 32, %v13325_v32  ;;  %v15715_v24 = vld [vmem:[#allocation47_spill] sm:$0xff]  ;;  %v15716_v34 = vld [vmem:[#allocation62_spill] sm:$0xff] }
 0x2c6   : > { %v2607_v56 = vsel %vm2605_vm10, %v15713_v2, %v12896_v48  ;;  %v5032_v9 = vsel %vm5020_vm2, %v5014_v62, %v5031_v35  ;;  %v13389_v16 = vmul.u32.u64.low %v13357_v27, %v5029_v60  ;;  %v13390_v55 = vmul.u32.u64.high %v13357_v27, %v5029_v60, %v13389_v16  ;;  %v932_v2 = vpop.permute.xlu0 %931  ;;  %v15719_v35 = vld [vmem:[#allocation41_spill] sm:$0xff] }
 0x2c7   : > { %v2608_v3 = vsel %vm2601_vm0, %v2604_v8, %v2607_v56  ;;  %v5033_v45 = vsel %vm5019_vm3, %v5030_v11, %v5032_v9  ;;  %v1024_v21 = vsel %vm1016_vm13, %v1007_v23, %v868_v58  ;;  %vm15391_vm14 = vweird.f32 %v15715_v24  ;;  %v15718_v23 = vld [vmem:[#allocation16_spill] sm:$0xff] }
 0x2c8   : > { %v13394_v6 = vmul.u32.u64.low %v13357_v27, %v5033_v45  ;;  %v13395_v7 = vmul.u32.u64.high %v13357_v27, %v5033_v45, %v13394_v6  ;;  %v4960_v8 = vshll.u32 %v13360_v54, 23  ;;  %v5025_v62 = vsel %vm5019_vm3, %v5022_v4, %v5024_v18  ;;  %v15717_v45 = vld [vmem:[#allocation14_spill] sm:$0xff] }
 0x2c9   : > { %v2609_v41 = vsel %vm15391_vm14, nan, %v2608_v3  ;;  %v2703_v50 = vadd.s32 3, %v15716_v34  ;;  %vm4780_vm0 = vcmp.lt.s32.totalorder %v12915_v47, 0  ;;  %v4862_v38 = vxor.u32 2147483648, %v13351_v20  ;;  %v13421_v3 = vpop.permute.xlu1 %741 }
 0x2ca   : > { %10028 = vmatprep.mubr.msk.f32.mxu0 %vm8071_vm4, %v2609_v41  ;;  %v15393_v63 = vxor.u32 2147483648, %v15717_v45  ;;  %v15392_v58 = vxor.u32 2147483648, %v15718_v23  ;;  %v13410_v11 = vsel %vm1033_vm12, %v1024_v21, %v932_v2  ;;  %v4956_v54 = vshrl.u32 %v13355_v42, %v4954_v14 }
 0x2cb   : > { %v5044_v52 = vadd.s32 1, %v13390_v55  ;;  %v2704_v56 = vand.u32 3, %v2703_v50  ;;  %v3013_v4 = vand.u32 3, %v15633_v57  ;;  %v5041_v61 = vmul.u32 %v13357_v27, %v5025_v62 }
 0x2cc   : > { %vm5043_vm15 = vc.u32 %v13395_v7, %v13389_v16  ;;  %vm15398_vm10 = vweird.f32 %v15719_v35  ;;  %v5093_v18 = vand.u32 2139095040, %v13410_v11  ;;  %v4961_v60 = vor.u32 4788187, %v4960_v8 }
 0x2cd   : > { %v5045_v9 = vsel %vm5043_vm15, %v5044_v52, %v13390_v55  ;;  %vm2706_vm2 = vcmp.eq.s32.totalorder %v2704_v56, 0  ;;  %vm2709_vm5 = vcmp.eq.s32.totalorder %v2704_v56, 2  ;;  %vm2705_vm3 = vcmp.lt.s32.totalorder %v2704_v56, 2 }
 0x2ce   : > { %v5046_v42 = vadd.s32 %v5045_v9, %v5041_v61  ;;  %v2708_v57 = vsel %vm2706_vm2, %v15718_v23, %v15393_v63  ;;  %v2711_v27 = vsel %vm2709_vm5, %v15392_v58, %v15717_v45  ;;  %v15720_v14 = vand.u32 2147483647, %v12915_v47 }
 0x2cf   : > { %v2712_v55 = vsel %vm2705_vm3, %v2708_v57, %v2711_v27  ;;  %v15394_v6 = vand.u32 2147483647, %v13410_v11  ;;  %v5094_v21 = vshrl.u32 %v5093_v18, 23  ;;  %vm3015_vm15 = vcmp.eq.s32.totalorder %v3013_v4, 0 }
 0x2d0   : > { %vm13431_vm14 = vcmp.le.f32.partialorder %v15720_v14, 0.7853982  ;;  %v5047_v8 = vadd.s32 536870912, %v5046_v42  ;;  %v2713_v62 = vsel %vm15398_vm10, nan, %v2712_v55  ;;  %v15723_v41 = vxor.u32 2147483648, %v15634_v30  ;;  %v13464_v14 = vpop.permute.xlu1 %743 }
 0x2d1   : > { %vm3018_vm2 = vcmp.eq.s32.totalorder %v3013_v4, 2  ;;  %v4955_v52 = vshll.u32 %v13276_v19, %v13325_v32  ;;  %10029 = vmatmul.mubr.msk.f32.gmra.mrb[14].mxu0 %vm8071_vm4, %v2713_v62  ;;  %v9566_v56 = vadd.s32 4294967169, %v5094_v21  ;;  %vm3014_vm5 = vcmp.lt.s32.totalorder %v3013_v4, 2 }
 0x2d2   : > { %v3017_v50 = vsel %vm3015_vm15, %v15635_v39, %v15723_v41  ;;  %v15724_v61 = vxor.u32 2147483648, %v15635_v39  ;;  %10588 = vsinq.f32 %v13322_v51  ;;  %v13448_v9 = vshrl.u32 %v5047_v8, 30  ;;  %10033 = vmatprep.mubr.msk.f32.mxu0 %vm8071_vm4, %v12885_v29 }
 0x2d3   : > { %v3116_v27 = vand.u32 3, %v15640_v13  ;;  %v4863_v19 = vsel %vm4780_vm0, %v4862_v38, %v13351_v20  ;;  %v15725_v32 = vsub.s32 4, %v13082_v15  ;;  %v4957_v39 = vor.u32 %v4956_v54, %v4955_v52  ;;  %v15726_v20 = vld [vmem:[#allocation27_spill] sm:$0xff]  ;;  %v15728_v54 = vld [vmem:[#allocation26_spill] sm:$0xff] }
 0x2d4   : > { %v3020_v18 = vsel %vm3018_vm2, %v15724_v61, %v15634_v30  ;;  %v5100_v51 = vadd.s32 1, %v9566_v56  ;;  %v4962_v4 = vand.u32 2147483647, %v4961_v60  ;;  %v5049_v29 = vshll.u32 %v13448_v9, 30  ;;  %v15732_v56 = vld [vmem:[#allocation32_spill] sm:$0xff] }
 0x2d5   : > { %v3021_v57 = vsel %vm3014_vm5, %v3017_v50, %v3020_v18  ;;  %v13461_v30 = vsel %vm4780_vm0, %v15725_v32, %v13082_v15  ;;  %v5097_v13 = vand.u32 8388607, %v15394_v6  ;;  %vm3118_vm3 = vcmp.eq.s32.totalorder %v3116_v27, 0  ;;  %10034 = vmatmul.mubr.msk.f32.vlgmr.msra.gmra.mrb[0].mxu0 %vm8071_vm4, %v12906_v33  ;;  %v10663_v33 = vld [vmem:[%s10959_s29 + $0x40] sm:$0xff] }
 0x2d6   : > { %vm5101_vm15 = vcmp.gt.s32.totalorder %v5100_v51, 0  ;;  %v3022_v15 = vsel %vm1350_vm11, nan, %v3021_v57  ;;  %v15727_v38 = vxor.u32 2147483648, %v15726_v20  ;;  %vm3121_vm0 = vcmp.eq.s32.totalorder %v3116_v27, 2 }
 0x2d7   : > { %v13475_v55 = vsub.s32 %v5046_v42, %v5049_v29  ;;  %v5102_v21 = vsel %vm5101_vm15, %v5100_v51, 0  ;;  %10036 = vmatprep.mubr.msk.f32.mxu0 %vm8071_vm4, %v3022_v15  ;;  %vm3117_vm2 = vcmp.lt.s32.totalorder %v3116_v27, 2  ;;  %v15729_v8 = vxor.u32 2147483648, %v15728_v54  ;;  %v13502_v15 = vpop.permute.xlu1 %807 }
 0x2d8   : > { %v3120_v60 = vsel %vm3118_vm3, %v15728_v54, %v15727_v38  ;;  %v4964_v41 = vcvt.s32.f32 %v4957_v39  ;;  %v13484_v12 = vsel %vm965_vm7, %v10663_v33, %v13244_v5  ;;  %v5104_v50 = vand.u32 31, %v5102_v21 }
 0x2d9   : > { %v3123_v62 = vsel %vm3121_vm0, %v15729_v8, %v15726_v20  ;;  %v13489_v42 = vsel %vm13431_vm14, %v12915_v47, %v4863_v19  ;;  %v5052_v61 = vsub.s32 0, %v13475_v55  ;;  %vm15730_vm11 = vweird.f32 %v15646_v1 }
 0x2da   : > { %v3124_v52 = vsel %vm3117_vm2, %v3120_v60, %v3123_v62  ;;  %v13495_v57 = vmul.f32 %v4964_v41, %v4962_v4  ;;  %v5098_v27 = vor.u32 8388608, %v5097_v13  ;;  %v5103_v32 = vshrl.u32 %v5102_v21, 5 }
 0x2db   : > { %v3125_v18 = vsel %vm15730_vm11, nan, %v3124_v52  ;;  %v5105_v5 = vsub.s32 32, %v5104_v50  ;;  %v9563_v39 = vmin.u32 %v5052_v61, %v13475_v55  ;;  %v5107_v51 = vshll.u32 %v15517_v22, %v5104_v50 }
 0x2dc   : > { %10037 = vmatmul.mubr.msk.f32.gmra.mrb[2].mxu0 %vm8071_vm4, %v3125_v18  ;;  %v5110_v19 = vshll.u32 %v15518_v25, %v5104_v50  ;;  %v5113_v29 = vshll.u32 %v15519_v28, %v5104_v50  ;;  %v5116_v20 = vshll.u32 %v15520_v37, %v5104_v50  ;;  %v13508_v38 = vpop.eup %10588  ;;  %v5119_v21 = vshll.u32 %v15521_v36, %v5104_v50 }
 0x2dd   : > { %v5108_v1 = vshrl.u32 %v15518_v25, %v5105_v5  ;;  %v5111_v4 = vshrl.u32 %v15519_v28, %v5105_v5  ;;  %v5114_v13 = vshrl.u32 %v15520_v37, %v5105_v5  ;;  %15731 = vst [vmem:[#allocation52_spill] sm:$0xff] %v13508_v38  ;;  %v5054_v54 = vclz %v9563_v39  ;;  %v806_v39 = vpop.permute.xlu0 %805 }
 0x2de   : > { %v5117_v60 = vshrl.u32 %v15521_v36, %v5105_v5  ;;  %v5120_v8 = vshrl.u32 %v15523_v59, %v5105_v5  ;;  %vm5122_vm5 = vcmp.lt.s32.totalorder %v5103_v32, 1  ;;  %vm5125_vm3 = vcmp.lt.s32.totalorder %v5103_v32, 4 }
 0x2df   : > { %v5109_v62 = vor.u32 %v5108_v1, %v5107_v51  ;;  %v5112_v41 = vor.u32 %v5111_v4, %v5110_v19  ;;  %v5115_v33 = vor.u32 %v5114_v13, %v5113_v29  ;;  %v9564_v52 = vadd.s32 4294967294, %v5054_v54  ;;  %v13517_v19 = vpop.permute.xlu1 %681 }
 0x2e0   : > { %v5118_v61 = vor.u32 %v5117_v60, %v5116_v20  ;;  %v5121_v18 = vor.u32 %v5120_v8, %v5119_v21  ;;  %v5106_v58 = vshrl.u32 %v15517_v22, %v5105_v5  ;;  %v3219_v47 = vand.u32 3, %v15732_v56 }
 0x2e1   : > { %v5127_v63 = vsel %vm5125_vm3, %v5115_v33, 2102212464  ;;  %v5130_v6 = vsel %vm5122_vm5, %v5109_v62, %v5112_v41  ;;  %vm5124_vm15 = vcmp.lt.s32.totalorder %v5103_v32, 3  ;;  %v5134_v0 = vsel %vm5122_vm5, %v5112_v41, %v5115_v33 }
 0x2e2   : > { %v5131_v50 = vsel %vm5125_vm3, %v5118_v61, 920167782  ;;  %v5135_v51 = vsel %vm5125_vm3, %v5121_v18, 1326507024  ;;  %vm5123_vm0 = vcmp.lt.s32.totalorder %v5103_v32, 2  ;;  %v5138_v4 = vshll.u32 %v5098_v27, 8 }
 0x2e3   : > { %v5132_v29 = vsel %vm5124_vm15, %v5115_v33, %v5131_v50  ;;  %v5136_v1 = vsel %vm5124_vm15, %v5118_v61, %v5135_v51  ;;  %vm9565_vm2 = vcmp.lt.s32.totalorder %v9564_v52, 0  ;;  %v5126_v5 = vsel %vm5122_vm5, %v5106_v58, %v5109_v62  ;;  %v934_v32 = vpop.permute.xlu1 %933  ;;  %v15737_v51 = vld [vmem:[#allocation10_spill] sm:$0xff] }
 0x2e4   : > { %v5128_v13 = vsel %vm5124_vm15, %v5112_v41, %v5127_v63  ;;  %v5133_v20 = vsel %vm5123_vm0, %v5130_v6, %v5132_v29  ;;  %v5137_v54 = vsel %vm5123_vm0, %v5134_v0, %v5136_v1  ;;  %vm3220_vm11 = vcmp.lt.s32.totalorder %v3219_v47, 2  ;;  %v870_v41 = vpop.permute.xlu0 %869 }
 0x2e5   : > { %v13522_v56 = vmul.u32.u64.low %v5138_v4, %v5133_v20  ;;  %v13523_v60 = vmul.u32.u64.high %v5138_v4, %v5133_v20, %v13522_v56  ;;  %vm4884_vm3 = vcmp.lt.s32.totalorder %v13073_v31, 0  ;;  %vm3221_vm10 = vcmp.eq.s32.totalorder %v3219_v47, 0 }
 0x2e6   : > { %v13527_v21 = vmul.u32.u64.low %v5138_v4, %v5137_v54  ;;  %v13528_v8 = vmul.u32.u64.high %v5138_v4, %v5137_v54, %v13527_v21  ;;  %vm3224_vm9 = vcmp.eq.s32.totalorder %v3219_v47, 2  ;;  %v13530_v27 = vsel %vm9565_vm2, 0, %v9564_v52  ;;  %v15742_v54 = vld [vmem:[#allocation33_spill] sm:$0xff] }
 0x2e7   : > { %v5129_v63 = vsel %vm5123_vm0, %v5126_v5, %v5128_v13  ;;  %v15733_v58 = vxor.u32 2147483648, %v11982_v43  ;;  %v15734_v6 = vxor.u32 2147483648, %v11967_v53  ;;  %v4966_v33 = vxor.u32 2147483648, %v13495_v57  ;;  %v15740_v13 = vld [vmem:[#allocation37_spill] sm:$0xff] }
 0x2e8   : > { %vm15735_vm5 = vcmask 48128   ;;  %v3322_v52 = vand.u32 3, %v15652_v40  ;;  %v5148_v18 = vadd.s32 1, %v13523_v60  ;;  %vm15736_vm15 = vcmask 72704  }
 0x2e9   : > { %v3223_v0 = vsel %vm3221_vm10, %v11967_v53, %v15733_v58  ;;  %v3226_v62 = vsel %vm3224_vm9, %v15734_v6, %v11982_v43  ;;  %v991_v61 = vsel %vm15735_vm5, %v13484_v12, %v13421_v3  ;;  %vm15738_vm10 = vweird.f32 %v15737_v51  ;;  %v15739_v53 = vld [vmem:[#allocation39_spill] sm:$0xff] }
 0x2ea   : > { %v3227_v47 = vsel %vm3220_vm11, %v3223_v0, %v3226_v62  ;;  %v1008_v50 = vsel %vm15736_vm15, %v991_v61, %v806_v39  ;;  %v3425_v43 = vand.u32 3, %v15739_v53  ;;  %v5058_v1 = vsub.s32 32, %v13530_v27  ;;  %v15744_v62 = vld [vmem:[#allocation9_spill] sm:$0xff]  ;;  %v15746_v61 = vld [vmem:[#allocation44_spill] sm:$0xff] }
 0x2eb   : > { %v3228_v29 = vsel %vm15738_vm10, nan, %v3227_v47  ;;  %v5145_v5 = vmul.u32 %v5138_v4, %v5129_v63  ;;  %vm5147_vm9 = vc.u32 %v13528_v8, %v13522_v56  ;;  %v1025_v40 = vsel %vm1016_vm13, %v1008_v50, %v870_v41 }
 0x2ec   : > { %10039 = vmatprep.mubr.msk.f32.mxu0 %vm8071_vm4, %v3228_v29  ;;  %v5149_v3 = vsel %vm5147_vm9, %v5148_v18, %v13523_v60  ;;  %vm3324_vm0 = vcmp.eq.s32.totalorder %v3322_v52, 0  ;;  %vm3327_vm2 = vcmp.eq.s32.totalorder %v3322_v52, 2  ;;  %v13556_v12 = vsel %vm1033_vm12, %v1025_v40, %v934_v32 }
 0x2ed   : > { %v5150_v39 = vadd.s32 %v5149_v3, %v5145_v5  ;;  %vm3323_vm11 = vcmp.lt.s32.totalorder %v3322_v52, 2  ;;  %v15741_v20 = vxor.u32 2147483648, %v15740_v13  ;;  %v15743_v21 = vxor.u32 2147483648, %v15742_v54  ;;  %v15748_v52 = vld [vmem:[#allocation43_spill] sm:$0xff] }
 0x2ee   : > { %v5042_v58 = vadd.s32 %v13389_v16, %v13395_v7  ;;  %v5062_v60 = vsub.s32 4294967266, %v13530_v27  ;;  %vm3427_vm5 = vcmp.eq.s32.totalorder %v3425_v43, 0  ;;  %vm15745_vm15 = vweird.f32 %v15744_v62 }
 0x2ef   : > { %v3326_v4 = vsel %vm3324_vm0, %v15742_v54, %v15741_v20  ;;  %v3329_v63 = vsel %vm3327_vm2, %v15743_v21, %v15740_v13  ;;  %v5151_v6 = vadd.s32 536870912, %v5150_v39  ;;  %v15747_v47 = vxor.u32 2147483648, %v15746_v61 }
 0x2f0   : > { %v3330_v0 = vsel %vm3323_vm11, %v3326_v4, %v3329_v63  ;;  %vm3430_vm10 = vcmp.eq.s32.totalorder %v3425_v43, 2  ;;  %v15749_v18 = vsub.s32 4, %v13259_v49  ;;  %vm3426_vm9 = vcmp.lt.s32.totalorder %v3425_v43, 2 }
 0x2f1   : > { %v3331_v41 = vsel %vm15745_vm15, nan, %v3330_v0  ;;  %v3429_v32 = vsel %vm3427_vm5, %v15748_v52, %v15747_v47  ;;  %v15750_v16 = vxor.u32 2147483648, %v15748_v52  ;;  %v5197_v51 = vand.u32 2139095040, %v13556_v12  ;;  %v10664_v0 = vld [vmem:[%s10959_s29 + $0x48] sm:$0xff]  ;;  %v15760_v47 = vld [vmem:[#allocation38_spill] sm:$0xff] }
 0x2f2   : > { %v4969_v50 = vsel %vm4884_vm3, %v15749_v18, %v13259_v49  ;;  %10040 = vmatmul.mubr.msk.f32.gmra.mrb[4].mxu0 %vm8071_vm4, %v3331_v41  ;;  %v4967_v29 = vsel %vm4884_vm3, %v4966_v33, %v13495_v57  ;;  %v5060_v53 = vshrl.u32 %v5042_v58, %v5058_v1  ;;  %v13585_v5 = vshrl.u32 %v5151_v6, 30  ;;  %v15751_v49 = vld [vmem:[#allocation13_spill] sm:$0xff]  ;;  %v15754_v57 = vld [vmem:[#allocation35_spill] sm:$0xff] }
 0x2f3   : > { %v3432_v7 = vsel %vm3430_vm10, %v15750_v16, %v15746_v61  ;;  %v5063_v3 = vadd.s32 127, %v5062_v60  ;;  %vm15752_vm0 = vweird.f32 %v15751_v49  ;;  %v15400_v43 = vand.u32 2147483647, %v13556_v12  ;;  %v15757_v41 = vld [vmem:[#allocation49_spill] sm:$0xff] }
 0x2f4   : > { %v3433_v40 = vsel %vm3426_vm9, %v3429_v32, %v3432_v7  ;;  %v5198_v20 = vshrl.u32 %v5197_v51, 23  ;;  %10590 = vcosq.f32 %v13489_v42  ;;  %v15753_v54 = vand.u32 2147483647, %v13073_v31 }
 0x2f5   : > { %v3434_v13 = vsel %vm15752_vm0, nan, %v3433_v40  ;;  %v5153_v4 = vshll.u32 %v13585_v5, 30  ;;  %v3528_v33 = vand.u32 3, %v15754_v57  ;;  %v13599_v1 = vsel %vm13431_vm14, 0, %v13461_v30  ;;  %v15763_v40 = vld [vmem:[#allocation11_spill] sm:$0xff] }
 0x2f6   : > { %vm4883_vm2 = vcmp.le.f32.partialorder %v15753_v54, 0.7853982  ;;  %10042 = vmatprep.mubr.msk.f32.mxu0 %vm8071_vm4, %v3434_v13  ;;  %15755 = vst [vmem:[#allocation48_spill] sm:$0xff] %v13599_v1  ;;  %10592 = vsinq.f32 %v13489_v42  ;;  %v5059_v21 = vshll.u32 %v13475_v55, %v13530_v27  ;;  %v9570_v63 = vadd.s32 4294967169, %v5198_v20 }
 0x2f7   : > { %v13605_v58 = vsel %vm4883_vm2, %v13073_v31, %v4967_v29  ;;  %v13607_v60 = vsel %vm4883_vm2, 0, %v4969_v50  ;;  %v975_v6 = vsel %vm965_vm7, %v10664_v0, %v13376_v46  ;;  %v13612_v62 = vsub.s32 %v5150_v39, %v5153_v4  ;;  %v15758_v46 = vld [vmem:[#allocation42_spill] sm:$0xff] }
 0x2f8   : > { %15756 = vst [vmem:[#allocation23_spill] sm:$0xff] %v13607_v60  ;;  %v13614_v2 = vor.u32 %v5060_v53, %v5059_v21  ;;  %v5064_v30 = vshll.u32 %v5063_v3, 23  ;;  %v13618_v42 = vand.u32 8388607, %v15400_v43  ;;  %v5204_v55 = vadd.s32 1, %v9570_v63 }
 0x2f9   : > { %v5156_v27 = vsub.s32 0, %v13612_v62  ;;  %vm3530_vm14 = vcmp.eq.s32.totalorder %v3528_v33, 0  ;;  %vm3533_vm3 = vcmp.eq.s32.totalorder %v3528_v33, 2  ;;  %v13622_v61 = vand.u32 3, %v15757_v41 }
 0x2fa   : > { %vm5205_vm11 = vcmp.gt.s32.totalorder %v5204_v55, 0  ;;  %vm3529_vm5 = vcmp.lt.s32.totalorder %v3528_v33, 2  ;;  %v15759_v39 = vxor.u32 2147483648, %v15758_v46  ;;  %v15761_v32 = vxor.u32 2147483648, %v15760_v47  ;;  %v13644_v33 = vpop.permute.xlu0 %871 }
 0x2fb   : > { %10594 = vcosq.f32 %v13605_v58  ;;  %v9567_v50 = vmin.u32 %v5156_v27, %v13612_v62  ;;  %v5206_v16 = vsel %vm5205_vm11, %v5204_v55, 0  ;;  %vm15762_vm15 = vcmask 48128  }
 0x2fc   : > { %v3532_v52 = vsel %vm3530_vm14, %v15760_v47, %v15759_v39  ;;  %v3535_v18 = vsel %vm3533_vm3, %v15761_v32, %v15758_v46  ;;  %v13635_v29 = vsel %vm15762_vm15, %v975_v6, %v13464_v14  ;;  %v5208_v53 = vand.u32 31, %v5206_v16 }
 0x2fd   : > { %v3536_v7 = vsel %vm3529_vm5, %v3532_v52, %v3535_v18  ;;  %vm15764_vm10 = vweird.f32 %v15763_v40  ;;  %v13639_v49 = vor.u32 4788187, %v5064_v30  ;;  %v5068_v13 = vcvt.s32.f32 %v13614_v2 }
 0x2fe   : > { %v3537_v3 = vsel %vm15764_vm10, nan, %v3536_v7  ;;  %v5158_v20 = vclz %v9567_v50  ;;  %v5202_v54 = vor.u32 8388608, %v13618_v42  ;;  %v5207_v4 = vshrl.u32 %v5206_v16, 5  ;;  %v13648_v14 = vpop.eup %10590 }
 0x2ff   : > { %10043 = vmatmul.mubr.msk.f32.gmra.mrb[6].mxu0 %vm8071_vm4, %v3537_v3  ;;  %v5209_v57 = vsub.s32 32, %v5208_v53  ;;  %vm3633_vm9 = vcmp.eq.s32.totalorder %v13622_v61, 0  ;;  %vm3636_vm0 = vcmp.eq.s32.totalorder %v13622_v61, 2  ;;  %15765 = vst [vmem:[#allocation47_spill] sm:$0xff] %v13648_v14  ;;  %v5211_v63 = vshll.u32 %v15517_v22, %v5208_v53 }
 0x300   : > { %v9568_v21 = vadd.s32 4294967294, %v5158_v20  ;;  %v5214_v0 = vshll.u32 %v15518_v25, %v5208_v53  ;;  %v5217_v6 = vshll.u32 %v15519_v28, %v5208_v53  ;;  %v13653_v30 = vpop.eup %10592  ;;  %v5220_v41 = vshll.u32 %v15520_v37, %v5208_v53 }
 0x301   : > { %15766 = vst [vmem:[#allocation62_spill] sm:$0xff] %v13653_v30  ;;  %v5212_v42 = vshrl.u32 %v15518_v25, %v5209_v57  ;;  %v5215_v55 = vshrl.u32 %v15519_v28, %v5209_v57  ;;  %v5218_v27 = vshrl.u32 %v15520_v37, %v5209_v57  ;;  %v5221_v46 = vshrl.u32 %v15521_v36, %v5209_v57 }
 0x302   : > { %vm9569_vm2 = vcmp.lt.s32.totalorder %v9568_v21, 0  ;;  %v5223_v39 = vshll.u32 %v15521_v36, %v5208_v53  ;;  %v5224_v47 = vshrl.u32 %v15523_v59, %v5209_v57  ;;  %vm4988_vm14 = vcmp.lt.s32.totalorder %v13284_v17, 0 }
 0x303   : > { %v13662_v52 = vsel %vm9569_vm2, 0, %v9568_v21  ;;  %v5213_v32 = vor.u32 %v5212_v42, %v5211_v63  ;;  %v5216_v18 = vor.u32 %v5215_v55, %v5214_v0  ;;  %v5219_v50 = vor.u32 %v5218_v27, %v5217_v6  ;;  %v13677_v0 = vpop.permute.xlu0 %683 }
 0x304   : > { %v5210_v16 = vshrl.u32 %v15517_v22, %v5209_v57  ;;  %v5222_v7 = vor.u32 %v5221_v46, %v5220_v41  ;;  %v15767_v40 = vxor.u32 2147483648, %v15678_v44  ;;  %v15768_v53 = vxor.u32 2147483648, %v15679_v10 }
 0x305   : > { %v5166_v21 = vsub.s32 4294967266, %v13662_v52  ;;  %v5225_v63 = vor.u32 %v5224_v47, %v5223_v39  ;;  %vm5226_vm3 = vcmp.lt.s32.totalorder %v5207_v4, 1  ;;  %vm5229_vm11 = vcmp.lt.s32.totalorder %v5207_v4, 4  ;;  %v13679_v57 = vpop.eup %10594 }
 0x306   : > { %v3635_v3 = vsel %vm3633_vm9, %v15679_v10, %v15767_v40  ;;  %v3638_v20 = vsel %vm3636_vm0, %v15768_v53, %v15678_v44  ;;  %15769 = vst [vmem:[#allocation14_spill] sm:$0xff] %v13679_v57  ;;  %vm5228_vm5 = vcmp.lt.s32.totalorder %v5207_v4, 3  ;;  %v5230_v6 = vsel %vm5226_vm3, %v5210_v16, %v5213_v32 }
 0x307   : > { %v5231_v42 = vsel %vm5229_vm11, %v5219_v50, 2102212464  ;;  %v5234_v55 = vsel %vm5226_vm3, %v5213_v32, %v5216_v18  ;;  %v5235_v41 = vsel %vm5229_vm11, %v5222_v7, 920167782  ;;  %v5238_v46 = vsel %vm5226_vm3, %v5216_v18, %v5219_v50 }
 0x308   : > { %v5232_v27 = vsel %vm5228_vm5, %v5216_v18, %v5231_v42  ;;  %v5239_v10 = vsel %vm5229_vm11, %v5225_v63, 1326507024  ;;  %v5066_v40 = vand.u32 2147483647, %v13639_v49  ;;  %vm5227_vm15 = vcmp.lt.s32.totalorder %v5207_v4, 2 }
 0x309   : > { %v5236_v44 = vsel %vm5228_vm5, %v5219_v50, %v5235_v41  ;;  %vm3632_vm10 = vcmp.lt.s32.totalorder %v13622_v61, 2  ;;  %v5240_v47 = vsel %vm5228_vm5, %v5222_v7, %v5239_v10  ;;  %v5242_v53 = vshll.u32 %v5202_v54, 8  ;;  %v936_v54 = vpop.permute.xlu0 %935  ;;  %v15774_v7 = vld [vmem:[#allocation40_spill] sm:$0xff] }
 0x30a   : > { %v5237_v39 = vsel %vm5227_vm15, %v5234_v55, %v5236_v44  ;;  %v3639_v43 = vsel %vm3632_vm10, %v3635_v3, %v3638_v20  ;;  %v15770_v51 = vand.u32 2147483647, %v13284_v17  ;;  %v5167_v32 = vadd.s32 127, %v5166_v21 }
 0x30b   : > { %v5233_v42 = vsel %vm5227_vm15, %v5230_v6, %v5232_v27  ;;  %v5241_v18 = vsel %vm5227_vm15, %v5238_v46, %v5240_v47  ;;  %v3640_v49 = vsel %vm1974_vm1, nan, %v3639_v43  ;;  %10596 = vsinq.f32 %v13605_v58  ;;  %v15780_v46 = vld [vmem:[#allocation45_spill] sm:$0xff] }
 0x30c   : > { %vm13685_vm9 = vcmp.le.f32.partialorder %v15770_v51, 0.7853982  ;;  %v13691_v4 = vmul.u32.u64.low %v5242_v53, %v5241_v18  ;;  %v13692_v50 = vmul.u32.u64.high %v5242_v53, %v5241_v18, %v13691_v4  ;;  %10045 = vmatprep.mubr.msk.f32.mxu0 %vm8071_vm4, %v3640_v49  ;;  %vm15773_vm0 = vcmask 72704  }
 0x30d   : > { %v13694_v61 = vmul.u32.u64.low %v5242_v53, %v5237_v39  ;;  %v13695_v63 = vmul.u32.u64.high %v5242_v53, %v5237_v39, %v13694_v61  ;;  %v1009_v51 = vsel %vm15773_vm0, %v13635_v29, %v13502_v15  ;;  %v3734_v3 = vand.u32 3, %v15774_v7  ;;  %v15786_v4 = vld [vmem:[#allocation18_spill] sm:$0xff] }
 0x30e   : > { %v3837_v43 = vand.u32 3, %v15775_v26  ;;  %v5069_v20 = vmul.f32 %v5068_v13, %v5066_v40  ;;  %v15776_v21 = vsub.s32 4, %v13448_v9  ;;  %v5162_v55 = vsub.s32 32, %v13662_v52  ;;  %v15778_v13 = vld [vmem:[#allocation46_spill] sm:$0xff] }
 0x30f   : > { %v1026_v58 = vsel %vm1016_vm13, %v1009_v51, %v13644_v33  ;;  %v5168_v27 = vshll.u32 %v5167_v32, 23  ;;  %v5249_v15 = vmul.u32 %v5242_v53, %v5233_v42  ;;  %vm3736_vm1 = vcmp.eq.s32.totalorder %v3734_v3, 0  ;;  %v15782_v40 = vld [vmem:[#allocation50_spill] sm:$0xff]  ;;  %v15783_v53 = vld [vmem:[#allocation59_spill] sm:$0xff] }
 0x310   : > { %v5073_v6 = vsel %vm4988_vm14, %v15776_v21, %v13448_v9  ;;  %v13716_v29 = vsel %vm1033_vm12, %v1026_v58, %v936_v54  ;;  %vm5251_vm2 = vc.u32 %v13692_v50, %v13694_v61  ;;  %v5252_v2 = vadd.s32 1, %v13695_v63  ;;  %v15785_v42 = vld [vmem:[#allocation58_spill] sm:$0xff] }
 0x311   : > { %15777 = vst [vmem:[#allocation16_spill] sm:$0xff] %v13716_v29  ;;  %v15779_v41 = vxor.u32 2147483648, %v15778_v13  ;;  %vm3739_vm3 = vcmp.eq.s32.totalorder %v3734_v3, 2  ;;  %vm3735_vm11 = vcmp.lt.s32.totalorder %v3734_v3, 2  ;;  %v15781_v33 = vxor.u32 2147483648, %v15780_v46 }
 0x312   : > { %vm3839_vm5 = vcmp.eq.s32.totalorder %v3837_v43, 0  ;;  %v3940_v44 = vand.u32 3, %v15782_v40  ;;  %v5253_v39 = vsel %vm5251_vm2, %v5252_v2, %v13695_v63  ;;  %v15784_v32 = vxor.u32 2147483648, %v15783_v53  ;;  %v15790_v2 = vld [vmem:[#allocation31_spill] sm:$0xff] }
 0x313   : > { %v3738_v9 = vsel %vm3736_vm1, %v15780_v46, %v15779_v41  ;;  %v3741_v10 = vsel %vm3739_vm3, %v15781_v33, %v15778_v13  ;;  %vm3842_vm15 = vcmp.eq.s32.totalorder %v3837_v43, 2  ;;  %v5254_v49 = vadd.s32 %v5253_v39, %v5249_v15  ;;  %v15794_v39 = vld [vmem:[#allocation57_spill] sm:$0xff] }
 0x314   : > { %v3742_v47 = vsel %vm3735_vm11, %v3738_v9, %v3741_v10  ;;  %v3841_v18 = vsel %vm3839_vm5, %v15785_v42, %v15784_v32  ;;  %vm15787_vm10 = vweird.f32 %v15786_v4  ;;  %vm3838_vm0 = vcmp.lt.s32.totalorder %v3837_v43, 2 }
 0x315   : > { %v3743_v54 = vsel %vm15787_vm10, nan, %v3742_v47  ;;  %v15788_v51 = vxor.u32 2147483648, %v15785_v42  ;;  %v13739_v3 = vsel %vm13685_vm9, 0, %v5073_v6  ;;  %v5146_v63 = vadd.s32 %v13522_v56, %v13528_v8  ;;  %v15792_v56 = vld [vmem:[#allocation61_spill] sm:$0xff]  ;;  %v13752_v9 = vpop.eup %10596 }
 0x316   : > { %15789 = vst [vmem:[#allocation41_spill] sm:$0xff] %v13739_v3  ;;  %10046 = vmatmul.mubr.msk.f32.gmra.mrb[8].mxu0 %vm8071_vm4, %v3743_v54  ;;  %v15401_v21 = vand.u32 2147483647, %v13716_v29  ;;  %v5070_v58 = vxor.u32 2147483648, %v5069_v20  ;;  %v5255_v15 = vadd.s32 536870912, %v5254_v49  ;;  %vm15791_vm1 = vweird.f32 %v15790_v2  ;;  %15793 = vst [vmem:[#allocation27_spill] sm:$0xff] %v13752_v9 }
 0x317   : > { %v3844_v7 = vsel %vm3842_vm15, %v15788_v51, %v15783_v53  ;;  %v5301_v13 = vand.u32 2139095040, %v13716_v29  ;;  %v5163_v6 = vshll.u32 %v13612_v62, %v13662_v52  ;;  %v5164_v41 = vshrl.u32 %v5146_v63, %v5162_v55  ;;  %v15796_v62 = vld [vmem:[#allocation55_spill] sm:$0xff]  ;;  %v10665_v53 = vld [vmem:[%s10959_s29 + $0x50] sm:$0xff] }
 0x318   : > { %v3845_v26 = vsel %vm3838_vm0, %v3841_v18, %v3844_v7  ;;  %v5169_v46 = vor.u32 4788187, %v5168_v27  ;;  %v4043_v8 = vand.u32 3, %v15792_v56  ;;  %v13754_v33 = vshrl.u32 %v5255_v15, 30  ;;  %v15799_v2 = vld [vmem:[#allocation67_spill] sm:$0xff] }
 0x319   : > { %v3846_v43 = vsel %vm15791_vm1, nan, %v3845_v26  ;;  %v5302_v10 = vshrl.u32 %v5301_v13, 23  ;;  %vm3942_vm2 = vcmp.eq.s32.totalorder %v3940_v44, 0  ;;  %vm3945_vm3 = vcmp.eq.s32.totalorder %v3940_v44, 2  ;;  %v746_v26 = vpop.permute.xlu1 %745 }
 0x31a   : > { %10048 = vmatprep.mubr.msk.f32.mxu0 %vm8071_vm4, %v3846_v43  ;;  %v5305_v40 = vand.u32 8388607, %v15401_v21  ;;  %vm3941_vm11 = vcmp.lt.s32.totalorder %v3940_v44, 2  ;;  %v15795_v47 = vxor.u32 2147483648, %v15794_v39  ;;  %v15797_v55 = vxor.u32 2147483648, %v15796_v62  ;;  %v15801_v43 = vld [vmem:[#allocation66_spill] sm:$0xff] }
 0x31b   : > { %v976_v32 = vsel %vm965_vm7, %v10665_v53, %v13517_v19  ;;  %v5257_v42 = vshll.u32 %v13754_v33, 30  ;;  %v9574_v18 = vadd.s32 4294967169, %v5302_v10  ;;  %v5071_v54 = vsel %vm4988_vm14, %v5070_v58, %v5069_v20 }
 0x31c   : > { %v3944_v52 = vsel %vm3942_vm2, %v15796_v62, %v15795_v47  ;;  %v3947_v27 = vsel %vm3945_vm3, %v15797_v55, %v15794_v39  ;;  %v5165_v44 = vor.u32 %v5164_v41, %v5163_v6  ;;  %vm4045_vm5 = vcmp.eq.s32.totalorder %v4043_v8, 0  ;;  %v15803_v41 = vld [vmem:[#allocation54_spill] sm:$0xff] }
 0x31d   : > { %v3948_v4 = vsel %vm3941_vm11, %v3944_v52, %v3947_v27  ;;  %v13772_v63 = vsub.s32 %v5254_v49, %v5257_v42  ;;  %v5308_v15 = vadd.s32 1, %v9574_v18  ;;  %v15800_v19 = vxor.u32 2147483648, %v15799_v2 }
 0x31e   : > { %v3949_v7 = vsel %vm2286_vm6, nan, %v3948_v4  ;;  %vm4048_vm15 = vcmp.eq.s32.totalorder %v4043_v8, 2  ;;  %v5170_v56 = vand.u32 2147483647, %v5169_v46  ;;  %v5306_v10 = vor.u32 8388608, %v5305_v40 }
 0x31f   : > { %10049 = vmatmul.mubr.msk.f32.gmra.mrb[10].mxu0 %vm8071_vm4, %v3949_v7  ;;  %v4047_v13 = vsel %vm4045_vm5, %v15801_v43, %v15800_v19  ;;  %vm4044_vm10 = vcmp.lt.s32.totalorder %v4043_v8, 2  ;;  %v15802_v20 = vxor.u32 2147483648, %v15801_v43  ;;  %v5260_v6 = vsub.s32 0, %v13772_v63  ;;  %v15807_v19 = vld [vmem:[#allocation65_spill] sm:$0xff] }
 0x320   : > { %vm5309_vm6 = vcmp.gt.s32.totalorder %v5308_v15, 0  ;;  %v13783_v39 = vand.u32 3, %v15803_v41  ;;  %v5172_v47 = vcvt.s32.f32 %v5165_v44  ;;  %v13791_v8 = vsel %vm13685_vm9, %v13284_v17, %v5071_v54  ;;  %v15806_v44 = vld [vmem:[#allocation68_spill] sm:$0xff]  ;;  %v13807_v54 = vpop.permute.xlu1 %747 }
 0x321   : > { %v4050_v58 = vsel %vm4048_vm15, %v15802_v20, %v15799_v2  ;;  %v5310_v52 = vsel %vm5309_vm6, %v5308_v15, 0  ;;  %v9571_v40 = vmin.u32 %v5260_v6, %v13772_v63  ;;  %vm15805_vm14 = vcmask 48128  }
 0x322   : > { %v4051_v49 = vsel %vm4044_vm10, %v4047_v13, %v4050_v58  ;;  %v13795_v27 = vsel %vm15805_vm14, %v976_v32, %v746_v26  ;;  %v5312_v53 = vand.u32 31, %v5310_v52  ;;  %v13798_v42 = vmul.f32 %v5172_v47, %v5170_v56 }
 0x323   : > { %v4052_v46 = vsel %vm2390_vm8, nan, %v4051_v49  ;;  %v5250_v18 = vadd.s32 %v13694_v61, %v13692_v50  ;;  %v13802_v4 = vshll.u32 %v5306_v10, 8  ;;  %v13805_v51 = vand.u32 3, %v15806_v44  ;;  %v15809_v61 = vld [vmem:[#allocation63_spill] sm:$0xff] }
 0x324   : > { %10051 = vmatprep.mubr.msk.f32.mxu0 %vm8071_vm4, %v4052_v46  ;;  %v5262_v16 = vclz %v9571_v40  ;;  %v5311_v7 = vshrl.u32 %v5310_v52, 5  ;;  %v5313_v15 = vsub.s32 32, %v5312_v53  ;;  %vm4148_vm8 = vcmp.eq.s32.totalorder %v13783_v39, 0  ;;  %v13826_v21 = vpop.permute.xlu1 %811 }
 0x325   : > { %v5315_v32 = vshll.u32 %v15517_v22, %v5312_v53  ;;  %v5318_v26 = vshll.u32 %v15518_v25, %v5312_v53  ;;  %v5321_v2 = vshll.u32 %v15519_v28, %v5312_v53  ;;  %v15808_v50 = vxor.u32 2147483648, %v15807_v19 }
 0x326   : > { %v9572_v13 = vadd.s32 4294967294, %v5262_v16  ;;  %v5316_v56 = vshrl.u32 %v15518_v25, %v5313_v15  ;;  %v5319_v10 = vshrl.u32 %v15519_v28, %v5313_v15  ;;  %v5324_v20 = vshll.u32 %v15520_v37, %v5312_v53 }
 0x327   : > { %v4150_v43 = vsel %vm4148_vm8, %v15809_v61, %v15808_v50  ;;  %vm4151_vm9 = vcmp.eq.s32.totalorder %v13783_v39, 2  ;;  %v5322_v58 = vshrl.u32 %v15520_v37, %v5313_v15  ;;  %v5325_v6 = vshrl.u32 %v15521_v36, %v5313_v15 }
 0x328   : > { %v5327_v49 = vshll.u32 %v15521_v36, %v5312_v53  ;;  %v5328_v41 = vshrl.u32 %v15523_v59, %v5313_v15  ;;  %vm9573_vm0 = vcmp.lt.s32.totalorder %v9572_v13, 0  ;;  %v5317_v47 = vor.u32 %v5316_v56, %v5315_v32 }
 0x329   : > { %v5320_v52 = vor.u32 %v5319_v10, %v5318_v26  ;;  %vm5330_vm1 = vcmp.lt.s32.totalorder %v5311_v7, 1  ;;  %vm4147_vm2 = vcmp.lt.s32.totalorder %v13783_v39, 2  ;;  %v5265_v55 = vsel %vm9573_vm0, 0, %v9572_v13 }
 0x32a   : > { %v5323_v46 = vor.u32 %v5322_v58, %v5321_v2  ;;  %v5326_v40 = vor.u32 %v5325_v6, %v5324_v20  ;;  %v5329_v44 = vor.u32 %v5328_v41, %v5327_v49  ;;  %v5270_v16 = vsub.s32 4294967266, %v5265_v55  ;;  %v810_v6 = vpop.permute.xlu0 %809 }
 0x32b   : > { %v5314_v50 = vshrl.u32 %v15517_v22, %v5313_v15  ;;  %vm5331_vm3 = vcmp.lt.s32.totalorder %v5311_v7, 2  ;;  %vm5333_vm11 = vcmp.lt.s32.totalorder %v5311_v7, 4  ;;  %vm5332_vm5 = vcmp.lt.s32.totalorder %v5311_v7, 3 }
 0x32c   : > { %v5335_v53 = vsel %vm5333_vm11, %v5323_v46, 2102212464  ;;  %v5338_v62 = vsel %vm5330_vm1, %v5317_v47, %v5320_v52  ;;  %v5339_v32 = vsel %vm5333_vm11, %v5326_v40, 920167782  ;;  %v5266_v26 = vsub.s32 32, %v5265_v55 }
 0x32d   : > { %v5271_v56 = vadd.s32 127, %v5270_v16  ;;  %v5334_v10 = vsel %vm5330_vm1, %v5314_v50, %v5317_v47  ;;  %v5340_v13 = vsel %vm5332_vm5, %v5323_v46, %v5339_v32  ;;  %v5336_v2 = vsel %vm5332_vm5, %v5320_v52, %v5335_v53 }
 0x32e   : > { %v5341_v20 = vsel %vm5331_vm3, %v5338_v62, %v5340_v13  ;;  %v5342_v58 = vsel %vm5330_vm1, %v5320_v52, %v5323_v46  ;;  %v5343_v15 = vsel %vm5333_vm11, %v5329_v44, 1326507024  ;;  %vm4250_vm15 = vcmp.lt.s32.totalorder %v13805_v51, 2  ;;  %v8491_v46 = vld [vmem:[%s15206_s6] sm:$0xff]  ;;  %v13857_v13 = vpop.permute.xlu1 %685 }
 0x32f   : > { %v5344_v49 = vsel %vm5332_vm5, %v5326_v40, %v5343_v15  ;;  %vm4251_vm10 = vcmp.eq.s32.totalorder %v13805_v51, 0  ;;  %vm4254_vm6 = vcmp.eq.s32.totalorder %v13805_v51, 2  ;;  %v15810_v62 = vxor.u32 2147483648, %v15809_v61  ;;  %v8492_v40 = vld [vmem:[%s15206_s6 + $0x8] sm:$0xff] }
 0x330   : > { %v5345_v41 = vsel %vm5331_vm3, %v5342_v58, %v5344_v49  ;;  %v13837_v16 = vmul.u32.u64.low %v13802_v4, %v5341_v20  ;;  %v13838_v47 = vmul.u32.u64.high %v13802_v4, %v5341_v20, %v13837_v16  ;;  %v5268_v44 = vshrl.u32 %v5250_v18, %v5266_v26  ;;  %v15812_v58 = vld [vmem:[#allocation25_spill] sm:$0xff] }
 0x331   : > { %v4153_v52 = vsel %vm4151_vm9, %v15810_v62, %v15807_v19  ;;  %v5337_v50 = vsel %vm5331_vm3, %v5334_v10, %v5336_v2  ;;  %v13854_v53 = vmul.u32.u64.low %v13802_v4, %v5345_v41  ;;  %v13855_v32 = vmul.u32.u64.high %v13802_v4, %v5345_v41, %v13854_v53  ;;  %v15814_v10 = vld [vmem:[#allocation34_spill] sm:$0xff] }
 0x332   : > { %vm5092_vm14 = vcmp.lt.s32.totalorder %v13410_v11, 0  ;;  %v5272_v19 = vshll.u32 %v5271_v56, 23  ;;  %v4154_v61 = vsel %vm4147_vm2, %v4150_v43, %v4153_v52  ;;  %v15811_v20 = vxor.u32 2147483648, %v12896_v48 }
 0x333   : > { %v15813_v18 = vxor.u32 2147483648, %v15812_v58  ;;  %v5267_v26 = vshll.u32 %v13772_v63, %v5265_v55  ;;  %vm15815_vm8 = vweird.f32 %v15814_v10  ;;  %v10192_v56 = vpack.c.bf16 %v8492_v40, %v8491_v46 }
 0x334   : > { %v4253_v15 = vsel %vm4251_vm10, %v15812_v58, %v15811_v20  ;;  %v4155_v2 = vsel %vm15815_vm8, nan, %v4154_v61  ;;  %v5356_v39 = vadd.s32 1, %v13838_v47  ;;  %vm15816_vm9 = vcmask 72704   ;;  %v8493_v20 = vld [vmem:[%s15206_s6 + $0x10] sm:$0x3] }
 0x335   : > { %v4256_v7 = vsel %vm4254_vm6, %v15813_v18, %v12896_v48  ;;  %v1010_v43 = vsel %vm15816_vm9, %v13795_v27, %v810_v6  ;;  %10052 = vmatmul.mubr.msk.f32.gmra.mrb[12].mxu0 %vm8071_vm4, %v4155_v2  ;;  %vm15817_vm0 = vweird.f32 %v15715_v24  ;;  %v874_v48 = vpop.permute.xlu0 %873  ;;  %v4352_v63 = vand.u32 3, %v15716_v34  ;;  %10193 = vmatprep.subr.bf16.mxu0 %v10192_v56  ;;  %v15825_v18 = vld [vmem:[#allocation28_spill] sm:$0xff] }
 0x336   : > { %v4257_v49 = vsel %vm4250_vm15, %v4253_v15, %v4256_v7  ;;  %v5174_v55 = vxor.u32 2147483648, %v13798_v42  ;;  %v5269_v62 = vor.u32 %v5268_v44, %v5267_v26  ;;  %v5353_v51 = vmul.u32 %v13802_v4, %v5337_v50  ;;  %10195 = vmatpush3.bf16.msra.mxu0 %v10192_v56 }
 0x337   : > { %v4258_v41 = vsel %vm15817_vm0, nan, %v4257_v49  ;;  %vm5355_vm1 = vc.u32 %v13855_v32, %v13837_v16  ;;  %v5273_v27 = vor.u32 4788187, %v5272_v19  ;;  %vm4354_vm2 = vcmp.eq.s32.totalorder %v4352_v63, 0  ;;  %v15823_v19 = vld [vmem:[#allocation21_spill] sm:$0xff] }
 0x338   : > { %10054 = vmatprep.mubr.msk.f32.mxu0 %vm8071_vm4, %v4258_v41  ;;  %v5357_v6 = vsel %vm5355_vm1, %v5356_v39, %v13838_v47  ;;  %vm4357_vm3 = vcmp.eq.s32.totalorder %v4352_v63, 2  ;;  %v15818_v24 = vand.u32 2147483647, %v13410_v11  ;;  %vm4353_vm5 = vcmp.lt.s32.totalorder %v4352_v63, 2  ;;  %v938_v47 = vpop.permute.xlu1 %937 }
 0x339   : > { %v5358_v52 = vadd.s32 %v5357_v6, %v5353_v51  ;;  %v15821_v4 = vxor.u32 2147483648, %v15717_v45  ;;  %v15822_v40 = vxor.u32 2147483648, %v15718_v23  ;;  %10598 = vcosq.f32 %v13791_v8  ;;  %v13912_v49 = vpop.permute.xlu0 %875  ;;  %v15829_v51 = vld [vmem:[#allocation53_spill] sm:$0xff] }
 0x33a   : > { %vm13888_vm11 = vcmp.le.f32.partialorder %v15818_v24, 0.7853982  ;;  %v1027_v50 = vsel %vm1016_vm13, %v1010_v43, %v874_v48  ;;  %v4455_v61 = vadd.s32 3, %v15823_v19  ;;  %vm15824_vm15 = vweird.f32 %v15719_v35 }
 0x33b   : > { %v4356_v46 = vsel %vm4354_vm2, %v15718_v23, %v15821_v4  ;;  %v4359_v44 = vsel %vm4357_vm3, %v15822_v40, %v15717_v45  ;;  %v5359_v58 = vadd.s32 536870912, %v5358_v52  ;;  %v15406_v7 = vxor.u32 2147483648, %v15825_v18  ;;  %v15826_v23 = vld [vmem:[#allocation29_spill] sm:$0xff]  ;;  %v10666_v40 = vld [vmem:[%s10959_s29 + $0x58] sm:$0xff] }
 0x33c   : > { %v4360_v53 = vsel %vm4353_vm5, %v4356_v46, %v4359_v44  ;;  %v15405_v45 = vxor.u32 2147483648, %v15826_v23  ;;  %v5274_v26 = vand.u32 2147483647, %v5273_v27  ;;  %v4456_v10 = vand.u32 3, %v4455_v61 }
 0x33d   : > { %v4361_v15 = vsel %vm15824_vm15, nan, %v4360_v53  ;;  %v13910_v2 = vsel %vm1033_vm12, %v1027_v50, %v938_v47  ;;  %vm8543_vm10 = vcmask 1041408   ;;  %v5175_v56 = vsel %vm5092_vm14, %v5174_v55, %v13798_v42  ;;  %v15828_v42 = vld [vmem:[#allocation56_spill] sm:$0xff]  ;;  %v13953_v50 = vpop.permute.xlu0 %687 }
 0x33e   : > { %10055 = vmatmul.mubr.msk.f32.gmra.mrb[14].mxu0 %vm8071_vm4, %v4361_v15  ;;  %v15827_v35 = vsub.s32 4, %v13585_v5  ;;  %v5276_v43 = vcvt.s32.f32 %v5269_v62  ;;  %v13922_v41 = vshrl.u32 %v5359_v58, 30  ;;  %10061 = vmatprep.subr.msk.mxu0 %vm8543_vm10, %v8493_v20  ;;  %vm4458_vm4 = vcmp.eq.s32.totalorder %v4456_v10, 0 }
 0x33f   : > { %vm4461_vm6 = vcmp.eq.s32.totalorder %v4456_v10, 2  ;;  %vm8494_vm8 = vcmask 146432   ;;  %v15407_v48 = vand.u32 2147483647, %v13910_v2  ;;  %10062 = vmatpush3.msk.msra.mxu0 %vm8543_vm10, %v8493_v20  ;;  %vm15414_vm9 = vweird.f32 %v15828_v42  ;;  %v15831_v20 = vld [vmem:[#allocation5_spill] sm:$0xff] }
 0x340   : > { %v5177_v39 = vsel %vm5092_vm14, %v15827_v35, %v13585_v5  ;;  %v5361_v63 = vshll.u32 %v13922_v41, 30  ;;  %vm4457_vm0 = vcmp.lt.s32.totalorder %v4456_v10, 2  ;;  %v4460_v5 = vsel %vm4458_vm4, %v15826_v23, %v15406_v7  ;;  %v15832_v10 = vld [vmem:[#allocation8_spill] sm:$0xff]  ;;  %v15833_v35 = vld [vmem:[#allocation15_spill] sm:$0xff] }
 0x341   : > { %v4463_v55 = vsel %vm4461_vm6, %v15405_v45, %v15825_v18  ;;  %v5277_v62 = vmul.f32 %v5276_v43, %v5274_v26  ;;  %vm4454_vm14 = vweird.f32 %v15829_v51  ;;  %v5405_v6 = vand.u32 2139095040, %v13910_v2 }
 0x342   : > { %v4464_v27 = vsel %vm4457_vm0, %v4460_v5, %v4463_v55  ;;  %10600 = vsinq.f32 %v13791_v8  ;;  %vm5196_vm1 = vcmp.lt.s32.totalorder %v13556_v12, 0  ;;  %v13939_v24 = vsub.s32 %v5358_v52, %v5361_v63 }
 0x343   : > { %v4465_v4 = vsel %vm4454_vm14, nan, %v4464_v27  ;;  %v13945_v46 = vsel %vm13888_vm11, 0, %v5177_v39  ;;  %v977_v44 = vsel %vm965_vm7, %v10666_v40, %v13677_v0  ;;  %v5406_v47 = vshrl.u32 %v5405_v6, 23  ;;  %v13964_v58 = vpop.eup %10598 }
 0x344   : > { %10063 = vmatprep.mubr.msk.f32.mxu0 %vm8494_vm8, %v4465_v4  ;;  %v5409_v8 = vand.u32 8388607, %v15407_v48  ;;  %v13958_v52 = vsel %vm13888_vm11, %v13410_v11, %v5175_v56  ;;  %vm15830_vm2 = vcmask 48128   ;;  %v5364_v61 = vsub.s32 0, %v13939_v24  ;;  %v15838_v48 = vld [vmem:[#allocation60_spill] sm:$0xff] }
 0x345   : > { %v994_v53 = vsel %vm15830_vm2, %v977_v44, %v13807_v54  ;;  %v15403_v0 = vxor.u32 2147483648, %v15831_v20  ;;  %v5278_v15 = vxor.u32 2147483648, %v5277_v62  ;;  %v9578_v26 = vadd.s32 4294967169, %v5406_v47  ;;  %v15834_v54 = vld [vmem:[#allocation12_spill] sm:$0xff]  ;;  %v15836_v47 = vld [vmem:[#allocation7_spill] sm:$0xff] }
 0x346   : > { %vm4562_vm3 = vcmp.eq.s32.totalorder %v15832_v10, 0  ;;  %v15402_v39 = vxor.u32 2147483648, %v15833_v35  ;;  %v9575_v43 = vmin.u32 %v5364_v61, %v13939_v24  ;;  %vm4565_vm11 = vcmp.eq.s32.totalorder %v15832_v10, 2  ;;  %v940_v61 = vpop.permute.xlu0 %939 }
 0x347   : > { %v4564_v34 = vsel %vm4562_vm3, %v15833_v35, %v15403_v0  ;;  %v4663_v56 = vadd.s32 3, %v15834_v54  ;;  %v5410_v63 = vor.u32 8388608, %v5409_v8  ;;  %v5412_v5 = vadd.s32 1, %v9578_v26 }
 0x348   : > { %vm4561_vm5 = vcmp.lt.s32.totalorder %v15832_v10, 2  ;;  %v4567_v55 = vsel %vm4565_vm11, %v15402_v39, %v15831_v20  ;;  %v5366_v27 = vclz %v9575_v43  ;;  %vm15835_vm15 = vcmask 72704   ;;  %v13998_v39 = vpop.permute.xlu1 %749 }
 0x349   : > { %v1011_v6 = vsel %vm15835_vm15, %v994_v53, %v13826_v21  ;;  %v4568_v4 = vsel %vm4561_vm5, %v4564_v34, %v4567_v55  ;;  %v13980_v40 = vand.u32 3, %v4663_v56  ;;  %10602 = vcosq.f32 %v13958_v52  ;;  %v15837_v55 = vld [vmem:[#allocation17_spill] sm:$0xff] }
 0x34a   : > { %vm5413_vm4 = vcmp.gt.s32.totalorder %v5412_v5, 0  ;;  %v4569_v44 = vsel %vm15414_vm9, nan, %v4568_v4  ;;  %v15404_v8 = vxor.u32 2147483648, %v15836_v47  ;;  %v13988_v26 = vsel %vm5196_vm1, %v5278_v15, %v5277_v62 }
 0x34b   : > { %v5354_v10 = vadd.s32 %v13837_v16, %v13855_v32  ;;  %v9576_v21 = vadd.s32 4294967294, %v5366_v27  ;;  %v5414_v53 = vsel %vm5413_vm4, %v5412_v5, 0  ;;  %10064 = vmatmul.mubr.msk.f32.vlgmr.msra.gmra.mrb[0].mxu0 %vm8494_vm8, %v4569_v44  ;;  %v13993_v34 = vshll.u32 %v5410_v63, 8 }
 0x34c   : > { %v5416_v43 = vand.u32 31, %v5414_v53  ;;  %v1028_v56 = vsel %vm1016_vm13, %v1011_v6, %v13912_v49  ;;  %v14000_v0 = vpop.eup %10600  ;;  %v14002_v62 = vshrl.u32 %v5414_v53, 5  ;;  %vm4666_vm0 = vcmp.eq.s32.totalorder %v13980_v40, 0  ;;  %v14023_v20 = vpop.permute.xlu1 %751 }
 0x34d   : > { %vm9577_vm6 = vcmp.lt.s32.totalorder %v9576_v21, 0  ;;  %v14006_v16 = vsel %vm1033_vm12, %v1028_v56, %v940_v61  ;;  %v4668_v49 = vsel %vm4666_vm0, %v15837_v55, %v15404_v8  ;;  %vm4669_vm2 = vcmp.eq.s32.totalorder %v13980_v40, 2 }
 0x34e   : > { %v5369_v32 = vsel %vm9577_vm6, 0, %v9576_v21  ;;  %v5417_v15 = vsub.s32 32, %v5416_v43  ;;  %v5419_v27 = vshll.u32 %v15517_v22, %v5416_v43  ;;  %v5422_v6 = vshll.u32 %v15518_v25, %v5416_v43 }
 0x34f   : > { %v5370_v63 = vsub.s32 32, %v5369_v32  ;;  %v5374_v5 = vsub.s32 4294967266, %v5369_v32  ;;  %vm4665_vm3 = vcmp.lt.s32.totalorder %v13980_v40, 2  ;;  %v5425_v21 = vshll.u32 %v15519_v28, %v5416_v43 }
 0x350   : > { %v5420_v44 = vshrl.u32 %v15518_v25, %v5417_v15  ;;  %v5423_v61 = vshrl.u32 %v15519_v28, %v5417_v15  ;;  %v5426_v53 = vshrl.u32 %v15520_v37, %v5417_v15  ;;  %v5428_v45 = vshll.u32 %v15520_v37, %v5416_v43 }
 0x351   : > { %v5372_v56 = vshrl.u32 %v5354_v10, %v5370_v63  ;;  %v5375_v8 = vadd.s32 127, %v5374_v5  ;;  %v5429_v7 = vshrl.u32 %v15521_v36, %v5417_v15  ;;  %vm15448_vm11 = vweird.f32 %v15838_v48 }
 0x352   : > { %v5371_v4 = vshll.u32 %v13939_v24, %v5369_v32  ;;  %v5421_v42 = vor.u32 %v5420_v44, %v5419_v27  ;;  %v5424_v51 = vor.u32 %v5423_v61, %v5422_v6  ;;  %v5427_v35 = vor.u32 %v5426_v53, %v5425_v21 }
 0x353   : > { %v15839_v23 = vand.u32 2147483647, %v13556_v12  ;;  %v5376_v10 = vshll.u32 %v5375_v8, 23  ;;  %v5430_v63 = vor.u32 %v5429_v7, %v5428_v45  ;;  %v5431_v5 = vshll.u32 %v15521_v36, %v5416_v43  ;;  %v14033_v19 = vpop.eup %10602 }
 0x354   : > { %v5432_v54 = vshrl.u32 %v15523_v59, %v5417_v15  ;;  %v5373_v24 = vor.u32 %v5372_v56, %v5371_v4  ;;  %v5418_v32 = vshrl.u32 %v15517_v22, %v5417_v15  ;;  %vm5434_vm15 = vcmp.lt.s32.totalorder %v14002_v62, 1 }
 0x355   : > { %vm14027_vm5 = vcmp.le.f32.partialorder %v15839_v23, 0.7853982  ;;  %v15842_v27 = vxor.u32 2147483648, %v15837_v55  ;;  %v5377_v6 = vor.u32 4788187, %v5376_v10  ;;  %vm5436_vm4 = vcmp.lt.s32.totalorder %v14002_v62, 3  ;;  %v14050_v10 = vpop.permute.xlu1 %815 }
 0x356   : > { %v5433_v8 = vor.u32 %v5432_v54, %v5431_v5  ;;  %vm5437_vm6 = vcmp.lt.s32.totalorder %v14002_v62, 4  ;;  %v5442_v45 = vsel %vm5434_vm15, %v5421_v42, %v5424_v51  ;;  %v5446_v4 = vsel %vm5434_vm15, %v5424_v51, %v5427_v35 }
 0x357   : > { %v4671_v23 = vsel %vm4669_vm2, %v15842_v27, %v15836_v47  ;;  %v5439_v7 = vsel %vm5437_vm6, %v5427_v35, 2102212464  ;;  %v5443_v43 = vsel %vm5437_vm6, %v5430_v63, 920167782  ;;  %vm5435_vm0 = vcmp.lt.s32.totalorder %v14002_v62, 2 }
 0x358   : > { %v5438_v15 = vsel %vm5434_vm15, %v5418_v32, %v5421_v42  ;;  %v5444_v44 = vsel %vm5436_vm4, %v5427_v35, %v5443_v43  ;;  %v5447_v61 = vsel %vm5437_vm6, %v5433_v8, 1326507024  ;;  %vm5300_vm9 = vcmp.lt.s32.totalorder %v13716_v29, 0  ;;  %v15843_v43 = vld [vmem:[#allocation20_spill] sm:$0xff] }
 0x359   : > { %v5440_v21 = vsel %vm5436_vm4, %v5424_v51, %v5439_v7  ;;  %v5445_v53 = vsel %vm5435_vm0, %v5442_v45, %v5444_v44  ;;  %v5448_v54 = vsel %vm5436_vm4, %v5430_v63, %v5447_v61  ;;  %v4672_v56 = vsel %vm4665_vm3, %v4668_v49, %v4671_v23 }
 0x35a   : > { %v5378_v5 = vand.u32 2147483647, %v5377_v6  ;;  %v5449_v27 = vsel %vm5435_vm0, %v5446_v4, %v5448_v54  ;;  %v14055_v42 = vmul.u32.u64.low %v13993_v34, %v5445_v53  ;;  %v14056_v35 = vmul.u32.u64.high %v13993_v34, %v5445_v53, %v14055_v42  ;;  %v15847_v54 = vld [vmem:[#allocation24_spill] sm:$0xff] }
 0x35b   : > { %v5280_v51 = vsub.s32 4, %v13754_v33  ;;  %v14061_v32 = vmul.u32.u64.low %v13993_v34, %v5449_v27  ;;  %v14062_v8 = vmul.u32.u64.high %v13993_v34, %v5449_v27, %v14061_v32  ;;  %v4673_v40 = vsel %vm15448_vm11, nan, %v4672_v56  ;;  %v14090_v27 = vpop.permute.xlu1 %689 }
 0x35c   : > { %v5380_v49 = vcvt.s32.f32 %v5373_v24  ;;  %v5441_v63 = vsel %vm5435_vm0, %v5438_v15, %v5440_v21  ;;  %10066 = vmatprep.mubr.msk.f32.mxu0 %vm8494_vm8, %v4673_v40  ;;  %v15417_v23 = vand.u32 2147483647, %v14006_v16  ;;  %v5509_v6 = vand.u32 2139095040, %v14006_v16  ;;  %v814_v21 = vpop.permute.xlu0 %813 }
 0x35d   : > { %10604 = vsinq.f32 %v13958_v52  ;;  %v5282_v7 = vsel %vm14027_vm5, %v13556_v12, %v13988_v26  ;;  %v5384_v45 = vsub.s32 4, %v13922_v41  ;;  %v4767_v24 = vadd.s32 3, %v15843_v43 }
 0x35e   : > { %v15844_v62 = vand.u32 2147483647, %v13716_v29  ;;  %v5381_v15 = vmul.f32 %v5380_v49, %v5378_v5  ;;  %v5460_v44 = vadd.s32 1, %v14056_v35  ;;  %v5510_v52 = vshrl.u32 %v5509_v6, 23 }
 0x35f   : > { %v15415_v61 = vxor.u32 2147483648, %v13508_v38  ;;  %v5457_v26 = vmul.u32 %v13993_v34, %v5441_v63  ;;  %vm5459_vm3 = vc.u32 %v14062_v8, %v14055_v42  ;;  %v4768_v53 = vand.u32 3, %v4767_v24  ;;  %v10667_v34 = vld [vmem:[%s10959_s29 + $0x60] sm:$0xff] }
 0x360   : > { %vm14080_vm2 = vcmp.le.f32.partialorder %v15844_v62, 0.7853982  ;;  %v15416_v56 = vxor.u32 2147483648, %v15847_v54  ;;  %v5281_v5 = vsel %vm5196_vm1, %v5280_v51, %v13754_v33  ;;  %v5461_v32 = vsel %vm5459_vm3, %v5460_v44, %v14056_v35 }
 0x361   : > { %v9582_v40 = vadd.s32 4294967169, %v5510_v52  ;;  %v5513_v49 = vand.u32 8388607, %v15417_v23  ;;  %10606 = vcosq.f32 %v5282_v7  ;;  %v978_v63 = vsel %vm965_vm7, %v10667_v34, %v13857_v13  ;;  %v15848_v52 = vld [vmem:[#allocation64_spill] sm:$0xff] }
 0x362   : > { %v5462_v6 = vadd.s32 %v5461_v32, %v5457_v26  ;;  %vm4770_vm15 = vcmp.eq.s32.totalorder %v4768_v53, 0  ;;  %v5385_v24 = vsel %vm5300_vm9, %v5384_v45, %v13922_v41  ;;  %vm4773_vm1 = vcmp.eq.s32.totalorder %v4768_v53, 2  ;;  %v878_v32 = vpop.permute.xlu0 %877 }
 0x363   : > { %v5516_v62 = vadd.s32 1, %v9582_v40  ;;  %v4772_v33 = vsel %vm4770_vm15, %v15847_v54, %v15415_v61  ;;  %v5382_v35 = vxor.u32 2147483648, %v5381_v15  ;;  %vm4769_vm4 = vcmp.lt.s32.totalorder %v4768_v53, 2  ;;  %v942_v53 = vpop.permute.xlu1 %941 }
 0x364   : > { %v5463_v51 = vadd.s32 536870912, %v5462_v6  ;;  %v4775_v44 = vsel %vm4773_vm1, %v15416_v56, %v13508_v38  ;;  %v5514_v13 = vor.u32 8388608, %v5513_v49  ;;  %vm15447_vm0 = vweird.f32 %v15848_v52 }
 0x365   : > { %vm5517_vm6 = vcmp.gt.s32.totalorder %v5516_v62, 0  ;;  %v4776_v26 = vsel %vm4769_vm4, %v4772_v33, %v4775_v44  ;;  %vm15849_vm3 = vcmask 48128   ;;  %v14119_v61 = vsel %vm14027_vm5, 0, %v5281_v5 }
 0x366   : > { %v14111_v41 = vshrl.u32 %v5463_v51, 30  ;;  %v995_v45 = vsel %vm15849_vm3, %v978_v63, %v13998_v39  ;;  %v5518_v40 = vsel %vm5517_vm6, %v5516_v62, 0  ;;  %v4777_v34 = vsel %vm15447_vm0, nan, %v4776_v26 }
 0x367   : > { %10608 = vsinq.f32 %v5282_v7  ;;  %v5520_v49 = vand.u32 31, %v5518_v40  ;;  %10067 = vmatmul.mubr.msk.f32.gmra.mrb[2].mxu0 %vm8494_vm8, %v4777_v34  ;;  %vm15850_vm15 = vcmask 72704   ;;  %v14123_v51 = vpop.eup %10604  ;;  %v5383_v39 = vsel %vm5300_vm9, %v5382_v35, %v5381_v15 }
 0x368   : > { %v1012_v33 = vsel %vm15850_vm15, %v995_v45, %v814_v21  ;;  %v14129_v63 = vsel %vm14080_vm2, 0, %v5385_v24  ;;  %v5465_v62 = vshll.u32 %v14111_v41, 30  ;;  %v5519_v5 = vshrl.u32 %v5518_v40, 5 }
 0x369   : > { %15851 = vst [vmem:[#allocation26_spill] sm:$0xff] %v14129_v63  ;;  %v1029_v18 = vsel %vm1016_vm13, %v1012_v33, %v878_v32  ;;  %v5521_v7 = vsub.s32 32, %v5520_v49  ;;  %v14133_v44 = vshll.u32 %v5514_v13, 8  ;;  %v5523_v45 = vshll.u32 %v15517_v22, %v5520_v49 }
 0x36a   : > { %v14136_v26 = vsel %vm1033_vm12, %v1029_v18, %v942_v53  ;;  %v14138_v21 = vsub.s32 %v5462_v6, %v5465_v62  ;;  %v5526_v15 = vshll.u32 %v15518_v25, %v5520_v49  ;;  %v5529_v24 = vshll.u32 %v15519_v28, %v5520_v49 }
 0x36b   : > { %15852 = vst [vmem:[#allocation32_spill] sm:$0xff] %v14136_v26  ;;  %v5524_v35 = vshrl.u32 %v15518_v25, %v5521_v7  ;;  %v5527_v34 = vshrl.u32 %v15519_v28, %v5521_v7  ;;  %v5532_v32 = vshll.u32 %v15520_v37, %v5520_v49  ;;  %v5535_v13 = vshll.u32 %v15521_v36, %v5520_v49  ;;  %v14147_v40 = vpop.eup %10606 }
 0x36c   : > { %v5468_v53 = vsub.s32 0, %v14138_v21  ;;  %v5530_v6 = vshrl.u32 %v15520_v37, %v5521_v7  ;;  %v5533_v33 = vshrl.u32 %v15521_v36, %v5521_v7  ;;  %v5536_v62 = vshrl.u32 %v15523_v59, %v5521_v7 }
 0x36d   : > { %v5525_v18 = vor.u32 %v5524_v35, %v5523_v45  ;;  %v5528_v56 = vor.u32 %v5527_v34, %v5526_v15  ;;  %vm5538_vm9 = vcmp.lt.s32.totalorder %v5519_v5, 1  ;;  %v5613_v23 = vand.u32 2139095040, %v14136_v26 }
 0x36e   : > { %v9579_v52 = vmin.u32 %v5468_v53, %v14138_v21  ;;  %v5531_v48 = vor.u32 %v5530_v6, %v5529_v24  ;;  %v5534_v54 = vor.u32 %v5533_v33, %v5532_v32  ;;  %v5537_v49 = vor.u32 %v5536_v62, %v5535_v13 }
 0x36f   : > { %v5522_v38 = vshrl.u32 %v15517_v22, %v5521_v7  ;;  %vm5540_vm5 = vcmp.lt.s32.totalorder %v5519_v5, 3  ;;  %vm5541_vm1 = vcmp.lt.s32.totalorder %v5519_v5, 4  ;;  %v5546_v55 = vsel %vm5538_vm9, %v5525_v18, %v5528_v56 }
 0x370   : > { %v5470_v47 = vclz %v9579_v52  ;;  %v5543_v43 = vsel %vm5541_vm1, %v5531_v48, 2102212464  ;;  %v5547_v63 = vsel %vm5541_vm1, %v5534_v54, 920167782  ;;  %v5550_v45 = vsel %vm5538_vm9, %v5528_v56, %v5531_v48 }
 0x371   : > { %v14158_v15 = vpop.eup %10608  ;;  %vm5539_vm4 = vcmp.lt.s32.totalorder %v5519_v5, 2  ;;  %v5542_v35 = vsel %vm5538_vm9, %v5522_v38, %v5525_v18  ;;  %v5548_v24 = vsel %vm5540_vm5, %v5531_v48, %v5547_v63  ;;  %v5551_v34 = vsel %vm5541_vm1, %v5537_v49, 1326507024 }
 0x372   : > { %v9580_v32 = vadd.s32 4294967294, %v5470_v47  ;;  %v5544_v13 = vsel %vm5540_vm5, %v5528_v56, %v5543_v43  ;;  %v5549_v7 = vsel %vm5539_vm4, %v5546_v55, %v5548_v24  ;;  %v5552_v53 = vsel %vm5540_vm5, %v5534_v54, %v5551_v34  ;;  %v10668_v43 = vld [vmem:[%s10959_s29 + $0x68] sm:$0xff] }
 0x373   : > { %v5386_v52 = vsel %vm14080_vm2, %v13716_v29, %v5383_v39  ;;  %v5553_v6 = vsel %vm5539_vm4, %v5550_v45, %v5552_v53  ;;  %v14167_v33 = vmul.u32.u64.low %v14133_v44, %v5549_v7  ;;  %v14168_v62 = vmul.u32.u64.high %v14133_v44, %v5549_v7, %v14167_v33  ;;  %v880_v7 = vpop.permute.xlu0 %879 }
 0x374   : > { %vm5404_vm6 = vcmp.lt.s32.totalorder %v13910_v2, 0  ;;  %vm9581_vm3 = vcmp.lt.s32.totalorder %v9580_v32, 0  ;;  %v14173_v38 = vmul.u32.u64.low %v14133_v44, %v5553_v6  ;;  %v14174_v48 = vmul.u32.u64.high %v14133_v44, %v5553_v6, %v14173_v38 }
 0x375   : > { %v5614_v47 = vshrl.u32 %v5613_v23, 23  ;;  %v5473_v55 = vsel %vm9581_vm3, 0, %v9580_v32  ;;  %v979_v4 = vsel %vm965_vm7, %v10668_v43, %v13953_v50  ;;  %v5545_v54 = vsel %vm5539_vm4, %v5542_v35, %v5544_v13 }
 0x376   : > { %v15428_v56 = vand.u32 2147483647, %v14136_v26  ;;  %v5474_v39 = vsub.s32 32, %v5473_v55  ;;  %v5478_v63 = vsub.s32 4294967266, %v5473_v55  ;;  %v4871_v49 = vadd.s32 3, %v13599_v1 }
 0x377   : > { %v9586_v18 = vadd.s32 4294967169, %v5614_v47  ;;  %10610 = vcosq.f32 %v5386_v52  ;;  %v5458_v45 = vadd.s32 %v14055_v42, %v14062_v8  ;;  %vm15853_vm2 = vcmask 48128  }
 0x378   : > { %v996_v23 = vsel %vm15853_vm2, %v979_v4, %v14023_v20  ;;  %v5564_v24 = vadd.s32 1, %v14168_v62  ;;  %10612 = vsinq.f32 %v5386_v52  ;;  %v5479_v50 = vadd.s32 127, %v5478_v63 }
 0x379   : > { %v5561_v5 = vmul.u32 %v14133_v44, %v5545_v54  ;;  %vm5563_vm15 = vc.u32 %v14174_v48, %v14167_v33  ;;  %v5488_v35 = vsub.s32 4, %v14111_v41  ;;  %v5617_v32 = vand.u32 8388607, %v15428_v56  ;;  %v10669_v54 = vld [vmem:[%s10959_s29 + $0x70] sm:$0xff] }
 0x37a   : > { %v5565_v34 = vsel %vm5563_vm15, %v5564_v24, %v14168_v62  ;;  %v5620_v42 = vadd.s32 1, %v9586_v18  ;;  %v5476_v8 = vshrl.u32 %v5458_v45, %v5474_v39  ;;  %v5480_v20 = vshll.u32 %v5479_v50, 23 }
 0x37b   : > { %v5566_v13 = vadd.s32 %v5565_v34, %v5561_v5  ;;  %v4872_v53 = vand.u32 3, %v4871_v49  ;;  %v5475_v52 = vshll.u32 %v14138_v21, %v5473_v55  ;;  %vm15854_vm9 = vcmask 72704  }
 0x37c   : > { %v1013_v44 = vsel %vm15854_vm9, %v996_v23, %v14050_v10  ;;  %vm5621_vm5 = vcmp.gt.s32.totalorder %v5620_v42, 0  ;;  %v15427_v6 = vxor.u32 2147483648, %v13653_v30  ;;  %v5481_v38 = vor.u32 4788187, %v5480_v20 }
 0x37d   : > { %v5567_v62 = vadd.s32 536870912, %v5566_v13  ;;  %v5622_v47 = vsel %vm5621_vm5, %v5620_v42, 0  ;;  %v15426_v43 = vxor.u32 2147483648, %v13648_v14  ;;  %v14202_v4 = vsel %vm5404_vm6, %v5488_v35, %v14111_v41 }
 0x37e   : > { %v14207_v21 = vsel %vm965_vm7, %v10669_v54, %v14090_v27  ;;  %v5624_v55 = vand.u32 31, %v5622_v47  ;;  %v14210_v10 = vsel %vm1016_vm13, %v1013_v44, %v880_v7  ;;  %v5477_v39 = vor.u32 %v5476_v8, %v5475_v52 }
 0x37f   : > { %v14212_v63 = vshrl.u32 %v5567_v62, 30  ;;  %v5618_v18 = vor.u32 8388608, %v5617_v32  ;;  %vm4874_vm1 = vcmp.eq.s32.totalorder %v4872_v53, 0  ;;  %v14214_v49 = vshrl.u32 %v5622_v47, 5 }
 0x380   : > { %v5625_v45 = vsub.s32 32, %v5624_v55  ;;  %v4876_v41 = vsel %vm4874_vm1, %v13648_v14, %v15427_v6  ;;  %vm4877_vm4 = vcmp.eq.s32.totalorder %v4872_v53, 2  ;;  %v5482_v23 = vand.u32 2147483647, %v5481_v38  ;;  %v15856_v38 = vld [vmem:[#allocation6_spill] sm:$0xff] }
 0x381   : > { %v5569_v27 = vshll.u32 %v14212_v63, 30  ;;  %v5627_v24 = vshll.u32 %v15517_v22, %v5624_v55  ;;  %v4879_v50 = vsel %vm4877_vm4, %v15426_v43, %v13653_v30  ;;  %v14224_v5 = vpop.eup %10610  ;;  %v5633_v32 = vshll.u32 %v15519_v28, %v5624_v55  ;;  %v14240_v43 = vpop.permute.xlu0 %691 }
 0x382   : > { %15855 = vst [vmem:[#allocation10_spill] sm:$0xff] %v14224_v5  ;;  %v5628_v35 = vshrl.u32 %v15518_v25, %v5625_v45  ;;  %v5631_v34 = vshrl.u32 %v15519_v28, %v5625_v45  ;;  %v5634_v42 = vshrl.u32 %v15520_v37, %v5625_v45  ;;  %v14230_v8 = vpop.eup %10612  ;;  %v5630_v7 = vshll.u32 %v15518_v25, %v5624_v55 }
 0x383   : > { %v14232_v20 = vsub.s32 %v5566_v13, %v5569_v27  ;;  %v5636_v52 = vshll.u32 %v15520_v37, %v5624_v55  ;;  %v5637_v44 = vshrl.u32 %v15521_v36, %v5625_v45  ;;  %vm15446_vm3 = vweird.f32 %v15856_v38 }
 0x384   : > { %v5484_v62 = vcvt.s32.f32 %v5477_v39  ;;  %v5562_v47 = vadd.s32 %v14167_v33, %v14174_v48  ;;  %v5635_v54 = vor.u32 %v5634_v42, %v5633_v32  ;;  %vm4873_vm2 = vcmp.lt.s32.totalorder %v4872_v53, 2 }
 0x385   : > { %v5572_v6 = vsub.s32 0, %v14232_v20  ;;  %v5629_v13 = vor.u32 %v5628_v35, %v5627_v24  ;;  %v5632_v27 = vor.u32 %v5631_v34, %v5630_v7  ;;  %v5638_v56 = vor.u32 %v5637_v44, %v5636_v52  ;;  %v944_v34 = vpop.permute.xlu0 %943 }
 0x386   : > { %v5639_v14 = vshll.u32 %v15521_v36, %v5624_v55  ;;  %v5640_v30 = vshrl.u32 %v15523_v59, %v5625_v45  ;;  %v5658_v1 = vshll.u32 %v5618_v18, 8  ;;  %v4880_v29 = vsel %vm4873_vm2, %v4876_v41, %v4879_v50  ;;  %v754_v18 = vpop.permute.xlu1 %753 }
 0x387   : > { %v5485_v5 = vmul.f32 %v5484_v62, %v5482_v23  ;;  %v9583_v39 = vmin.u32 %v5572_v6, %v14232_v20  ;;  %v5626_v33 = vshrl.u32 %v15517_v22, %v5625_v45  ;;  %vm5645_vm15 = vcmp.lt.s32.totalorder %v14214_v49, 4 }
 0x388   : > { %v5641_v48 = vor.u32 %v5640_v30, %v5639_v14  ;;  %vm5642_vm9 = vcmp.lt.s32.totalorder %v14214_v49, 1  ;;  %vm5643_vm5 = vcmp.lt.s32.totalorder %v14214_v49, 2  ;;  %v5647_v53 = vsel %vm5645_vm15, %v5635_v54, 2102212464 }
 0x389   : > { %v5574_v24 = vclz %v9583_v39  ;;  %vm5644_vm1 = vcmp.lt.s32.totalorder %v14214_v49, 3  ;;  %v5650_v55 = vsel %vm5642_vm9, %v5629_v13, %v5632_v27  ;;  %v5651_v35 = vsel %vm5645_vm15, %v5638_v56, 920167782 }
 0x38a   : > { %v5646_v41 = vsel %vm5642_vm9, %v5626_v33, %v5629_v13  ;;  %v5652_v23 = vsel %vm5644_vm1, %v5635_v54, %v5651_v35  ;;  %v5654_v50 = vsel %vm5642_vm9, %v5632_v27, %v5635_v54  ;;  %v5655_v6 = vsel %vm5645_vm15, %v5641_v48, 1326507024 }
 0x38b   : > { %v9584_v45 = vadd.s32 4294967294, %v5574_v24  ;;  %v5648_v32 = vsel %vm5644_vm1, %v5632_v27, %v5647_v53  ;;  %v5653_v14 = vsel %vm5643_vm5, %v5650_v55, %v5652_v23  ;;  %v5656_v30 = vsel %vm5644_vm1, %v5638_v56, %v5655_v6  ;;  %v756_v23 = vpop.permute.xlu1 %755 }
 0x38c   : > { %vm5508_vm4 = vcmp.lt.s32.totalorder %v14006_v16, 0  ;;  %v5657_v42 = vsel %vm5643_vm5, %v5654_v50, %v5656_v30  ;;  %v14256_v7 = vmul.u32.u64.low %v5658_v1, %v5653_v14  ;;  %v14257_v52 = vmul.u32.u64.high %v5658_v1, %v5653_v14, %v14256_v7 }
 0x38d   : > { %v4881_v44 = vsel %vm15446_vm3, nan, %v4880_v29  ;;  %v15857_v62 = vand.u32 2147483647, %v13910_v2  ;;  %vm9585_vm15 = vcmp.lt.s32.totalorder %v9584_v45, 0  ;;  %v14273_v27 = vsel %vm1033_vm12, %v14210_v10, %v944_v34 }
 0x38e   : > { %v14267_v13 = vmul.u32.u64.low %v5658_v1, %v5657_v42  ;;  %v14268_v56 = vmul.u32.u64.high %v5658_v1, %v5657_v42, %v14267_v13  ;;  %10069 = vmatprep.mubr.msk.f32.mxu0 %vm8494_vm8, %v4881_v44  ;;  %v5577_v39 = vsel %vm9585_vm15, 0, %v9584_v45  ;;  %v5649_v29 = vsel %vm5643_vm5, %v5646_v41, %v5648_v32 }
 0x38f   : > { %vm14263_vm2 = vcmp.le.f32.partialorder %v15857_v62, 0.7853982  ;;  %v15439_v33 = vand.u32 2147483647, %v14273_v27  ;;  %v5717_v48 = vand.u32 2139095040, %v14273_v27  ;;  %v5486_v53 = vxor.u32 2147483648, %v5485_v5 }
 0x390   : > { %v5578_v24 = vsub.s32 32, %v5577_v39  ;;  %v5582_v55 = vsub.s32 4294967266, %v5577_v39  ;;  %vm15860_vm9 = vcmask 48128   ;;  %v5592_v50 = vsub.s32 4, %v14212_v63  ;;  %v14292_v62 = vld [vmem:[%s10959_s29 + $0x78] sm:$0xff] }
 0x391   : > { %v997_v35 = vsel %vm15860_vm9, %v14207_v21, %v754_v18  ;;  %v5668_v10 = vadd.s32 1, %v14257_v52  ;;  %v5718_v6 = vshrl.u32 %v5717_v48, 23  ;;  %v5721_v49 = vand.u32 8388607, %v15439_v33  ;;  %15861 = vst [vmem:[#allocation39_spill] sm:$0xff] %v14292_v62  ;;  %vm15862_vm1 = vmmov %vm15860_vm9 }
 0x392   : > { %v5580_v41 = vshrl.u32 %v5562_v47, %v5578_v24  ;;  %v5583_v34 = vadd.s32 127, %v5582_v55  ;;  %v5665_v45 = vmul.u32 %v5658_v1, %v5649_v29  ;;  %vm5667_vm5 = vc.u32 %v14268_v56, %v14256_v7 }
 0x393   : > { %v5579_v32 = vshll.u32 %v14232_v20, %v5577_v39  ;;  %v5669_v14 = vsel %vm5667_vm5, %v5668_v10, %v14257_v52  ;;  %v9590_v21 = vadd.s32 4294967169, %v5718_v6  ;;  %v4975_v18 = vadd.s32 3, %v13607_v60 }
 0x394   : > { %v5487_v30 = vsel %vm5404_vm6, %v5486_v53, %v5485_v5  ;;  %v5584_v42 = vshll.u32 %v5583_v34, 23  ;;  %v5670_v44 = vadd.s32 %v5669_v14, %v5665_v45  ;;  %v981_v1 = vsel %vm965_vm7, %v14292_v62, %v14240_v43  ;;  %v820_v53 = vpop.permute.xlu1 %819  ;;  %v818_v45 = vpop.permute.xlu0 %817 }
 0x395   : > { %v5581_v47 = vor.u32 %v5580_v41, %v5579_v32  ;;  %v998_v13 = vsel %vm15862_vm1, %v981_v1, %v756_v23  ;;  %v5722_v20 = vor.u32 8388608, %v5721_v49  ;;  %v5724_v39 = vadd.s32 1, %v9590_v21 }
 0x396   : > { %v5585_v52 = vor.u32 4788187, %v5584_v42  ;;  %v14301_v29 = vsel %vm5508_vm4, %v5592_v50, %v14212_v63  ;;  %v5671_v5 = vadd.s32 536870912, %v5670_v44  ;;  %v4976_v48 = vand.u32 3, %v4975_v18 }
 0x397   : > { %v14306_v24 = vsel %vm14263_vm2, %v13910_v2, %v5487_v30  ;;  %vm5725_vm6 = vcmp.gt.s32.totalorder %v5724_v39, 0  ;;  %v15438_v43 = vxor.u32 2147483648, %v13752_v9  ;;  %v15437_v55 = vxor.u32 2147483648, %v13679_v57 }
 0x398   : > { %v5586_v23 = vand.u32 2147483647, %v5585_v52  ;;  %v14311_v10 = vadd.s32 %v14256_v7, %v14268_v56  ;;  %v14313_v6 = vshrl.u32 %v5671_v5, 30  ;;  %v5726_v63 = vsel %vm5725_vm6, %v5724_v39, 0  ;;  %v884_v33 = vpop.permute.xlu1 %883  ;;  %v882_v38 = vpop.permute.xlu0 %881 }
 0x399   : > { %v5588_v50 = vcvt.s32.f32 %v5581_v47  ;;  %v5728_v49 = vand.u32 31, %v5726_v63  ;;  %v14315_v41 = vshll.u32 %v5722_v20, 8  ;;  %vm15863_vm15 = vcmask 72704  }
 0x39a   : > { %v14318_v34 = vsel %vm15863_vm15, %v998_v13, %v820_v53  ;;  %v5673_v32 = vshll.u32 %v14313_v6, 30  ;;  %vm4977_vm9 = vcmp.lt.s32.totalorder %v4976_v48, 2  ;;  %vm4978_vm5 = vcmp.eq.s32.totalorder %v4976_v48, 0 }
 0x39b   : > { %vm4981_vm1 = vcmp.eq.s32.totalorder %v4976_v48, 2  ;;  %v5727_v14 = vshrl.u32 %v5726_v63, 5  ;;  %v5729_v21 = vsub.s32 32, %v5728_v49  ;;  %v4980_v7 = vsel %vm4978_vm5, %v13679_v57, %v15438_v43 }
 0x39c   : > { %v4983_v56 = vsel %vm4981_vm1, %v15437_v55, %v13752_v9  ;;  %v14327_v18 = vmul.f32 %v5588_v50, %v5586_v23  ;;  %v14329_v30 = vsub.s32 %v5670_v44, %v5673_v32  ;;  %v5731_v42 = vshll.u32 %v15517_v22, %v5728_v49 }
 0x39d   : > { %vm4974_vm6 = vweird.f32 %v13073_v31  ;;  %v1014_v1 = vsel %vm15863_vm15, %v997_v35, %v818_v45  ;;  %v5732_v47 = vshrl.u32 %v15518_v25, %v5729_v21  ;;  %v5734_v13 = vshll.u32 %v15518_v25, %v5728_v49 }
 0x39e   : > { %v5735_v20 = vshrl.u32 %v15519_v28, %v5729_v21  ;;  %v5737_v39 = vshll.u32 %v15519_v28, %v5728_v49  ;;  %v5676_v52 = vsub.s32 0, %v14329_v30  ;;  %v5738_v5 = vshrl.u32 %v15520_v37, %v5729_v21 }
 0x39f   : > { %v5740_v44 = vshll.u32 %v15520_v37, %v5728_v49  ;;  %v5741_v53 = vshrl.u32 %v15521_v36, %v5729_v21  ;;  %v5696_v23 = vsub.s32 4, %v14313_v6  ;;  %v5733_v63 = vor.u32 %v5732_v47, %v5731_v42 }
 0x3a0   : > { %v5736_v35 = vor.u32 %v5735_v20, %v5734_v13  ;;  %v4984_v50 = vsel %vm4977_vm9, %v4980_v7, %v4983_v56  ;;  %v9587_v45 = vmin.u32 %v5676_v52, %v14329_v30  ;;  %v5730_v32 = vshrl.u32 %v15517_v22, %v5729_v21 }
 0x3a1   : > { %v5739_v55 = vor.u32 %v5738_v5, %v5737_v39  ;;  %v5742_v43 = vor.u32 %v5741_v53, %v5740_v44  ;;  %v5743_v57 = vshll.u32 %v15521_v36, %v5728_v49  ;;  %v5744_v9 = vshrl.u32 %v15523_v59, %v5729_v21 }
 0x3a2   : > { %vm5746_vm5 = vcmp.lt.s32.totalorder %v5727_v14, 1  ;;  %vm5747_vm1 = vcmp.lt.s32.totalorder %v5727_v14, 2  ;;  %v5678_v60 = vclz %v9587_v45  ;;  %vm5748_vm15 = vcmp.lt.s32.totalorder %v5727_v14, 3 }
 0x3a3   : > { %vm5749_vm3 = vcmp.lt.s32.totalorder %v5727_v14, 4  ;;  %v5750_v42 = vsel %vm5746_vm5, %v5730_v32, %v5733_v63  ;;  %v15864_v48 = vand.u32 2147483647, %v14006_v16  ;;  %v5745_v56 = vor.u32 %v5744_v9, %v5743_v57 }
 0x3a4   : > { %v5751_v47 = vsel %vm5749_vm3, %v5739_v55, 2102212464  ;;  %v5754_v13 = vsel %vm5746_vm5, %v5733_v63, %v5736_v35  ;;  %v5755_v20 = vsel %vm5749_vm3, %v5742_v43, 920167782  ;;  %v9588_v39 = vadd.s32 4294967294, %v5678_v60  ;;  %v946_v63 = vpop.permute.xlu0 %945 }
 0x3a5   : > { %vm14350_vm9 = vcmp.le.f32.partialorder %v15864_v48, 0.7853982  ;;  %v5752_v49 = vsel %vm5748_vm15, %v5736_v35, %v5751_v47  ;;  %v5756_v21 = vsel %vm5748_vm15, %v5739_v55, %v5755_v20  ;;  %v5758_v52 = vsel %vm5746_vm5, %v5736_v35, %v5739_v55  ;;  %v948_v55 = vpop.permute.xlu1 %947 }
 0x3a6   : > { %v5590_v5 = vxor.u32 2147483648, %v14327_v18  ;;  %vm5612_vm0 = vcmp.lt.s32.totalorder %v14136_v26, 0  ;;  %v5757_v44 = vsel %vm5747_vm1, %v5754_v13, %v5756_v21  ;;  %v5759_v53 = vsel %vm5749_vm3, %v5745_v56, 1326507024 }
 0x3a7   : > { %v4985_v45 = vsel %vm4974_vm6, nan, %v4984_v50  ;;  %vm9589_vm11 = vcmp.lt.s32.totalorder %v9588_v39, 0  ;;  %v5760_v57 = vsel %vm5748_vm15, %v5742_v43, %v5759_v53  ;;  %v5753_v32 = vsel %vm5747_vm1, %v5750_v42, %v5752_v49 }
 0x3a8   : > { %v14363_v60 = vmul.u32.u64.low %v14315_v41, %v5757_v44  ;;  %v14364_v9 = vmul.u32.u64.high %v14315_v41, %v5757_v44, %v14363_v60  ;;  %10070 = vmatmul.mubr.msk.f32.gmra.mrb[4].mxu0 %vm8494_vm8, %v4985_v45  ;;  %v5681_v35 = vsel %vm9589_vm11, 0, %v9588_v39  ;;  %v5761_v48 = vsel %vm5747_vm1, %v5758_v52, %v5760_v57 }
 0x3a9   : > { %v1032_v56 = vsel %vm1016_vm13, %v14318_v34, %v884_v33  ;;  %v5682_v50 = vsub.s32 32, %v5681_v35  ;;  %v5683_v47 = vshll.u32 %v14329_v30, %v5681_v35  ;;  %v5686_v43 = vsub.s32 4294967266, %v5681_v35 }
 0x3aa   : > { %v1031_v13 = vsel %vm1016_vm13, %v1014_v1, %v882_v38  ;;  %v14374_v20 = vmul.u32.u64.low %v14315_v41, %v5761_v48  ;;  %v14375_v21 = vmul.u32.u64.high %v14315_v41, %v5761_v48, %v14374_v20  ;;  %v14378_v44 = vsel %vm1033_vm12, %v1032_v56, %v948_v55 }
 0x3ab   : > { %v14381_v42 = vsel %vm1033_vm12, %v1031_v13, %v946_v63  ;;  %v5684_v14 = vshrl.u32 %v14311_v10, %v5682_v50  ;;  %v5687_v39 = vadd.s32 127, %v5686_v43  ;;  %v5772_v33 = vadd.s32 1, %v14364_v9 }
 0x3ac   : > { %v15451_v34 = vand.u32 2147483647, %v14378_v44  ;;  %v14389_v38 = vsel %vm14263_vm2, 0, %v14202_v4  ;;  %v15867_v30 = vand.u32 2147483647, %v14136_v26  ;;  %v5925_v49 = vand.u32 2139095040, %v14378_v44 }
 0x3ad   : > { %v15450_v10 = vand.u32 2147483647, %v14381_v42  ;;  %10614 = vcosq.f32 %v14306_v24  ;;  %v14403_v52 = vsel %vm14350_vm9, 0, %v14301_v29  ;;  %v5685_v54 = vor.u32 %v5684_v14, %v5683_v47 }
 0x3ae   : > { %vm14393_vm13 = vcmp.le.f32.partialorder %v15867_v30, 0.7853982  ;;  %v5688_v4 = vshll.u32 %v5687_v39, 23  ;;  %v5591_v53 = vsel %vm5508_vm4, %v5590_v5, %v14327_v18  ;;  %v5769_v45 = vmul.u32 %v14315_v41, %v5753_v32 }
 0x3af   : > { %vm5771_vm12 = vc.u32 %v14375_v21, %v14363_v60  ;;  %v5926_v57 = vshrl.u32 %v5925_v49, 23  ;;  %v5697_v63 = vsel %vm5612_vm0, %v5696_v23, %v14313_v6  ;;  %v5929_v35 = vand.u32 8388607, %v15451_v34 }
 0x3b0   : > { %v5689_v55 = vor.u32 4788187, %v5688_v4  ;;  %v5773_v29 = vsel %vm5771_vm12, %v5772_v33, %v14364_v9  ;;  %v5821_v18 = vand.u32 2139095040, %v14381_v42  ;;  %v5825_v41 = vand.u32 8388607, %v15450_v10 }
 0x3b1   : > { %v5774_v48 = vadd.s32 %v5773_v29, %v5769_v45  ;;  %v9598_v56 = vadd.s32 4294967169, %v5926_v57  ;;  %v5594_v5 = vsel %vm14350_vm9, %v14006_v16, %v5591_v53  ;;  %v5692_v50 = vcvt.s32.f32 %v5685_v54  ;;  %v7675_v29 = vld [vmem:[%s15203_s3] sm:$0x7] }
 0x3b2   : > { %v5690_v32 = vand.u32 2147483647, %v5689_v55  ;;  %v5079_v6 = vadd.s32 3, %v13739_v3  ;;  %10616 = vsinq.f32 %v14306_v24  ;;  %v5822_v47 = vshrl.u32 %v5821_v18, 23 }
 0x3b3   : > { %v5775_v23 = vadd.s32 536870912, %v5774_v48  ;;  %v5932_v9 = vadd.s32 1, %v9598_v56  ;;  %v14428_v13 = vsel %vm14393_vm13, 0, %v5697_v63  ;;  %v5930_v20 = vor.u32 8388608, %v5929_v35 }
 0x3b4   : > { %v5693_v43 = vmul.f32 %v5692_v50, %v5690_v32  ;;  %15870 = vst [vmem:[#allocation37_spill] sm:$0xff] %v14428_v13  ;;  %v5826_v14 = vor.u32 8388608, %v5825_v41  ;;  %10618 = vcosq.f32 %v5594_v5  ;;  %v14432_v7 = vand.u32 3, %v5079_v6 }
 0x3b5   : > { %v14430_v39 = vshrl.u32 %v5775_v23, 30  ;;  %vm5933_vm11 = vcmp.gt.s32.totalorder %v5932_v9, 0  ;;  %v9594_v49 = vadd.s32 4294967169, %v5822_v47  ;;  %v15449_v24 = vxor.u32 2147483648, %v14000_v0 }
 0x3b6   : > { %v5694_v33 = vxor.u32 2147483648, %v5693_v43  ;;  %v5934_v30 = vsel %vm5933_vm11, %v5932_v9, 0  ;;  %10620 = vsinq.f32 %v5594_v5  ;;  %v14436_v54 = vadd.s32 %v14363_v60, %v14375_v21 }
 0x3b7   : > { %v5777_v4 = vshll.u32 %v14430_v39, 30  ;;  %v5936_v53 = vand.u32 31, %v5934_v30  ;;  %v14439_v45 = vpop.eup %10614  ;;  %v14443_v55 = vshll.u32 %v5930_v20, 8  ;;  %v14445_v63 = vshll.u32 %v5826_v14, 8 }
 0x3b8   : > { %v5695_v57 = vsel %vm5612_vm0, %v5694_v33, %v5693_v43  ;;  %v5800_v56 = vsub.s32 4, %v14430_v39  ;;  %vm5082_vm3 = vcmp.eq.s32.totalorder %v14432_v7, 0  ;;  %v5935_v18 = vshrl.u32 %v5934_v30, 5 }
 0x3b9   : > { %v14448_v35 = vsub.s32 %v5774_v48, %v5777_v4  ;;  %v5937_v60 = vsub.s32 32, %v5936_v53  ;;  %v5698_v21 = vsel %vm14393_vm13, %v14136_v26, %v5695_v57  ;;  %v5828_v41 = vadd.s32 1, %v9594_v49 }
 0x3ba   : > { %v14458_v5 = vsel %vm5082_vm3, %v13964_v58, %v15449_v24  ;;  %v5939_v48 = vshll.u32 %v15517_v22, %v5936_v53  ;;  %v5942_v6 = vshll.u32 %v15518_v25, %v5936_v53  ;;  %vm5716_vm0 = vcmp.lt.s32.totalorder %v14273_v27, 0 }
 0x3bb   : > { %v5780_v32 = vsub.s32 0, %v14448_v35  ;;  %v5940_v50 = vshrl.u32 %v15518_v25, %v5937_v60  ;;  %v5938_v1 = vshrl.u32 %v15517_v22, %v5937_v60  ;;  %v5943_v23 = vshrl.u32 %v15519_v28, %v5937_v60 }
 0x3bc   : > { %v5945_v9 = vshll.u32 %v15519_v28, %v5936_v53  ;;  %v5946_v47 = vshrl.u32 %v15520_v37, %v5937_v60  ;;  %v14469_v43 = vpop.eup %10616  ;;  %v5948_v33 = vshll.u32 %v15520_v37, %v5936_v53  ;;  %v5949_v30 = vshrl.u32 %v15521_v36, %v5937_v60 }
 0x3bd   : > { %v9591_v20 = vmin.u32 %v5780_v32, %v14448_v35  ;;  %v5941_v14 = vor.u32 %v5940_v50, %v5939_v48  ;;  %v5944_v49 = vor.u32 %v5943_v23, %v5942_v6  ;;  %v5951_v57 = vshll.u32 %v15521_v36, %v5936_v53 }
 0x3be   : > { %v5947_v4 = vor.u32 %v5946_v47, %v5945_v9  ;;  %v5952_v24 = vshrl.u32 %v15523_v59, %v5937_v60  ;;  %v14476_v10 = vpop.eup %10618  ;;  %v15871_v34 = vand.u32 2147483647, %v14273_v27  ;;  %v5950_v48 = vor.u32 %v5949_v30, %v5948_v33 }
 0x3bf   : > { %v5782_v32 = vclz %v9591_v20  ;;  %vm5954_vm2 = vcmp.lt.s32.totalorder %v5935_v18, 1  ;;  %vm5955_vm5 = vcmp.lt.s32.totalorder %v5935_v18, 2  ;;  %vm5956_vm1 = vcmp.lt.s32.totalorder %v5935_v18, 3 }
 0x3c0   : > { %vm14480_vm4 = vcmp.le.f32.partialorder %v15871_v34, 0.7853982  ;;  %v5953_v50 = vor.u32 %v5952_v24, %v5951_v57  ;;  %vm5957_vm15 = vcmp.lt.s32.totalorder %v5935_v18, 4  ;;  %v5962_v6 = vsel %vm5954_vm2, %v5941_v14, %v5944_v49  ;;  %v14485_v53 = vpop.eup %10620 }
 0x3c1   : > { %vm5085_vm9 = vcmp.eq.s32.totalorder %v14432_v7, 2  ;;  %v9592_v60 = vadd.s32 4294967294, %v5782_v32  ;;  %v5959_v23 = vsel %vm5957_vm15, %v5947_v4, 2102212464  ;;  %v5963_v9 = vsel %vm5957_vm15, %v5950_v48, 920167782 }
 0x3c2   : > { %v5966_v47 = vsel %vm5954_vm2, %v5944_v49, %v5947_v4  ;;  %v5958_v34 = vsel %vm5954_vm2, %v5938_v1, %v5941_v14  ;;  %v5960_v31 = vsel %vm5956_vm1, %v5944_v49, %v5959_v23  ;;  %v5964_v3 = vsel %vm5956_vm1, %v5947_v4, %v5963_v9 }
 0x3c3   : > { %v5967_v62 = vsel %vm5957_vm15, %v5953_v50, 1326507024  ;;  %vm9593_vm13 = vcmp.lt.s32.totalorder %v9592_v60, 0  ;;  %v5965_v20 = vsel %vm5955_vm5, %v5962_v6, %v5964_v3  ;;  %vm5829_vm12 = vcmp.gt.s32.totalorder %v5828_v41, 0 }
 0x3c4   : > { %v5968_v33 = vsel %vm5956_vm1, %v5950_v48, %v5967_v62  ;;  %v5785_v24 = vsel %vm9593_vm13, 0, %v9592_v60  ;;  %v14490_v57 = vmul.u32.u64.low %v14443_v55, %v5965_v20  ;;  %v14491_v26 = vmul.u32.u64.high %v14443_v55, %v5965_v20, %v14490_v57 }
 0x3c5   : > { %v5969_v30 = vsel %vm5955_vm5, %v5966_v47, %v5968_v33  ;;  %v5786_v32 = vsub.s32 32, %v5785_v24  ;;  %v5790_v13 = vsub.s32 4294967266, %v5785_v24  ;;  %v5801_v1 = vsel %vm5716_vm0, %v5800_v56, %v14430_v39 }
 0x3c6   : > { %v5961_v14 = vsel %vm5955_vm5, %v5958_v34, %v5960_v31  ;;  %10622 = vcosq.f32 %v5698_v21  ;;  %v14499_v3 = vmul.u32.u64.low %v14443_v55, %v5969_v30  ;;  %v14500_v62 = vmul.u32.u64.high %v14443_v55, %v5969_v30, %v14499_v3 }
 0x3c7   : > { %v5830_v49 = vsel %vm5829_vm12, %v5828_v41, 0  ;;  %v5787_v4 = vshll.u32 %v14448_v35, %v5785_v24  ;;  %v5788_v48 = vshrl.u32 %v14436_v54, %v5786_v32  ;;  %v5791_v50 = vadd.s32 127, %v5790_v13 }
 0x3c8   : > { %v5832_v6 = vand.u32 31, %v5830_v49  ;;  %10624 = vsinq.f32 %v5698_v21  ;;  %v14506_v60 = vsel %vm14480_vm4, 0, %v5801_v1  ;;  %v5977_v39 = vmul.u32 %v14443_v55, %v5961_v14 }
 0x3c9   : > { %v5980_v31 = vadd.s32 1, %v14491_v26  ;;  %v5789_v56 = vor.u32 %v5788_v48, %v5787_v4  ;;  %v5792_v18 = vshll.u32 %v5791_v50, 23  ;;  %v15874_v41 = vxor.u32 2147483648, %v13964_v58 }
 0x3ca   : > { %v5833_v23 = vsub.s32 32, %v5832_v6  ;;  %vm5979_vm11 = vc.u32 %v14500_v62, %v14490_v57  ;;  %v5831_v13 = vshrl.u32 %v5830_v49, 5  ;;  %v5835_v35 = vshll.u32 %v15517_v22, %v5832_v6 }
 0x3cb   : > { %v5087_v54 = vsel %vm5085_vm9, %v15874_v41, %v14000_v0  ;;  %v5838_v21 = vshll.u32 %v15518_v25, %v5832_v6  ;;  %vm5081_vm3 = vcmp.lt.s32.totalorder %v14432_v7, 2  ;;  %v5793_v55 = vor.u32 4788187, %v5792_v18 }
 0x3cc   : > { %v5796_v9 = vcvt.s32.f32 %v5789_v56  ;;  %v5981_v47 = vsel %vm5979_vm11, %v5980_v31, %v14491_v26  ;;  %v5841_v34 = vshll.u32 %v15519_v28, %v5832_v6  ;;  %v5836_v33 = vshrl.u32 %v15518_v25, %v5833_v23 }
 0x3cd   : > { %v5982_v20 = vadd.s32 %v5981_v47, %v5977_v39  ;;  %v5839_v24 = vshrl.u32 %v15519_v28, %v5833_v23  ;;  %v5842_v30 = vshrl.u32 %v15520_v37, %v5833_v23  ;;  %v5794_v32 = vand.u32 2147483647, %v5793_v55 }
 0x3ce   : > { %vm5924_vm2 = vcmp.lt.s32.totalorder %v14378_v44, 0  ;;  %v5834_v1 = vshrl.u32 %v15517_v22, %v5833_v23  ;;  %v5844_v14 = vshll.u32 %v15520_v37, %v5832_v6  ;;  %v5845_v3 = vshrl.u32 %v15521_v36, %v5833_v23 }
 0x3cf   : > { %v5983_v49 = vadd.s32 536870912, %v5982_v20  ;;  %v5837_v26 = vor.u32 %v5836_v33, %v5835_v35  ;;  %v5840_v4 = vor.u32 %v5839_v24, %v5838_v21  ;;  %v5843_v48 = vor.u32 %v5842_v30, %v5841_v34 }
 0x3d0   : > { %vm15477_vm5 = vweird.f32 %v13284_v17  ;;  %v5797_v25 = vmul.f32 %v5796_v9, %v5794_v32  ;;  %v5846_v50 = vor.u32 %v5845_v3, %v5844_v14  ;;  %v5847_v28 = vshll.u32 %v15521_v36, %v5832_v6  ;;  %v14532_v31 = vpop.eup %10622 }
 0x3d1   : > { %v5848_v39 = vshrl.u32 %v15523_v59, %v5833_v23  ;;  %v5984_v56 = vshrl.u32 %v5983_v49, 30  ;;  %vm5850_vm1 = vcmp.lt.s32.totalorder %v5831_v13, 1  ;;  %vm5852_vm15 = vcmp.lt.s32.totalorder %v5831_v13, 3 }
 0x3d2   : > { %vm5853_vm9 = vcmp.lt.s32.totalorder %v5831_v13, 4  ;;  %v5798_v22 = vxor.u32 2147483648, %v5797_v25  ;;  %v5854_v18 = vsel %vm5850_vm1, %v5834_v1, %v5837_v26  ;;  %v14536_v35 = vpop.eup %10624  ;;  %v5858_v59 = vsel %vm5850_vm1, %v5837_v26, %v5840_v4 }
 0x3d3   : > { %v5849_v37 = vor.u32 %v5848_v39, %v5847_v28  ;;  %v5855_v41 = vsel %vm5853_vm9, %v5843_v48, 2102212464  ;;  %v5985_v21 = vshll.u32 %v5984_v56, 30  ;;  %v6008_v55 = vsub.s32 4, %v5984_v56 }
 0x3d4   : > { %v5856_v36 = vsel %vm5852_vm15, %v5840_v4, %v5855_v41  ;;  %v5799_v6 = vsel %vm5716_vm0, %v5798_v22, %v5797_v25  ;;  %v5859_v23 = vsel %vm5853_vm9, %v5846_v50, 920167782  ;;  %v5088_v9 = vsel %vm5081_vm3, %v14458_v5, %v5087_v54 }
 0x3d5   : > { %v5183_v47 = vadd.s32 3, %v13945_v46  ;;  %v14547_v34 = vsub.s32 %v5982_v20, %v5985_v21  ;;  %vm5851_vm13 = vcmp.lt.s32.totalorder %v5831_v13, 2  ;;  %v5860_v33 = vsel %vm5852_vm15, %v5843_v48, %v5859_v23 }
 0x3d6   : > { %v5862_v24 = vsel %vm5850_vm1, %v5840_v4, %v5843_v48  ;;  %vm5182_vm12 = vweird.f32 %v13410_v11  ;;  %v15875_v30 = vand.u32 2147483647, %v14378_v44  ;;  %v14560_v7 = vadd.s32 %v14490_v57, %v14500_v62 }
 0x3d7   : > { %v5857_v5 = vsel %vm5851_vm13, %v5854_v18, %v5856_v36  ;;  %v5861_v54 = vsel %vm5851_vm13, %v5858_v59, %v5860_v33  ;;  %v5863_v20 = vsel %vm5853_vm9, %v5849_v37, 1326507024  ;;  %v14566_v1 = vsel %vm14480_vm4, %v14273_v27, %v5799_v6  ;;  %v10671_v59 = vld [vmem:[%s10959_s29 + $0x8] sm:$0xff]  ;;  %v10672_v33 = vld [vmem:[%s10959_s29 + $0x10] sm:$0xff] }
 0x3d8   : > { %vm14554_vm0 = vcmp.le.f32.partialorder %v15875_v30, 0.7853982  ;;  %v5988_v14 = vsub.s32 0, %v14547_v34  ;;  %v6009_v3 = vsel %vm5924_vm2, %v6008_v55, %v5984_v56  ;;  %v5864_v49 = vsel %vm5852_vm15, %v5846_v50, %v5863_v20 }
 0x3d9   : > { %v5865_v26 = vsel %vm5851_vm13, %v5862_v24, %v5864_v49  ;;  %v14573_v57 = vmul.u32.u64.low %v14445_v63, %v5861_v54  ;;  %v14574_v62 = vmul.u32.u64.high %v14445_v63, %v5861_v54, %v14573_v57  ;;  %v5089_v4 = vsel %vm15477_vm5, nan, %v5088_v9  ;;  %v10673_v49 = vld [vmem:[%s10959_s29 + $0x18] sm:$0xff] }
 0x3da   : > { %v9599_v48 = vmin.u32 %v5988_v14, %v14547_v34  ;;  %v14584_v25 = vmul.u32.u64.low %v14445_v63, %v5865_v26  ;;  %v14585_v28 = vmul.u32.u64.high %v14445_v63, %v5865_v26, %v14584_v25  ;;  %10072 = vmatprep.mubr.msk.f32.mxu0 %vm8494_vm8, %v5089_v4  ;;  %v5184_v13 = vand.u32 3, %v5183_v47  ;;  %v10674_v4 = vld [vmem:[%s10959_s29 + $0x20] sm:$0xff] }
 0x3db   : > { %10626 = vcosq.f32 %v14566_v1  ;;  %v5187_v50 = vxor.u32 2147483648, %v14123_v51  ;;  %v5190_v39 = vxor.u32 2147483648, %v14033_v19  ;;  %vm7724_vm4 = vcmask 1042432  }
 0x3dc   : > { %v5990_v56 = vclz %v9599_v48  ;;  %vm5185_vm11 = vcmp.lt.s32.totalorder %v5184_v13, 2  ;;  %vm5186_vm3 = vcmp.eq.s32.totalorder %v5184_v13, 0  ;;  %vm5189_vm1 = vcmp.eq.s32.totalorder %v5184_v13, 2  ;;  %9953 = vmatprep.subr.msk.mxu1 %vm7724_vm4, %v7675_v29 }
 0x3dd   : > { %v5876_v22 = vadd.s32 1, %v14574_v62  ;;  %v5188_v37 = vsel %vm5186_vm3, %v14033_v19, %v5187_v50  ;;  %v5191_v18 = vsel %vm5189_vm1, %v5190_v39, %v14123_v51  ;;  %9954 = vmatpush3.msk.msra.mxu1 %vm7724_vm4, %v7675_v29  ;;  %v5287_v41 = vadd.s32 3, %v14119_v61  ;;  %v15878_v29 = vld [vmem:[#allocation26_spill] sm:$0xff] }
 0x3de   : > { %v9600_v21 = vadd.s32 4294967294, %v5990_v56  ;;  %v5873_v55 = vmul.u32 %v14445_v63, %v5857_v5  ;;  %vm5875_vm15 = vc.u32 %v14585_v28, %v14573_v57  ;;  %v5192_v36 = vsel %vm5185_vm11, %v5188_v37, %v5191_v18  ;;  %9956 = vmatmul.mubr.msk.f32.vlgmr.msra.gmra.mrb[0].mxu1 %vm965_vm7, %v10671_v59 }
 0x3df   : > { %v5877_v6 = vsel %vm5875_vm15, %v5876_v22, %v14574_v62  ;;  %v5193_v23 = vsel %vm5182_vm12, nan, %v5192_v36  ;;  %v5288_v9 = vand.u32 3, %v5287_v41  ;;  %v15475_v47 = vxor.u32 2147483648, %v14158_v15  ;;  %9958 = vmatprep.mubr.msk.f32.mxu1 %vm965_vm7, %v10672_v33 }
 0x3e0   : > { %vm9601_vm9 = vcmp.lt.s32.totalorder %v9600_v21, 0  ;;  %v14612_v63 = vsel %vm14554_vm0, 0, %v6009_v3  ;;  %v5878_v24 = vadd.s32 %v5877_v6, %v5873_v55  ;;  %10073 = vmatmul.mubr.msk.f32.gmra.mrb[6].mxu0 %vm8494_vm8, %v5193_v23  ;;  %v15474_v30 = vxor.u32 2147483648, %v14147_v40  ;;  %v10675_v6 = vld [vmem:[%s10959_s29 + $0x28] sm:$0xff]  ;;  %v15880_v23 = vld [vmem:[#allocation16_spill] sm:$0xff] }
 0x3e1   : > { %v5993_v5 = vsel %vm9601_vm9, 0, %v9600_v21  ;;  %vm5286_vm13 = vweird.f32 %v13556_v12  ;;  %vm5289_vm4 = vcmp.lt.s32.totalorder %v5288_v9, 2  ;;  %vm5290_vm11 = vcmp.eq.s32.totalorder %v5288_v9, 0  ;;  %v15879_v21 = vld [vmem:[#allocation10_spill] sm:$0xff] }
 0x3e2   : > { %v5994_v54 = vsub.s32 32, %v5993_v5  ;;  %v5998_v20 = vsub.s32 4294967266, %v5993_v5  ;;  %v5879_v14 = vadd.s32 536870912, %v5878_v24  ;;  %vm5293_vm3 = vcmp.eq.s32.totalorder %v5288_v9, 2  ;;  %9959 = vmatmul.mubr.msk.f32.gmra.mrb[2].mxu1 %vm965_vm7, %v10673_v49  ;;  %v10676_v9 = vld [vmem:[%s10959_s29 + $0x30] sm:$0xff] }
 0x3e3   : > { %v5995_v3 = vshll.u32 %v14547_v34, %v5993_v5  ;;  %v5292_v26 = vsel %vm5290_vm11, %v14147_v40, %v15475_v47  ;;  %v5295_v62 = vsel %vm5293_vm3, %v15474_v30, %v14158_v15  ;;  %9961 = vmatprep.mubr.msk.f32.mxu1 %vm965_vm7, %v10674_v4  ;;  %v5391_v48 = vadd.s32 3, %v15878_v29  ;;  %v10677_v4 = vld [vmem:[%s10959_s29 + $0x38] sm:$0xff] }
 0x3e4   : > { %v5996_v25 = vshrl.u32 %v14560_v7, %v5994_v54  ;;  %v5999_v13 = vadd.s32 127, %v5998_v20  ;;  %v14630_v56 = vshrl.u32 %v5879_v14, 30  ;;  %v5296_v34 = vsel %vm5289_vm4, %v5292_v26, %v5295_v62 }
 0x3e5   : > { %v14633_v22 = vpop.eup %10626  ;;  %v5297_v37 = vsel %vm5286_vm13, nan, %v5296_v34  ;;  %v5392_v18 = vand.u32 3, %v5391_v48  ;;  %v15473_v41 = vxor.u32 2147483648, %v14230_v8  ;;  %v15472_v55 = vxor.u32 2147483648, %v15879_v21 }
 0x3e6   : > { %10628 = vsinq.f32 %v14566_v1  ;;  %v5997_v36 = vor.u32 %v5996_v25, %v5995_v3  ;;  %v6000_v7 = vshll.u32 %v5999_v13, 23  ;;  %v5881_v59 = vshll.u32 %v14630_v56, 30  ;;  %10075 = vmatprep.mubr.msk.f32.mxu0 %vm8494_vm8, %v5297_v37  ;;  %9962 = vmatmul.mubr.msk.f32.gmra.mrb[4].mxu1 %vm965_vm7, %v10675_v6  ;;  %v10678_v13 = vld [vmem:[%s10959_s29 + $0x40] sm:$0xff]  ;;  %v8709_v6 = vld [vmem:[%s15207_s7 + $0x8] sm:$0xff] }
 0x3e7   : > { %vm15458_vm1 = vweird.f32 %v15880_v23  ;;  %vm5393_vm15 = vcmp.lt.s32.totalorder %v5392_v18, 2  ;;  %9964 = vmatprep.mubr.msk.f32.mxu1 %vm965_vm7, %v10676_v9  ;;  %vm15461_vm9 = vweird.f32 %v13910_v2  ;;  %v5495_v1 = vadd.s32 3, %v14389_v38 }
 0x3e8   : > { %v6001_v33 = vor.u32 4788187, %v6000_v7  ;;  %v14649_v5 = vsub.s32 %v5878_v24, %v5881_v59  ;;  %vm5394_vm4 = vcmp.eq.s32.totalorder %v5392_v18, 0  ;;  %vm5397_vm11 = vcmp.eq.s32.totalorder %v5392_v18, 2  ;;  %v7674_v7 = vld [vmem:[%s15202_s2] sm:$0xf] }
 0x3e9   : > { %v6004_v54 = vcvt.s32.f32 %v5997_v36  ;;  %v5396_v20 = vsel %vm5394_vm4, %v15879_v21, %v15473_v41  ;;  %v5399_v14 = vsel %vm5397_vm11, %v15472_v55, %v14230_v8  ;;  %v5496_v49 = vand.u32 3, %v5495_v1  ;;  %v8708_v59 = vld [vmem:[%s15207_s7] sm:$0xff] }
 0x3ea   : > { %v6002_v3 = vand.u32 2147483647, %v6001_v33  ;;  %v5884_v26 = vsub.s32 0, %v14649_v5  ;;  %v5400_v62 = vsel %vm5393_vm15, %v5396_v20, %v5399_v14  ;;  %9965 = vmatmul.mubr.msk.f32.gmra.mrb[6].mxu1 %vm965_vm7, %v10677_v4  ;;  %v15460_v24 = vxor.u32 2147483648, %v14469_v43  ;;  %v10679_v14 = vld [vmem:[%s10959_s29 + $0x48] sm:$0xff] }
 0x3eb   : > { %v5904_v48 = vsub.s32 4, %v14630_v56  ;;  %v5401_v25 = vsel %vm15458_vm1, nan, %v5400_v62  ;;  %9967 = vmatprep.mubr.msk.f32.mxu1 %vm965_vm7, %v10678_v13  ;;  %vm5497_vm3 = vcmp.lt.s32.totalorder %v5496_v49, 2  ;;  %vm5498_vm4 = vcmp.eq.s32.totalorder %v5496_v49, 0 }
 0x3ec   : > { %v6005_v34 = vmul.f32 %v6004_v54, %v6002_v3  ;;  %vm5820_vm11 = vcmp.lt.s32.totalorder %v14381_v42, 0  ;;  %v9595_v37 = vmin.u32 %v5884_v26, %v14649_v5  ;;  %10076 = vmatmul.mubr.msk.f32.gmra.mrb[8].mxu0 %vm8494_vm8, %v5401_v25  ;;  %v5500_v18 = vsel %vm5498_vm4, %v14439_v45, %v15460_v24  ;;  %v10680_v26 = vld [vmem:[%s10959_s29 + $0x50] sm:$0xff]  ;;  %v15881_v24 = vld [vmem:[#allocation37_spill] sm:$0xff] }
 0x3ed   : > { %v15459_v36 = vxor.u32 2147483648, %v14439_v45  ;;  %vm5501_vm15 = vcmp.eq.s32.totalorder %v5496_v49, 2  ;;  %v5599_v9 = vadd.s32 3, %v14403_v52  ;;  %v15471_v1 = vxor.u32 2147483648, %v14485_v53  ;;  %v8710_v49 = vld [vmem:[%s15207_s7 + $0x10] sm:$0x3] }
 0x3ee   : > { %v15470_v33 = vxor.u32 2147483648, %v14476_v10  ;;  %v6006_v54 = vxor.u32 2147483648, %v6005_v34  ;;  %v5886_v20 = vclz %v9595_v37  ;;  %9968 = vmatmul.mubr.msk.f32.gmra.mrb[8].mxu1 %vm965_vm7, %v10679_v14  ;;  %vm7921_vm4 = vcmask 1043456  }
 0x3ef   : > { %v5503_v3 = vsel %vm5501_vm15, %v15459_v36, %v14469_v43  ;;  %9970 = vmatprep.mubr.msk.f32.mxu1 %vm965_vm7, %v10680_v26  ;;  %vm15476_vm1 = vweird.f32 %v14006_v16  ;;  %v5600_v4 = vand.u32 3, %v5599_v9  ;;  %9979 = vmatprep.subr.msk.mxu1 %vm7921_vm4, %v7674_v7  ;;  %v10196_v25 = vpack.c.bf16 %v8709_v6, %v8708_v59  ;;  %v10682_v59 = vld [vmem:[%s10959_s29 + $0x60] sm:$0xff] }
 0x3f0   : > { %v5504_v62 = vsel %vm5497_vm3, %v5500_v18, %v5503_v3  ;;  %v14694_v13 = vpop.eup %10628  ;;  %v6007_v37 = vsel %vm5924_vm2, %v6006_v54, %v6005_v34  ;;  %v9596_v14 = vadd.s32 4294967294, %v5886_v20  ;;  %9980 = vmatpush3.msk.msra.mxu1 %vm7921_vm4, %v7674_v7  ;;  %v5703_v26 = vadd.s32 3, %v15881_v24  ;;  %v10681_v34 = vld [vmem:[%s10959_s29 + $0x58] sm:$0xff] }
 0x3f1   : > { %v5505_v36 = vsel %vm15461_vm9, nan, %v5504_v62  ;;  %v6010_v18 = vsel %vm14554_vm0, %v14378_v44, %v6007_v37  ;;  %vm5601_vm3 = vcmp.lt.s32.totalorder %v5600_v4, 2  ;;  %vm5602_vm2 = vcmp.eq.s32.totalorder %v5600_v4, 0  ;;  %10197 = vmatprep.subr.bf16.mxu0 %v10196_v25 }
 0x3f2   : > { %10078 = vmatprep.mubr.msk.f32.mxu0 %vm8494_vm8, %v5505_v36  ;;  %vm5605_vm15 = vcmp.eq.s32.totalorder %v5600_v4, 2  ;;  %10630 = vcosq.f32 %v6010_v18  ;;  %vm9597_vm9 = vcmp.lt.s32.totalorder %v9596_v14, 0  ;;  %9971 = vmatmul.mubr.msk.f32.gmra.mrb[10].mxu1 %vm965_vm7, %v10681_v34  ;;  %v5604_v7 = vsel %vm5602_vm2, %v14476_v10, %v15471_v1  ;;  %v15901_v1 = vld [vmem:[#allocation15_spill] sm:$0xff] }
 0x3f3   : > { %v5607_v32 = vsel %vm5605_vm15, %v15470_v33, %v14485_v53  ;;  %10199 = vmatpush3.bf16.msra.mxu0 %v10196_v25  ;;  %10632 = vsinq.f32 %v6010_v18  ;;  %v5889_v36 = vsel %vm9597_vm9, 0, %v9596_v14  ;;  %9973 = vmatprep.mubr.msk.f32.mxu1 %vm965_vm7, %v10682_v59  ;;  %v5704_v9 = vand.u32 3, %v5703_v26  ;;  %v10683_v14 = vld [vmem:[%s10959_s29 + $0x68] sm:$0xff]  ;;  %v15892_v59 = vld [vmem:[#allocation12_spill] sm:$0xff] }
 0x3f4   : > { %v5608_v6 = vsel %vm5601_vm3, %v5604_v7, %v5607_v32  ;;  %10091 = vmatprep.subr.msk.mxu0 %vm8543_vm10, %v8710_v49  ;;  %v5874_v54 = vadd.s32 %v14573_v57, %v14585_v28  ;;  %v5890_v20 = vsub.s32 32, %v5889_v36  ;;  %v5894_v3 = vsub.s32 4294967266, %v5889_v36 }
 0x3f5   : > { %v5609_v62 = vsel %vm15476_vm1, nan, %v5608_v6  ;;  %v5891_v4 = vshll.u32 %v14649_v5, %v5889_v36  ;;  %v5905_v25 = vsel %vm5820_vm11, %v5904_v48, %v14630_v56  ;;  %vm5705_vm0 = vcmp.lt.s32.totalorder %v5704_v9, 2  ;;  %v10684_v5 = vld [vmem:[%s10959_s29 + $0x70] sm:$0xff]  ;;  %v15885_v6 = vld [vmem:[#allocation32_spill] sm:$0xff] }
 0x3f6   : > { %10079 = vmatmul.mubr.msk.f32.gmra.mrb[10].mxu0 %vm8494_vm8, %v5609_v62  ;;  %v15468_v37 = vxor.u32 2147483648, %v14536_v35  ;;  %v5892_v57 = vshrl.u32 %v5874_v54, %v5890_v20  ;;  %v5895_v28 = vadd.s32 127, %v5894_v3  ;;  %9974 = vmatmul.mubr.msk.f32.gmra.mrb[12].mxu1 %vm965_vm7, %v10683_v14  ;;  %vm5706_vm9 = vcmp.eq.s32.totalorder %v5704_v9, 0 }
 0x3f7   : > { %v15467_v26 = vxor.u32 2147483648, %v14532_v31  ;;  %10092 = vmatpush3.msk.msra.mxu0 %vm8543_vm10, %v8710_v49  ;;  %9976 = vmatprep.mubr.msk.f32.mxu1 %vm965_vm7, %v10684_v5  ;;  %vm5709_vm4 = vcmp.eq.s32.totalorder %v5704_v9, 2  ;;  %v5807_v48 = vadd.s32 3, %v14506_v60  ;;  %v15466_v18 = vxor.u32 2147483648, %v14694_v13  ;;  %v10685_v5 = vld [vmem:[%s10903_s19] sm:$0xff] }
 0x3f8   : > { %v5708_v56 = vsel %vm5706_vm9, %v14532_v31, %v15468_v37  ;;  %v5893_v34 = vor.u32 %v5892_v57, %v5891_v4  ;;  %v5896_v7 = vshll.u32 %v5895_v28, 23  ;;  %v15462_v49 = vxor.u32 2147483648, %v14633_v22  ;;  %v15886_v4 = vld [vmem:[#allocation39_spill] sm:$0xff]  ;;  %v10690_v37 = vld [vmem:[%s10903_s19 + $0x28] sm:$0xff] }
 0x3f9   : > { %v5711_v32 = vsel %vm5709_vm4, %v15467_v26, %v14536_v35  ;;  %v15882_v36 = vand.u32 2147483647, %v14381_v42  ;;  %vm15464_vm3 = vweird.f32 %v15885_v6  ;;  %v5808_v20 = vand.u32 3, %v5807_v48 }
 0x3fa   : > { %v5712_v54 = vsel %vm5705_vm0, %v5708_v56, %v5711_v32  ;;  %v5897_v3 = vor.u32 4788187, %v5896_v7  ;;  %9977 = vmatmul.mubr.msk.f32.gmra.mrb[14].mxu1 %vm965_vm7, %v15886_v4  ;;  %v6015_v28 = vadd.s32 3, %v14612_v63  ;;  %v5900_v14 = vcvt.s32.f32 %v5893_v34 }
 0x3fb   : > { %vm14748_vm10 = vcmp.le.f32.partialorder %v15882_v36, 0.7853982  ;;  %v5713_v57 = vsel %vm15464_vm3, nan, %v5712_v54  ;;  %vm15887_vm2 = vcmask 31744   ;;  %vm5810_vm15 = vcmp.eq.s32.totalorder %v5808_v20, 0  ;;  %v15888_v36 = vld [vmem:[#allocation19_spill] sm:$0xff] }
 0x3fc   : > { %v14756_v62 = vsel %vm14748_vm10, 0, %v5905_v25  ;;  %9981 = vmatprep.mubr.msk.f32.mxu1 %vm15887_vm2, %v10685_v5  ;;  %10081 = vmatprep.mubr.msk.f32.mxu0 %vm8494_vm8, %v5713_v57  ;;  %vm5813_vm0 = vcmp.eq.s32.totalorder %v5808_v20, 2  ;;  %v14766_v9 = vpop.eup %10630  ;;  %v5898_v25 = vand.u32 2147483647, %v5897_v3  ;;  %vm5809_vm9 = vcmp.lt.s32.totalorder %v5808_v20, 2  ;;  %v10686_v20 = vld [vmem:[%s10903_s19 + $0x8] sm:$0xff]  ;;  %vm15889_vm4 = vmmov %vm15887_vm2 }
 0x3fd   : > { %v5812_v56 = vsel %vm5810_vm15, %v14633_v22, %v15466_v18  ;;  %v5815_v48 = vsel %vm5813_vm0, %v15462_v49, %v14694_v13  ;;  %v14774_v34 = vpop.eup %10632  ;;  %vm15463_vm7 = vweird.f32 %v14273_v27  ;;  %v5911_v32 = vadd.s32 3, %v14756_v62  ;;  %v10687_v5 = vld [vmem:[%s10903_s19 + $0x10] sm:$0xff]  ;;  %vm15891_vm15 = vmmov %vm15887_vm2  ;;  %v15897_v18 = vld [vmem:[#allocation20_spill] sm:$0xff] }
 0x3fe   : > { %v5816_v7 = vsel %vm5809_vm9, %v5812_v56, %v5815_v48  ;;  %v6222_v54 = vand.u32 3, %v15888_v36  ;;  %v5901_v3 = vmul.f32 %v5900_v14, %v5898_v25  ;;  %9982 = vmatmul.mubr.msk.f32.vlgmr.msra.gmra.mrb[0].mxu1 %vm15889_vm4, %v10686_v20  ;;  %v6016_v57 = vand.u32 3, %v6015_v28  ;;  %v15890_v36 = vld [vmem:[#allocation21_spill] sm:$0xff]  ;;  %vm15911_vm5 = vmmov %vm15887_vm2 }
 0x3ff   : > { %v5817_v4 = vsel %vm15463_vm7, nan, %v5816_v7  ;;  %9984 = vmatprep.mubr.msk.f32.mxu1 %vm15887_vm2, %v10687_v5  ;;  %v15465_v56 = vxor.u32 2147483648, %v14774_v34  ;;  %v15469_v48 = vxor.u32 2147483648, %v14766_v9  ;;  %v6119_v14 = vand.u32 3, %v15890_v36  ;;  %v10688_v7 = vld [vmem:[%s10903_s19 + $0x18] sm:$0xff]  ;;  %v15893_v5 = vld [vmem:[#allocation28_spill] sm:$0xff] }
 0x400   : > { %10082 = vmatmul.mubr.msk.f32.gmra.mrb[12].mxu0 %vm8494_vm8, %v5817_v4  ;;  %v5902_v49 = vxor.u32 2147483648, %v5901_v3  ;;  %v14789_v25 = vand.u32 3, %v5911_v32  ;;  %vm6018_vm0 = vcmp.eq.s32.totalorder %v6016_v57, 0  ;;  %vm6021_vm9 = vcmp.eq.s32.totalorder %v6016_v57, 2  ;;  %v10689_v4 = vld [vmem:[%s10903_s19 + $0x20] sm:$0xff] }
 0x401   : > { %vm6224_vm4 = vcmp.eq.s32.totalorder %v6222_v54, 0  ;;  %vm6014_vm7 = vweird.f32 %v14378_v44  ;;  %v6023_v32 = vsel %vm6021_vm9, %v15469_v48, %v14774_v34  ;;  %vm6124_vm3 = vcmp.eq.s32.totalorder %v6119_v14, 2  ;;  %v15899_v48 = vld [vmem:[#allocation5_spill] sm:$0xff]  ;;  %v8965_v44 = vld [vmem:[%s15209_s9 + $0x18] sm:$0xff] }
 0x402   : > { %v5903_v20 = vsel %vm5820_vm11, %v5902_v49, %v5901_v3  ;;  %9985 = vmatmul.mubr.msk.f32.gmra.mrb[2].mxu1 %vm15891_vm15, %v10688_v7  ;;  %v6020_v49 = vsel %vm6018_vm0, %v14766_v9, %v15465_v56  ;;  %vm6227_vm11 = vcmp.eq.s32.totalorder %v6222_v54, 2  ;;  %vm6121_vm15 = vcmp.eq.s32.totalorder %v6119_v14, 0 }
 0x403   : > { %v5906_v28 = vsel %vm14748_vm10, %v14381_v42, %v5903_v20  ;;  %9987 = vmatprep.mubr.msk.f32.mxu1 %vm15887_vm2, %v10689_v4  ;;  %v6325_v3 = vand.u32 3, %v15892_v59  ;;  %v15894_v36 = vxor.u32 2147483648, %v15893_v5  ;;  %v15895_v20 = vld [vmem:[#allocation29_spill] sm:$0xff]  ;;  %v6428_v26 = vand.u32 3, %v15897_v18  ;;  %vm15898_vm10 = vmmov %vm15887_vm2  ;;  %v15903_v18 = vld [vmem:[#allocation7_spill] sm:$0xff] }
 0x404   : > { %10634 = vcosq.f32 %v5906_v28  ;;  %v15896_v4 = vxor.u32 2147483648, %v15895_v20  ;;  %v15900_v33 = vxor.u32 2147483648, %v15899_v48  ;;  %vm5913_vm1 = vcmp.lt.s32.totalorder %v14789_v25, 2 }
 0x405   : > { %10636 = vsinq.f32 %v5906_v28  ;;  %v6123_v7 = vsel %vm6121_vm15, %v15895_v20, %v15894_v36  ;;  %v15902_v28 = vxor.u32 2147483648, %v15901_v1  ;;  %vm6327_vm0 = vcmp.eq.s32.totalorder %v6325_v3, 0  ;;  %v10691_v36 = vld [vmem:[%s10903_s19 + $0x30] sm:$0xff] }
 0x406   : > { %v6126_v56 = vsel %vm6124_vm3, %v15896_v4, %v15893_v5  ;;  %9988 = vmatmul.mubr.msk.f32.gmra.mrb[4].mxu1 %vm15898_vm10, %v10690_v37  ;;  %v6226_v55 = vsel %vm6224_vm4, %v15901_v1, %v15900_v33  ;;  %vm6330_vm9 = vcmp.eq.s32.totalorder %v6325_v3, 2  ;;  %vm6017_vm3 = vcmp.lt.s32.totalorder %v6016_v57, 2  ;;  %v15905_v37 = vld [vmem:[#allocation17_spill] sm:$0xff]  ;;  %v15907_v1 = vld [vmem:[#allocation48_spill] sm:$0xff]  ;;  %v10692_v57 = vld [vmem:[%s10903_s19 + $0x38] sm:$0xff] }
 0x407   : > { %v6229_v59 = vsel %vm6227_vm11, %v15902_v28, %v15899_v48  ;;  %9990 = vmatprep.mubr.msk.f32.mxu1 %vm15887_vm2, %v10691_v36  ;;  %vm6223_vm15 = vcmp.lt.s32.totalorder %v6222_v54, 2  ;;  %v15904_v5 = vxor.u32 2147483648, %v15903_v18  ;;  %v15906_v4 = vxor.u32 2147483648, %v15905_v37  ;;  %v15908_v54 = vld [vmem:[#allocation52_spill] sm:$0xff] }
 0x408   : > { %v6024_v41 = vsel %vm6017_vm3, %v6020_v49, %v6023_v32  ;;  %vm6120_vm4 = vcmp.lt.s32.totalorder %v6119_v14, 2  ;;  %vm6326_vm11 = vcmp.lt.s32.totalorder %v6325_v3, 2  ;;  %v6531_v48 = vand.u32 3, %v15907_v1  ;;  %v10693_v14 = vld [vmem:[%s10903_s19 + $0x40] sm:$0xff]  ;;  %v15913_v49 = vld [vmem:[#allocation62_spill] sm:$0xff]  ;;  %v15915_v3 = vld [vmem:[#allocation47_spill] sm:$0xff] }
 0x409   : > { %v6329_v20 = vsel %vm6327_vm0, %v15905_v37, %v15904_v5  ;;  %v6332_v33 = vsel %vm6330_vm9, %v15906_v4, %v15903_v18  ;;  %v6127_v28 = vsel %vm6120_vm4, %v6123_v7, %v6126_v56  ;;  %v6230_v30 = vsel %vm6223_vm15, %v6226_v55, %v6229_v59  ;;  %v15910_v5 = vld [vmem:[#allocation24_spill] sm:$0xff] }
 0x40a   : > { %v6333_v47 = vsel %vm6326_vm11, %v6329_v20, %v6332_v33  ;;  %vm6430_vm10 = vcmp.eq.s32.totalorder %v6428_v26, 0  ;;  %9991 = vmatmul.mubr.msk.f32.gmra.mrb[6].mxu1 %vm15887_vm2, %v10692_v57  ;;  %v15909_v36 = vxor.u32 2147483648, %v15908_v54  ;;  %vm6433_vm0 = vcmp.eq.s32.totalorder %v6428_v26, 2  ;;  %v15917_v20 = vld [vmem:[#allocation23_spill] sm:$0xff] }
 0x40b   : > { %vm6533_vm9 = vcmp.eq.s32.totalorder %v6531_v48, 0  ;;  %vm6536_vm3 = vcmp.eq.s32.totalorder %v6531_v48, 2  ;;  %9993 = vmatprep.mubr.msk.f32.mxu1 %vm15911_vm5, %v10693_v14  ;;  %vm5910_vm15 = vweird.f32 %v14381_v42  ;;  %v15912_v55 = vxor.u32 2147483648, %v15910_v5  ;;  %v8964_v42 = vld [vmem:[%s15209_s9 + $0x10] sm:$0xff] }
 0x40c   : > { %v6432_v37 = vsel %vm6430_vm10, %v15910_v5, %v15909_v36  ;;  %v15914_v32 = vxor.u32 2147483648, %v15913_v49  ;;  %v15916_v59 = vxor.u32 2147483648, %v15915_v3  ;;  %v14852_v4 = vand.u32 3, %v15917_v20  ;;  %v15921_v5 = vld [vmem:[#allocation60_spill] sm:$0xff] }
 0x40d   : > { %v6435_v56 = vsel %vm6433_vm0, %v15912_v55, %v15908_v54  ;;  %vm5914_vm4 = vcmp.eq.s32.totalorder %v14789_v25, 0  ;;  %vm5917_vm5 = vcmp.eq.s32.totalorder %v14789_v25, 2  ;;  %v6025_v33 = vsel %vm6014_vm7, nan, %v6024_v41  ;;  %v15919_v54 = vld [vmem:[#allocation56_spill] sm:$0xff] }
 0x40e   : > { %v6535_v7 = vsel %vm6533_vm9, %v15915_v3, %v15914_v32  ;;  %v6538_v18 = vsel %vm6536_vm3, %v15916_v59, %v15913_v49  ;;  %v6128_v57 = vsel %vm4454_vm14, nan, %v6127_v28  ;;  %vm15920_vm11 = vweird.f32 %v15919_v54  ;;  %v14868_v55 = vpop.eup %10634  ;;  %v10694_v49 = vld [vmem:[%s10903_s19 + $0x48] sm:$0xff] }
 0x40f   : > { %v14862_v36 = vsel %vm15920_vm11, nan, %v6230_v30  ;;  %vm15922_vm10 = vweird.f32 %v15921_v5  ;;  %vm6429_vm2 = vcmp.lt.s32.totalorder %v6428_v26, 2  ;;  %vm6532_vm0 = vcmp.lt.s32.totalorder %v6531_v48, 2  ;;  %v15924_v28 = vld [vmem:[#allocation41_spill] sm:$0xff]  ;;  %v14880_v59 = vpop.eup %10636  ;;  %v10696_v5 = vld [vmem:[%s10903_s19 + $0x58] sm:$0xff] }
 0x410   : > { %v14866_v14 = vsel %vm15922_vm10, nan, %v6333_v47  ;;  %vm15923_vm9 = vcmask 31744   ;;  %v14872_v32 = vsel %vm6429_vm2, %v6432_v37, %v6435_v56  ;;  %v14874_v41 = vsel %vm6532_vm0, %v6535_v7, %v6538_v18  ;;  %v10695_v47 = vld [vmem:[%s10903_s19 + $0x50] sm:$0xff]  ;;  %v15926_v56 = vld [vmem:[#allocation27_spill] sm:$0xff] }
 0x411   : > { %9994 = vmatmul.mubr.msk.f32.gmra.mrb[8].mxu1 %vm15923_vm9, %v10694_v49  ;;  %v14877_v3 = vand.u32 3, %v15924_v28  ;;  %v6840_v30 = vand.u32 3, %v13945_v46  ;;  %vm15925_vm14 = vmmov %vm15923_vm9  ;;  %v5918_v26 = vxor.u32 2147483648, %v14868_v55  ;;  %vm6636_vm3 = vcmp.eq.s32.totalorder %v14852_v4, 0  ;;  %v15928_v46 = vld [vmem:[#allocation14_spill] sm:$0xff] }
 0x412   : > { %9996 = vmatprep.mubr.msk.f32.mxu1 %vm15925_vm14, %v10695_v47  ;;  %vm6639_vm11 = vcmp.eq.s32.totalorder %v14852_v4, 2  ;;  %v6943_v48 = vand.u32 3, %v14119_v61  ;;  %v5915_v37 = vxor.u32 2147483648, %v14880_v59  ;;  %v15927_v7 = vxor.u32 2147483648, %v15926_v56  ;;  %v10697_v47 = vld [vmem:[%s10903_s19 + $0x60] sm:$0xff] }
 0x413   : > { %v15929_v20 = vxor.u32 2147483648, %v15928_v46  ;;  %vm6842_vm10 = vcmp.eq.s32.totalorder %v6840_v30, 0  ;;  %v5919_v54 = vsel %vm5917_vm5, %v5918_v26, %v14880_v59  ;;  %vm6841_vm2 = vcmp.lt.s32.totalorder %v6840_v30, 2 }
 0x414   : > { %v14892_v18 = vsel %vm6636_vm3, %v15928_v46, %v15927_v7  ;;  %v6844_v61 = vsel %vm6842_vm10, %v14033_v19, %v5187_v50  ;;  %vm6845_vm0 = vcmp.eq.s32.totalorder %v6840_v30, 2  ;;  %v5916_v49 = vsel %vm5914_vm4, %v14868_v55, %v5915_v37  ;;  %vm15930_vm3 = vmmov %vm15923_vm9 }
 0x415   : > { %v14897_v1 = vsel %vm6639_vm11, %v15929_v20, %v15926_v56  ;;  %9997 = vmatmul.mubr.msk.f32.gmra.mrb[10].mxu1 %vm15923_vm9, %v10696_v5  ;;  %v6847_v28 = vsel %vm6845_vm0, %v5190_v39, %v14123_v51  ;;  %vm6944_vm5 = vcmp.lt.s32.totalorder %v6943_v48, 2  ;;  %vm6945_vm14 = vcmp.eq.s32.totalorder %v6943_v48, 0  ;;  %vm15933_vm4 = vmmov %vm15930_vm3 }
 0x416   : > { %9999 = vmatprep.mubr.msk.f32.mxu1 %vm15930_vm3, %v10697_v47  ;;  %v5920_v50 = vsel %vm5913_vm1, %v5916_v49, %v5919_v54  ;;  %v6848_v30 = vsel %vm6841_vm2, %v6844_v61, %v6847_v28  ;;  %v15931_v56 = vxor.u32 2147483648, %v14158_v15  ;;  %vm6948_vm11 = vcmp.eq.s32.totalorder %v6943_v48, 2  ;;  %v10698_v61 = vld [vmem:[%s10903_s19 + $0x68] sm:$0xff]  ;;  %vm15934_vm2 = vmmov %vm15930_vm3 }
 0x417   : > { %v5921_v46 = vsel %vm5910_vm15, nan, %v5920_v50  ;;  %v6849_v19 = vsel %vm5182_vm12, nan, %v6848_v30  ;;  %v15932_v51 = vxor.u32 2147483648, %v14147_v40  ;;  %v7046_v25 = vand.u32 3, %v15878_v29 }
 0x418   : > { %v6947_v7 = vsel %vm6945_vm14, %v14147_v40, %v15931_v56  ;;  %10084 = vmatprep.mubr.msk.f32.mxu0 %vm8494_vm8, %v5921_v46  ;;  %vm6739_vm1 = vcmp.eq.s32.totalorder %v14877_v3, 0  ;;  %v7149_v48 = vand.u32 3, %v14389_v38  ;;  %v7252_v54 = vand.u32 3, %v14403_v52 }
 0x419   : > { %v6950_v39 = vsel %vm6948_vm11, %v15932_v51, %v14158_v15  ;;  %10000 = vmatmul.mubr.msk.f32.gmra.mrb[12].mxu1 %vm15933_vm4, %v10698_v61  ;;  %10085 = vmatmul.mubr.msk.f32.gmra.mrb[14].mxu0 %vm8494_vm8, %v6025_v33  ;;  %vm7048_vm12 = vcmp.eq.s32.totalorder %v7046_v25, 0  ;;  %vm7051_vm10 = vcmp.eq.s32.totalorder %v7046_v25, 2  ;;  %v7355_v40 = vand.u32 3, %v15881_v24  ;;  %v10699_v15 = vld [vmem:[%s10903_s19 + $0x70] sm:$0xff]  ;;  %vm15940_vm11 = vmmov %vm15934_vm2 }
 0x41a   : > { %v6951_v20 = vsel %vm6944_vm5, %v6947_v7, %v6950_v39  ;;  %10002 = vmatprep.mubr.msk.f32.mxu1 %vm15934_vm2, %v10699_v15  ;;  %10093 = vmatprep.mubr.msk.f32.mxu0 %vm8494_vm8, %v6128_v57  ;;  %vm7047_vm0 = vcmp.lt.s32.totalorder %v7046_v25, 2  ;;  %v15935_v38 = vxor.u32 2147483648, %v14230_v8  ;;  %v15936_v29 = vxor.u32 2147483648, %v15879_v21  ;;  %v8966_v15 = vld [vmem:[%s15209_s9 + $0x20] sm:$0xff] }
 0x41b   : > { %v6952_v11 = vsel %vm5286_vm13, nan, %v6951_v20  ;;  %vm7151_vm13 = vcmp.eq.s32.totalorder %v7149_v48, 0  ;;  %v15937_v33 = vxor.u32 2147483648, %v14000_v0  ;;  %v15938_v49 = vxor.u32 2147483648, %v14469_v43 }
 0x41c   : > { %v7050_v52 = vsel %vm7048_vm12, %v15879_v21, %v15935_v38  ;;  %v7053_v12 = vsel %vm7051_vm10, %v15936_v29, %v14230_v8  ;;  %vm7154_vm9 = vcmp.eq.s32.totalorder %v7149_v48, 2  ;;  %vm7150_vm5 = vcmp.lt.s32.totalorder %v7149_v48, 2  ;;  %v10700_v8 = vld [vmem:[%s10903_s19 + $0x78] sm:$0xff]  ;;  %v8967_v38 = vld [vmem:[%s15209_s9 + $0x28] sm:$0xff]  ;;  %v8968_v29 = vld [vmem:[%s15209_s9 + $0x30] sm:$0xff] }
 0x41d   : > { %v6741_v24 = vsel %vm6739_vm1, %v13964_v58, %v15937_v33  ;;  %v7054_v5 = vsel %vm7047_vm0, %v7050_v52, %v7053_v12  ;;  %v7153_v57 = vsel %vm7151_vm13, %v14439_v45, %v15938_v49  ;;  %v15939_v28 = vxor.u32 2147483648, %v14439_v45  ;;  %10003 = vmatmul.mubr.msk.f32.gmra.mrb[14].mxu1 %vm15940_vm11, %v10700_v8  ;;  %10094 = vmatmul.mubr.msk.f32.vlgmr.msra.gmra.mrb[0].mxu0 %vm8494_vm8, %v14862_v36  ;;  %v8969_v12 = vld [vmem:[%s15209_s9 + $0x38] sm:$0xff] }
 0x41e   : > { %vm7254_vm14 = vcmp.eq.s32.totalorder %v7252_v54, 0  ;;  %vm7257_vm3 = vcmp.eq.s32.totalorder %v7252_v54, 2  ;;  %vm7253_vm1 = vcmp.lt.s32.totalorder %v7252_v54, 2  ;;  %v15941_v50 = vxor.u32 2147483648, %v14485_v53  ;;  %10096 = vmatprep.mubr.msk.f32.mxu0 %vm8494_vm8, %v14866_v14  ;;  %v15946_v14 = vld [vmem:[#allocation64_spill] sm:$0xff] }
 0x41f   : > { %v7156_v47 = vsel %vm7154_vm9, %v15939_v28, %v14469_v43  ;;  %v15942_v56 = vxor.u32 2147483648, %v14476_v10  ;;  %vm6742_vm4 = vcmp.eq.s32.totalorder %v14877_v3, 2  ;;  %vm7357_vm12 = vcmp.eq.s32.totalorder %v7355_v40, 0 }
 0x420   : > { %v7157_v21 = vsel %vm7150_vm5, %v7153_v57, %v7156_v47  ;;  %v7256_v30 = vsel %vm7254_vm14, %v14476_v10, %v15941_v50  ;;  %vm7360_vm10 = vcmp.eq.s32.totalorder %v7355_v40, 2  ;;  %v15943_v43 = vxor.u32 2147483648, %v13964_v58 }
 0x421   : > { %v7259_v7 = vsel %vm7257_vm3, %v15942_v56, %v14485_v53  ;;  %vm7356_vm2 = vcmp.lt.s32.totalorder %v7355_v40, 2  ;;  %v15944_v46 = vxor.u32 2147483648, %v14536_v35  ;;  %v15945_v10 = vxor.u32 2147483648, %v14532_v31 }
 0x422   : > { %v7260_v45 = vsel %vm7253_vm1, %v7256_v30, %v7259_v7  ;;  %v6744_v36 = vsel %vm6742_vm4, %v15943_v43, %v14000_v0  ;;  %vm15947_vm0 = vweird.f32 %v15946_v14  ;;  %vm6635_vm13 = vcmp.lt.s32.totalorder %v14852_v4, 2  ;;  %v15948_v0 = vld [vmem:[#allocation6_spill] sm:$0xff] }
 0x423   : > { %v7359_v51 = vsel %vm7357_vm12, %v14532_v31, %v15944_v46  ;;  %v7362_v53 = vsel %vm7360_vm10, %v15945_v10, %v14536_v35  ;;  %v6437_v39 = vsel %vm15947_vm0, nan, %v14872_v32  ;;  %vm15949_vm9 = vweird.f32 %v15948_v0 }
 0x424   : > { %v7363_v25 = vsel %vm7356_vm2, %v7359_v51, %v7362_v53  ;;  %10097 = vmatmul.mubr.msk.f32.gmra.mrb[2].mxu0 %vm8494_vm8, %v6437_v39  ;;  %v6540_v58 = vsel %vm15949_vm9, nan, %v14874_v41  ;;  %v6642_v20 = vsel %vm6635_vm13, %v14892_v18, %v14897_v1  ;;  %vm6738_vm5 = vcmp.lt.s32.totalorder %v14877_v3, 2  ;;  %v15077_v51 = vld [vmem:[%s15208_s8] ss:$0 sm:$0xff] }
 0x425   : > { %10099 = vmatprep.mubr.msk.f32.mxu0 %vm8494_vm8, %v6540_v58  ;;  %v6745_v31 = vsel %vm6738_vm5, %v6741_v24, %v6744_v36  ;;  %v6643_v32 = vsel %vm4974_vm6, nan, %v6642_v20  ;;  %vm15951_vm14 = vweird.f32 %v13284_v17  ;;  %v7458_v41 = vand.u32 3, %v14506_v60 }
 0x426   : > { %v6746_v4 = vsel %vm15951_vm14, nan, %v6745_v31  ;;  %v7561_v3 = vand.u32 3, %v14756_v62  ;;  %vm15952_vm3 = vweird.f32 %v15880_v23  ;;  %vm15953_vm6 = vweird.f32 %v13910_v2 }
 0x427   : > { %v7055_v18 = vsel %vm15952_vm3, nan, %v7054_v5  ;;  %v7158_v1 = vsel %vm15953_vm6, nan, %v7157_v21  ;;  %vm7460_vm11 = vcmp.eq.s32.totalorder %v7458_v41, 0  ;;  %vm7463_vm1 = vcmp.eq.s32.totalorder %v7458_v41, 2 }
 0x428   : > { %10100 = vmatmul.mubr.msk.f32.gmra.mrb[4].mxu0 %vm8494_vm8, %v6643_v32  ;;  %v7664_v17 = vand.u32 3, %v14612_v63  ;;  %v15954_v60 = vxor.u32 2147483648, %v14694_v13  ;;  %v15955_v62 = vxor.u32 2147483648, %v14633_v22  ;;  %vm7563_vm4 = vcmp.eq.s32.totalorder %v7561_v3, 0 }
 0x429   : > { %10102 = vmatprep.mubr.msk.f32.mxu0 %vm8494_vm8, %v6746_v4  ;;  %vm7566_vm12 = vcmp.eq.s32.totalorder %v7561_v3, 2  ;;  %v7565_v2 = vsel %vm7563_vm4, %v14868_v55, %v5915_v37  ;;  %vm15956_vm10 = vweird.f32 %v14006_v16  ;;  %vm15957_vm2 = vweird.f32 %v15885_v6 }
 0x42a   : > { %v7465_v23 = vsel %vm7463_vm1, %v15955_v62, %v14694_v13  ;;  %v7568_v63 = vsel %vm7566_vm12, %v5918_v26, %v14880_v59  ;;  %v7261_v48 = vsel %vm15956_vm10, nan, %v7260_v45  ;;  %v7364_v54 = vsel %vm15957_vm2, nan, %v7363_v25 }
 0x42b   : > { %vm7459_vm0 = vcmp.lt.s32.totalorder %v7458_v41, 2  ;;  %vm7562_vm13 = vcmp.lt.s32.totalorder %v7561_v3, 2  ;;  %vm7666_vm9 = vcmp.eq.s32.totalorder %v7664_v17, 0  ;;  %vm7669_vm5 = vcmp.eq.s32.totalorder %v7664_v17, 2 }
 0x42c   : > { %10103 = vmatmul.mubr.msk.f32.gmra.mrb[6].mxu0 %vm8494_vm8, %v6849_v19  ;;  %v7462_v19 = vsel %vm7460_vm11, %v14633_v22, %v15954_v60  ;;  %v7569_v13 = vsel %vm7562_vm13, %v7565_v2, %v7568_v63  ;;  %v15958_v37 = vxor.u32 2147483648, %v14774_v34  ;;  %v15959_v16 = vxor.u32 2147483648, %v14766_v9 }
 0x42d   : > { %10105 = vmatprep.mubr.msk.f32.mxu0 %vm8494_vm8, %v6952_v11  ;;  %v7466_v22 = vsel %vm7459_vm0, %v7462_v19, %v7465_v23  ;;  %vm15960_vm14 = vweird.f32 %v14273_v27  ;;  %vm7665_vm3 = vcmp.lt.s32.totalorder %v7664_v17, 2  ;;  %v7570_v26 = vsel %vm5910_vm15, nan, %v7569_v13  ;;  %v8963_v27 = vld [vmem:[%s15209_s9 + $0x8] sm:$0xff] }
 0x42e   : > { %v7668_v55 = vsel %vm7666_vm9, %v14766_v9, %v15958_v37  ;;  %v7671_v59 = vsel %vm7669_vm5, %v15959_v16, %v14774_v34  ;;  %v7467_v6 = vsel %vm15960_vm14, nan, %v7466_v22  ;;  %v8962_v9 = vld [vmem:[%s15209_s9] sm:$0xff]  ;;  %v10204_v40 = vpack.c.bf16 %v8965_v44, %v8964_v42 }
 0x42f   : > { %v7672_v61 = vsel %vm7665_vm3, %v7668_v55, %v7671_v59  ;;  %v10200_v34 = vpack.c.bf16 %v8963_v27, %v8962_v9  ;;  %v10208_v52 = vpack.c.bf16 %v8967_v38, %v8966_v15  ;;  %v10212_v33 = vpack.c.bf16 %v8969_v12, %v8968_v29 }
 0x430   : > { %10106 = vmatmul.mubr.msk.f32.gmra.mrb[8].mxu0 %vm8494_vm8, %v7055_v18  ;;  %v7673_v11 = vsel %vm6014_vm7, nan, %v7672_v61  ;;  %vm10778_vm7 = vmmov 0  }
 0x431   : > { %10108 = vmatprep.mubr.msk.f32.mxu0 %vm8494_vm8, %v7158_v1  ;;  %10201 = vmatprep.subr.bf16.mxu1 %v10200_v34 }
 0x432   : > { %10203 = vmatpush3.bf16.msra.mxu1 %v10200_v34 }
 0x433   : > { %10205 = vmatprep.subr.bf16.mxu1 %v10204_v40 }
 0x434   : > { %10109 = vmatmul.mubr.msk.f32.gmra.mrb[10].mxu0 %vm8494_vm8, %v7261_v48 }
 0x435   : > { %10111 = vmatprep.mubr.msk.f32.mxu0 %vm8494_vm8, %v7364_v54 }
 0x436   : > { %10207 = vmatpush3.bf16.msra.mxu1 %v10204_v40 }
 0x437   : > { %10209 = vmatprep.subr.bf16.mxu1 %v10208_v52 }
 0x438   : > { %10112 = vmatmul.mubr.msk.f32.gmra.mrb[12].mxu0 %vm8494_vm8, %v7467_v6 }
 0x439   : > { %10114 = vmatprep.mubr.msk.f32.mxu0 %vm8494_vm8, %v7570_v26 }
 0x43a   : > { %10211 = vmatpush3.bf16.msra.mxu1 %v10208_v52 }
 0x43b   : > { %10213 = vmatprep.subr.bf16.mxu1 %v10212_v33 }
 0x43c   : > { %10115 = vmatmul.mubr.msk.f32.gmra.mrb[14].mxu0 %vm8494_vm8, %v7673_v11  ;;  %vm8977_vm8 = vcmask 523264  }
 0x43d   : > { %vm15122_vm15 = vmpackc.low %vm8977_vm8, %vm8977_vm8 }
 0x43e   : > { %10215 = vmatpush3.bf16.msra.mxu1 %v10212_v33 }
 0x4d1   : > { %v9983_v24 = vpop.f32.mrb[0].mxu1 }
 0x4d2   : > { %v7991_v5 = vpop.f32.mrb[1].mxu1 }
 0x4d5   : > { %v9986_v49 = vpop.f32.mrb[2].mxu1 }
 0x4d6   : > { %v8001_v57 = vpop.f32.mrb[3].mxu1 }
 0x4d9   : > { %v9989_v28 = vpop.f32.mrb[4].mxu1 }
 0x4da   : > { %v8011_v47 = vpop.f32.mrb[5].mxu1 }
 0x4dd   : > { %v9992_v8 = vpop.f32.mrb[6].mxu1 }
 0x4de   : > { %v8021_v21 = vpop.f32.mrb[7].mxu1 }
 0x4e4   : > { %v9995_v50 = vpop.f32.mrb[8].mxu1 }
 0x4e5   : > { %v8031_v30 = vpop.f32.mrb[9].mxu1 }
 0x4e8   : > { %v9998_v56 = vpop.f32.mrb[10].mxu1 }
 0x4e9   : > { %v8041_v7 = vpop.f32.mrb[11].mxu1 }
 0x4ec   : > { %v10001_v45 = vpop.f32.mrb[12].mxu1 }
 0x4ed   : > { %v15070_v43 = vpop.f32.mrb[13].mxu1 }
 0x4f0   : > { %v15072_v36 = vpop.f32.mrb[14].mxu1  ;;  %v10095_v46 = vpop.f32.mrb[0].mxu0 }
 0x4f1   : > { %v15079_v10 = vpop.f32.mrb[15].mxu1  ;;  %v10248_v53 = vadd.f32 %v10095_v46, %v9983_v24  ;;  %v8828_v14 = vpop.f32.mrb[1].mxu0 }
 0x4f2   : > { %v10249_v39 = vadd.f32 %v8828_v14, %v7991_v5 }
 0x4f3   : > { %v8931_v25 = vadd.f32 %v10248_v53, %v15077_v51 }
 0x4f4   : > { %v8930_v0 = vadd.f32 %v10249_v39, %v15077_v51 }
 0x4f5   : > { %v8947_v4 = vmax.f32 %v8931_v25, 0.0 }
 0x4f6   : > { %v8946_v35 = vmax.f32 %v8930_v0, 0.0 }
 0x4f7   : > { %v10098_v58 = vpop.f32.mrb[2].mxu0 }
 0x4f8   : > { %v10250_v20 = vadd.f32 %v10098_v58, %v9986_v49  ;;  %v8838_v31 = vpop.f32.mrb[3].mxu0  ;;  %10133 = vmatprep.mubr.msk.f32.mxu1 %vm8977_vm8, %v8946_v35 }
 0x4f9   : > { %v10251_v32 = vadd.f32 %v8838_v31, %v8001_v57  ;;  %10134 = vmatmul.mubr.msk.f32.vlgmr.msra.gmra.mrb[16].mxu1 %vm8977_vm8, %v8947_v4 }
 0x4fa   : > { %v8933_v41 = vadd.f32 %v10250_v20, %v15077_v51 }
 0x4fb   : > { %v8932_v3 = vadd.f32 %v10251_v32, %v15077_v51  ;;  %v10101_v18 = vpop.f32.mrb[4].mxu0 }
 0x4fc   : > { %v10252_v1 = vadd.f32 %v10101_v18, %v9989_v28  ;;  %v8848_v17 = vpop.f32.mrb[5].mxu0  ;;  %v8949_v62 = vmax.f32 %v8933_v41, 0.0 }
 0x4fd   : > { %v8948_v60 = vmax.f32 %v8932_v3, 0.0  ;;  %v10253_v19 = vadd.f32 %v8848_v17, %v8011_v47 }
 0x4fe   : > { %v8935_v23 = vadd.f32 %v10252_v1, %v15077_v51 }
 0x4ff   : > { %v8934_v2 = vadd.f32 %v10253_v19, %v15077_v51  ;;  %v10104_v63 = vpop.f32.mrb[6].mxu0  ;;  %10136 = vmatprep.mubr.msk.f32.mxu1 %vm8977_vm8, %v8948_v60 }
 0x500   : > { %v10254_v48 = vadd.f32 %v10104_v63, %v9992_v8  ;;  %v8858_v54 = vpop.f32.mrb[7].mxu0  ;;  %10137 = vmatmul.mubr.msk.f32.gmra.mrb[18].mxu1 %vm8977_vm8, %v8949_v62  ;;  %v8951_v37 = vmax.f32 %v8935_v23, 0.0 }
 0x501   : > { %v8950_v22 = vmax.f32 %v8934_v2, 0.0  ;;  %v10255_v13 = vadd.f32 %v8858_v54, %v8021_v21 }
 0x502   : > { %v8937_v55 = vadd.f32 %v10254_v48, %v15077_v51 }
 0x503   : > { %v8936_v16 = vadd.f32 %v10255_v13, %v15077_v51  ;;  %v10107_v59 = vpop.f32.mrb[8].mxu0  ;;  %10139 = vmatprep.mubr.msk.f32.mxu1 %vm8977_vm8, %v8950_v22 }
 0x504   : > { %v10256_v6 = vadd.f32 %v10107_v59, %v9995_v50  ;;  %v8868_v26 = vpop.f32.mrb[9].mxu0  ;;  %10140 = vmatmul.mubr.msk.f32.gmra.mrb[20].mxu1 %vm8977_vm8, %v8951_v37  ;;  %v8953_v9 = vmax.f32 %v8937_v55, 0.0 }
 0x505   : > { %v8952_v61 = vmax.f32 %v8936_v16, 0.0  ;;  %v10257_v11 = vadd.f32 %v8868_v26, %v8031_v30 }
 0x506   : > { %v8939_v27 = vadd.f32 %v10256_v6, %v15077_v51 }
 0x507   : > { %v8938_v34 = vadd.f32 %v10257_v11, %v15077_v51  ;;  %v10110_v42 = vpop.f32.mrb[10].mxu0  ;;  %10142 = vmatprep.mubr.msk.f32.mxu1 %vm8977_vm8, %v8952_v61 }
 0x508   : > { %v10258_v44 = vadd.f32 %v10110_v42, %v9998_v56  ;;  %v8878_v40 = vpop.f32.mrb[11].mxu0  ;;  %10143 = vmatmul.mubr.msk.f32.gmra.mrb[22].mxu1 %vm8977_vm8, %v8953_v9  ;;  %v8955_v52 = vmax.f32 %v8939_v27, 0.0 }
 0x509   : > { %v8954_v15 = vmax.f32 %v8938_v34, 0.0  ;;  %v10259_v38 = vadd.f32 %v8878_v40, %v8041_v7 }
 0x50a   : > { %v8941_v29 = vadd.f32 %v10258_v44, %v15077_v51 }
 0x50b   : > { %v8940_v12 = vadd.f32 %v10259_v38, %v15077_v51  ;;  %v10113_v33 = vpop.f32.mrb[12].mxu0  ;;  %10145 = vmatprep.mubr.msk.f32.mxu1 %vm8977_vm8, %v8954_v15 }
 0x50c   : > { %v10260_v24 = vadd.f32 %v10113_v33, %v10001_v45  ;;  %v8888_v5 = vpop.f32.mrb[13].mxu0  ;;  %10146 = vmatmul.mubr.msk.f32.gmra.mrb[24].mxu1 %vm8977_vm8, %v8955_v52  ;;  %v8957_v28 = vmax.f32 %v8941_v29, 0.0 }
 0x50d   : > { %v8956_v49 = vmax.f32 %v8940_v12, 0.0  ;;  %v10261_v57 = vadd.f32 %v8888_v5, %v15070_v43 }
 0x50e   : > { %v8943_v47 = vadd.f32 %v10260_v24, %v15077_v51 }
 0x50f   : > { %v8942_v8 = vadd.f32 %v10261_v57, %v15077_v51  ;;  %v10116_v21 = vpop.f32.mrb[14].mxu0  ;;  %10148 = vmatprep.mubr.msk.f32.mxu1 %vm8977_vm8, %v8956_v49 }
 0x510   : > { %v10262_v50 = vadd.f32 %v10116_v21, %v15072_v36  ;;  %v8898_v30 = vpop.f32.mrb[15].mxu0  ;;  %10149 = vmatmul.mubr.msk.f32.gmra.mrb[26].mxu1 %vm8977_vm8, %v8957_v28  ;;  %v8959_v45 = vmax.f32 %v8943_v47, 0.0  ;;  %v10777_v36 = vmov 0.0|0.0  }
 0x511   : > { %v8958_v56 = vmax.f32 %v8942_v8, 0.0  ;;  %v10263_v7 = vadd.f32 %v8898_v30, %v15079_v10  ;;  %10216 = vmatprep.subr.bf16.mxu1 %v10777_v36  ;;  %v10779_v10 = vmov 0.0  }
 0x512   : > { %v8945_v46 = vadd.f32 %v10262_v50, %v15077_v51 }
 0x513   : > { %v8944_v43 = vadd.f32 %v10263_v7, %v15077_v51  ;;  %10151 = vmatprep.mubr.msk.f32.mxu1 %vm8977_vm8, %v8958_v56  ;;  %v9767_v51 = vld [vmem:[%s15210_s10] ss:$0 sm:$0xff] }
 0x514   : > { %10152 = vmatmul.mubr.msk.f32.gmra.mrb[28].mxu1 %vm8977_vm8, %v8959_v45  ;;  %v8961_v14 = vmax.f32 %v8945_v46, 0.0  ;;  %v9187_v46 = vld [vmem:[%s15211_s11] sm:$0x7] }
 0x515   : > { %v8960_v53 = vmax.f32 %v8944_v43, 0.0 }
 0x517   : > { %10154 = vmatprep.mubr.msk.f32.mxu1 %vm8977_vm8, %v8960_v53 }
 0x518   : > { %10155 = vmatmul.mubr.msk.f32.gmra.mrb[30].mxu1 %vm8977_vm8, %v8961_v14 }
 0x519   : > { %10189 = vmatprep.mubr.msk.f32.mxu1 %vm10778_vm7, %v10779_v10 }
 0x5cc   : > { %v10135_v39 = vpop.f32.mrb[16].mxu1 }
 0x5cd   : > { %v9098_v25 = vadd.f32 %v10135_v39, %v9767_v51  ;;  %v9092_v0 = vpop.f32.mrb[17].mxu1 }
 0x5ce   : > { %v9093_v58 = vadd.f32 %v9767_v51, %v9092_v0 }
 0x5cf   : > { %v9172_v20 = vmax.f32 %v9098_v25, 0.0 }
 0x5d0   : > { %v9171_v31 = vmax.f32 %v9093_v58, 0.0 }
 0x5d2   : > { %v10217_v3 = vpack.c.bf16 %v9172_v20, %v9171_v31 }
 0x5d3   : > { %v10138_v35 = vpop.f32.mrb[18].mxu1 }
 0x5d4   : > { %v9108_v32 = vadd.f32 %v10138_v35, %v9767_v51  ;;  %v9102_v4 = vpop.f32.mrb[19].mxu1  ;;  %10219 = vmatpush3.bf16.xpose.msk.msra.mxu1 %vm15122_vm15, %v10217_v3 }
 0x5d5   : > { %v9103_v18 = vadd.f32 %v9767_v51, %v9102_v4  ;;  %10220 = vmatprep.subr.bf16.mxu1 %v10777_v36 }
 0x5d6   : > { %v9174_v1 = vmax.f32 %v9108_v32, 0.0 }
 0x5d7   : > { %v9173_v17 = vmax.f32 %v9103_v18, 0.0  ;;  %v10141_v60 = vpop.f32.mrb[20].mxu1 }
 0x5d8   : > { %v9118_v19 = vadd.f32 %v10141_v60, %v9767_v51  ;;  %v9112_v62 = vpop.f32.mrb[21].mxu1 }
 0x5d9   : > { %v10221_v23 = vpack.c.bf16 %v9174_v1, %v9173_v17  ;;  %v9113_v2 = vadd.f32 %v9767_v51, %v9112_v62 }
 0x5da   : > { %v9176_v63 = vmax.f32 %v9118_v19, 0.0 }
 0x5db   : > { %v9175_v48 = vmax.f32 %v9113_v2, 0.0  ;;  %v10144_v54 = vpop.f32.mrb[22].mxu1 }
 0x5dc   : > { %v9128_v22 = vadd.f32 %v10144_v54, %v9767_v51  ;;  %v9122_v13 = vpop.f32.mrb[23].mxu1  ;;  %10223 = vmatpush3.bf16.xpose.msk.msra.mxu1 %vm15122_vm15, %v10221_v23 }
 0x5dd   : > { %v10225_v37 = vpack.c.bf16 %v9176_v63, %v9175_v48  ;;  %v9123_v55 = vadd.f32 %v9767_v51, %v9122_v13  ;;  %10224 = vmatprep.subr.bf16.mxu1 %v10777_v36 }
 0x5de   : > { %v9178_v16 = vmax.f32 %v9128_v22, 0.0 }
 0x5df   : > { %v9177_v59 = vmax.f32 %v9123_v55, 0.0  ;;  %v10147_v6 = vpop.f32.mrb[24].mxu1 }
 0x5e0   : > { %v9138_v26 = vadd.f32 %v10147_v6, %v9767_v51  ;;  %v9132_v61 = vpop.f32.mrb[25].mxu1 }
 0x5e1   : > { %v10229_v11 = vpack.c.bf16 %v9178_v16, %v9177_v59  ;;  %v9133_v9 = vadd.f32 %v9767_v51, %v9132_v61 }
 0x5e2   : > { %v9180_v27 = vmax.f32 %v9138_v26, 0.0 }
 0x5e3   : > { %v9179_v34 = vmax.f32 %v9133_v9, 0.0  ;;  %v10150_v42 = vpop.f32.mrb[26].mxu1 }
 0x5e4   : > { %v9148_v44 = vadd.f32 %v10150_v42, %v9767_v51  ;;  %v9142_v40 = vpop.f32.mrb[27].mxu1  ;;  %10227 = vmatpush3.bf16.xpose.msk.msra.mxu1 %vm15122_vm15, %v10225_v37 }
 0x5e5   : > { %v10233_v15 = vpack.c.bf16 %v9180_v27, %v9179_v34  ;;  %v9143_v38 = vadd.f32 %v9767_v51, %v9142_v40  ;;  %10228 = vmatprep.subr.bf16.mxu1 %v10777_v36 }
 0x5e6   : > { %v9182_v52 = vmax.f32 %v9148_v44, 0.0 }
 0x5e7   : > { %v9181_v29 = vmax.f32 %v9143_v38, 0.0  ;;  %v10153_v12 = vpop.f32.mrb[28].mxu1 }
 0x5e8   : > { %v9158_v33 = vadd.f32 %v10153_v12, %v9767_v51  ;;  %v9152_v24 = vpop.f32.mrb[29].mxu1 }
 0x5e9   : > { %v10237_v5 = vpack.c.bf16 %v9182_v52, %v9181_v29  ;;  %v9153_v49 = vadd.f32 %v9767_v51, %v9152_v24 }
 0x5ea   : > { %v9184_v57 = vmax.f32 %v9158_v33, 0.0 }
 0x5eb   : > { %v9183_v28 = vmax.f32 %v9153_v49, 0.0  ;;  %v10156_v47 = vpop.f32.mrb[30].mxu1 }
 0x5ec   : > { %v9168_v8 = vadd.f32 %v10156_v47, %v9767_v51  ;;  %v9162_v21 = vpop.f32.mrb[31].mxu1  ;;  %10231 = vmatpush3.bf16.xpose.msk.msra.mxu1 %vm15122_vm15, %v10229_v11 }
 0x5ed   : > { %v10241_v50 = vpack.c.bf16 %v9184_v57, %v9183_v28  ;;  %v9163_v30 = vadd.f32 %v9767_v51, %v9162_v21  ;;  %10232 = vmatprep.subr.bf16.mxu1 %v10777_v36 }
 0x5ee   : > { %v9186_v56 = vmax.f32 %v9168_v8, 0.0 }
 0x5ef   : > { %v9185_v7 = vmax.f32 %v9163_v30, 0.0 }
 0x5f1   : > { %v10245_v45 = vpack.c.bf16 %v9186_v56, %v9185_v7 }
 0x5f4   : > { %10235 = vmatpush3.bf16.xpose.msk.msra.mxu1 %vm15122_vm15, %v10233_v15 }
 0x5f5   : > { %10236 = vmatprep.subr.bf16.mxu1 %v10777_v36 }
 0x5fc   : > { %10239 = vmatpush3.bf16.xpose.msk.msra.mxu1 %vm15122_vm15, %v10237_v5 }
 0x5fd   : > { %10240 = vmatprep.subr.bf16.mxu1 %v10777_v36 }
 0x604   : > { %10243 = vmatpush3.bf16.xpose.msk.msra.mxu1 %vm15122_vm15, %v10241_v50 }
 0x605   : > { %10244 = vmatprep.subr.bf16.mxu1 %v10777_v36 }
 0x60c   : > { %10247 = vmatpush3.bf16.xpose.msk.msra.mxu1 %vm15122_vm15, %v10245_v45 }
 0x613   : > { %10190 = vmatmul.mubr.msk.f32.vlgmr.msra.gmra.mrb[32].mxu1 %vm8977_vm8, %v9187_v46 }
 0x6e6   : > { %v9305_v43 = vpop.f32.mrb[32].mxu1 }
 0x6e7   : > { %v9801_v53 = vmul.f32 -1.442695, %v9305_v43  ;;  %v10191_v14 = vpop.f32.mrb[33].mxu1 }
 0x6e9   : > { %10638 = vpow2.f32 %v9801_v53 }
 0x6f3   : > { %v10639_v10 = vpop.eup %10638 }
 0x6f4   : > { %v9312_v51 = vadd.f32 1.0, %v10639_v10 }
 0x6f6   : > { %10640 = vrcp.f32 %v9312_v51 }
 0x700   : > { %v10641_v36 = vpop.eup %10640 }
 0x701   : > { %9315 = vst [vmem:[%s423_s17] sm:$0x7] %v10641_v36 }
 0x702   : > { %10714 = shalt.err (!%p10711_p3)
}
 0x703   : > { %s10715_s28 = scalar_lea.hbm %s15158_s20, 64  ;;  %s10719_s19 = scalar_lea.hbm %s15212_s12, 128 }
 0x704   : > { %p10716_p4 = scmp.ne.s32.totalorder %s15158_s20, %s10715_s28  ;;  %p10720_p9 = scmp.lt.u32.totalorder %s15158_s20, %s15212_s12 }
 0x705   : > { %p10721_p10 = scmp.lt.u32.totalorder %s10719_s19, %s10715_s28  ;;  %p10723_p12 = scmp.lt.u32.totalorder %s10715_s28, %s15158_s20 }
 0x706   : > { %p10717_p7 = pnand %p10716_p4, %p10884_p5 }
 0x707   : > { %p10722_p11 = por %p10721_p10, %p10720_p9 }
 0x708   : > { %p10718_p8 = pneg %p10717_p7 }
 0x709   : > { %p10724_p13 = por %p10723_p12, %p10722_p11 }
 0x70b   : > { %p10725_p0 = pnand %p10724_p13, %p10718_p8 }
 0x70d   : > { %10728 = shalt.err (!%p10725_p0)
}
 0x70e   : > { %10456 = dma.vmem_to_hbm [thread:$0]  (%p10884_p5), %s15160_s18, 64, %s15158_s20, %s9317_s26  }
 0x70f PF: > { %p10462_p1 = scmp.ge.s32.totalorder %s10763_s24, 2  ;;  %s9342_s0 = sand.u32 1, %s10751_s21  }
 0x710   : > { %s9343_s1 = scalar_lea.sflag [#allocation3], %s9342_s0 }
 0x711   : > { %p10459_p2 = pnand %p10462_p1, %p10888_p6 }
 0x713   : > { %10746 = dma.done.wait (!%p10459_p2), %s9343_s1, 64  }
 0x714   : > { %10748 = vsyncadd (!%p10459_p2), %s9343_s1, 4294967232  ;;  %p22_p3 = scmp.ge.s32.totalorder %s10871_s27, 4   ;;  %s15963_s21 = smov %s10755_s22 }
 0x715   : > { %s15964_s22 = smov %s10759_s23  ;;  %s15965_s23 = smov %s10882_s30 }
 0x716   : > { %s15966_s24 = smov %s10871_s27  ;;  %24 = sbr.rel (!%p22_p3) target bundleno = 6 (0x6), region = 106 }
 0x71d   :  { %9348 = vsyncpa [#allocation3], 1 }
 0x71e   :  { %9350 = vsyncpa [#allocation3 + $0x1], 1 }

</bundles_post_ra>
